<compile_context>
chip_gen: v7x
topology: tpu7x:2x2x1
jax: 0.10.0
libtpu: 0.0.40
codegen_flags: <defaults>
</compile_context>

<pallas_src>
import functools
import numpy as np
import jax
import jax.numpy as jnp
from jax.experimental import pallas as pl
from jax.experimental.pallas import tpu as pltpu

# bf16 matmul inputs (~2x MXU throughput on v5e/v6e/v7x); accumulation stays f32 via
# preferred_element_type.  Weights are cast ONCE at param-prep, not per call.
MATMUL_DTYPE = jnp.bfloat16
ACT_DTYPE = jnp.bfloat16          # inter-kernel attention activation (halves glue HBM traffic)


# ----------------------------------------------------------------------------
# VMEM budgeting (generation aware: 128 MiB v5e/v6e, 64 MiB v7x)
# ----------------------------------------------------------------------------
@functools.lru_cache(maxsize=None)
def _vmem_capacity():
    try:
        return int(pltpu.get_tpu_info().vmem_capacity_bytes)
    except Exception:
        return 64 << 20            # conservative fallback (v7x physical per-core VMEM)


def _budgets():
    cap = _vmem_capacity()
    limit = min(int(cap * 0.8), 100 << 20)   # scoped VMEM limit we request
    budget = limit // 2                      # per-grid-step working-set target
    return limit, budget


def _pick_window_batch(nW, N, C, num_heads, budget):
    """Largest divisor of nW whose per-step working set fits the VMEM budget."""
    best = 1
    for wb in range(1, nW + 1):
        if nW % wb:
            continue
        M = wb * N
        if M > 8192:
            continue
        io = 2 * 2 * (2 * M * C)                                   # in+out blocks, bf16, dbl-buf
        wgt = 2 * (4 * C * C * 2 + num_heads * N * N * 4 + 3 * C * 4 + wb * N * N * 4)
        inter = 10 * M * C * 4 + 3 * wb * num_heads * N * N * 4
        if io + wgt + inter <= budget:
            best = wb
    return best


def _pick_l_tile(L, C, Hd, lat, num_prompt, budget):
    """Largest divisor of L (multiple of 8, >= num_prompt, <= 4096) fitting the budget."""
    best = None
    for tl in range(1, L + 1):
        if L % tl:
            continue
        if tl < min(num_prompt, L):
            continue
        if (tl % 8) and tl != L:
            continue
        if tl > 4096:
            continue
        io = 2 * (tl * C * 2 + 3 * tl * C * 4)                     # xa bf16 + shortcut/prompt/out f32
        wgt = 2 * (2 * C * Hd * 2 + 2 * C * lat * 2)
        inter = 2 * tl * Hd * 4 + 6 * tl * C * 4
        if io + wgt + inter <= budget:
            best = tl
    if best is None:
        best = L   # TODO(synk): also tile Hd of the MLP if this still overflows VMEM
    return best


# ----------------------------------------------------------------------------
# small in-kernel helpers
# ----------------------------------------------------------------------------
def _layernorm(x, g, b, eps=1e-5):
    mean = jnp.mean(x, axis=-1, keepdims=True)
    xc = x - mean
    var = jnp.mean(xc * xc, axis=-1, keepdims=True)
    return xc * jax.lax.rsqrt(var + eps) * g + b


def _gelu_tanh(x):
    # tanh-approx GELU: transcendental goes to the EUP slot (free vs VALU), ~1e-3 drift
    # from torch's exact erf GELU.
    c = 0.7978845608028654
    return 0.5 * x * (1.0 + jnp.tanh(c * (x + 0.044715 * x * x * x)))


# ----------------------------------------------------------------------------
# Pallas kernels
# ----------------------------------------------------------------------------
def _ln_window_attn_kernel(x_ref, g_ref, beta_ref, wqkv_ref, bqkv_ref, wo_ref, bo_ref,
                           bias_ref, *rest, num_heads, has_mask):
    if has_mask:
        mask_ref, o_ref = rest
    else:
        (o_ref,) = rest
        mask_ref = None

    x = x_ref[0]                                         # (Wb, N, C) bf16
    Wb, N, C = x.shape
    hd = C // num_heads

    # ---- LayerNorm1 on the flat (Wb*N, C) token slab (f32 statistics) ----
    xf = x.reshape(Wb * N, C).astype(jnp.float32)
    xn = _layernorm(xf, g_ref[...], beta_ref[...]).astype(MATMUL_DTYPE)

    # ---- Q/K/V: three lane-aligned (C,C) matmuls (scale pre-folded into Wq/bq) ----
    q = jnp.dot(xn, wqkv_ref[0], preferred_element_type=jnp.float32) + bqkv_ref[0]
    k = jnp.dot(xn, wqkv_ref[1], preferred_element_type=jnp.float32) + bqkv_ref[1]
    v = jnp.dot(xn, wqkv_ref[2], preferred_element_type=jnp.float32) + bqkv_ref[2]

    def heads(t):                                        # (Wb*N, C) -> (Wb*nh, N, hd)
        t = t.astype(MATMUL_DTYPE).reshape(Wb, N, num_heads, hd)
        t = jnp.transpose(t, (0, 2, 1, 3))
        return t.reshape(Wb * num_heads, N, hd)

    qh, kh, vh = heads(q), heads(k), heads(v)

    # ---- one head-batched score matmul + softmax + context matmul ----
    s = jax.lax.dot_general(qh, kh, (((2,), (2,)), ((0,), (0,))),
                            preferred_element_type=jnp.float32)     # (Wb*nh, N, N)
    s = s.reshape(Wb, num_heads, N, N) + bias_ref[...]               # relative pos. bias
    if has_mask:
        s = s + mask_ref[...].reshape(Wb, 1, N, N)                   # shift mask
    s = s - jnp.max(s, axis=-1, keepdims=True)
    p = jnp.exp(s)
    p = p / jnp.sum(p, axis=-1, keepdims=True)
    p = p.reshape(Wb * num_heads, N, N).astype(MATMUL_DTYPE)

    ctx = jax.lax.dot_general(p, vh, (((2,), (1,)), ((0,), (0,))),
                              preferred_element_type=jnp.float32)    # (Wb*nh, N, hd)
    ctx = ctx.astype(MATMUL_DTYPE).reshape(Wb, num_heads, N, hd)
    ctx = jnp.transpose(ctx, (0, 2, 1, 3)).reshape(Wb * N, C)

    # ---- single output projection on concatenated heads, lane-dense store ----
    out = jnp.dot(ctx, wo_ref[...], preferred_element_type=jnp.float32) + bo_ref[...]
    o_ref[0] = out.reshape(Wb, N, C).astype(o_ref.dtype)


def _prompt_attn_kernel(xa_ref, prompt_ref, o_ref, *, prompt_scale):
    xa = xa_ref[0]                                       # (L, C) bf16
    pr = prompt_ref[...]                                 # (num, C) bf16
    num = pr.shape[0]
    a = jax.lax.dot_general(pr, xa, (((1,), (1,)), ((), ())),
                            preferred_element_type=jnp.float32) * prompt_scale   # (num, L)
    a = a - jnp.max(a, axis=-1, keepdims=True)
    e = jnp.exp(a)
    p = (e / jnp.sum(e, axis=-1, keepdims=True)).astype(MATMUL_DTYPE)
    out = jnp.dot(p, xa, preferred_element_type=jnp.float32)         # (num, C)
    # emit zero-padded (TL, C) block; rows [0, num) carry prompt_out
    o_ref[...] = jnp.zeros(o_ref.shape, jnp.float32)
    o_ref[0, 0:num, :] = out


def _block_epilogue_kernel(xa_ref, sc_ref, prompt_ref, g2_ref, beta2_ref,
                           w1_ref, b1_ref, w2_ref, b2m_ref,
                           wd_ref, bd_ref, wu_ref, bu_ref, gate_ref, o_ref):
    xa = xa_ref[0].astype(jnp.float32)                   # (TL, C) attention output
    # prompt residual only lands on the first L-tile (rows [0, num_prompt))
    first = (pl.program_id(1) == 0).astype(jnp.float32)
    x1 = sc_ref[0].astype(jnp.float32) + xa + first * prompt_ref[0]

    # ---- LayerNorm2 + MLP (tanh GELU) ----
    xn = _layernorm(x1, g2_ref[...], beta2_ref[...]).astype(MATMUL_DTYPE)
    h = jnp.dot(xn, w1_ref[...], preferred_element_type=jnp.float32) + b1_ref[...]
    h = _gelu_tanh(h).astype(MATMUL_DTYPE)
    mlp_out = jnp.dot(h, w2_ref[...], preferred_element_type=jnp.float32) + b2m_ref[...]

    # ---- share_MLP (QuickGELU, gated) on the residual stream x1 ----
    x1m = x1.astype(MATMUL_DTYPE)
    s = jnp.dot(x1m, wd_ref[...], preferred_element_type=jnp.float32) + bd_ref[...]
    s = (s * jax.nn.sigmoid(1.702 * s)).astype(MATMUL_DTYPE)
    share = (jnp.dot(s, wu_ref[...], preferred_element_type=jnp.float32)
             + bu_ref[...]) * gate_ref[0]

    o_ref[0] = (x1 + mlp_out + share).astype(o_ref.dtype)


# ----------------------------------------------------------------------------
# Pallas wrappers
# ----------------------------------------------------------------------------
def window_attention_fused(xw, ln_g, ln_b, wqkv, bqkv, wo, bo, rel_bias, mask, num_heads):
    B, nW, N, C = xw.shape
    limit, budget = _budgets()
    Wb = _pick_window_batch(nW, N, C, num_heads, budget)
    has_mask = mask is not None

    in_specs = [
        pl.BlockSpec((1, Wb, N, C), lambda b, w: (b, w, 0, 0)),
        pl.BlockSpec((1, C), lambda b, w: (0, 0)),
        pl.BlockSpec((1, C), lambda b, w: (0, 0)),
        pl.BlockSpec((3, C, C), lambda b, w: (0, 0, 0)),
        pl.BlockSpec((3, 1, C), lambda b, w: (0, 0, 0)),
        pl.BlockSpec((C, C), lambda b, w: (0, 0)),
        pl.BlockSpec((1, C), lambda b, w: (0, 0)),
        pl.BlockSpec((num_heads, N, N), lambda b, w: (0, 0, 0)),
    ]
    args = [xw, ln_g, ln_b, wqkv, bqkv, wo, bo, rel_bias]
    if has_mask:
        in_specs.append(pl.BlockSpec((Wb, N, N), lambda b, w: (w, 0, 0)))
        args.append(mask)

    kern = functools.partial(_ln_window_attn_kernel, num_heads=num_heads, has_mask=has_mask)
    return pl.pallas_call(
        kern,
        out_shape=jax.ShapeDtypeStruct((B, nW, N, C), ACT_DTYPE),
        grid=(B, nW // Wb),
        in_specs=in_specs,
        out_specs=pl.BlockSpec((1, Wb, N, C), lambda b, w: (b, w, 0, 0)),
        compiler_params=pltpu.CompilerParams(
            dimension_semantics=("parallel", "parallel"),
            vmem_limit_bytes=limit),
    )(*args)


def prompt_attention(xa, prompt, tl, prompt_scale):
    B, L, C = xa.shape
    num = prompt.shape[0]
    limit, _ = _budgets()
    kern = functools.partial(_prompt_attn_kernel, prompt_scale=prompt_scale)
    return pl.pallas_call(
        kern,
        out_shape=jax.ShapeDtypeStruct((B, tl, C), jnp.float32),
        grid=(B,),
        in_specs=[pl.BlockSpec((1, L, C), lambda b: (b, 0, 0)),
                  pl.BlockSpec((num, C), lambda b: (0, 0))],
        out_specs=pl.BlockSpec((1, tl, C), lambda b: (b, 0, 0)),
        compiler_params=pltpu.CompilerParams(
            dimension_semantics=("parallel",), vmem_limit_bytes=limit),
    )(xa, prompt)


def block_epilogue(xa, shortcut, prompt_pad, g2, b2, w1, b1, w2, b2m,
                   wd, bd, wu, bu, gate, tl):
    B, L, C = xa.shape
    Hd = w1.shape[1]
    lat = wd.shape[1]
    limit, _ = _budgets()
    return pl.pallas_call(
        _block_epilogue_kernel,
        out_shape=jax.ShapeDtypeStruct((B, L, C), shortcut.dtype),
        grid=(B, L // tl),
        in_specs=[pl.BlockSpec((1, tl, C), lambda b, l: (b, l, 0)),
                  pl.BlockSpec((1, tl, C), lambda b, l: (b, l, 0)),
                  pl.BlockSpec((1, tl, C), lambda b, l: (b, 0, 0)),
                  pl.BlockSpec((1, C), lambda b, l: (0, 0)),
                  pl.BlockSpec((1, C), lambda b, l: (0, 0)),
                  pl.BlockSpec((C, Hd), lambda b, l: (0, 0)),
                  pl.BlockSpec((1, Hd), lambda b, l: (0, 0)),
                  pl.BlockSpec((Hd, C), lambda b, l: (0, 0)),
                  pl.BlockSpec((1, C), lambda b, l: (0, 0)),
                  pl.BlockSpec((C, lat), lambda b, l: (0, 0)),
                  pl.BlockSpec((1, lat), lambda b, l: (0, 0)),
                  pl.BlockSpec((lat, C), lambda b, l: (0, 0)),
                  pl.BlockSpec((1, C), lambda b, l: (0, 0)),
                  pl.BlockSpec(memory_space=pltpu.MemorySpace.SMEM)],   # scalar gate
        out_specs=pl.BlockSpec((1, tl, C), lambda b, l: (b, l, 0)),
        compiler_params=pltpu.CompilerParams(
            dimension_semantics=("parallel", "parallel"),
            vmem_limit_bytes=limit),
    )(xa, shortcut, prompt_pad, g2, b2, w1, b1, w2, b2m, wd, bd, wu, bu, gate)


# ----------------------------------------------------------------------------
# Glue (reshapes / rolls / window (un)partition / cached constant buffers)
# ----------------------------------------------------------------------------
def window_partition_seq(x, ws):                         # (B,H,W,C) -> (B, nW, ws*ws, C)
    B, H, W, C = x.shape
    x = x.reshape(B, H // ws, ws, W // ws, ws, C)
    x = x.transpose(0, 1, 3, 2, 4, 5)
    return x.reshape(B, (H // ws) * (W // ws), ws * ws, C)


def window_reverse_seq(xw, ws, H, W):                    # (B, nW, ws*ws, C) -> (B,H,W,C)
    B = xw.shape[0]
    C = xw.shape[-1]
    x = xw.reshape(B, H // ws, W // ws, ws, ws, C)
    x = x.transpose(0, 1, 3, 2, 4, 5)
    return x.reshape(B, H, W, C)


@functools.lru_cache(maxsize=None)
def compute_rel_index(ws):
    coords = np.stack(np.meshgrid(np.arange(ws), np.arange(ws), indexing="ij"))
    cf = coords.reshape(2, -1)
    rel = cf[:, :, None] - cf[:, None, :]
    rel = rel.transpose(1, 2, 0).astype(np.int64)
    rel[:, :, 0] += ws - 1
    rel[:, :, 1] += ws - 1
    rel[:, :, 0] *= 2 * ws - 1
    return rel.sum(-1)                                   # (N, N) numpy, cached


@functools.lru_cache(maxsize=None)
def compute_attn_mask(H, W, ws, shift):
    img = np.zeros((1, H, W, 1), np.float32)
    slices = (slice(0, -ws), slice(-ws, -shift), slice(-shift, None))
    cnt = 0
    for hs in slices:
        for wsl in slices:
            img[:, hs, wsl, :] = cnt
            cnt += 1
    mw = img.reshape(1, H // ws, ws, W // ws, ws, 1).transpose(0, 1, 3, 2, 4, 5)
    mw = mw.reshape(-1, ws * ws)
    am = mw[:, None, :] - mw[:, :, None]
    am = np.where(am != 0, -100.0, 0.0).astype(np.float32)
    return jnp.asarray(am)                               # (nW, N, N), cached


def swin_block_forward(x, p, share, input_resolution, window_size, shift,
                       num_heads, num_prompt):
    H, W = input_resolution
    B, L, C = x.shape
    if min(H, W) <= window_size:                         # same rule as the module
        window_size = min(H, W)
        shift = 0
    ws = window_size
    N = ws * ws

    shortcut = x                                          # f32 residual stream
    xr = x.astype(ACT_DTYPE).reshape(B, H, W, C)
    if shift > 0:
        xr = jnp.roll(xr, (-shift, -shift), axis=(1, 2))
    xw = window_partition_seq(xr, ws)                     # (B, nW, N, C) bf16 (LN1 fused)

    rel_index = compute_rel_index(ws)
    rel_bias = p["rel_table"][rel_index.reshape(-1)]
    rel_bias = rel_bias.reshape(N, N, num_heads).transpose(2, 0, 1)   # (nH, N, N)
    mask = compute_attn_mask(H, W, ws, shift) if shift > 0 else None

    attn_w = window_attention_fused(xw, p["ln1_g"], p["ln1_b"], p["wqkv"], p["bqkv"],
                                    p["wo"], p["bo"], rel_bias, mask, num_heads)

    xs = window_reverse_seq(attn_w, ws, H, W)
    if shift > 0:
        xs = jnp.roll(xs, (shift, shift), axis=(1, 2))
    xa = xs.reshape(B, L, C)                              # bf16 attention output

    Hd = p["w1"].shape[1]
    lat = share["wd"].shape[1]
    _, budget = _budgets()
    tl = _pick_l_tile(L, C, Hd, lat, num_prompt, budget)

    # tiny full-L softmax pass -> (B, tl, C) zero-padded prompt residual
    prompt_pad = prompt_attention(xa, p["prompt"], tl, C ** -0.5)

    # fused: residuals + LN2 + MLP + share_MLP, tiled over (B, L//tl)
    return block_epilogue(xa, shortcut, prompt_pad, p["ln2_g"], p["ln2_b"],
                          p["w1"], p["b1"], p["w2"], p["b2"],
                          share["wd"], share["bd"], share["wu"], share["bu"],
                          share["gate"], tl)


def basic_layer_forward(x, params, input_resolution, window_size, num_heads,
                        num_prompt=10):
    for i, blk in enumerate(params["blocks"]):
        shift = 0 if i % 2 == 0 else window_size // 2
        x = swin_block_forward(x, blk, params["shares"][i // 3], input_resolution,
                               window_size, shift, num_heads, num_prompt)
    # downsample=None in this configuration
    return x


# ----------------------------------------------------------------------------
# Deterministic parameter init (shapes follow the PyTorch __init__) + one-time prep
# ----------------------------------------------------------------------------
def init_basic_layer(key, dim, depth, num_heads, window_size, mlp_ratio=4.0,
                     num_prompt=10, latent=10):
    hidden = int(dim * mlp_ratio)
    n_bias = (2 * window_size - 1) ** 2
    keys = iter(jax.random.split(key, depth * 20 + 20))

    def nrm(shape, std=0.02):
        return (std * jax.random.normal(next(keys), shape)).astype(jnp.float32)

    blocks, shares = [], []
    for i in range(depth):
        if i % 3 == 0:
            shares.append(dict(
                wd=nrm((dim, latent)), bd=nrm((latent,)),
                wu=nrm((latent, dim)), bu=nrm((dim,)),
                gate=nrm((1,))))  # torch inits gate=0; random here to exercise the path
        blocks.append(dict(
            ln1_g=jnp.ones((dim,), jnp.float32), ln1_b=jnp.zeros((dim,), jnp.float32),
            wqkv=nrm((dim, 3 * dim)), bqkv=nrm((3 * dim,)),     # packed QKV (C, 3C)
            wo=nrm((dim, dim)), bo=nrm((dim,)),
            rel_table=nrm((n_bias, num_heads)),
            ln2_g=jnp.ones((dim,), jnp.float32), ln2_b=jnp.zeros((dim,), jnp.float32),
            w1=nrm((dim, hidden)), b1=nrm((hidden,)),
            w2=nrm((hidden, dim)), b2=nrm((dim,)),
            prompt=nrm((num_prompt, dim))))
    return dict(blocks=blocks, shares=shares)


def prepare_basic_layer_params(params, dim, num_heads):
    """One-time prep: split packed QKV into (3,C,C) lane-aligned weights, fold the
    attention scale into Wq/bq, cast all matmul weights to MATMUL_DTYPE (bf16)."""
    C = dim
    scale = (C // num_heads) ** -0.5
    out = {"blocks": [], "shares": []}
    for sh in params["shares"]:
        out["shares"].append(dict(
            wd=sh["wd"].astype(MATMUL_DTYPE), bd=sh["bd"].reshape(1, -1),
            wu=sh["wu"].astype(MATMUL_DTYPE), bu=sh["bu"].reshape(1, -1),
            gate=sh["gate"].reshape(1)))
    for blk in params["blocks"]:
        wqkv = blk["wqkv"].reshape(C, 3, C).transpose(1, 0, 2)      # (3, C, C): [q, k, v]
        bqkv = blk["bqkv"].reshape(3, 1, C)
        wqkv = wqkv.at[0].multiply(scale)                           # fold attention scale
        bqkv = bqkv.at[0].multiply(scale)
        Hd = blk["w1"].shape[1]
        out["blocks"].append(dict(
            ln1_g=blk["ln1_g"].reshape(1, C), ln1_b=blk["ln1_b"].reshape(1, C),
            wqkv=wqkv.astype(MATMUL_DTYPE), bqkv=bqkv,
            wo=blk["wo"].astype(MATMUL_DTYPE), bo=blk["bo"].reshape(1, C),
            rel_table=blk["rel_table"],
            ln2_g=blk["ln2_g"].reshape(1, C), ln2_b=blk["ln2_b"].reshape(1, C),
            w1=blk["w1"].astype(MATMUL_DTYPE), b1=blk["b1"].reshape(1, Hd),
            w2=blk["w2"].astype(MATMUL_DTYPE), b2=blk["b2"].reshape(1, C),
            prompt=blk["prompt"].astype(MATMUL_DTYPE)))
    return out


# ----------------------------------------------------------------------------
if __name__ == "__main__":
    B, H, W, dim = 2, 8, 8, 32
    depth, num_heads, window_size = 2, 2, 4

    key = jax.random.PRNGKey(0)
    kx, kp = jax.random.split(key)
    x = jax.random.normal(kx, (B, H * W, dim), jnp.float32)
    params = prepare_basic_layer_params(
        init_basic_layer(kp, dim, depth, num_heads, window_size), dim, num_heads)

    fwd = jax.jit(functools.partial(basic_layer_forward,
                                    input_resolution=(H, W),
                                    window_size=window_size,
                                    num_heads=num_heads))
    out = jax.block_until_ready(fwd(x, params))
    assert out.shape == (B, H * W, dim)
    assert bool(jnp.all(jnp.isfinite(out)))
    print("KERNEL_OK")
</pallas_src>

<mosaic_0001>
module attributes {stable_mosaic.version = 11 : i64} {
  func.func @_ln_window_attn_kernel(%arg0: i32, %arg1: i32, %arg2: memref<1x4x16x32xbf16, #tpu.memory_space<vmem>>, %arg3: memref<1x32xf32, #tpu.memory_space<vmem>>, %arg4: memref<1x32xf32, #tpu.memory_space<vmem>>, %arg5: memref<3x32x32xbf16, #tpu.memory_space<vmem>>, %arg6: memref<3x1x32xf32, #tpu.memory_space<vmem>>, %arg7: memref<32x32xbf16, #tpu.memory_space<vmem>>, %arg8: memref<1x32xf32, #tpu.memory_space<vmem>>, %arg9: memref<2x16x16xf32, #tpu.memory_space<vmem>>, %arg10: memref<1x4x16x32xbf16, #tpu.memory_space<vmem>>) attributes {dimension_semantics = [#tpu.dimension_semantics<parallel>, #tpu.dimension_semantics<parallel>], iteration_bounds = array<i64: 2, 1>, scalar_prefetch = 0 : i64, scratch_operands = 0 : i64, tpu.core_type = #tpu.core_type<tc>, window_params = [{transform_indices = @transform_0, window_bounds = array<i64: 1, 4, 16, 32>}, {pipeline_mode = #tpu.pipeline_mode<synchronous>, transform_indices = @transform_1, window_bounds = array<i64: 1, 32>}, {pipeline_mode = #tpu.pipeline_mode<synchronous>, transform_indices = @transform_2, window_bounds = array<i64: 1, 32>}, {pipeline_mode = #tpu.pipeline_mode<synchronous>, transform_indices = @transform_3, window_bounds = array<i64: 3, 32, 32>}, {pipeline_mode = #tpu.pipeline_mode<synchronous>, transform_indices = @transform_4, window_bounds = array<i64: 3, 1, 32>}, {pipeline_mode = #tpu.pipeline_mode<synchronous>, transform_indices = @transform_5, window_bounds = array<i64: 32, 32>}, {pipeline_mode = #tpu.pipeline_mode<synchronous>, transform_indices = @transform_6, window_bounds = array<i64: 1, 32>}, {pipeline_mode = #tpu.pipeline_mode<synchronous>, transform_indices = @transform_7, window_bounds = array<i64: 2, 16, 16>}, {transform_indices = @transform_8, window_bounds = array<i64: 1, 4, 16, 32>}]} {
    %c0 = arith.constant 0 : index
    %c0_0 = arith.constant 0 : index
    %c0_1 = arith.constant 0 : index
    %c0_2 = arith.constant 0 : index
    %0 = vector.load %arg2[%c0, %c0_0, %c0_1, %c0_2] : memref<1x4x16x32xbf16, #tpu.memory_space<vmem>>, vector<1x4x16x32xbf16>
    %1 = vector.shape_cast %0 : vector<1x4x16x32xbf16> to vector<4x16x32xbf16>
    %2 = vector.shape_cast %1 : vector<4x16x32xbf16> to vector<64x32xbf16>
    %3 = arith.extf %2 : vector<64x32xbf16> to vector<64x32xf32>
    %c0_3 = arith.constant 0 : index
    %c0_4 = arith.constant 0 : index
    %4 = vector.load %arg3[%c0_3, %c0_4] : memref<1x32xf32, #tpu.memory_space<vmem>>, vector<1x32xf32>
    %c0_5 = arith.constant 0 : index
    %c0_6 = arith.constant 0 : index
    %5 = vector.load %arg4[%c0_5, %c0_6] : memref<1x32xf32, #tpu.memory_space<vmem>>, vector<1x32xf32>
    %cst = arith.constant dense<0.000000e+00> : vector<64xf32>
    %6 = vector.multi_reduction <add>, %3, %cst [1] : vector<64x32xf32> to vector<64xf32>
    %7 = vector.shape_cast %6 : vector<64xf32> to vector<64x1xf32>
    %cst_7 = arith.constant 3.200000e+01 : f32
    %8 = vector.broadcast %cst_7 : f32 to vector<64x1xf32>
    %9 = arith.divf %7, %8 : vector<64x1xf32>
    %10 = vector.broadcast %9 : vector<64x1xf32> to vector<64x32xf32>
    %11 = arith.subf %3, %10 : vector<64x32xf32>
    %12 = arith.mulf %11, %11 : vector<64x32xf32>
    %cst_8 = arith.constant dense<0.000000e+00> : vector<64xf32>
    %13 = vector.multi_reduction <add>, %12, %cst_8 [1] : vector<64x32xf32> to vector<64xf32>
    %14 = vector.shape_cast %13 : vector<64xf32> to vector<64x1xf32>
    %cst_9 = arith.constant 3.200000e+01 : f32
    %15 = vector.broadcast %cst_9 : f32 to vector<64x1xf32>
    %16 = arith.divf %14, %15 : vector<64x1xf32>
    %cst_10 = arith.constant 9.99999974E-6 : f32
    %17 = vector.broadcast %cst_10 : f32 to vector<64x1xf32>
    %18 = arith.addf %16, %17 : vector<64x1xf32>
    %19 = math.rsqrt %18 : vector<64x1xf32>
    %20 = vector.broadcast %19 : vector<64x1xf32> to vector<64x32xf32>
    %21 = arith.mulf %11, %20 : vector<64x32xf32>
    %22 = vector.broadcast %4 : vector<1x32xf32> to vector<64x32xf32>
    %23 = arith.mulf %21, %22 : vector<64x32xf32>
    %24 = vector.broadcast %5 : vector<1x32xf32> to vector<64x32xf32>
    %25 = arith.addf %23, %24 : vector<64x32xf32>
    %26 = arith.truncf %25 : vector<64x32xf32> to vector<64x32xbf16>
    %c0_11 = arith.constant 0 : index
    %c0_12 = arith.constant 0 : index
    %c0_13 = arith.constant 0 : index
    %27 = vector.load %arg5[%c0_11, %c0_12, %c0_13] : memref<3x32x32xbf16, #tpu.memory_space<vmem>>, vector<1x32x32xbf16>
    %28 = vector.shape_cast %27 : vector<1x32x32xbf16> to vector<32x32xbf16>
    %cst_14 = arith.constant dense<0.000000e+00> : vector<64x32xf32>
    %29 = tpu.matmul %26, %28, %cst_14 {dimension_numbers = #tpu.dot_dimension_numbers<[1], [0], [0], [1], [0, 0, 1, 1], [], []>} : vector<64x32xbf16>, vector<32x32xbf16>, vector<64x32xf32> -> vector<64x32xf32>
    %c0_15 = arith.constant 0 : index
    %c0_16 = arith.constant 0 : index
    %c0_17 = arith.constant 0 : index
    %30 = vector.load %arg6[%c0_15, %c0_16, %c0_17] : memref<3x1x32xf32, #tpu.memory_space<vmem>>, vector<1x1x32xf32>
    %31 = vector.shape_cast %30 : vector<1x1x32xf32> to vector<1x32xf32>
    %32 = vector.broadcast %31 : vector<1x32xf32> to vector<64x32xf32>
    %33 = arith.addf %29, %32 : vector<64x32xf32>
    %c1 = arith.constant 1 : index
    %c0_18 = arith.constant 0 : index
    %c0_19 = arith.constant 0 : index
    %34 = vector.load %arg5[%c1, %c0_18, %c0_19] : memref<3x32x32xbf16, #tpu.memory_space<vmem>>, vector<1x32x32xbf16>
    %35 = vector.shape_cast %34 : vector<1x32x32xbf16> to vector<32x32xbf16>
    %cst_20 = arith.constant dense<0.000000e+00> : vector<64x32xf32>
    %36 = tpu.matmul %26, %35, %cst_20 {dimension_numbers = #tpu.dot_dimension_numbers<[1], [0], [0], [1], [0, 0, 1, 1], [], []>} : vector<64x32xbf16>, vector<32x32xbf16>, vector<64x32xf32> -> vector<64x32xf32>
    %c1_21 = arith.constant 1 : index
    %c0_22 = arith.constant 0 : index
    %c0_23 = arith.constant 0 : index
    %37 = vector.load %arg6[%c1_21, %c0_22, %c0_23] : memref<3x1x32xf32, #tpu.memory_space<vmem>>, vector<1x1x32xf32>
    %38 = vector.shape_cast %37 : vector<1x1x32xf32> to vector<1x32xf32>
    %39 = vector.broadcast %38 : vector<1x32xf32> to vector<64x32xf32>
    %40 = arith.addf %36, %39 : vector<64x32xf32>
    %c2 = arith.constant 2 : index
    %c0_24 = arith.constant 0 : index
    %c0_25 = arith.constant 0 : index
    %41 = vector.load %arg5[%c2, %c0_24, %c0_25] : memref<3x32x32xbf16, #tpu.memory_space<vmem>>, vector<1x32x32xbf16>
    %42 = vector.shape_cast %41 : vector<1x32x32xbf16> to vector<32x32xbf16>
    %cst_26 = arith.constant dense<0.000000e+00> : vector<64x32xf32>
    %43 = tpu.matmul %26, %42, %cst_26 {dimension_numbers = #tpu.dot_dimension_numbers<[1], [0], [0], [1], [0, 0, 1, 1], [], []>} : vector<64x32xbf16>, vector<32x32xbf16>, vector<64x32xf32> -> vector<64x32xf32>
    %c2_27 = arith.constant 2 : index
    %c0_28 = arith.constant 0 : index
    %c0_29 = arith.constant 0 : index
    %44 = vector.load %arg6[%c2_27, %c0_28, %c0_29] : memref<3x1x32xf32, #tpu.memory_space<vmem>>, vector<1x1x32xf32>
    %45 = vector.shape_cast %44 : vector<1x1x32xf32> to vector<1x32xf32>
    %46 = vector.broadcast %45 : vector<1x32xf32> to vector<64x32xf32>
    %47 = arith.addf %43, %46 : vector<64x32xf32>
    %48 = arith.truncf %33 : vector<64x32xf32> to vector<64x32xbf16>
    %49 = vector.shape_cast %48 : vector<64x32xbf16> to vector<4x16x2x16xbf16>
    %50 = tpu.transpose %49, [0, 2, 1, 3] : vector<4x16x2x16xbf16> -> vector<4x2x16x16xbf16>
    %51 = vector.shape_cast %50 : vector<4x2x16x16xbf16> to vector<8x16x16xbf16>
    %52 = arith.truncf %40 : vector<64x32xf32> to vector<64x32xbf16>
    %53 = vector.shape_cast %52 : vector<64x32xbf16> to vector<4x16x2x16xbf16>
    %54 = tpu.transpose %53, [0, 2, 1, 3] : vector<4x16x2x16xbf16> -> vector<4x2x16x16xbf16>
    %55 = vector.shape_cast %54 : vector<4x2x16x16xbf16> to vector<8x16x16xbf16>
    %56 = arith.truncf %47 : vector<64x32xf32> to vector<64x32xbf16>
    %57 = vector.shape_cast %56 : vector<64x32xbf16> to vector<4x16x2x16xbf16>
    %58 = tpu.transpose %57, [0, 2, 1, 3] : vector<4x16x2x16xbf16> -> vector<4x2x16x16xbf16>
    %59 = vector.shape_cast %58 : vector<4x2x16x16xbf16> to vector<8x16x16xbf16>
    %cst_30 = arith.constant dense<0.000000e+00> : vector<8x16x16xf32>
    %60 = tpu.matmul %51, %55, %cst_30 {dimension_numbers = #tpu.dot_dimension_numbers<[2], [2], [1], [1], [0, 0, 0, 1, 1, 1], [0], [0]>} : vector<8x16x16xbf16>, vector<8x16x16xbf16>, vector<8x16x16xf32> -> vector<8x16x16xf32>
    %61 = vector.shape_cast %60 : vector<8x16x16xf32> to vector<4x2x16x16xf32>
    %c0_31 = arith.constant 0 : index
    %c0_32 = arith.constant 0 : index
    %c0_33 = arith.constant 0 : index
    %62 = vector.load %arg9[%c0_31, %c0_32, %c0_33] : memref<2x16x16xf32, #tpu.memory_space<vmem>>, vector<2x16x16xf32>
    %63 = vector.shape_cast %62 : vector<2x16x16xf32> to vector<1x2x16x16xf32>
    %64 = vector.broadcast %63 : vector<1x2x16x16xf32> to vector<4x2x16x16xf32>
    %65 = arith.addf %61, %64 : vector<4x2x16x16xf32>
    %cst_34 = arith.constant dense<0xFF800000> : vector<4x2x16xf32>
    %66 = vector.multi_reduction <maximumf>, %65, %cst_34 [3] : vector<4x2x16x16xf32> to vector<4x2x16xf32>
    %67 = vector.shape_cast %66 : vector<4x2x16xf32> to vector<4x2x16x1xf32>
    %68 = vector.broadcast %67 : vector<4x2x16x1xf32> to vector<4x2x16x16xf32>
    %69 = arith.subf %65, %68 : vector<4x2x16x16xf32>
    %70 = math.exp %69 : vector<4x2x16x16xf32>
    %cst_35 = arith.constant dense<0.000000e+00> : vector<4x2x16xf32>
    %71 = vector.multi_reduction <add>, %70, %cst_35 [3] : vector<4x2x16x16xf32> to vector<4x2x16xf32>
    %72 = vector.shape_cast %71 : vector<4x2x16xf32> to vector<4x2x16x1xf32>
    %73 = vector.broadcast %72 : vector<4x2x16x1xf32> to vector<4x2x16x16xf32>
    %74 = arith.divf %70, %73 : vector<4x2x16x16xf32>
    %75 = vector.shape_cast %74 : vector<4x2x16x16xf32> to vector<8x16x16xf32>
    %76 = arith.truncf %75 : vector<8x16x16xf32> to vector<8x16x16xbf16>
    %cst_36 = arith.constant dense<0.000000e+00> : vector<8x16x16xf32>
    %77 = tpu.matmul %76, %59, %cst_36 {dimension_numbers = #tpu.dot_dimension_numbers<[2], [1], [1], [2], [0, 0, 0, 1, 1, 2], [0], [0]>} : vector<8x16x16xbf16>, vector<8x16x16xbf16>, vector<8x16x16xf32> -> vector<8x16x16xf32>
    %78 = arith.truncf %77 : vector<8x16x16xf32> to vector<8x16x16xbf16>
    %79 = vector.shape_cast %78 : vector<8x16x16xbf16> to vector<4x2x16x16xbf16>
    %80 = tpu.transpose %79, [0, 2, 1, 3] : vector<4x2x16x16xbf16> -> vector<4x16x2x16xbf16>
    %81 = vector.shape_cast %80 : vector<4x16x2x16xbf16> to vector<64x32xbf16>
    %c0_37 = arith.constant 0 : index
    %c0_38 = arith.constant 0 : index
    %82 = vector.load %arg7[%c0_37, %c0_38] : memref<32x32xbf16, #tpu.memory_space<vmem>>, vector<32x32xbf16>
    %cst_39 = arith.constant dense<0.000000e+00> : vector<64x32xf32>
    %83 = tpu.matmul %81, %82, %cst_39 {dimension_numbers = #tpu.dot_dimension_numbers<[1], [0], [0], [1], [0, 0, 1, 1], [], []>} : vector<64x32xbf16>, vector<32x32xbf16>, vector<64x32xf32> -> vector<64x32xf32>
    %c0_40 = arith.constant 0 : index
    %c0_41 = arith.constant 0 : index
    %84 = vector.load %arg8[%c0_40, %c0_41] : memref<1x32xf32, #tpu.memory_space<vmem>>, vector<1x32xf32>
    %85 = vector.broadcast %84 : vector<1x32xf32> to vector<64x32xf32>
    %86 = arith.addf %83, %85 : vector<64x32xf32>
    %87 = vector.shape_cast %86 : vector<64x32xf32> to vector<4x16x32xf32>
    %88 = arith.truncf %87 : vector<4x16x32xf32> to vector<4x16x32xbf16>
    %c0_42 = arith.constant 0 : index
    %c0_43 = arith.constant 0 : index
    %c0_44 = arith.constant 0 : index
    %c0_45 = arith.constant 0 : index
    %89 = vector.load %arg10[%c0_42, %c0_43, %c0_44, %c0_45] : memref<1x4x16x32xbf16, #tpu.memory_space<vmem>>, vector<1x4x16x32xbf16>
    %90 = vector.shape_cast %89 : vector<1x4x16x32xbf16> to vector<4x16x32xbf16>
    %91 = vector.shape_cast %88 : vector<4x16x32xbf16> to vector<1x4x16x32xbf16>
    tpu.vector_store %arg10[%c0_42, %c0_43, %c0_44, %c0_45], %91 {strides = array<i32>} : memref<1x4x16x32xbf16, #tpu.memory_space<vmem>>, vector<1x4x16x32xbf16>,
    return
  }
  func.func @transform_0(%arg0: i32, %arg1: i32) -> (i32, i32, i32, i32) {
    %c0_i32 = arith.constant 0 : i32
    %c0_i32_0 = arith.constant 0 : i32
    %c0_i32_1 = arith.constant 0 : i32
    return %arg0, %arg1, %c0_i32, %c0_i32_0 : i32, i32, i32, i32
  }
  func.func @transform_1(%arg0: i32, %arg1: i32) -> (i32, i32) {
    %c0_i32 = arith.constant 0 : i32
    %c0_i32_0 = arith.constant 0 : i32
    %c0_i32_1 = arith.constant 0 : i32
    return %c0_i32, %c0_i32_0 : i32, i32
  }
  func.func @transform_2(%arg0: i32, %arg1: i32) -> (i32, i32) {
    %c0_i32 = arith.constant 0 : i32
    %c0_i32_0 = arith.constant 0 : i32
    %c0_i32_1 = arith.constant 0 : i32
    return %c0_i32, %c0_i32_0 : i32, i32
  }
  func.func @transform_3(%arg0: i32, %arg1: i32) -> (i32, i32, i32) {
    %c0_i32 = arith.constant 0 : i32
    %c0_i32_0 = arith.constant 0 : i32
    %c0_i32_1 = arith.constant 0 : i32
    %c0_i32_2 = arith.constant 0 : i32
    return %c0_i32, %c0_i32_0, %c0_i32_1 : i32, i32, i32
  }
  func.func @transform_4(%arg0: i32, %arg1: i32) -> (i32, i32, i32) {
    %c0_i32 = arith.constant 0 : i32
    %c0_i32_0 = arith.constant 0 : i32
    %c0_i32_1 = arith.constant 0 : i32
    %c0_i32_2 = arith.constant 0 : i32
    return %c0_i32, %c0_i32_0, %c0_i32_1 : i32, i32, i32
  }
  func.func @transform_5(%arg0: i32, %arg1: i32) -> (i32, i32) {
    %c0_i32 = arith.constant 0 : i32
    %c0_i32_0 = arith.constant 0 : i32
    %c0_i32_1 = arith.constant 0 : i32
    return %c0_i32, %c0_i32_0 : i32, i32
  }
  func.func @transform_6(%arg0: i32, %arg1: i32) -> (i32, i32) {
    %c0_i32 = arith.constant 0 : i32
    %c0_i32_0 = arith.constant 0 : i32
    %c0_i32_1 = arith.constant 0 : i32
    return %c0_i32, %c0_i32_0 : i32, i32
  }
  func.func @transform_7(%arg0: i32, %arg1: i32) -> (i32, i32, i32) {
    %c0_i32 = arith.constant 0 : i32
    %c0_i32_0 = arith.constant 0 : i32
    %c0_i32_1 = arith.constant 0 : i32
    %c0_i32_2 = arith.constant 0 : i32
    return %c0_i32, %c0_i32_0, %c0_i32_1 : i32, i32, i32
  }
  func.func @transform_8(%arg0: i32, %arg1: i32) -> (i32, i32, i32, i32) {
    %c0_i32 = arith.constant 0 : i32
    %c0_i32_0 = arith.constant 0 : i32
    %c0_i32_1 = arith.constant 0 : i32
    return %arg0, %arg1, %c0_i32, %c0_i32_0 : i32, i32, i32, i32
  }
}

module attributes {stable_mosaic.version = 11 : i64} {
  func.func @_block_epilogue_kernel(%arg0: i32, %arg1: i32, %arg2: memref<1x64x32xbf16, #tpu.memory_space<vmem>>, %arg3: memref<1x64x32xf32, #tpu.memory_space<vmem>>, %arg4: memref<1x64x32xf32, #tpu.memory_space<vmem>>, %arg5: memref<1x32xf32, #tpu.memory_space<vmem>>, %arg6: memref<1x32xf32, #tpu.memory_space<vmem>>, %arg7: memref<32x128xbf16, #tpu.memory_space<vmem>>, %arg8: memref<1x128xf32, #tpu.memory_space<vmem>>, %arg9: memref<128x32xbf16, #tpu.memory_space<vmem>>, %arg10: memref<1x32xf32, #tpu.memory_space<vmem>>, %arg11: memref<32x10xbf16, #tpu.memory_space<vmem>>, %arg12: memref<1x10xf32, #tpu.memory_space<vmem>>, %arg13: memref<10x32xbf16, #tpu.memory_space<vmem>>, %arg14: memref<1x32xf32, #tpu.memory_space<vmem>>, %arg15: memref<1xf32, #tpu.memory_space<smem>>, %arg16: memref<1x64x32xf32, #tpu.memory_space<vmem>>) attributes {dimension_semantics = [#tpu.dimension_semantics<parallel>, #tpu.dimension_semantics<parallel>], iteration_bounds = array<i64: 2, 1>, scalar_prefetch = 0 : i64, scratch_operands = 0 : i64, tpu.core_type = #tpu.core_type<tc>, window_params = [{transform_indices = @transform_0, window_bounds = array<i64: 1, 64, 32>}, {transform_indices = @transform_1, window_bounds = array<i64: 1, 64, 32>}, {transform_indices = @transform_2, window_bounds = array<i64: 1, 64, 32>}, {pipeline_mode = #tpu.pipeline_mode<synchronous>, transform_indices = @transform_3, window_bounds = array<i64: 1, 32>}, {pipeline_mode = #tpu.pipeline_mode<synchronous>, transform_indices = @transform_4, window_bounds = array<i64: 1, 32>}, {pipeline_mode = #tpu.pipeline_mode<synchronous>, transform_indices = @transform_5, window_bounds = array<i64: 32, 128>}, {pipeline_mode = #tpu.pipeline_mode<synchronous>, transform_indices = @transform_6, window_bounds = array<i64: 1, 128>}, {pipeline_mode = #tpu.pipeline_mode<synchronous>, transform_indices = @transform_7, window_bounds = array<i64: 128, 32>}, {pipeline_mode = #tpu.pipeline_mode<synchronous>, transform_indices = @transform_8, window_bounds = array<i64: 1, 32>}, {pipeline_mode = #tpu.pipeline_mode<synchronous>, transform_indices = @transform_9, window_bounds = array<i64: 32, 10>}, {pipeline_mode = #tpu.pipeline_mode<synchronous>, transform_indices = @transform_10, window_bounds = array<i64: 1, 10>}, {pipeline_mode = #tpu.pipeline_mode<synchronous>, transform_indices = @transform_11, window_bounds = array<i64: 10, 32>}, {pipeline_mode = #tpu.pipeline_mode<synchronous>, transform_indices = @transform_12, window_bounds = array<i64: 1, 32>}, {transform_indices = @transform_13, window_bounds = array<i64: 1>}, {transform_indices = @transform_14, window_bounds = array<i64: 1, 64, 32>}]} {
    %c0 = arith.constant 0 : index
    %c0_0 = arith.constant 0 : index
    %c0_1 = arith.constant 0 : index
    %0 = vector.load %arg2[%c0, %c0_0, %c0_1] : memref<1x64x32xbf16, #tpu.memory_space<vmem>>, vector<1x64x32xbf16>
    %1 = vector.shape_cast %0 : vector<1x64x32xbf16> to vector<64x32xbf16>
    %2 = arith.extf %1 : vector<64x32xbf16> to vector<64x32xf32>
    %c0_i32 = arith.constant 0 : i32
    %3 = arith.cmpi eq, %arg1, %c0_i32 : i32
    %4 = arith.extui %3 : i1 to i32
    %5 = arith.sitofp %4 : i32 to f32
    %c0_2 = arith.constant 0 : index
    %c0_3 = arith.constant 0 : index
    %c0_4 = arith.constant 0 : index
    %6 = vector.load %arg3[%c0_2, %c0_3, %c0_4] : memref<1x64x32xf32, #tpu.memory_space<vmem>>, vector<1x64x32xf32>
    %7 = vector.shape_cast %6 : vector<1x64x32xf32> to vector<64x32xf32>
    %8 = arith.addf %7, %2 : vector<64x32xf32>
    %c0_5 = arith.constant 0 : index
    %c0_6 = arith.constant 0 : index
    %c0_7 = arith.constant 0 : index
    %9 = vector.load %arg4[%c0_5, %c0_6, %c0_7] : memref<1x64x32xf32, #tpu.memory_space<vmem>>, vector<1x64x32xf32>
    %10 = vector.shape_cast %9 : vector<1x64x32xf32> to vector<64x32xf32>
    %11 = vector.broadcast %5 : f32 to vector<64x32xf32>
    %12 = arith.mulf %11, %10 : vector<64x32xf32>
    %13 = arith.addf %8, %12 : vector<64x32xf32>
    %c0_8 = arith.constant 0 : index
    %c0_9 = arith.constant 0 : index
    %14 = vector.load %arg5[%c0_8, %c0_9] : memref<1x32xf32, #tpu.memory_space<vmem>>, vector<1x32xf32>
    %c0_10 = arith.constant 0 : index
    %c0_11 = arith.constant 0 : index
    %15 = vector.load %arg6[%c0_10, %c0_11] : memref<1x32xf32, #tpu.memory_space<vmem>>, vector<1x32xf32>
    %cst = arith.constant dense<0.000000e+00> : vector<64xf32>
    %16 = vector.multi_reduction <add>, %13, %cst [1] : vector<64x32xf32> to vector<64xf32>
    %17 = vector.shape_cast %16 : vector<64xf32> to vector<64x1xf32>
    %cst_12 = arith.constant 3.200000e+01 : f32
    %18 = vector.broadcast %cst_12 : f32 to vector<64x1xf32>
    %19 = arith.divf %17, %18 : vector<64x1xf32>
    %20 = vector.broadcast %19 : vector<64x1xf32> to vector<64x32xf32>
    %21 = arith.subf %13, %20 : vector<64x32xf32>
    %22 = arith.mulf %21, %21 : vector<64x32xf32>
    %cst_13 = arith.constant dense<0.000000e+00> : vector<64xf32>
    %23 = vector.multi_reduction <add>, %22, %cst_13 [1] : vector<64x32xf32> to vector<64xf32>
    %24 = vector.shape_cast %23 : vector<64xf32> to vector<64x1xf32>
    %cst_14 = arith.constant 3.200000e+01 : f32
    %25 = vector.broadcast %cst_14 : f32 to vector<64x1xf32>
    %26 = arith.divf %24, %25 : vector<64x1xf32>
    %cst_15 = arith.constant 9.99999974E-6 : f32
    %27 = vector.broadcast %cst_15 : f32 to vector<64x1xf32>
    %28 = arith.addf %26, %27 : vector<64x1xf32>
    %29 = math.rsqrt %28 : vector<64x1xf32>
    %30 = vector.broadcast %29 : vector<64x1xf32> to vector<64x32xf32>
    %31 = arith.mulf %21, %30 : vector<64x32xf32>
    %32 = vector.broadcast %14 : vector<1x32xf32> to vector<64x32xf32>
    %33 = arith.mulf %31, %32 : vector<64x32xf32>
    %34 = vector.broadcast %15 : vector<1x32xf32> to vector<64x32xf32>
    %35 = arith.addf %33, %34 : vector<64x32xf32>
    %36 = arith.truncf %35 : vector<64x32xf32> to vector<64x32xbf16>
    %c0_16 = arith.constant 0 : index
    %c0_17 = arith.constant 0 : index
    %37 = vector.load %arg7[%c0_16, %c0_17] : memref<32x128xbf16, #tpu.memory_space<vmem>>, vector<32x128xbf16>
    %cst_18 = arith.constant dense<0.000000e+00> : vector<64x128xf32>
    %38 = tpu.matmul %36, %37, %cst_18 {dimension_numbers = #tpu.dot_dimension_numbers<[1], [0], [0], [1], [0, 0, 1, 1], [], []>} : vector<64x32xbf16>, vector<32x128xbf16>, vector<64x128xf32> -> vector<64x128xf32>
    %c0_19 = arith.constant 0 : index
    %c0_20 = arith.constant 0 : index
    %39 = vector.load %arg8[%c0_19, %c0_20] : memref<1x128xf32, #tpu.memory_space<vmem>>, vector<1x128xf32>
    %40 = vector.broadcast %39 : vector<1x128xf32> to vector<64x128xf32>
    %41 = arith.addf %38, %40 : vector<64x128xf32>
    %cst_21 = arith.constant 5.000000e-01 : f32
    %42 = vector.broadcast %cst_21 : f32 to vector<64x128xf32>
    %43 = arith.mulf %42, %41 : vector<64x128xf32>
    %cst_22 = arith.constant 4.471500e-02 : f32
    %44 = vector.broadcast %cst_22 : f32 to vector<64x128xf32>
    %45 = arith.mulf %44, %41 : vector<64x128xf32>
    %46 = arith.mulf %45, %41 : vector<64x128xf32>
    %47 = arith.mulf %46, %41 : vector<64x128xf32>
    %48 = arith.addf %41, %47 : vector<64x128xf32>
    %cst_23 = arith.constant 0.797884583 : f32
    %49 = vector.broadcast %cst_23 : f32 to vector<64x128xf32>
    %50 = arith.mulf %49, %48 : vector<64x128xf32>
    %51 = math.tanh %50 : vector<64x128xf32>
    %cst_24 = arith.constant 1.000000e+00 : f32
    %52 = vector.broadcast %cst_24 : f32 to vector<64x128xf32>
    %53 = arith.addf %52, %51 : vector<64x128xf32>
    %54 = arith.mulf %43, %53 : vector<64x128xf32>
    %55 = arith.truncf %54 : vector<64x128xf32> to vector<64x128xbf16>
    %c0_25 = arith.constant 0 : index
    %c0_26 = arith.constant 0 : index
    %56 = vector.load %arg9[%c0_25, %c0_26] : memref<128x32xbf16, #tpu.memory_space<vmem>>, vector<128x32xbf16>
    %cst_27 = arith.constant dense<0.000000e+00> : vector<64x32xf32>
    %57 = tpu.matmul %55, %56, %cst_27 {dimension_numbers = #tpu.dot_dimension_numbers<[1], [0], [0], [1], [0, 0, 1, 1], [], []>} : vector<64x128xbf16>, vector<128x32xbf16>, vector<64x32xf32> -> vector<64x32xf32>
    %c0_28 = arith.constant 0 : index
    %c0_29 = arith.constant 0 : index
    %58 = vector.load %arg10[%c0_28, %c0_29] : memref<1x32xf32, #tpu.memory_space<vmem>>, vector<1x32xf32>
    %59 = vector.broadcast %58 : vector<1x32xf32> to vector<64x32xf32>
    %60 = arith.addf %57, %59 : vector<64x32xf32>
    %61 = arith.truncf %13 : vector<64x32xf32> to vector<64x32xbf16>
    %c0_30 = arith.constant 0 : index
    %c0_31 = arith.constant 0 : index
    %62 = vector.load %arg11[%c0_30, %c0_31] : memref<32x10xbf16, #tpu.memory_space<vmem>>, vector<32x10xbf16>
    %cst_32 = arith.constant dense<0.000000e+00> : vector<64x10xf32>
    %63 = tpu.matmul %61, %62, %cst_32 {dimension_numbers = #tpu.dot_dimension_numbers<[1], [0], [0], [1], [0, 0, 1, 1], [], []>} : vector<64x32xbf16>, vector<32x10xbf16>, vector<64x10xf32> -> vector<64x10xf32>
    %c0_33 = arith.constant 0 : index
    %c0_34 = arith.constant 0 : index
    %64 = vector.load %arg12[%c0_33, %c0_34] : memref<1x10xf32, #tpu.memory_space<vmem>>, vector<1x10xf32>
    %65 = vector.broadcast %64 : vector<1x10xf32> to vector<64x10xf32>
    %66 = arith.addf %63, %65 : vector<64x10xf32>
    %cst_35 = arith.constant 1.702000e+00 : f32
    %67 = vector.broadcast %cst_35 : f32 to vector<64x10xf32>
    %68 = arith.mulf %67, %66 : vector<64x10xf32>
    %69 = arith.negf %68 : vector<64x10xf32>
    %70 = math.exp %69 : vector<64x10xf32>
    %cst_36 = arith.constant 1.000000e+00 : f32
    %71 = vector.broadcast %cst_36 : f32 to vector<64x10xf32>
    %72 = arith.addf %71, %70 : vector<64x10xf32>
    %73 = arith.divf %71, %72 : vector<64x10xf32>
    %74 = arith.mulf %66, %73 : vector<64x10xf32>
    %75 = arith.truncf %74 : vector<64x10xf32> to vector<64x10xbf16>
    %c0_37 = arith.constant 0 : index
    %c0_38 = arith.constant 0 : index
    %76 = vector.load %arg13[%c0_37, %c0_38] : memref<10x32xbf16, #tpu.memory_space<vmem>>, vector<10x32xbf16>
    %cst_39 = arith.constant dense<0.000000e+00> : vector<64x32xf32>
    %77 = tpu.matmul %75, %76, %cst_39 {dimension_numbers = #tpu.dot_dimension_numbers<[1], [0], [0], [1], [0, 0, 1, 1], [], []>} : vector<64x10xbf16>, vector<10x32xbf16>, vector<64x32xf32> -> vector<64x32xf32>
    %c0_40 = arith.constant 0 : index
    %c0_41 = arith.constant 0 : index
    %78 = vector.load %arg14[%c0_40, %c0_41] : memref<1x32xf32, #tpu.memory_space<vmem>>, vector<1x32xf32>
    %79 = vector.broadcast %78 : vector<1x32xf32> to vector<64x32xf32>
    %80 = arith.addf %77, %79 : vector<64x32xf32>
    %c0_42 = arith.constant 0 : index
    %81 = memref.load %arg15[%c0_42] : memref<1xf32, #tpu.memory_space<smem>>
    %82 = vector.broadcast %81 : f32 to vector<64x32xf32>
    %83 = arith.mulf %80, %82 : vector<64x32xf32>
    %84 = arith.addf %13, %60 : vector<64x32xf32>
    %85 = arith.addf %84, %83 : vector<64x32xf32>
    %c0_43 = arith.constant 0 : index
    %c0_44 = arith.constant 0 : index
    %c0_45 = arith.constant 0 : index
    %86 = vector.load %arg16[%c0_43, %c0_44, %c0_45] : memref<1x64x32xf32, #tpu.memory_space<vmem>>, vector<1x64x32xf32>
    %87 = vector.shape_cast %86 : vector<1x64x32xf32> to vector<64x32xf32>
    %88 = vector.shape_cast %85 : vector<64x32xf32> to vector<1x64x32xf32>
    tpu.vector_store %arg16[%c0_43, %c0_44, %c0_45], %88 {strides = array<i32>} : memref<1x64x32xf32, #tpu.memory_space<vmem>>, vector<1x64x32xf32>,
    return
  }
  func.func @transform_0(%arg0: i32, %arg1: i32) -> (i32, i32, i32) {
    %c0_i32 = arith.constant 0 : i32
    %c0_i32_0 = arith.constant 0 : i32
    return %arg0, %arg1, %c0_i32 : i32, i32, i32
  }
  func.func @transform_1(%arg0: i32, %arg1: i32) -> (i32, i32, i32) {
    %c0_i32 = arith.constant 0 : i32
    %c0_i32_0 = arith.constant 0 : i32
    return %arg0, %arg1, %c0_i32 : i32, i32, i32
  }
  func.func @transform_2(%arg0: i32, %arg1: i32) -> (i32, i32, i32) {
    %c0_i32 = arith.constant 0 : i32
    %c0_i32_0 = arith.constant 0 : i32
    %c0_i32_1 = arith.constant 0 : i32
    return %arg0, %c0_i32, %c0_i32_0 : i32, i32, i32
  }
  func.func @transform_3(%arg0: i32, %arg1: i32) -> (i32, i32) {
    %c0_i32 = arith.constant 0 : i32
    %c0_i32_0 = arith.constant 0 : i32
    %c0_i32_1 = arith.constant 0 : i32
    return %c0_i32, %c0_i32_0 : i32, i32
  }
  func.func @transform_4(%arg0: i32, %arg1: i32) -> (i32, i32) {
    %c0_i32 = arith.constant 0 : i32
    %c0_i32_0 = arith.constant 0 : i32
    %c0_i32_1 = arith.constant 0 : i32
    return %c0_i32, %c0_i32_0 : i32, i32
  }
  func.func @transform_5(%arg0: i32, %arg1: i32) -> (i32, i32) {
    %c0_i32 = arith.constant 0 : i32
    %c0_i32_0 = arith.constant 0 : i32
    %c0_i32_1 = arith.constant 0 : i32
    return %c0_i32, %c0_i32_0 : i32, i32
  }
  func.func @transform_6(%arg0: i32, %arg1: i32) -> (i32, i32) {
    %c0_i32 = arith.constant 0 : i32
    %c0_i32_0 = arith.constant 0 : i32
    %c0_i32_1 = arith.constant 0 : i32
    return %c0_i32, %c0_i32_0 : i32, i32
  }
  func.func @transform_7(%arg0: i32, %arg1: i32) -> (i32, i32) {
    %c0_i32 = arith.constant 0 : i32
    %c0_i32_0 = arith.constant 0 : i32
    %c0_i32_1 = arith.constant 0 : i32
    return %c0_i32, %c0_i32_0 : i32, i32
  }
  func.func @transform_8(%arg0: i32, %arg1: i32) -> (i32, i32) {
    %c0_i32 = arith.constant 0 : i32
    %c0_i32_0 = arith.constant 0 : i32
    %c0_i32_1 = arith.constant 0 : i32
    return %c0_i32, %c0_i32_0 : i32, i32
  }
  func.func @transform_9(%arg0: i32, %arg1: i32) -> (i32, i32) {
    %c0_i32 = arith.constant 0 : i32
    %c0_i32_0 = arith.constant 0 : i32
    %c0_i32_1 = arith.constant 0 : i32
    return %c0_i32, %c0_i32_0 : i32, i32
  }
  func.func @transform_10(%arg0: i32, %arg1: i32) -> (i32, i32) {
    %c0_i32 = arith.constant 0 : i32
    %c0_i32_0 = arith.constant 0 : i32
    %c0_i32_1 = arith.constant 0 : i32
    return %c0_i32, %c0_i32_0 : i32, i32
  }
  func.func @transform_11(%arg0: i32, %arg1: i32) -> (i32, i32) {
    %c0_i32 = arith.constant 0 : i32
    %c0_i32_0 = arith.constant 0 : i32
    %c0_i32_1 = arith.constant 0 : i32
    return %c0_i32, %c0_i32_0 : i32, i32
  }
  func.func @transform_12(%arg0: i32, %arg1: i32) -> (i32, i32) {
    %c0_i32 = arith.constant 0 : i32
    %c0_i32_0 = arith.constant 0 : i32
    %c0_i32_1 = arith.constant 0 : i32
    return %c0_i32, %c0_i32_0 : i32, i32
  }
  func.func @transform_13(%arg0: i32, %arg1: i32) -> i32 {
    %c0_i32 = arith.constant 0 : i32
    %c0_i32_0 = arith.constant 0 : i32
    return %c0_i32 : i32
  }
  func.func @transform_14(%arg0: i32, %arg1: i32) -> (i32, i32, i32) {
    %c0_i32 = arith.constant 0 : i32
    %c0_i32_0 = arith.constant 0 : i32
    return %arg0, %arg1, %c0_i32 : i32, i32, i32
  }
}

module attributes {stable_mosaic.version = 11 : i64} {
  func.func @_prompt_attn_kernel(%arg0: i32, %arg1: memref<1x64x32xbf16, #tpu.memory_space<vmem>>, %arg2: memref<10x32xbf16, #tpu.memory_space<vmem>>, %arg3: memref<1x64x32xf32, #tpu.memory_space<vmem>>) attributes {dimension_semantics = [#tpu.dimension_semantics<parallel>], iteration_bounds = array<i64: 2>, scalar_prefetch = 0 : i64, scratch_operands = 0 : i64, tpu.core_type = #tpu.core_type<tc>, window_params = [{transform_indices = @transform_0, window_bounds = array<i64: 1, 64, 32>}, {pipeline_mode = #tpu.pipeline_mode<synchronous>, transform_indices = @transform_1, window_bounds = array<i64: 10, 32>}, {transform_indices = @transform_2, window_bounds = array<i64: 1, 64, 32>}]} {
    %c0 = arith.constant 0 : index
    %c0_0 = arith.constant 0 : index
    %c0_1 = arith.constant 0 : index
    %0 = vector.load %arg1[%c0, %c0_0, %c0_1] : memref<1x64x32xbf16, #tpu.memory_space<vmem>>, vector<1x64x32xbf16>
    %1 = vector.shape_cast %0 : vector<1x64x32xbf16> to vector<64x32xbf16>
    %c0_2 = arith.constant 0 : index
    %c0_3 = arith.constant 0 : index
    %2 = vector.load %arg2[%c0_2, %c0_3] : memref<10x32xbf16, #tpu.memory_space<vmem>>, vector<10x32xbf16>
    %cst = arith.constant dense<0.000000e+00> : vector<10x64xf32>
    %3 = tpu.matmul %2, %1, %cst {dimension_numbers = #tpu.dot_dimension_numbers<[1], [1], [0], [0], [0, 0, 1, 0], [], []>} : vector<10x32xbf16>, vector<64x32xbf16>, vector<10x64xf32> -> vector<10x64xf32>
    %cst_4 = arith.constant 0.176776692 : f32
    %4 = vector.broadcast %cst_4 : f32 to vector<10x64xf32>
    %5 = arith.mulf %3, %4 : vector<10x64xf32>
    %cst_5 = arith.constant dense<0xFF800000> : vector<10xf32>
    %6 = vector.multi_reduction <maximumf>, %5, %cst_5 [1] : vector<10x64xf32> to vector<10xf32>
    %7 = vector.shape_cast %6 : vector<10xf32> to vector<10x1xf32>
    %8 = vector.broadcast %7 : vector<10x1xf32> to vector<10x64xf32>
    %9 = arith.subf %5, %8 : vector<10x64xf32>
    %10 = math.exp %9 : vector<10x64xf32>
    %cst_6 = arith.constant dense<0.000000e+00> : vector<10xf32>
    %11 = vector.multi_reduction <add>, %10, %cst_6 [1] : vector<10x64xf32> to vector<10xf32>
    %12 = vector.shape_cast %11 : vector<10xf32> to vector<10x1xf32>
    %13 = vector.broadcast %12 : vector<10x1xf32> to vector<10x64xf32>
    %14 = arith.divf %10, %13 : vector<10x64xf32>
    %15 = arith.truncf %14 : vector<10x64xf32> to vector<10x64xbf16>
    %cst_7 = arith.constant dense<0.000000e+00> : vector<10x32xf32>
    %16 = tpu.matmul %15, %1, %cst_7 {dimension_numbers = #tpu.dot_dimension_numbers<[1], [0], [0], [1], [0, 0, 1, 1], [], []>} : vector<10x64xbf16>, vector<64x32xbf16>, vector<10x32xf32> -> vector<10x32xf32>
    %cst_8 = arith.constant 0.000000e+00 : f32
    %17 = vector.broadcast %cst_8 : f32 to vector<1x64x32xf32>
    %c0_9 = arith.constant 0 : index
    %c0_10 = arith.constant 0 : index
    %c0_11 = arith.constant 0 : index
    %18 = vector.load %arg3[%c0_9, %c0_10, %c0_11] : memref<1x64x32xf32, #tpu.memory_space<vmem>>, vector<1x64x32xf32>
    tpu.vector_store %arg3[%c0_9, %c0_10, %c0_11], %17 {strides = array<i32>} : memref<1x64x32xf32, #tpu.memory_space<vmem>>, vector<1x64x32xf32>,
    %c0_12 = arith.constant 0 : index
    %c0_13 = arith.constant 0 : index
    %c0_14 = arith.constant 0 : index
    %19 = vector.load %arg3[%c0_12, %c0_13, %c0_14] : memref<1x64x32xf32, #tpu.memory_space<vmem>>, vector<1x10x32xf32>
    %20 = vector.shape_cast %19 : vector<1x10x32xf32> to vector<10x32xf32>
    %21 = vector.shape_cast %16 : vector<10x32xf32> to vector<1x10x32xf32>
    tpu.vector_store %arg3[%c0_12, %c0_13, %c0_14], %21 {strides = array<i32>} : memref<1x64x32xf32, #tpu.memory_space<vmem>>, vector<1x10x32xf32>,
    return
  }
  func.func @transform_0(%arg0: i32) -> (i32, i32, i32) {
    %c0_i32 = arith.constant 0 : i32
    %c0_i32_0 = arith.constant 0 : i32
    %c0_i32_1 = arith.constant 0 : i32
    return %arg0, %c0_i32, %c0_i32_0 : i32, i32, i32
  }
  func.func @transform_1(%arg0: i32) -> (i32, i32) {
    %c0_i32 = arith.constant 0 : i32
    %c0_i32_0 = arith.constant 0 : i32
    %c0_i32_1 = arith.constant 0 : i32
    return %c0_i32, %c0_i32_0 : i32, i32
  }
  func.func @transform_2(%arg0: i32) -> (i32, i32, i32) {
    %c0_i32 = arith.constant 0 : i32
    %c0_i32_0 = arith.constant 0 : i32
    %c0_i32_1 = arith.constant 0 : i32
    return %arg0, %c0_i32, %c0_i32_0 : i32, i32, i32
  }
}

module attributes {stable_mosaic.version = 11 : i64} {
  func.func @_ln_window_attn_kernel(%arg0: i32, %arg1: i32, %arg2: memref<1x4x16x32xbf16, #tpu.memory_space<vmem>>, %arg3: memref<1x32xf32, #tpu.memory_space<vmem>>, %arg4: memref<1x32xf32, #tpu.memory_space<vmem>>, %arg5: memref<3x32x32xbf16, #tpu.memory_space<vmem>>, %arg6: memref<3x1x32xf32, #tpu.memory_space<vmem>>, %arg7: memref<32x32xbf16, #tpu.memory_space<vmem>>, %arg8: memref<1x32xf32, #tpu.memory_space<vmem>>, %arg9: memref<2x16x16xf32, #tpu.memory_space<vmem>>, %arg10: memref<4x16x16xf32, #tpu.memory_space<vmem>>, %arg11: memref<1x4x16x32xbf16, #tpu.memory_space<vmem>>) attributes {dimension_semantics = [#tpu.dimension_semantics<parallel>, #tpu.dimension_semantics<parallel>], iteration_bounds = array<i64: 2, 1>, scalar_prefetch = 0 : i64, scratch_operands = 0 : i64, tpu.core_type = #tpu.core_type<tc>, window_params = [{transform_indices = @transform_0, window_bounds = array<i64: 1, 4, 16, 32>}, {pipeline_mode = #tpu.pipeline_mode<synchronous>, transform_indices = @transform_1, window_bounds = array<i64: 1, 32>}, {pipeline_mode = #tpu.pipeline_mode<synchronous>, transform_indices = @transform_2, window_bounds = array<i64: 1, 32>}, {pipeline_mode = #tpu.pipeline_mode<synchronous>, transform_indices = @transform_3, window_bounds = array<i64: 3, 32, 32>}, {pipeline_mode = #tpu.pipeline_mode<synchronous>, transform_indices = @transform_4, window_bounds = array<i64: 3, 1, 32>}, {pipeline_mode = #tpu.pipeline_mode<synchronous>, transform_indices = @transform_5, window_bounds = array<i64: 32, 32>}, {pipeline_mode = #tpu.pipeline_mode<synchronous>, transform_indices = @transform_6, window_bounds = array<i64: 1, 32>}, {pipeline_mode = #tpu.pipeline_mode<synchronous>, transform_indices = @transform_7, window_bounds = array<i64: 2, 16, 16>}, {transform_indices = @transform_8, window_bounds = array<i64: 4, 16, 16>}, {transform_indices = @transform_9, window_bounds = array<i64: 1, 4, 16, 32>}]} {
    %c0 = arith.constant 0 : index
    %c0_0 = arith.constant 0 : index
    %c0_1 = arith.constant 0 : index
    %c0_2 = arith.constant 0 : index
    %0 = vector.load %arg2[%c0, %c0_0, %c0_1, %c0_2] : memref<1x4x16x32xbf16, #tpu.memory_space<vmem>>, vector<1x4x16x32xbf16>
    %1 = vector.shape_cast %0 : vector<1x4x16x32xbf16> to vector<4x16x32xbf16>
    %2 = vector.shape_cast %1 : vector<4x16x32xbf16> to vector<64x32xbf16>
    %3 = arith.extf %2 : vector<64x32xbf16> to vector<64x32xf32>
    %c0_3 = arith.constant 0 : index
    %c0_4 = arith.constant 0 : index
    %4 = vector.load %arg3[%c0_3, %c0_4] : memref<1x32xf32, #tpu.memory_space<vmem>>, vector<1x32xf32>
    %c0_5 = arith.constant 0 : index
    %c0_6 = arith.constant 0 : index
    %5 = vector.load %arg4[%c0_5, %c0_6] : memref<1x32xf32, #tpu.memory_space<vmem>>, vector<1x32xf32>
    %cst = arith.constant dense<0.000000e+00> : vector<64xf32>
    %6 = vector.multi_reduction <add>, %3, %cst [1] : vector<64x32xf32> to vector<64xf32>
    %7 = vector.shape_cast %6 : vector<64xf32> to vector<64x1xf32>
    %cst_7 = arith.constant 3.200000e+01 : f32
    %8 = vector.broadcast %cst_7 : f32 to vector<64x1xf32>
    %9 = arith.divf %7, %8 : vector<64x1xf32>
    %10 = vector.broadcast %9 : vector<64x1xf32> to vector<64x32xf32>
    %11 = arith.subf %3, %10 : vector<64x32xf32>
    %12 = arith.mulf %11, %11 : vector<64x32xf32>
    %cst_8 = arith.constant dense<0.000000e+00> : vector<64xf32>
    %13 = vector.multi_reduction <add>, %12, %cst_8 [1] : vector<64x32xf32> to vector<64xf32>
    %14 = vector.shape_cast %13 : vector<64xf32> to vector<64x1xf32>
    %cst_9 = arith.constant 3.200000e+01 : f32
    %15 = vector.broadcast %cst_9 : f32 to vector<64x1xf32>
    %16 = arith.divf %14, %15 : vector<64x1xf32>
    %cst_10 = arith.constant 9.99999974E-6 : f32
    %17 = vector.broadcast %cst_10 : f32 to vector<64x1xf32>
    %18 = arith.addf %16, %17 : vector<64x1xf32>
    %19 = math.rsqrt %18 : vector<64x1xf32>
    %20 = vector.broadcast %19 : vector<64x1xf32> to vector<64x32xf32>
    %21 = arith.mulf %11, %20 : vector<64x32xf32>
    %22 = vector.broadcast %4 : vector<1x32xf32> to vector<64x32xf32>
    %23 = arith.mulf %21, %22 : vector<64x32xf32>
    %24 = vector.broadcast %5 : vector<1x32xf32> to vector<64x32xf32>
    %25 = arith.addf %23, %24 : vector<64x32xf32>
    %26 = arith.truncf %25 : vector<64x32xf32> to vector<64x32xbf16>
    %c0_11 = arith.constant 0 : index
    %c0_12 = arith.constant 0 : index
    %c0_13 = arith.constant 0 : index
    %27 = vector.load %arg5[%c0_11, %c0_12, %c0_13] : memref<3x32x32xbf16, #tpu.memory_space<vmem>>, vector<1x32x32xbf16>
    %28 = vector.shape_cast %27 : vector<1x32x32xbf16> to vector<32x32xbf16>
    %cst_14 = arith.constant dense<0.000000e+00> : vector<64x32xf32>
    %29 = tpu.matmul %26, %28, %cst_14 {dimension_numbers = #tpu.dot_dimension_numbers<[1], [0], [0], [1], [0, 0, 1, 1], [], []>} : vector<64x32xbf16>, vector<32x32xbf16>, vector<64x32xf32> -> vector<64x32xf32>
    %c0_15 = arith.constant 0 : index
    %c0_16 = arith.constant 0 : index
    %c0_17 = arith.constant 0 : index
    %30 = vector.load %arg6[%c0_15, %c0_16, %c0_17] : memref<3x1x32xf32, #tpu.memory_space<vmem>>, vector<1x1x32xf32>
    %31 = vector.shape_cast %30 : vector<1x1x32xf32> to vector<1x32xf32>
    %32 = vector.broadcast %31 : vector<1x32xf32> to vector<64x32xf32>
    %33 = arith.addf %29, %32 : vector<64x32xf32>
    %c1 = arith.constant 1 : index
    %c0_18 = arith.constant 0 : index
    %c0_19 = arith.constant 0 : index
    %34 = vector.load %arg5[%c1, %c0_18, %c0_19] : memref<3x32x32xbf16, #tpu.memory_space<vmem>>, vector<1x32x32xbf16>
    %35 = vector.shape_cast %34 : vector<1x32x32xbf16> to vector<32x32xbf16>
    %cst_20 = arith.constant dense<0.000000e+00> : vector<64x32xf32>
    %36 = tpu.matmul %26, %35, %cst_20 {dimension_numbers = #tpu.dot_dimension_numbers<[1], [0], [0], [1], [0, 0, 1, 1], [], []>} : vector<64x32xbf16>, vector<32x32xbf16>, vector<64x32xf32> -> vector<64x32xf32>
    %c1_21 = arith.constant 1 : index
    %c0_22 = arith.constant 0 : index
    %c0_23 = arith.constant 0 : index
    %37 = vector.load %arg6[%c1_21, %c0_22, %c0_23] : memref<3x1x32xf32, #tpu.memory_space<vmem>>, vector<1x1x32xf32>
    %38 = vector.shape_cast %37 : vector<1x1x32xf32> to vector<1x32xf32>
    %39 = vector.broadcast %38 : vector<1x32xf32> to vector<64x32xf32>
    %40 = arith.addf %36, %39 : vector<64x32xf32>
    %c2 = arith.constant 2 : index
    %c0_24 = arith.constant 0 : index
    %c0_25 = arith.constant 0 : index
    %41 = vector.load %arg5[%c2, %c0_24, %c0_25] : memref<3x32x32xbf16, #tpu.memory_space<vmem>>, vector<1x32x32xbf16>
    %42 = vector.shape_cast %41 : vector<1x32x32xbf16> to vector<32x32xbf16>
    %cst_26 = arith.constant dense<0.000000e+00> : vector<64x32xf32>
    %43 = tpu.matmul %26, %42, %cst_26 {dimension_numbers = #tpu.dot_dimension_numbers<[1], [0], [0], [1], [0, 0, 1, 1], [], []>} : vector<64x32xbf16>, vector<32x32xbf16>, vector<64x32xf32> -> vector<64x32xf32>
    %c2_27 = arith.constant 2 : index
    %c0_28 = arith.constant 0 : index
    %c0_29 = arith.constant 0 : index
    %44 = vector.load %arg6[%c2_27, %c0_28, %c0_29] : memref<3x1x32xf32, #tpu.memory_space<vmem>>, vector<1x1x32xf32>
    %45 = vector.shape_cast %44 : vector<1x1x32xf32> to vector<1x32xf32>
    %46 = vector.broadcast %45 : vector<1x32xf32> to vector<64x32xf32>
    %47 = arith.addf %43, %46 : vector<64x32xf32>
    %48 = arith.truncf %33 : vector<64x32xf32> to vector<64x32xbf16>
    %49 = vector.shape_cast %48 : vector<64x32xbf16> to vector<4x16x2x16xbf16>
    %50 = tpu.transpose %49, [0, 2, 1, 3] : vector<4x16x2x16xbf16> -> vector<4x2x16x16xbf16>
    %51 = vector.shape_cast %50 : vector<4x2x16x16xbf16> to vector<8x16x16xbf16>
    %52 = arith.truncf %40 : vector<64x32xf32> to vector<64x32xbf16>
    %53 = vector.shape_cast %52 : vector<64x32xbf16> to vector<4x16x2x16xbf16>
    %54 = tpu.transpose %53, [0, 2, 1, 3] : vector<4x16x2x16xbf16> -> vector<4x2x16x16xbf16>
    %55 = vector.shape_cast %54 : vector<4x2x16x16xbf16> to vector<8x16x16xbf16>
    %56 = arith.truncf %47 : vector<64x32xf32> to vector<64x32xbf16>
    %57 = vector.shape_cast %56 : vector<64x32xbf16> to vector<4x16x2x16xbf16>
    %58 = tpu.transpose %57, [0, 2, 1, 3] : vector<4x16x2x16xbf16> -> vector<4x2x16x16xbf16>
    %59 = vector.shape_cast %58 : vector<4x2x16x16xbf16> to vector<8x16x16xbf16>
    %cst_30 = arith.constant dense<0.000000e+00> : vector<8x16x16xf32>
    %60 = tpu.matmul %51, %55, %cst_30 {dimension_numbers = #tpu.dot_dimension_numbers<[2], [2], [1], [1], [0, 0, 0, 1, 1, 1], [0], [0]>} : vector<8x16x16xbf16>, vector<8x16x16xbf16>, vector<8x16x16xf32> -> vector<8x16x16xf32>
    %61 = vector.shape_cast %60 : vector<8x16x16xf32> to vector<4x2x16x16xf32>
    %c0_31 = arith.constant 0 : index
    %c0_32 = arith.constant 0 : index
    %c0_33 = arith.constant 0 : index
    %62 = vector.load %arg9[%c0_31, %c0_32, %c0_33] : memref<2x16x16xf32, #tpu.memory_space<vmem>>, vector<2x16x16xf32>
    %63 = vector.shape_cast %62 : vector<2x16x16xf32> to vector<1x2x16x16xf32>
    %64 = vector.broadcast %63 : vector<1x2x16x16xf32> to vector<4x2x16x16xf32>
    %65 = arith.addf %61, %64 : vector<4x2x16x16xf32>
    %c0_34 = arith.constant 0 : index
    %c0_35 = arith.constant 0 : index
    %c0_36 = arith.constant 0 : index
    %66 = vector.load %arg10[%c0_34, %c0_35, %c0_36] : memref<4x16x16xf32, #tpu.memory_space<vmem>>, vector<4x16x16xf32>
    %67 = vector.shape_cast %66 : vector<4x16x16xf32> to vector<4x1x16x16xf32>
    %68 = vector.broadcast %67 : vector<4x1x16x16xf32> to vector<4x2x16x16xf32>
    %69 = arith.addf %65, %68 : vector<4x2x16x16xf32>
    %cst_37 = arith.constant dense<0xFF800000> : vector<4x2x16xf32>
    %70 = vector.multi_reduction <maximumf>, %69, %cst_37 [3] : vector<4x2x16x16xf32> to vector<4x2x16xf32>
    %71 = vector.shape_cast %70 : vector<4x2x16xf32> to vector<4x2x16x1xf32>
    %72 = vector.broadcast %71 : vector<4x2x16x1xf32> to vector<4x2x16x16xf32>
    %73 = arith.subf %69, %72 : vector<4x2x16x16xf32>
    %74 = math.exp %73 : vector<4x2x16x16xf32>
    %cst_38 = arith.constant dense<0.000000e+00> : vector<4x2x16xf32>
    %75 = vector.multi_reduction <add>, %74, %cst_38 [3] : vector<4x2x16x16xf32> to vector<4x2x16xf32>
    %76 = vector.shape_cast %75 : vector<4x2x16xf32> to vector<4x2x16x1xf32>
    %77 = vector.broadcast %76 : vector<4x2x16x1xf32> to vector<4x2x16x16xf32>
    %78 = arith.divf %74, %77 : vector<4x2x16x16xf32>
    %79 = vector.shape_cast %78 : vector<4x2x16x16xf32> to vector<8x16x16xf32>
    %80 = arith.truncf %79 : vector<8x16x16xf32> to vector<8x16x16xbf16>
    %cst_39 = arith.constant dense<0.000000e+00> : vector<8x16x16xf32>
    %81 = tpu.matmul %80, %59, %cst_39 {dimension_numbers = #tpu.dot_dimension_numbers<[2], [1], [1], [2], [0, 0, 0, 1, 1, 2], [0], [0]>} : vector<8x16x16xbf16>, vector<8x16x16xbf16>, vector<8x16x16xf32> -> vector<8x16x16xf32>
    %82 = arith.truncf %81 : vector<8x16x16xf32> to vector<8x16x16xbf16>
    %83 = vector.shape_cast %82 : vector<8x16x16xbf16> to vector<4x2x16x16xbf16>
    %84 = tpu.transpose %83, [0, 2, 1, 3] : vector<4x2x16x16xbf16> -> vector<4x16x2x16xbf16>
    %85 = vector.shape_cast %84 : vector<4x16x2x16xbf16> to vector<64x32xbf16>
    %c0_40 = arith.constant 0 : index
    %c0_41 = arith.constant 0 : index
    %86 = vector.load %arg7[%c0_40, %c0_41] : memref<32x32xbf16, #tpu.memory_space<vmem>>, vector<32x32xbf16>
    %cst_42 = arith.constant dense<0.000000e+00> : vector<64x32xf32>
    %87 = tpu.matmul %85, %86, %cst_42 {dimension_numbers = #tpu.dot_dimension_numbers<[1], [0], [0], [1], [0, 0, 1, 1], [], []>} : vector<64x32xbf16>, vector<32x32xbf16>, vector<64x32xf32> -> vector<64x32xf32>
    %c0_43 = arith.constant 0 : index
    %c0_44 = arith.constant 0 : index
    %88 = vector.load %arg8[%c0_43, %c0_44] : memref<1x32xf32, #tpu.memory_space<vmem>>, vector<1x32xf32>
    %89 = vector.broadcast %88 : vector<1x32xf32> to vector<64x32xf32>
    %90 = arith.addf %87, %89 : vector<64x32xf32>
    %91 = vector.shape_cast %90 : vector<64x32xf32> to vector<4x16x32xf32>
    %92 = arith.truncf %91 : vector<4x16x32xf32> to vector<4x16x32xbf16>
    %c0_45 = arith.constant 0 : index
    %c0_46 = arith.constant 0 : index
    %c0_47 = arith.constant 0 : index
    %c0_48 = arith.constant 0 : index
    %93 = vector.load %arg11[%c0_45, %c0_46, %c0_47, %c0_48] : memref<1x4x16x32xbf16, #tpu.memory_space<vmem>>, vector<1x4x16x32xbf16>
    %94 = vector.shape_cast %93 : vector<1x4x16x32xbf16> to vector<4x16x32xbf16>
    %95 = vector.shape_cast %92 : vector<4x16x32xbf16> to vector<1x4x16x32xbf16>
    tpu.vector_store %arg11[%c0_45, %c0_46, %c0_47, %c0_48], %95 {strides = array<i32>} : memref<1x4x16x32xbf16, #tpu.memory_space<vmem>>, vector<1x4x16x32xbf16>,
    return
  }
  func.func @transform_0(%arg0: i32, %arg1: i32) -> (i32, i32, i32, i32) {
    %c0_i32 = arith.constant 0 : i32
    %c0_i32_0 = arith.constant 0 : i32
    %c0_i32_1 = arith.constant 0 : i32
    return %arg0, %arg1, %c0_i32, %c0_i32_0 : i32, i32, i32, i32
  }
  func.func @transform_1(%arg0: i32, %arg1: i32) -> (i32, i32) {
    %c0_i32 = arith.constant 0 : i32
    %c0_i32_0 = arith.constant 0 : i32
    %c0_i32_1 = arith.constant 0 : i32
    return %c0_i32, %c0_i32_0 : i32, i32
  }
  func.func @transform_2(%arg0: i32, %arg1: i32) -> (i32, i32) {
    %c0_i32 = arith.constant 0 : i32
    %c0_i32_0 = arith.constant 0 : i32
    %c0_i32_1 = arith.constant 0 : i32
    return %c0_i32, %c0_i32_0 : i32, i32
  }
  func.func @transform_3(%arg0: i32, %arg1: i32) -> (i32, i32, i32) {
    %c0_i32 = arith.constant 0 : i32
    %c0_i32_0 = arith.constant 0 : i32
    %c0_i32_1 = arith.constant 0 : i32
    %c0_i32_2 = arith.constant 0 : i32
    return %c0_i32, %c0_i32_0, %c0_i32_1 : i32, i32, i32
  }
  func.func @transform_4(%arg0: i32, %arg1: i32) -> (i32, i32, i32) {
    %c0_i32 = arith.constant 0 : i32
    %c0_i32_0 = arith.constant 0 : i32
    %c0_i32_1 = arith.constant 0 : i32
    %c0_i32_2 = arith.constant 0 : i32
    return %c0_i32, %c0_i32_0, %c0_i32_1 : i32, i32, i32
  }
  func.func @transform_5(%arg0: i32, %arg1: i32) -> (i32, i32) {
    %c0_i32 = arith.constant 0 : i32
    %c0_i32_0 = arith.constant 0 : i32
    %c0_i32_1 = arith.constant 0 : i32
    return %c0_i32, %c0_i32_0 : i32, i32
  }
  func.func @transform_6(%arg0: i32, %arg1: i32) -> (i32, i32) {
    %c0_i32 = arith.constant 0 : i32
    %c0_i32_0 = arith.constant 0 : i32
    %c0_i32_1 = arith.constant 0 : i32
    return %c0_i32, %c0_i32_0 : i32, i32
  }
  func.func @transform_7(%arg0: i32, %arg1: i32) -> (i32, i32, i32) {
    %c0_i32 = arith.constant 0 : i32
    %c0_i32_0 = arith.constant 0 : i32
    %c0_i32_1 = arith.constant 0 : i32
    %c0_i32_2 = arith.constant 0 : i32
    return %c0_i32, %c0_i32_0, %c0_i32_1 : i32, i32, i32
  }
  func.func @transform_8(%arg0: i32, %arg1: i32) -> (i32, i32, i32) {
    %c0_i32 = arith.constant 0 : i32
    %c0_i32_0 = arith.constant 0 : i32
    %c0_i32_1 = arith.constant 0 : i32
    return %arg1, %c0_i32, %c0_i32_0 : i32, i32, i32
  }
  func.func @transform_9(%arg0: i32, %arg1: i32) -> (i32, i32, i32, i32) {
    %c0_i32 = arith.constant 0 : i32
    %c0_i32_0 = arith.constant 0 : i32
    %c0_i32_1 = arith.constant 0 : i32
    return %arg0, %arg1, %c0_i32, %c0_i32_0 : i32, i32, i32, i32
  }
}

</mosaic_0001>

<bundles_post_ra>
// kernel: basic_layer_forward.7
= control target key start
LH: loop header
LB: loop body
LE: loop exit
PB: predicated region body
PF: predicated region fallthrough
CT: control target
= control target key end

     0   :  { %s480_s9 = smov 0   ;;  %s529_s0 = inlined_call_operand.vmem [shape: bf16[2,64,32], index: 0, kind: input, shape index: {}]   ;;  %s530_s1 = inlined_call_operand.vmem [shape: bf16[10,32], index: 1, kind: input, shape index: {}]   ;;  %s531_s2 = inlined_call_operand.vmem [shape: f32[2,64,32], index: 2, kind: output, shape index: {}]  }
   0x1 LB: > { %s378_s10 = sadd.s32 4294967295, %s461_s9   ;;  %p382_p0 = scmp.ge.s32.totalorder %s461_s9, 1  ;;  %s461_s9 = sphi %s480_s9, %s12_s9  }
   0x2   : > { %p112_p1 = scmp.lt.s32.totalorder %s461_s9, 3 }
   0x4   : > { %p113_p2 = pnand %p382_p0, %p112_p1 }
   0x5   : > { %p134_p3 = scmp.lt.s32.totalorder (!%p113_p2), %s378_s10, 1  ;;  %v463_v0 = vmov (!%p113_p2), 0.0   ;;  %vm464_vm0 = vmmov (!%p113_p2), 0   ;;  %vm180_vm1 = vcmask (!%p113_p2), 261120   ;;  %v446_v9 = vld [vmem:[%s530_s1] sm:$0x1f] (!%p113_p2)  }
   0x6   : > { %116 = sbr.rel (%p113_p2) target bundleno = 798 (0x31e), region = 28  ;;  %408 = vmatprep.subr.bf16.mxu0 (!%p113_p2), %v463_v0  ;;  %416 = vmatprep.mubr.msk.bf16.mxu0 (!%p113_p2), %vm464_vm0, %v463_v0  ;;  %vm239_vm2 = vcmask (!%p113_p2), 523264   ;;  %vm243_vm3 = vcmask (!%p113_p2), 517120   ;;  %vm321_vm4 = vcmask (!%p113_p2), 254976  }
   0x7   : > { %420 = vmatprep.subr.bf16.mxu1 (!%p113_p2), %v463_v0  ;;  %428 = vmatprep.mubr.msk.bf16.mxu1 (!%p113_p2), %vm464_vm0, %v463_v0 }
   0xd   : > { %s533_s10 = smov (!%p134_p3, %s378_s10), 1 }
   0xe   : > { %s396_s11 = sshll.u32 %s533_s10, 5  ;;  %s397_s12 = sshll.u32 %s533_s10, 6 }
   0xf   : > { %s138_s15 = scalar_lea.vmem %s529_s0, %s396_s11  ;;  %s494_s18 = scalar_lea.vmem %s531_s2, %s397_s12 }
  0x10   : > { %v442_v1 = vld [vmem:[%s138_s15] sm:$0xff]   ;;  %314 = vst.msk [vmem:[%s494_s18 + $0x10] sm:$0xff] %vm180_vm1, %v463_v0  ;;  %315 = vst.msk [vmem:[%s494_s18 + $0x18] sm:$0xff] %vm180_vm1, %v463_v0  ;;  %v443_v3 = vld [vmem:[%s138_s15 + $0x8] sm:$0xff]  }
  0x11   : > { %316 = vst.msk [vmem:[%s494_s18 + $0x20] sm:$0xff] %vm180_vm1, %v463_v0  ;;  %317 = vst.msk [vmem:[%s494_s18 + $0x28] sm:$0xff] %vm180_vm1, %v463_v0  ;;  %v185_v2 = vsel %vm180_vm1, %v442_v1, 0  ;;  %421 = vmatpush3.bf16.msra.mxu1 %v442_v1  ;;  %v188_v4 = vsel %vm180_vm1, %v443_v3, 0  ;;  %v444_v5 = vld [vmem:[%s138_s15 + $0x10] sm:$0xff]   ;;  %v445_v6 = vld [vmem:[%s138_s15 + $0x18] sm:$0xff]  }
  0x12   : > { %318 = vst.msk [vmem:[%s494_s18 + $0x30] sm:$0xff] %vm180_vm1, %v463_v0  ;;  %319 = vst.msk [vmem:[%s494_s18 + $0x38] sm:$0xff] %vm180_vm1, %v463_v0  ;;  %409 = vmatpush3.bf16.xpose.msra.mxu0 %v185_v2  ;;  %422 = vmatprep.subr.bf16.mxu1 %v463_v0  ;;  %v191_v7 = vsel %vm180_vm1, %v444_v5, 0  ;;  %v194_v8 = vsel %vm180_vm1, %v445_v6, 0 }
  0x13   : > { %312 = vst.msk [vmem:[%s494_s18] sm:$0xff] %vm180_vm1, %v463_v0  ;;  %313 = vst.msk [vmem:[%s494_s18 + $0x8] sm:$0xff] %vm180_vm1, %v463_v0  ;;  %410 = vmatprep.subr.bf16.mxu0 %v463_v0 }
  0x15   : > { %423 = vmatpush3.bf16.msra.mxu1 %v443_v3 }
  0x16   : > { %424 = vmatprep.subr.bf16.mxu1 %v463_v0 }
  0x19   : > { %425 = vmatpush3.bf16.msra.mxu1 %v444_v5 }
  0x1a   : > { %411 = vmatpush3.bf16.xpose.msra.mxu0 %v188_v4  ;;  %426 = vmatprep.subr.bf16.mxu1 %v463_v0 }
  0x1b   : > { %412 = vmatprep.subr.bf16.mxu0 %v463_v0 }
  0x1d   : > { %427 = vmatpush3.bf16.msra.mxu1 %v445_v6 }
  0x22   : > { %413 = vmatpush3.bf16.xpose.msra.mxu0 %v191_v7 }
  0x23   : > { %414 = vmatprep.subr.bf16.mxu0 %v463_v0 }
  0x2a   : > { %415 = vmatpush3.bf16.xpose.msra.mxu0 %v194_v8 }
  0x31   : > { %417 = vmatmul.mubr.msk.bf16.vlgmr.msra.gmra.mrb[0].mxu0 %vm180_vm1, %v446_v9 }
 0x104   : > { %v230_v10 = vpop.f32.mrb[0].mxu0 }
 0x105   : > { %v237_v11 = vmul.f32 0.17677669, %v230_v10  ;;  %v418_v12 = vpop.f32.mrb[1].mxu0 }
 0x106   : > { %v233_v13 = vpop.f32.mrb[2].mxu0 }
 0x107   : > { %v238_v14 = vmul.f32 0.17677669, %v233_v13  ;;  %v419_v15 = vpop.f32.mrb[3].mxu0  ;;  %v240_v16 = vsel %vm239_vm2, %v237_v11, -inf }
 0x108   : > { %241 = vmax.xlane.f32.xlu0 %v240_v16 }
 0x109   : > { %v244_v17 = vsel %vm243_vm3, %v238_v14, -inf }
 0x10c   : > { %245 = vmax.xlane.f32.xlu0 %v244_v17 }
 0x195   : > { %v242_v18 = vpop.xlane.xlu0 %241 }
 0x196   : > { %v247_v19 = vsub.f32 %v237_v11, %v242_v18 }
 0x198   : > { %v249_v20 = vmul.f32 1.442695, %v247_v19 }
 0x199   : > { %v246_v21 = vpop.xlane.xlu0 %245 }
 0x19a   : > { %447 = vpow2.f32 %v249_v20  ;;  %v248_v22 = vsub.f32 %v238_v14, %v246_v21 }
 0x19c   : > { %v251_v23 = vmul.f32 1.442695, %v248_v22 }
 0x19e   : > { %449 = vpow2.f32 %v251_v23 }
 0x1a4   : > { %v448_v24 = vpop.eup %447 }
 0x1a5   : > { %v253_v25 = vsel %vm239_vm2, %v448_v24, 0.0 }
 0x1a6   : > { %254 = vadd.xlane.f32.xlu1 %v253_v25 }
 0x1a8   : > { %v450_v26 = vpop.eup %449 }
 0x1a9   : > { %v256_v27 = vsel %vm243_vm3, %v450_v26, 0.0 }
 0x1aa   : > { %257 = vadd.xlane.f32.xlu1 %v256_v27 }
 0x233   : > { %v255_v28 = vpop.xlane.xlu1 %254 }
 0x234   : > { %451 = vrcp.f32 %v255_v28 }
 0x237   : > { %v258_v29 = vpop.xlane.xlu1 %257 }
 0x238   : > { %453 = vrcp.f32 %v258_v29 }
 0x23e   : > { %v452_v30 = vpop.eup %451 }
 0x23f   : > { %v260_v32 = vmul.f32 %v452_v30, %v448_v24 }
 0x242   : > { %v454_v31 = vpop.eup %453 }
 0x243   : > { %v262_v33 = vmul.f32 %v454_v31, %v450_v26 }
 0x245   : > { %v263_v34 = vpack.c.bf16 %v262_v33, %v260_v32 }
 0x247   : > { %429 = vmatmul.mubr.msk.bf16.vlgmr.msra.gmra.mrb[0].mxu1 %vm239_vm2, %v263_v34 }
 0x31a   : > { %v305_v35 = vpop.f32.mrb[0].mxu1 }
 0x31b   : > { %320 = vst.msk [vmem:[%s494_s18] sm:$0xff] %vm180_vm1, %v305_v35  ;;  %v430_v36 = vpop.f32.mrb[1].mxu1 }
 0x31c   : > { %v308_v37 = vpop.f32.mrb[2].mxu1 }
 0x31d   : > { %322 = vst.msk [vmem:[%s494_s18 + $0x8] sm:$0x3] %vm321_vm4, %v308_v37  ;;  %v431_v38 = vpop.f32.mrb[3].mxu1 }
 0x31e PF: > { %s12_s9 = sadd.s32 1, %s461_s9  }
 0x31f   : > { %p9_p4 = scmp.ge.s32.totalorder %s12_s9, 4  }
 0x321   :  { %11 = sbr.rel (!%p9_p4) target bundleno = 1 (0x1), region = 58 }

// kernel: basic_layer_forward.8
= control target key start
LH: loop header
LB: loop body
LE: loop exit
PB: predicated region body
PF: predicated region fallthrough
CT: control target
= control target key end

     0   :  { %s1864_s15 = smov 0   ;;  %s1866_s16 = smov 0   ;;  %s2216_s0 = inlined_call_operand.vmem [shape: bf16[2,64,32], index: 0, kind: input, shape index: {}]   ;;  %s2217_s1 = inlined_call_operand.vmem [shape: f32[2,64,32], index: 1, kind: input, shape index: {}]   ;;  %s2218_s2 = inlined_call_operand.vmem [shape: f32[2,64,32], index: 2, kind: input, shape index: {}]   ;;  %s2219_s3 = inlined_call_operand.vmem [shape: f32[1,32], index: 3, kind: input, shape index: {}]   ;;  %s2220_s4 = inlined_call_operand.vmem [shape: f32[1,32], index: 4, kind: input, shape index: {}]   ;;  %s2221_s5 = inlined_call_operand.vmem [shape: bf16[32,128], index: 5, kind: input, shape index: {}]   ;;  %s2222_s6 = inlined_call_operand.vmem [shape: f32[1,128], index: 6, kind: input, shape index: {}]   ;;  %s2223_s7 = inlined_call_operand.vmem [shape: bf16[128,32], index: 7, kind: input, shape index: {}]   ;;  %s2224_s8 = inlined_call_operand.vmem [shape: f32[1,32], index: 8, kind: input, shape index: {}]   ;;  %s2225_s9 = inlined_call_operand.vmem [shape: bf16[32,10], index: 9, kind: input, shape index: {}]   ;;  %s2226_s10 = inlined_call_operand.vmem [shape: f32[1,10], index: 10, kind: input, shape index: {}]   ;;  %s2227_s11 = inlined_call_operand.vmem [shape: bf16[10,32], index: 11, kind: input, shape index: {}]   ;;  %s2228_s12 = inlined_call_operand.vmem [shape: f32[1,32], index: 12, kind: input, shape index: {}]   ;;  %s2229_s13 = inlined_call_operand.<no memory space> [shape: f32[1], index: 13, kind: input, shape index: {}]   ;;  %s2230_s14 = inlined_call_operand.vmem [shape: f32[2,64,32], index: 14, kind: output, shape index: {}]  }
   0x1   :  { %19 = sst [smem:[#allocation2]] %s2229_s13  ;;  %s1868_s17 = smov 0  }
   0x2 LB: > { %s37_s13 = sadd.s32 1, %s1780_s16  ;;  %p1500_p0 = scmp.ge.s32.totalorder %s1784_s17, 1  ;;  %s1784_s17 = sphi %s1868_s17, %s25_s17   ;;  %s1780_s16 = sphi %s1866_s16, %s2232_s16   ;;  %s1776_s15 = sphi %s1864_s15, %s2231_s15  }
   0x3   : > { %p39_p1 = scmp.ge.s32.totalorder %s37_s13, 2  ;;  %p461_p2 = scmp.lt.s32.totalorder %s1784_s17, 3 }
   0x5   : > { %s2234_s13 = smov (%p39_p1, %s37_s13), 0  ;;  %p462_p3 = pnand %p1500_p0, %p461_p2 }
   0x6   : > { %p530_p4 = scmp.lt.s32.totalorder (!%p462_p3), %s1776_s15, 1  ;;  %vm627_vm0 = vcmask (!%p462_p3), 261120   ;;  %vm1276_vm1 = vcmask (!%p462_p3), 1044480   ;;  %vm1263_vm2 = vcmask (!%p462_p3), 80896   ;;  %s1345_s24 = sld [smem:[#allocation2]] (!%p462_p3) }
   0x7   : > { %465 = sbr.rel (%p462_p3) target bundleno = 843 (0x34b), region = 76 }
   0xe   : > { %s2236_s15 = smov (!%p530_p4, %s1776_s15), 1 }
   0xf   : > { %s1550_s18 = sshll.u32 %s2236_s15, 5  ;;  %s1882_s19 = sshll.u32 %s2236_s15, 6 }
  0x10   : > { %s1887_s22 = scalar_lea.vmem %s2216_s0, %s1550_s18  ;;  %s1893_s25 = scalar_lea.vmem %s2217_s1, %s1882_s19 }
  0x11   : > { %s1899_s28 = scalar_lea.vmem %s2218_s2, %s1882_s19  ;;  %v1555_v0 = vld [vmem:[%s1887_s22] sm:$0xff]   ;;  %v1570_v2 = vld [vmem:[%s1887_s22 + $0x8] sm:$0xff]   ;;  %v586_v6 = vld [vmem:[%s1893_s25 + $0x10] sm:$0xff]  ;;  %s2182_s15 = scalar_lea.vmem %s2230_s14, %s1882_s19 }
  0x12   : > { %v584_v1 = vld [vmem:[%s1893_s25] sm:$0xff]  ;;  %v1556_v3 = vunpack.c.l.bf16 %v1555_v0  ;;  %v1560_v5 = vunpack.c.l.bf16 %v1570_v2  ;;  %v602_v7 = vld [vmem:[%s1899_s28 + $0x10] sm:$0xff]  ;;  %v1557_v8 = vunpack.c.h.bf16 %v1555_v0  ;;  %v1561_v9 = vunpack.c.h.bf16 %v1570_v2  ;;  %v585_v10 = vld [vmem:[%s1893_s25 + $0x8] sm:$0xff] }
  0x13   : > { %v600_v4 = vld [vmem:[%s1899_s28] sm:$0xff]  ;;  %v601_v11 = vld [vmem:[%s1899_s28 + $0x8] sm:$0xff]  ;;  %v587_v12 = vld [vmem:[%s1893_s25 + $0x18] sm:$0xff] }
  0x14   : > { %v592_v13 = vadd.f32 %v1556_v3, %v584_v1  ;;  %v594_v14 = vadd.f32 %v1560_v5, %v586_v6  ;;  %v593_v15 = vadd.f32 %v1557_v8, %v585_v10  ;;  %v595_v16 = vadd.f32 %v1561_v9, %v587_v12  ;;  %v603_v17 = vld [vmem:[%s1899_s28 + $0x18] sm:$0xff]  ;;  %v1571_v18 = vld [vmem:[%s1887_s22 + $0x10] sm:$0xff]   ;;  %v588_v19 = vld [vmem:[%s1893_s25 + $0x20] sm:$0xff] }
  0x15   : > { %v1564_v20 = vunpack.c.l.bf16 %v1571_v18  ;;  %v1565_v21 = vunpack.c.h.bf16 %v1571_v18  ;;  %v589_v22 = vld [vmem:[%s1893_s25 + $0x28] sm:$0xff]  ;;  %v604_v27 = vld [vmem:[%s1899_s28 + $0x20] sm:$0xff]  ;;  %v1572_v29 = vld [vmem:[%s1887_s22 + $0x18] sm:$0xff]  }
  0x16   : > { %v1914_v23 = vadd.f32 %v600_v4, %v592_v13  ;;  %v1916_v24 = vadd.f32 %v602_v7, %v594_v14  ;;  %v1918_v25 = vadd.f32 %v601_v11, %v593_v15  ;;  %v1920_v26 = vadd.f32 %v603_v17, %v595_v16  ;;  %v605_v28 = vld [vmem:[%s1899_s28 + $0x28] sm:$0xff]  ;;  %v590_v33 = vld [vmem:[%s1893_s25 + $0x30] sm:$0xff]  ;;  %v591_v35 = vld [vmem:[%s1893_s25 + $0x38] sm:$0xff] }
  0x17   : > { %v596_v30 = vadd.f32 %v1564_v20, %v588_v19  ;;  %v597_v31 = vadd.f32 %v1565_v21, %v589_v22  ;;  %v1568_v32 = vunpack.c.l.bf16 %v1572_v29  ;;  %v1569_v34 = vunpack.c.h.bf16 %v1572_v29  ;;  %v606_v40 = vld [vmem:[%s1899_s28 + $0x30] sm:$0xff]  ;;  %v607_v45 = vld [vmem:[%s1899_s28 + $0x38] sm:$0xff] }
  0x18   : > { %v628_v36 = vsel %vm627_vm0, %v1914_v23, 0.0  ;;  %v634_v37 = vsel %vm627_vm0, %v1916_v24, 0.0  ;;  %v631_v38 = vsel %vm627_vm0, %v1918_v25, 0.0  ;;  %v637_v39 = vsel %vm627_vm0, %v1920_v26, 0.0 }
  0x19   : > { %629 = vadd.xlane.f32.xlu0 %v628_v36  ;;  %635 = vadd.xlane.f32.xlu1 %v634_v37  ;;  %v1936_v41 = vadd.f32 %v604_v27, %v596_v30  ;;  %v1938_v42 = vadd.f32 %v605_v28, %v597_v31  ;;  %v598_v43 = vadd.f32 %v1568_v32, %v590_v33  ;;  %v1685_v32 = vld [vmem:[%s2221_s5] sm:$0xff]   ;;  %v1686_v33 = vld [vmem:[%s2221_s5 + $0x8] sm:$0xff]  }
  0x1a   : > { %v599_v44 = vadd.f32 %v1569_v34, %v591_v35  ;;  %1602 = vmatprep.subr.bf16.mxu0 %v1685_v32  ;;  %v2010_v34 = vld [vmem:[%s2225_s9] sm:$0xff]  }
  0x1b   : > { %v640_v46 = vsel %vm627_vm0, %v1936_v41, 0.0  ;;  %v643_v47 = vsel %vm627_vm0, %v1938_v42, 0.0  ;;  %v1945_v48 = vadd.f32 %v606_v40, %v598_v43  ;;  %1603 = vmatpush3.bf16.msra.mxu0 %v1685_v32 }
  0x1c   : > { %v1947_v49 = vadd.f32 %v607_v45, %v599_v44  ;;  %1604 = vmatprep.subr.bf16.mxu0 %v1686_v33 }
  0x1d   : > { %632 = vadd.xlane.f32.xlu0 %v631_v38  ;;  %638 = vadd.xlane.f32.xlu1 %v637_v39  ;;  %v646_v50 = vsel %vm627_vm0, %v1945_v48, 0.0 }
  0x1e   : > { %v649_v51 = vsel %vm627_vm0, %v1947_v49, 0.0 }
  0x1f   : > { %1605 = vmatpush3.bf16.msra.mxu0 %v1686_v33 }
  0x20   : > { %1638 = vmatprep.subr.bf16.mxu0 %v2010_v34 }
  0x21   : > { %641 = vadd.xlane.f32.xlu0 %v640_v46  ;;  %644 = vadd.xlane.f32.xlu1 %v643_v47 }
  0x25   : > { %647 = vadd.xlane.f32.xlu0 %v646_v50  ;;  %650 = vadd.xlane.f32.xlu1 %v649_v51 }
  0xa6   : > { %v630_v52 = vpop.xlane.xlu0 %629  ;;  %v636_v53 = vpop.xlane.xlu1 %635 }
  0xa7   : > { %v653_v54 = vmul.f32 0.03125, %v630_v52  ;;  %v655_v55 = vmul.f32 0.03125, %v636_v53 }
  0xa9   : > { %v1954_v56 = vsub.f32 %v1914_v23, %v653_v54  ;;  %v1957_v57 = vsub.f32 %v1916_v24, %v655_v55 }
  0xaa   : > { %v633_v58 = vpop.xlane.xlu0 %632  ;;  %v639_v59 = vpop.xlane.xlu1 %638 }
  0xab   : > { %v654_v60 = vmul.f32 0.03125, %v633_v58  ;;  %v656_v61 = vmul.f32 0.03125, %v639_v59  ;;  %v669_v62 = vmul.f32 %v1954_v56, %v1954_v56  ;;  %v671_v63 = vmul.f32 %v1957_v57, %v1957_v57 }
  0xad   : > { %v1964_v0 = vsub.f32 %v1918_v25, %v654_v60  ;;  %v1967_v1 = vsub.f32 %v1920_v26, %v656_v61  ;;  %v677_v2 = vsel %vm627_vm0, %v669_v62, 0.0  ;;  %v683_v5 = vsel %vm627_vm0, %v671_v63, 0.0 }
  0xae   : > { %678 = vadd.xlane.f32.xlu0 %v677_v2  ;;  %v642_v3 = vpop.xlane.xlu0 %641  ;;  %v645_v4 = vpop.xlane.xlu1 %644 }
  0xaf   : > { %v657_v6 = vmul.f32 0.03125, %v642_v3  ;;  %v658_v7 = vmul.f32 0.03125, %v645_v4  ;;  %v670_v8 = vmul.f32 %v1964_v0, %v1964_v0  ;;  %v672_v9 = vmul.f32 %v1967_v1, %v1967_v1  ;;  %v1509_v4 = vld [vmem:[%s2219_s3] ss:$0 sm:$0xff] }
  0xb1   : > { %v1976_v10 = vsub.f32 %v1936_v41, %v657_v6  ;;  %v1979_v11 = vsub.f32 %v1938_v42, %v658_v7  ;;  %v680_v12 = vsel %vm627_vm0, %v670_v8, 0.0  ;;  %v686_v15 = vsel %vm627_vm0, %v672_v9, 0.0 }
  0xb2   : > { %684 = vadd.xlane.f32.xlu0 %v683_v5  ;;  %681 = vadd.xlane.f32.xlu1 %v680_v12  ;;  %v648_v13 = vpop.xlane.xlu0 %647  ;;  %v651_v14 = vpop.xlane.xlu1 %650 }
  0xb3   : > { %v659_v16 = vmul.f32 0.03125, %v648_v13  ;;  %v660_v17 = vmul.f32 0.03125, %v651_v14  ;;  %v673_v18 = vmul.f32 %v1976_v10, %v1976_v10  ;;  %v674_v19 = vmul.f32 %v1979_v11, %v1979_v11 }
  0xb5   : > { %v1988_v20 = vsub.f32 %v1945_v48, %v659_v16  ;;  %v1991_v21 = vsub.f32 %v1947_v49, %v660_v17  ;;  %v689_v22 = vsel %vm627_vm0, %v673_v18, 0.0  ;;  %v692_v27 = vsel %vm627_vm0, %v674_v19, 0.0 }
  0xb6   : > { %687 = vadd.xlane.f32.xlu1 %v686_v15  ;;  %690 = vadd.xlane.f32.xlu0 %v689_v22 }
  0xb7   : > { %v675_v28 = vmul.f32 %v1988_v20, %v1988_v20  ;;  %v676_v29 = vmul.f32 %v1991_v21, %v1991_v21 }
  0xb9   : > { %v695_v30 = vsel %vm627_vm0, %v675_v28, 0.0  ;;  %v698_v31 = vsel %vm627_vm0, %v676_v29, 0.0 }
  0xba   : > { %693 = vadd.xlane.f32.xlu1 %v692_v27  ;;  %696 = vadd.xlane.f32.xlu0 %v695_v30 }
  0xbe   : > { %699 = vadd.xlane.f32.xlu1 %v698_v31 }
 0x13b   : > { %v679_v35 = vpop.xlane.xlu0 %678 }
 0x13c   : > { %v701_v36 = vmul.f32 0.03125, %v679_v35 }
 0x13e   : > { %v709_v37 = vadd.f32 1e-05, %v701_v36  ;;  %v1688_v36 = vld [vmem:[%s2225_s9 + $0x8] sm:$0xff]  }
 0x13f   : > { %v682_v38 = vpop.xlane.xlu1 %681  ;;  %v685_v39 = vpop.xlane.xlu0 %684 }
 0x140   : > { %1698 = vrsqrt.f32 %v709_v37  ;;  %v702_v40 = vmul.f32 0.03125, %v682_v38  ;;  %v703_v43 = vmul.f32 0.03125, %v685_v39 }
 0x142   : > { %v710_v44 = vadd.f32 1e-05, %v702_v40  ;;  %v711_v45 = vadd.f32 1e-05, %v703_v43 }
 0x143   : > { %v688_v46 = vpop.xlane.xlu1 %687  ;;  %v691_v47 = vpop.xlane.xlu0 %690 }
 0x144   : > { %1700 = vrsqrt.f32 %v710_v44  ;;  %v704_v50 = vmul.f32 0.03125, %v688_v46  ;;  %v705_v51 = vmul.f32 0.03125, %v691_v47  ;;  %v1080_v47 = vpack.c.bf16 %v1947_v49, %v1945_v48 }
 0x145   : > { %1702 = vrsqrt.f32 %v711_v45  ;;  %v1077_v45 = vpack.c.bf16 %v1918_v25, %v1914_v23 }
 0x146   : > { %v712_v52 = vadd.f32 1e-05, %v704_v50  ;;  %v713_v53 = vadd.f32 1e-05, %v705_v51  ;;  %v1689_v50 = vld [vmem:[%s2223_s7] sm:$0xff]   ;;  %v1690_v51 = vld [vmem:[%s2223_s7 + $0x8] sm:$0xff]  }
 0x147   : > { %v694_v54 = vpop.xlane.xlu1 %693  ;;  %v697_v55 = vpop.xlane.xlu0 %696  ;;  %1614 = vmatprep.subr.bf16.mxu1 %v1689_v50 }
 0x148   : > { %1704 = vrsqrt.f32 %v712_v52  ;;  %v706_v58 = vmul.f32 0.03125, %v694_v54  ;;  %v707_v59 = vmul.f32 0.03125, %v697_v55  ;;  %1615 = vmatpush3.bf16.msra.mxu1 %v1689_v50  ;;  %v1691_v52 = vld [vmem:[%s2223_s7 + $0x10] sm:$0xff]   ;;  %v1693_v54 = vld [vmem:[%s2223_s7 + $0x20] sm:$0xff]   ;;  %v1694_v55 = vld [vmem:[%s2223_s7 + $0x28] sm:$0xff]  }
 0x149   : > { %1706 = vrsqrt.f32 %v713_v53  ;;  %1616 = vmatprep.subr.bf16.mxu1 %v1690_v51  ;;  %v1692_v53 = vld [vmem:[%s2223_s7 + $0x18] sm:$0xff]  }
 0x14a   : > { %v1699_v60 = vpop.eup %1698  ;;  %v714_v61 = vadd.f32 1e-05, %v706_v58  ;;  %v715_v62 = vadd.f32 1e-05, %v707_v59  ;;  %v1695_v58 = vld [vmem:[%s2223_s7 + $0x30] sm:$0xff]   ;;  %v1696_v59 = vld [vmem:[%s2223_s7 + $0x38] sm:$0xff]  }
 0x14b   : > { %v700_v63 = vpop.xlane.xlu1 %699  ;;  %v725_v2 = vmul.f32 %v1699_v60, %v1954_v56  ;;  %v1510_v56 = vld [vmem:[%s2220_s4] ss:$0 sm:$0xff] }
 0x14c   : > { %1708 = vrsqrt.f32 %v714_v61  ;;  %v708_v3 = vmul.f32 0.03125, %v700_v63  ;;  %1617 = vmatpush3.bf16.msra.mxu1 %v1690_v51  ;;  %v1697_v60 = vld [vmem:[%s2227_s11] sm:$0x1f]  }
 0x14d   : > { %1710 = vrsqrt.f32 %v715_v62  ;;  %v739_v9 = vmul.f32 %v1509_v4, %v725_v2  ;;  %1618 = vmatprep.subr.bf16.mxu1 %v1691_v52  ;;  %v1278_v61 = vsel %vm1276_vm1, %v1697_v60, 0  ;;  %v1511_v62 = vld [vmem:[%s2222_s6] ss:$0 sm:$0xff] }
 0x14e   : > { %v1701_v5 = vpop.eup %1700  ;;  %v716_v6 = vadd.f32 1e-05, %v708_v3 }
 0x14f   : > { %v1703_v7 = vpop.eup %1702  ;;  %v726_v8 = vmul.f32 %v1701_v5, %v1964_v0  ;;  %v753_v17 = vadd.f32 %v1510_v56, %v739_v9 }
 0x150   : > { %v727_v12 = vmul.f32 %v1703_v7, %v1957_v57  ;;  %1712 = vrsqrt.f32 %v716_v6  ;;  %1619 = vmatpush3.bf16.msra.mxu1 %v1691_v52 }
 0x151   : > { %v740_v13 = vmul.f32 %v1509_v4, %v726_v8  ;;  %1620 = vmatprep.subr.bf16.mxu1 %v1692_v53 }
 0x152   : > { %v1705_v14 = vpop.eup %1704  ;;  %v741_v19 = vmul.f32 %v1509_v4, %v727_v12 }
 0x153   : > { %v1707_v15 = vpop.eup %1706  ;;  %v728_v16 = vmul.f32 %v1705_v14, %v1967_v1  ;;  %v754_v18 = vadd.f32 %v1510_v56, %v740_v13 }
 0x154   : > { %v729_v22 = vmul.f32 %v1707_v15, %v1976_v10  ;;  %v755_v30 = vadd.f32 %v1510_v56, %v741_v19  ;;  %1621 = vmatpush3.bf16.msra.mxu1 %v1692_v53 }
 0x155   : > { %v761_v27 = vpack.c.bf16 %v754_v18, %v753_v17  ;;  %v742_v0 = vmul.f32 %v1509_v4, %v728_v16  ;;  %1622 = vmatprep.subr.bf16.mxu1 %v1693_v54 }
 0x156   : > { %v1709_v28 = vpop.eup %1708  ;;  %v743_v32 = vmul.f32 %v1509_v4, %v729_v22 }
 0x157   : > { %v1711_v29 = vpop.eup %1710  ;;  %v730_v57 = vmul.f32 %v1709_v28, %v1979_v11  ;;  %1606 = vmatprep.mubr.msk.bf16.mxu0 %vm627_vm0, %v761_v27  ;;  %v756_v31 = vadd.f32 %v1510_v56, %v742_v0 }
 0x158   : > { %v731_v33 = vmul.f32 %v1711_v29, %v1988_v20  ;;  %v757_v38 = vadd.f32 %v1510_v56, %v743_v32  ;;  %1623 = vmatpush3.bf16.msra.mxu1 %v1693_v54 }
 0x159   : > { %v762_v35 = vpack.c.bf16 %v756_v31, %v755_v30  ;;  %v744_v1 = vmul.f32 %v1509_v4, %v730_v57  ;;  %1624 = vmatprep.subr.bf16.mxu1 %v1694_v55 }
 0x15a   : > { %v1713_v10 = vpop.eup %1712  ;;  %v745_v39 = vmul.f32 %v1509_v4, %v731_v33 }
 0x15b   : > { %v732_v37 = vmul.f32 %v1713_v10, %v1991_v21  ;;  %1607 = vmatmul.mubr.msk.bf16.vlgmr.msra.gmra.mrb[0].mxu0 %vm627_vm0, %v762_v35  ;;  %v758_v11 = vadd.f32 %v1510_v56, %v744_v1  ;;  %v1078_v21 = vpack.c.bf16 %v1920_v26, %v1916_v24 }
 0x15c   : > { %1639 = vmatpush3.bf16.msra.mxu0 %v2010_v34  ;;  %v759_v20 = vadd.f32 %v1510_v56, %v745_v39  ;;  %v1079_v34 = vpack.c.bf16 %v1938_v42, %v1936_v41  ;;  %1625 = vmatpush3.bf16.msra.mxu1 %v1694_v55 }
 0x15d   : > { %v763_v40 = vpack.c.bf16 %v758_v11, %v757_v38  ;;  %1640 = vmatprep.subr.bf16.mxu0 %v1688_v36  ;;  %v746_v43 = vmul.f32 %v1509_v4, %v732_v37  ;;  %1626 = vmatprep.subr.bf16.mxu1 %v1695_v58 }
 0x15f   : > { %1610 = vmatprep.mubr.msk.bf16.mxu0 %vm627_vm0, %v763_v40  ;;  %v760_v44 = vadd.f32 %v1510_v56, %v746_v43 }
 0x160   : > { %1641 = vmatpush3.bf16.msra.mxu0 %v1688_v36  ;;  %1627 = vmatpush3.bf16.msra.mxu1 %v1695_v58 }
 0x161   : > { %v764_v46 = vpack.c.bf16 %v760_v44, %v759_v20  ;;  %1628 = vmatprep.subr.bf16.mxu1 %v1696_v59  ;;  %1660 = vmatprep.subr.msk.bf16.mxu0 %vm1276_vm1, %v1697_v60 }
 0x163   : > { %1611 = vmatmul.mubr.msk.bf16.gmra.mrb[4].mxu0 %vm627_vm0, %v764_v46  ;;  %v2112_v46 = vld [vmem:[%s2226_s10] ss:$0 sm:$0xff] }
 0x164   : > { %1642 = vmatprep.mubr.msk.bf16.mxu0 %vm627_vm0, %v1077_v45  ;;  %1629 = vmatpush3.bf16.msra.mxu1 %v1696_v59 }
 0x16b   : > { %1643 = vmatmul.mubr.msk.bf16.vlgmr.msra.gmra.mrb[8].mxu0 %vm627_vm0, %v1078_v21 }
 0x16c   : > { %1646 = vmatprep.mubr.msk.bf16.mxu0 %vm627_vm0, %v1079_v34  ;;  %1651 = vmatpush3.bf16.msra.mxu0 %v1278_v61 }
 0x173   : > { %1647 = vmatmul.mubr.msk.bf16.gmra.mrb[12].mxu0 %vm627_vm0, %v1080_v47 }
 0x22e   : > { %v1608_v63 = vpop.f32.mrb[0].mxu0 }
 0x22f   : > { %v843_v2 = vadd.f32 %v1608_v63, %v1511_v62  ;;  %v834_v3 = vpop.f32.mrb[1].mxu0 }
 0x230   : > { %v2077_v4 = vadd.f32 %v1511_v62, %v834_v3  ;;  %v1609_v5 = vpop.f32.mrb[2].mxu0 }
 0x231   : > { %v875_v6 = vmul.f32 0.044715, %v843_v2  ;;  %v2079_v7 = vadd.f32 %v1609_v5, %v1511_v62  ;;  %v837_v8 = vpop.f32.mrb[3].mxu0  ;;  %v867_v5 = vmul.f32 0.5, %v843_v2 }
 0x232   : > { %v873_v9 = vmul.f32 0.044715, %v2077_v4  ;;  %v2082_v12 = vadd.f32 %v1511_v62, %v837_v8 }
 0x233   : > { %v883_v56 = vmul.f32 %v875_v6, %v843_v2  ;;  %v876_v13 = vmul.f32 0.044715, %v2079_v7 }
 0x234   : > { %v874_v14 = vmul.f32 0.044715, %v2082_v12  ;;  %v881_v15 = vmul.f32 %v873_v9, %v2077_v4 }
 0x235   : > { %v891_v16 = vmul.f32 %v883_v56, %v843_v2  ;;  %v884_v17 = vmul.f32 %v876_v13, %v2079_v7 }
 0x236   : > { %v1612_v18 = vpop.f32.mrb[4].mxu0  ;;  %v882_v19 = vmul.f32 %v874_v14, %v2082_v12  ;;  %v889_v22 = vmul.f32 %v881_v15, %v2077_v4 }
 0x237   : > { %v892_v27 = vmul.f32 %v884_v17, %v2079_v7  ;;  %v2091_v0 = vadd.f32 %v1612_v18, %v1511_v62  ;;  %v850_v28 = vpop.f32.mrb[5].mxu0  ;;  %v899_v29 = vadd.f32 %v891_v16, %v843_v2  ;;  %v865_v16 = vmul.f32 0.5, %v2077_v4 }
 0x238   : > { %v2093_v57 = vadd.f32 %v1511_v62, %v850_v28  ;;  %v1613_v30 = vpop.f32.mrb[6].mxu0  ;;  %v890_v31 = vmul.f32 %v882_v19, %v2082_v12  ;;  %v897_v32 = vadd.f32 %v889_v22, %v2077_v4  ;;  %v868_v19 = vmul.f32 0.5, %v2079_v7 }
 0x239   : > { %v879_v33 = vmul.f32 0.044715, %v2091_v0  ;;  %v2098_v35 = vadd.f32 %v1613_v30, %v1511_v62  ;;  %v853_v1 = vpop.f32.mrb[7].mxu0  ;;  %v900_v36 = vadd.f32 %v892_v27, %v2079_v7  ;;  %v907_v10 = vmul.f32 0.7978846, %v899_v29 }
 0x23a   : > { %v877_v37 = vmul.f32 0.044715, %v2093_v57  ;;  %v2102_v38 = vadd.f32 %v1511_v62, %v853_v1  ;;  %v898_v11 = vadd.f32 %v890_v31, %v2082_v12  ;;  %v905_v39 = vmul.f32 0.7978846, %v897_v32 }
 0x23b   : > { %v887_v40 = vmul.f32 %v879_v33, %v2091_v0  ;;  %v880_v43 = vmul.f32 0.044715, %v2098_v35  ;;  %v908_v20 = vmul.f32 0.7978846, %v900_v36  ;;  %1714 = vtanh.f32 %v907_v10 }
 0x23c   : > { %v885_v44 = vmul.f32 %v877_v37, %v2093_v57  ;;  %v878_v45 = vmul.f32 0.044715, %v2102_v38  ;;  %v906_v21 = vmul.f32 0.7978846, %v898_v11  ;;  %1716 = vtanh.f32 %v905_v39 }
 0x23d   : > { %v895_v34 = vmul.f32 %v887_v40, %v2091_v0  ;;  %v888_v47 = vmul.f32 %v880_v43, %v2098_v35  ;;  %1718 = vtanh.f32 %v908_v20  ;;  %v866_v28 = vmul.f32 0.5, %v2082_v12 }
 0x23e   : > { %v893_v50 = vmul.f32 %v885_v44, %v2093_v57  ;;  %v886_v51 = vmul.f32 %v878_v45, %v2102_v38  ;;  %v1644_v52 = vpop.f32.mrb[8].mxu0  ;;  %1720 = vtanh.f32 %v906_v21 }
 0x23f   : > { %v896_v53 = vmul.f32 %v888_v47, %v2098_v35  ;;  %v2120_v54 = vadd.f32 %v1644_v52, %v2112_v46  ;;  %v1150_v55 = vpop.f32.mrb[9].mxu0  ;;  %v903_v6 = vadd.f32 %v895_v34, %v2091_v0 }
 0x240   : > { %v894_v58 = vmul.f32 %v886_v51, %v2102_v38  ;;  %v2124_v59 = vadd.f32 %v2112_v46, %v1150_v55  ;;  %v1645_v60 = vpop.f32.mrb[10].mxu0  ;;  %v901_v61 = vadd.f32 %v893_v50, %v2093_v57 }
 0x241   : > { %v1536_v62 = vmul.f32 -1.702, %v2120_v54  ;;  %v2129_v63 = vadd.f32 %v1645_v60, %v2112_v46  ;;  %v1153_v3 = vpop.f32.mrb[11].mxu0  ;;  %v904_v17 = vadd.f32 %v896_v53, %v2098_v35  ;;  %v911_v29 = vmul.f32 0.7978846, %v903_v6 }
 0x242   : > { %v1534_v8 = vmul.f32 -1.702, %v2124_v59  ;;  %v2134_v9 = vadd.f32 %v2112_v46, %v1153_v3  ;;  %v902_v56 = vadd.f32 %v894_v58, %v2102_v38  ;;  %v909_v13 = vmul.f32 0.7978846, %v901_v61 }
 0x243   : > { %v1201_v14 = vmul.f32 1.442695, %v1536_v62  ;;  %v1537_v15 = vmul.f32 -1.702, %v2129_v63  ;;  %v912_v37 = vmul.f32 0.7978846, %v904_v17 }
 0x244   : > { %v1197_v18 = vmul.f32 1.442695, %v1534_v8  ;;  %v1535_v2 = vmul.f32 -1.702, %v2134_v9  ;;  %1722 = vtanh.f32 %v909_v13  ;;  %v910_v4 = vmul.f32 0.7978846, %v902_v56 }
 0x245   : > { %v1715_v22 = vpop.eup %1714  ;;  %1724 = vpow2.f32 %v1201_v14  ;;  %v1203_v27 = vmul.f32 1.442695, %v1537_v15 }
 0x246   : > { %v1717_v30 = vpop.eup %1716  ;;  %1726 = vpow2.f32 %v1197_v18  ;;  %v1199_v31 = vmul.f32 1.442695, %v1535_v2  ;;  %v1648_v32 = vpop.f32.mrb[12].mxu0  ;;  %v923_v33 = vadd.f32 1.0, %v1715_v22  ;;  %v869_v22 = vmul.f32 0.5, %v2093_v57 }
 0x247   : > { %v1719_v1 = vpop.eup %1718  ;;  %1728 = vpow2.f32 %v1203_v27  ;;  %v2144_v36 = vadd.f32 %v1648_v32, %v2112_v46  ;;  %v1166_v10 = vpop.f32.mrb[13].mxu0  ;;  %v921_v7 = vadd.f32 1.0, %v1717_v30  ;;  %v870_v27 = vmul.f32 0.5, %v2102_v38 }
 0x248   : > { %v1721_v11 = vpop.eup %1720  ;;  %1730 = vpow2.f32 %v1199_v31  ;;  %v2147_v39 = vadd.f32 %v2112_v46, %v1166_v10  ;;  %v1649_v12 = vpop.f32.mrb[14].mxu0  ;;  %v924_v40 = vadd.f32 1.0, %v1719_v1  ;;  %v931_v43 = vmul.f32 %v923_v33, %v867_v5 }
 0x249   : > { %v1540_v20 = vmul.f32 -1.702, %v2144_v36  ;;  %v2151_v44 = vadd.f32 %v1649_v12, %v2112_v46  ;;  %v1169_v45 = vpop.f32.mrb[15].mxu0  ;;  %v922_v21 = vadd.f32 1.0, %v1721_v11  ;;  %v929_v34 = vmul.f32 %v921_v7, %v865_v16 }
 0x24a   : > { %v1538_v47 = vmul.f32 -1.702, %v2147_v39  ;;  %v2155_v50 = vadd.f32 %v2112_v46, %v1169_v45  ;;  %v932_v51 = vmul.f32 %v924_v40, %v868_v19  ;;  %1732 = vtanh.f32 %v910_v4 }
 0x24b   : > { %v1209_v52 = vmul.f32 1.442695, %v1540_v20  ;;  %v1541_v53 = vmul.f32 -1.702, %v2151_v44  ;;  %v930_v55 = vmul.f32 %v922_v21, %v866_v28  ;;  %1734 = vtanh.f32 %v911_v29 }
 0x24c   : > { %v1205_v58 = vmul.f32 1.442695, %v1538_v47  ;;  %v1539_v60 = vmul.f32 -1.702, %v2155_v50  ;;  %v938_v61 = vpack.c.bf16 %v932_v51, %v931_v43  ;;  %1736 = vtanh.f32 %v912_v37 }
 0x24d   : > { %1738 = vpow2.f32 %v1209_v52  ;;  %v1211_v62 = vmul.f32 1.442695, %v1541_v53  ;;  %v937_v3 = vpack.c.bf16 %v930_v55, %v929_v34  ;;  %v871_v30 = vmul.f32 0.5, %v2091_v0 }
 0x24e   : > { %v1723_v5 = vpop.eup %1722  ;;  %1740 = vpow2.f32 %v1205_v58  ;;  %v1207_v6 = vmul.f32 1.442695, %v1539_v60  ;;  %v872_v1 = vmul.f32 0.5, %v2098_v35 }
 0x24f   : > { %v1725_v46 = vpop.eup %1724  ;;  %1742 = vpow2.f32 %v1211_v62  ;;  %1630 = vmatprep.mubr.bf16.mxu1 %v937_v3  ;;  %v925_v18 = vadd.f32 1.0, %v1723_v5 }
 0x250   : > { %v1727_v8 = vpop.eup %1726  ;;  %v1215_v56 = vadd.f32 1.0, %v1725_v46  ;;  %1744 = vpow2.f32 %v1207_v6  ;;  %1631 = vmatmul.mubr.bf16.vlgmr.msra.gmra.mrb[0].mxu1 %v938_v61 }
 0x251   : > { %v1729_v13 = vpop.eup %1728  ;;  %v1213_v14 = vadd.f32 1.0, %v1727_v8  ;;  %v933_v33 = vmul.f32 %v925_v18, %v869_v22 }
 0x252   : > { %v1731_v15 = vpop.eup %1730  ;;  %1746 = vrcp.f32 %v1215_v56  ;;  %v1216_v16 = vadd.f32 1.0, %v1729_v13 }
 0x253   : > { %1748 = vrcp.f32 %v1213_v14  ;;  %v1214_v17 = vadd.f32 1.0, %v1731_v15 }
 0x254   : > { %v1733_v2 = vpop.eup %1732  ;;  %1750 = vrcp.f32 %v1216_v16 }
 0x255   : > { %v1735_v19 = vpop.eup %1734  ;;  %1752 = vrcp.f32 %v1214_v17  ;;  %v926_v28 = vadd.f32 1.0, %v1733_v2 }
 0x256   : > { %v1737_v29 = vpop.eup %1736  ;;  %v927_v31 = vadd.f32 1.0, %v1735_v19  ;;  %v1346_v19 = vstv %s1345_s24 }
 0x257   : > { %v1739_v32 = vpop.eup %1738  ;;  %v934_v4 = vmul.f32 %v926_v28, %v870_v27  ;;  %v928_v10 = vadd.f32 1.0, %v1737_v29 }
 0x258   : > { %v1741_v7 = vpop.eup %1740  ;;  %v1219_v37 = vadd.f32 1.0, %v1739_v32  ;;  %v935_v43 = vmul.f32 %v927_v31, %v871_v30 }
 0x259   : > { %v1743_v11 = vpop.eup %1742  ;;  %v1217_v12 = vadd.f32 1.0, %v1741_v7  ;;  %v939_v40 = vpack.c.bf16 %v934_v4, %v933_v33  ;;  %v936_v57 = vmul.f32 %v928_v10, %v872_v1 }
 0x25a   : > { %v1745_v20 = vpop.eup %1744  ;;  %1754 = vrcp.f32 %v1219_v37  ;;  %v1220_v38 = vadd.f32 1.0, %v1743_v11 }
 0x25b   : > { %1756 = vrcp.f32 %v1217_v12  ;;  %v1218_v45 = vadd.f32 1.0, %v1745_v20  ;;  %1634 = vmatprep.mubr.bf16.mxu1 %v939_v40  ;;  %v940_v0 = vpack.c.bf16 %v936_v57, %v935_v43 }
 0x25c   : > { %v1747_v21 = vpop.eup %1746  ;;  %1758 = vrcp.f32 %v1220_v38 }
 0x25d   : > { %v1749_v34 = vpop.eup %1748  ;;  %1760 = vrcp.f32 %v1218_v45  ;;  %1635 = vmatmul.mubr.bf16.gmra.mrb[4].mxu1 %v940_v0  ;;  %v1239_v51 = vmul.f32 %v1747_v21, %v2120_v54 }
 0x25e   : > { %v1751_v35 = vpop.eup %1750  ;;  %v1237_v53 = vmul.f32 %v1749_v34, %v2124_v59 }
 0x25f   : > { %v1753_v47 = vpop.eup %1752  ;;  %v1240_v52 = vmul.f32 %v1751_v35, %v2129_v63 }
 0x260   : > { %v1238_v55 = vmul.f32 %v1753_v47, %v2134_v9 }
 0x261   : > { %v1246_v58 = vpack.c.bf16 %v1240_v52, %v1239_v51 }
 0x262   : > { %v1245_v60 = vpack.c.bf16 %v1238_v55, %v1237_v53 }
 0x264   : > { %v1755_v61 = vpop.eup %1754  ;;  %1652 = vmatprep.mubr.msk.bf16.mxu0 %vm1263_vm2, %v1245_v60 }
 0x265   : > { %v1757_v62 = vpop.eup %1756  ;;  %1653 = vmatmul.mubr.msk.bf16.vlgmr.msra.gmra.mrb[16].mxu0 %vm1263_vm2, %v1246_v58  ;;  %v1243_v6 = vmul.f32 %v1755_v61, %v2144_v36  ;;  %v1518_v36 = vld [vmem:[%s2224_s8] ss:$0 sm:$0xff] }
 0x266   : > { %v1759_v3 = vpop.eup %1758  ;;  %v1241_v54 = vmul.f32 %v1757_v62, %v2147_v39  ;;  %v1542_v39 = vld [vmem:[%s2228_s12] ss:$0 sm:$0xff] }
 0x267   : > { %v1761_v5 = vpop.eup %1760  ;;  %v1244_v46 = vmul.f32 %v1759_v3, %v2151_v44 }
 0x268   : > { %v1242_v63 = vmul.f32 %v1761_v5, %v2155_v50 }
 0x269   : > { %v1248_v59 = vpack.c.bf16 %v1244_v46, %v1243_v6 }
 0x26a   : > { %v1247_v8 = vpack.c.bf16 %v1242_v63, %v1241_v54 }
 0x26c   : > { %1656 = vmatprep.mubr.msk.bf16.mxu0 %vm1263_vm2, %v1247_v8 }
 0x26d   : > { %1657 = vmatmul.mubr.msk.bf16.gmra.mrb[20].mxu0 %vm1263_vm2, %v1248_v59 }
 0x323   : > { %v1632_v9 = vpop.f32.mrb[0].mxu1 }
 0x324   : > { %v1046_v56 = vpop.f32.mrb[1].mxu1  ;;  %v1055_v44 = vadd.f32 %v1632_v9, %v1518_v36 }
 0x325   : > { %v1633_v13 = vpop.f32.mrb[2].mxu1  ;;  %v1047_v50 = vadd.f32 %v1518_v36, %v1046_v56 }
 0x326   : > { %v1049_v14 = vpop.f32.mrb[3].mxu1  ;;  %v1058_v22 = vadd.f32 %v1633_v13, %v1518_v36  ;;  %v1357_v32 = vadd.f32 %v1055_v44, %v1916_v24 }
 0x327   : > { %v1050_v29 = vadd.f32 %v1518_v36, %v1049_v14  ;;  %v1355_v10 = vadd.f32 %v1047_v50, %v1914_v23 }
 0x328   : > { %v1358_v11 = vadd.f32 %v1058_v22, %v1920_v26 }
 0x329   : > { %v1356_v24 = vadd.f32 %v1050_v29, %v1918_v25 }
 0x330   : > { %v1636_v15 = vpop.f32.mrb[4].mxu1 }
 0x331   : > { %v1062_v16 = vpop.f32.mrb[5].mxu1  ;;  %v1071_v20 = vadd.f32 %v1636_v15, %v1518_v36 }
 0x332   : > { %v1637_v17 = vpop.f32.mrb[6].mxu1  ;;  %v1063_v45 = vadd.f32 %v1518_v36, %v1062_v16 }
 0x333   : > { %v1065_v18 = vpop.f32.mrb[7].mxu1  ;;  %v1074_v21 = vadd.f32 %v1637_v17, %v1518_v36  ;;  %v1361_v51 = vadd.f32 %v1071_v20, %v1945_v48 }
 0x334   : > { %v1066_v35 = vadd.f32 %v1518_v36, %v1065_v18  ;;  %v1359_v58 = vadd.f32 %v1063_v45, %v1936_v41 }
 0x335   : > { %v1362_v62 = vadd.f32 %v1074_v21, %v1947_v49 }
 0x336   : > { %v1360_v6 = vadd.f32 %v1066_v35, %v1938_v42 }
 0x338   : > { %v1654_v2 = vpop.f32.mrb[16].mxu0 }
 0x339   : > { %v1323_v27 = vadd.f32 %v1654_v2, %v1542_v39  ;;  %v1314_v28 = vpop.f32.mrb[17].mxu0 }
 0x33a   : > { %v1315_v30 = vadd.f32 %v1542_v39, %v1314_v28  ;;  %v1655_v31 = vpop.f32.mrb[18].mxu0 }
 0x33b   : > { %v1349_v33 = vmul.f32 %v1346_v19, %v1323_v27  ;;  %v1326_v4 = vadd.f32 %v1655_v31, %v1542_v39  ;;  %v1317_v1 = vpop.f32.mrb[19].mxu0 }
 0x33c   : > { %v1347_v7 = vmul.f32 %v1346_v19, %v1315_v30  ;;  %v1318_v37 = vadd.f32 %v1542_v39, %v1317_v1 }
 0x33d   : > { %v1365_v12 = vadd.f32 %v1357_v32, %v1349_v33  ;;  %v1350_v40 = vmul.f32 %v1346_v19, %v1326_v4 }
 0x33e   : > { %v1363_v43 = vadd.f32 %v1355_v10, %v1347_v7  ;;  %v1348_v57 = vmul.f32 %v1346_v19, %v1318_v37 }
 0x33f   : > { %1373 = vst.msk [vmem:[%s2182_s15 + $0x10] sm:$0xff] %vm627_vm0, %v1365_v12  ;;  %v1366_v38 = vadd.f32 %v1358_v11, %v1350_v40 }
 0x340   : > { %1371 = vst.msk [vmem:[%s2182_s15] sm:$0xff] %vm627_vm0, %v1363_v43  ;;  %v1364_v23 = vadd.f32 %v1356_v24, %v1348_v57  ;;  %v1658_v0 = vpop.f32.mrb[20].mxu0 }
 0x341   : > { %1374 = vst.msk [vmem:[%s2182_s15 + $0x18] sm:$0xff] %vm627_vm0, %v1366_v38  ;;  %v1339_v26 = vadd.f32 %v1658_v0, %v1542_v39  ;;  %v1330_v34 = vpop.f32.mrb[21].mxu0 }
 0x342   : > { %1372 = vst.msk [vmem:[%s2182_s15 + $0x8] sm:$0xff] %vm627_vm0, %v1364_v23  ;;  %v1331_v25 = vadd.f32 %v1542_v39, %v1330_v34  ;;  %v1659_v47 = vpop.f32.mrb[22].mxu0 }
 0x343   : > { %v1353_v52 = vmul.f32 %v1346_v19, %v1339_v26  ;;  %v1342_v53 = vadd.f32 %v1659_v47, %v1542_v39  ;;  %v1333_v55 = vpop.f32.mrb[23].mxu0 }
 0x344   : > { %v1351_v60 = vmul.f32 %v1346_v19, %v1331_v25  ;;  %v1334_v61 = vadd.f32 %v1542_v39, %v1333_v55 }
 0x345   : > { %v1369_v3 = vadd.f32 %v1361_v51, %v1353_v52  ;;  %v1354_v5 = vmul.f32 %v1346_v19, %v1342_v53 }
 0x346   : > { %v1367_v46 = vadd.f32 %v1359_v58, %v1351_v60  ;;  %v1352_v54 = vmul.f32 %v1346_v19, %v1334_v61 }
 0x347   : > { %1377 = vst.msk [vmem:[%s2182_s15 + $0x30] sm:$0xff] %vm627_vm0, %v1369_v3  ;;  %v1370_v48 = vadd.f32 %v1362_v62, %v1354_v5 }
 0x348   : > { %1375 = vst.msk [vmem:[%s2182_s15 + $0x20] sm:$0xff] %vm627_vm0, %v1367_v46  ;;  %v1368_v63 = vadd.f32 %v1360_v6, %v1352_v54 }
 0x349   : > { %1378 = vst.msk [vmem:[%s2182_s15 + $0x38] sm:$0xff] %vm627_vm0, %v1370_v48 }
 0x34a   : > { %1376 = vst.msk [vmem:[%s2182_s15 + $0x28] sm:$0xff] %vm627_vm0, %v1368_v63 }
 0x34b PF: > { %s25_s17 = sadd.s32 1, %s1784_s17   ;;  %s2231_s15 = smov %s1780_s16 }
 0x34c   : > { %p22_p5 = scmp.ge.s32.totalorder %s25_s17, 4   ;;  %s2232_s16 = smov %s2234_s13 }
 0x34e   :  { %24 = sbr.rel (!%p22_p5) target bundleno = 2 (0x2), region = 112 }

// kernel: basic_layer_forward.6
= control target key start
LH: loop header
LB: loop body
LE: loop exit
PB: predicated region body
PF: predicated region fallthrough
CT: control target
= control target key end

     0   :  { %s5970_s27 = smov 0   ;;  %s5972_s28 = smov 0   ;;  %s7311_s0 = inlined_call_operand.vmem [shape: bf16[2,4,16,32], index: 0, kind: input, shape index: {}]   ;;  %s7312_s1 = inlined_call_operand.vmem [shape: f32[1,32], index: 1, kind: input, shape index: {}]   ;;  %s7313_s2 = inlined_call_operand.vmem [shape: f32[1,32], index: 2, kind: input, shape index: {}]   ;;  %s7314_s3 = inlined_call_operand.vmem [shape: bf16[3,32,32], index: 3, kind: input, shape index: {}]   ;;  %s7315_s4 = inlined_call_operand.vmem [shape: f32[3,1,32], index: 4, kind: input, shape index: {}]   ;;  %s7316_s5 = inlined_call_operand.vmem [shape: bf16[32,32], index: 5, kind: input, shape index: {}]   ;;  %s7317_s6 = inlined_call_operand.vmem [shape: f32[1,32], index: 6, kind: input, shape index: {}]   ;;  %s7318_s7 = inlined_call_operand.vmem [shape: f32[2,16,16], index: 7, kind: input, shape index: {}]   ;;  %s7319_s8 = inlined_call_operand.vmem [shape: bf16[2,4,16,32], index: 8, kind: output, shape index: {}]  }
   0x1   :  { %s5974_s29 = smov 0  }
   0x2 LB: > { %s30_s30 = sadd.s32 1, %s5912_s28  ;;  %p5407_p0 = scmp.ge.s32.totalorder %s5916_s29, 1  ;;  %s5916_s29 = sphi %s5974_s29, %s18_s29   ;;  %s5912_s28 = sphi %s5972_s28, %s7360_s28   ;;  %s5908_s27 = sphi %s5970_s27, %s7359_s27  }
   0x3   : > { %p32_p1 = scmp.ge.s32.totalorder %s30_s30, 2  ;;  %p284_p2 = scmp.lt.s32.totalorder %s5916_s29, 3 }
   0x5   : > { %s7362_s30 = smov (%p32_p1, %s30_s30), 0  ;;  %p285_p3 = pnand %p5407_p0, %p284_p2 }
   0x7   : > { %288 = sbr.rel (%p285_p3) target bundleno = 1977 (0x7b9), region = 52 }
   0xe   : > { %p329_p4 = scmp.lt.s32.totalorder %s5908_s27, 1  ;;  %vm369_vm0 = vcmask 261120   ;;  %v5806_v60 = vld [vmem:[%s7314_s3] sm:$0xff]   ;;  %v5807_v61 = vld [vmem:[%s7314_s3 + $0x8] sm:$0xff]   ;;  %v6053_v62 = vld [vmem:[%s7314_s3 + $0x10] sm:$0xff]   ;;  %s5918_s18 = smov 112  }
   0xf   : > { %5771 = vmatprep.subr.bf16.mxu1 %v5806_v60  ;;  %5627 = vmatprep.subr.bf16.mxu0 %v5806_v60  ;;  %v6059_v63 = vld [vmem:[%s7314_s3 + $0x20] sm:$0xff]   ;;  %vm5920_vm1 = vmmov 0   ;;  %vm3369_vm2 = vcmask 130048   ;;  %s5924_s14 = smov 16   ;;  %vm5298_vm3 = vcmask 257024  }
  0x10   : > { %s7364_s27 = smov (!%p329_p4, %s5908_s27), 1  ;;  %5773 = vmatpush3.bf16.msra.mxu1 %v5806_v60  ;;  %5628 = vmatpush3.bf16.msra.mxu0 %v5806_v60 }
  0x11   : > { %s5542_s9 = sshll.u32 %s7364_s27, 5  ;;  %5772 = vmatprep.subr.bf16.mxu1 %v5807_v61  ;;  %5629 = vmatprep.subr.bf16.mxu0 %v5807_v61 }
  0x12   : > { %s337_s12 = scalar_lea.vmem %s7311_s0, %s5542_s9  ;;  %s348_s19 = scalar_lea.vmem %s7319_s8, %s5542_s9 }
  0x13   : > { %v5569_v0 = vld [vmem:[%s337_s12 + $0x10] sm:$0xff]   ;;  %v5570_v1 = vld [vmem:[%s337_s12 + $0x18] sm:$0xff]   ;;  %v5553_v6 = vld [vmem:[%s337_s12] sm:$0xff]  }
  0x14   : > { %v5562_v2 = vunpack.c.l.bf16 %v5569_v0  ;;  %v5566_v3 = vunpack.c.l.bf16 %v5570_v1  ;;  %v5563_v4 = vunpack.c.h.bf16 %v5569_v0  ;;  %v5567_v5 = vunpack.c.h.bf16 %v5570_v1  ;;  %v5568_v13 = vld [vmem:[%s337_s12 + $0x8] sm:$0xff]   ;;  %5774 = vmatpush3.bf16.msra.mxu1 %v5807_v61  ;;  %5630 = vmatpush3.bf16.msra.mxu0 %v5807_v61 }
  0x15   : > { %v5554_v11 = vunpack.c.l.bf16 %v5553_v6  ;;  %v5555_v12 = vunpack.c.h.bf16 %v5553_v6  ;;  %v5558_v16 = vunpack.c.l.bf16 %v5568_v13  ;;  %v5559_v17 = vunpack.c.h.bf16 %v5568_v13  ;;  %5639 = vmatprep.subr.bf16.mxu1 %v6053_v62  ;;  %5651 = vmatprep.subr.bf16.mxu0 %v6059_v63 }
  0x16   : > { %v382_v7 = vsel %vm369_vm0, %v5562_v2, 0.0  ;;  %v388_v8 = vsel %vm369_vm0, %v5566_v3, 0.0  ;;  %v385_v9 = vsel %vm369_vm0, %v5563_v4, 0.0  ;;  %v391_v10 = vsel %vm369_vm0, %v5567_v5, 0.0 }
  0x17   : > { %383 = vadd.xlane.f32.xlu0 %v382_v7  ;;  %389 = vadd.xlane.f32.xlu1 %v388_v8  ;;  %v370_v14 = vsel %vm369_vm0, %v5554_v11, 0.0  ;;  %v373_v15 = vsel %vm369_vm0, %v5555_v12, 0.0  ;;  %v376_v18 = vsel %vm369_vm0, %v5558_v16, 0.0  ;;  %v379_v19 = vsel %vm369_vm0, %v5559_v17, 0.0 }
  0x1b   : > { %386 = vadd.xlane.f32.xlu0 %v385_v9  ;;  %392 = vadd.xlane.f32.xlu1 %v391_v10 }
  0x1f   : > { %371 = vadd.xlane.f32.xlu0 %v370_v14  ;;  %374 = vadd.xlane.f32.xlu1 %v373_v15 }
  0x23   : > { %377 = vadd.xlane.f32.xlu0 %v376_v18  ;;  %380 = vadd.xlane.f32.xlu1 %v379_v19 }
  0xa4   : > { %v384_v20 = vpop.xlane.xlu0 %383  ;;  %v390_v21 = vpop.xlane.xlu1 %389 }
  0xa5   : > { %v399_v22 = vmul.f32 0.03125, %v384_v20  ;;  %v401_v23 = vmul.f32 0.03125, %v390_v21 }
  0xa7   : > { %v6004_v24 = vsub.f32 %v5562_v2, %v399_v22  ;;  %v6006_v25 = vsub.f32 %v5566_v3, %v401_v23 }
  0xa8   : > { %v387_v26 = vpop.xlane.xlu0 %386  ;;  %v393_v27 = vpop.xlane.xlu1 %392 }
  0xa9   : > { %v400_v28 = vmul.f32 0.03125, %v387_v26  ;;  %v402_v29 = vmul.f32 0.03125, %v393_v27  ;;  %v415_v30 = vmul.f32 %v6004_v24, %v6004_v24  ;;  %v417_v31 = vmul.f32 %v6006_v25, %v6006_v25  ;;  %v5412_v27 = vld [vmem:[%s7312_s1] ss:$0 sm:$0xff] }
  0xab   : > { %v6012_v32 = vsub.f32 %v5563_v4, %v400_v28  ;;  %v6014_v33 = vsub.f32 %v5567_v5, %v402_v29  ;;  %v431_v34 = vsel %vm369_vm0, %v415_v30, 0.0  ;;  %v437_v37 = vsel %vm369_vm0, %v417_v31, 0.0 }
  0xac   : > { %432 = vadd.xlane.f32.xlu0 %v431_v34  ;;  %v372_v35 = vpop.xlane.xlu0 %371  ;;  %v375_v36 = vpop.xlane.xlu1 %374 }
  0xad   : > { %v395_v38 = vmul.f32 0.03125, %v372_v35  ;;  %v416_v39 = vmul.f32 %v6012_v32, %v6012_v32  ;;  %v396_v40 = vmul.f32 0.03125, %v375_v36  ;;  %v418_v41 = vmul.f32 %v6014_v33, %v6014_v33 }
  0xaf   : > { %v6022_v42 = vsub.f32 %v5554_v11, %v395_v38  ;;  %v434_v43 = vsel %vm369_vm0, %v416_v39, 0.0  ;;  %v6025_v44 = vsub.f32 %v5555_v12, %v396_v40  ;;  %v440_v46 = vsel %vm369_vm0, %v418_v41, 0.0 }
  0xb0   : > { %435 = vadd.xlane.f32.xlu1 %v434_v43  ;;  %438 = vadd.xlane.f32.xlu0 %v437_v37  ;;  %v378_v45 = vpop.xlane.xlu0 %377  ;;  %v381_v47 = vpop.xlane.xlu1 %380 }
  0xb1   : > { %v397_v48 = vmul.f32 0.03125, %v378_v45  ;;  %v398_v49 = vmul.f32 0.03125, %v381_v47  ;;  %v411_v50 = vmul.f32 %v6022_v42, %v6022_v42  ;;  %v412_v51 = vmul.f32 %v6025_v44, %v6025_v44 }
  0xb3   : > { %v6032_v52 = vsub.f32 %v5558_v16, %v397_v48  ;;  %v6034_v53 = vsub.f32 %v5559_v17, %v398_v49  ;;  %v419_v54 = vsel %vm369_vm0, %v411_v50, 0.0  ;;  %v422_v55 = vsel %vm369_vm0, %v412_v51, 0.0 }
  0xb4   : > { %441 = vadd.xlane.f32.xlu1 %v440_v46  ;;  %420 = vadd.xlane.f32.xlu0 %v419_v54 }
  0xb5   : > { %v413_v56 = vmul.f32 %v6032_v52, %v6032_v52  ;;  %v414_v57 = vmul.f32 %v6034_v53, %v6034_v53 }
  0xb7   : > { %v425_v58 = vsel %vm369_vm0, %v413_v56, 0.0  ;;  %v428_v59 = vsel %vm369_vm0, %v414_v57, 0.0  ;;  %v5809_v56 = vld [vmem:[%s7314_s3 + $0x18] sm:$0xff]  }
  0xb8   : > { %423 = vadd.xlane.f32.xlu1 %v422_v55  ;;  %426 = vadd.xlane.f32.xlu0 %v425_v58 }
  0xbc   : > { %429 = vadd.xlane.f32.xlu1 %v428_v59 }
 0x139   : > { %v433_v0 = vpop.xlane.xlu0 %432 }
 0x13a   : > { %v447_v1 = vmul.f32 0.03125, %v433_v0 }
 0x13c   : > { %v455_v2 = vadd.f32 1e-05, %v447_v1 }
 0x13d   : > { %v436_v3 = vpop.xlane.xlu1 %435  ;;  %v439_v4 = vpop.xlane.xlu0 %438 }
 0x13e   : > { %5814 = vrsqrt.f32 %v455_v2  ;;  %v448_v5 = vmul.f32 0.03125, %v436_v3  ;;  %v449_v6 = vmul.f32 0.03125, %v439_v4 }
 0x140   : > { %v456_v7 = vadd.f32 1e-05, %v448_v5  ;;  %v457_v8 = vadd.f32 1e-05, %v449_v6 }
 0x141   : > { %v442_v9 = vpop.xlane.xlu1 %441  ;;  %v421_v10 = vpop.xlane.xlu0 %420 }
 0x142   : > { %5816 = vrsqrt.f32 %v456_v7  ;;  %v450_v11 = vmul.f32 0.03125, %v442_v9  ;;  %v443_v12 = vmul.f32 0.03125, %v421_v10 }
 0x143   : > { %5818 = vrsqrt.f32 %v457_v8 }
 0x144   : > { %v458_v13 = vadd.f32 1e-05, %v450_v11  ;;  %v451_v14 = vadd.f32 1e-05, %v443_v12 }
 0x145   : > { %v424_v15 = vpop.xlane.xlu1 %423  ;;  %v427_v16 = vpop.xlane.xlu0 %426 }
 0x146   : > { %5820 = vrsqrt.f32 %v458_v13  ;;  %v444_v17 = vmul.f32 0.03125, %v424_v15  ;;  %v445_v18 = vmul.f32 0.03125, %v427_v16  ;;  %v5426_v13 = vld [vmem:[%s7315_s4 + $0x1] ss:$0 sm:$0xff] }
 0x147   : > { %5822 = vrsqrt.f32 %v451_v14 }
 0x148   : > { %v5815_v19 = vpop.eup %5814  ;;  %v452_v20 = vadd.f32 1e-05, %v444_v17  ;;  %v453_v21 = vadd.f32 1e-05, %v445_v18 }
 0x149   : > { %v430_v22 = vpop.xlane.xlu1 %429  ;;  %v471_v23 = vmul.f32 %v5815_v19, %v6004_v24  ;;  %v5413_v24 = vld [vmem:[%s7313_s2] ss:$0 sm:$0xff] }
 0x14a   : > { %5824 = vrsqrt.f32 %v452_v20  ;;  %v446_v26 = vmul.f32 0.03125, %v430_v22 }
 0x14b   : > { %5826 = vrsqrt.f32 %v453_v21  ;;  %v485_v34 = vmul.f32 %v5412_v27, %v471_v23 }
 0x14c   : > { %v5817_v28 = vpop.eup %5816  ;;  %v454_v29 = vadd.f32 1e-05, %v446_v26 }
 0x14d   : > { %v5819_v30 = vpop.eup %5818  ;;  %v472_v31 = vmul.f32 %v5817_v28, %v6012_v32  ;;  %v499_v40 = vadd.f32 %v5413_v24, %v485_v34 }
 0x14e   : > { %v473_v35 = vmul.f32 %v5819_v30, %v6006_v25  ;;  %5828 = vrsqrt.f32 %v454_v29 }
 0x14f   : > { %v486_v36 = vmul.f32 %v5412_v27, %v472_v31 }
 0x150   : > { %v5821_v37 = vpop.eup %5820  ;;  %v487_v43 = vmul.f32 %v5412_v27, %v473_v35 }
 0x151   : > { %v5823_v38 = vpop.eup %5822  ;;  %v474_v39 = vmul.f32 %v5821_v37, %v6014_v33  ;;  %v500_v41 = vadd.f32 %v5413_v24, %v486_v36 }
 0x152   : > { %v467_v45 = vmul.f32 %v5823_v38, %v6022_v42  ;;  %v501_v25 = vadd.f32 %v5413_v24, %v487_v43 }
 0x153   : > { %v505_v46 = vpack.c.bf16 %v500_v41, %v499_v40  ;;  %v488_v32 = vmul.f32 %v5412_v27, %v474_v39 }
 0x154   : > { %v5825_v47 = vpop.eup %5824  ;;  %v481_v51 = vmul.f32 %v5412_v27, %v467_v45 }
 0x155   : > { %v5827_v48 = vpop.eup %5826  ;;  %5635 = vmatprep.mubr.msk.bf16.mxu1 %vm369_vm0, %v505_v46  ;;  %v502_v49 = vadd.f32 %v5413_v24, %v488_v32  ;;  %v468_v50 = vmul.f32 %v5825_v47, %v6025_v44 }
 0x156   : > { %v469_v54 = vmul.f32 %v5827_v48, %v6032_v52  ;;  %v495_v58 = vadd.f32 %v5413_v24, %v481_v51 }
 0x157   : > { %v506_v55 = vpack.c.bf16 %v502_v49, %v501_v25  ;;  %v482_v33 = vmul.f32 %v5412_v27, %v468_v50 }
 0x158   : > { %v5829_v42 = vpop.eup %5828  ;;  %v483_v60 = vmul.f32 %v5412_v27, %v469_v54 }
 0x159   : > { %v470_v57 = vmul.f32 %v5829_v42, %v6034_v53  ;;  %5636 = vmatmul.mubr.msk.bf16.vlgmr.msra.gmra.mrb[0].mxu1 %vm369_vm0, %v506_v55  ;;  %v496_v59 = vadd.f32 %v5413_v24, %v482_v33  ;;  %v5811_v53 = vld [vmem:[%s7314_s3 + $0x28] sm:$0xff]  }
 0x15a   : > { %5640 = vmatpush3.bf16.msra.mxu1 %v6053_v62  ;;  %v497_v52 = vadd.f32 %v5413_v24, %v483_v60  ;;  %v5414_v62 = vld [vmem:[%s7315_s4] ss:$0 sm:$0xff] }
 0x15b   : > { %v503_v44 = vpack.c.bf16 %v496_v59, %v495_v58  ;;  %5641 = vmatprep.subr.bf16.mxu1 %v5809_v56  ;;  %v484_v61 = vmul.f32 %v5412_v27, %v470_v57 }
 0x15d   : > { %5631 = vmatprep.mubr.msk.bf16.mxu0 %vm369_vm0, %v503_v44  ;;  %5643 = vmatprep.mubr.msk.bf16.mxu1 %vm369_vm0, %v503_v44  ;;  %v498_v0 = vadd.f32 %v5413_v24, %v484_v61  ;;  %v5438_v24 = vld [vmem:[%s7315_s4 + $0x2] ss:$0 sm:$0xff] }
 0x15e   : > { %5642 = vmatpush3.bf16.msra.mxu1 %v5809_v56 }
 0x15f   : > { %v504_v1 = vpack.c.bf16 %v498_v0, %v497_v52 }
 0x161   : > { %5632 = vmatmul.mubr.msk.bf16.vlgmr.msra.gmra.mrb[0].mxu0 %vm369_vm0, %v504_v1  ;;  %5644 = vmatmul.mubr.msk.bf16.vlgmr.msra.gmra.mrb[4].mxu1 %vm369_vm0, %v504_v1 }
 0x162   : > { %5647 = vmatprep.mubr.msk.bf16.mxu1 %vm369_vm0, %v505_v46  ;;  %5652 = vmatpush3.bf16.msra.mxu0 %v6059_v63 }
 0x163   : > { %5655 = vmatprep.mubr.msk.bf16.mxu0 %vm369_vm0, %v503_v44  ;;  %5653 = vmatprep.subr.bf16.mxu0 %v5811_v53 }
 0x166   : > { %5654 = vmatpush3.bf16.msra.mxu0 %v5811_v53  ;;  %v7320_v53 = vmov 0.0  }
 0x167   : > { %5663 = vmatprep.subr.bf16.mxu1 %v7320_v53  ;;  %5675 = vmatprep.subr.bf16.mxu0 %v7320_v53 }
 0x169   : > { %5648 = vmatmul.mubr.msk.bf16.gmra.mrb[8].mxu1 %vm369_vm0, %v506_v55  ;;  %5656 = vmatmul.mubr.msk.bf16.vlgmr.msra.gmra.mrb[4].mxu0 %vm369_vm0, %v504_v1 }
 0x16a   : > { %5659 = vmatprep.mubr.msk.bf16.mxu0 %vm369_vm0, %v505_v46  ;;  %5665 = vmatprep.mubr.msk.bf16.mxu1 %vm5920_vm1, %v7320_v53 }
 0x171   : > { %5660 = vmatmul.mubr.msk.bf16.gmra.mrb[8].mxu0 %vm369_vm0, %v506_v55 }
 0x172   : > { %5677 = vmatprep.mubr.msk.bf16.mxu0 %vm5920_vm1, %v7320_v53 }
 0x22c   : > { %v5637_v2 = vpop.f32.mrb[0].mxu1 }
 0x22d   : > { %v592_v3 = vpop.f32.mrb[1].mxu1  ;;  %v601_v63 = vadd.f32 %v5637_v2, %v5414_v62 }
 0x22e   : > { %v5638_v4 = vpop.f32.mrb[2].mxu1  ;;  %v593_v7 = vadd.f32 %v5414_v62, %v592_v3  ;;  %v845_v3 = vlaneseq }
 0x22f   : > { %v604_v5 = vadd.f32 %v5638_v4, %v5414_v62  ;;  %v595_v6 = vpop.f32.mrb[3].mxu1  ;;  %v7324_v4 = vmov 0  }
 0x230   : > { %v596_v8 = vadd.f32 %v5414_v62, %v595_v6  ;;  %v846_v6 = vshrl.u32 %v845_v3, 7 }
 0x231   : > { %v6099_v9 = vpack.c.bf16 %v604_v5, %v601_v63  ;;  %v6155_v63 = vpack.i.b16 %v7324_v4, %v7324_v4 }
 0x232   : > { %v6101_v10 = vpack.c.bf16 %v596_v8, %v593_v7 }
 0x234   : > { %v5633_v11 = vpop.f32.mrb[0].mxu0  ;;  %v5645_v12 = vpop.f32.mrb[4].mxu1 }
 0x235   : > { %v576_v14 = vpop.f32.mrb[1].mxu0  ;;  %v666_v15 = vpop.f32.mrb[5].mxu1  ;;  %v585_v18 = vadd.f32 %v5633_v11, %v5414_v62  ;;  %v675_v19 = vadd.f32 %v5645_v12, %v5426_v13  ;;  %v5923_v12 = vmov 1934713408  }
 0x236   : > { %v5634_v16 = vpop.f32.mrb[2].mxu0  ;;  %v5646_v17 = vpop.f32.mrb[6].mxu1  ;;  %v577_v26 = vadd.f32 %v5414_v62, %v576_v14  ;;  %v667_v27 = vadd.f32 %v5426_v13, %v666_v15 }
 0x237   : > { %v588_v20 = vadd.f32 %v5634_v16, %v5414_v62  ;;  %v678_v21 = vadd.f32 %v5646_v17, %v5426_v13  ;;  %v579_v22 = vpop.f32.mrb[3].mxu0  ;;  %v669_v23 = vpop.f32.mrb[7].mxu1 }
 0x238   : > { %v580_v28 = vadd.f32 %v5414_v62, %v579_v22  ;;  %v670_v29 = vadd.f32 %v5426_v13, %v669_v23  ;;  %v5921_v62 = vmov 1983009808  }
 0x239   : > { %v6106_v30 = vpack.c.bf16 %v588_v20, %v585_v18  ;;  %v6108_v31 = vpack.c.bf16 %v678_v21, %v675_v19  ;;  %v843_v2 = vunpack.c.l.s4 %v5921_v62 }
 0x23a   : > { %v6110_v34 = vpack.c.bf16 %v580_v28, %v577_v26  ;;  %v6112_v35 = vpack.c.bf16 %v670_v29, %v667_v27 }
 0x23b   : > { %v844_v5 = vunpack.c.0.s8 %v843_v2 }
 0x23c   : > { %v5649_v36 = vpop.f32.mrb[8].mxu1  ;;  %1657 = vrot.lane.b32.xlu0 %v6112_v35, %s5918_s18  ;;  %v5657_v37 = vpop.f32.mrb[4].mxu0  ;;  %795 = vrot.lane.b32.xlu1 %v6110_v34, %s5918_s18  ;;  %v807_v19 = vshrl.u32 %v6110_v34, 16  ;;  %v1669_v22 = vshrl.u32 %v6112_v35, 16 }
 0x23d   : > { %v765_v38 = vadd.f32 %v5657_v37, %v5438_v24  ;;  %v682_v39 = vpop.f32.mrb[9].mxu1  ;;  %v756_v40 = vpop.f32.mrb[5].mxu0  ;;  %v691_v45 = vadd.f32 %v5649_v36, %v5426_v13  ;;  %v6158_v14 = vsub.s32 %v844_v5, %v846_v6 }
 0x23e   : > { %v5650_v41 = vpop.f32.mrb[10].mxu1  ;;  %v5658_v43 = vpop.f32.mrb[6].mxu0  ;;  %v683_v25 = vadd.f32 %v5426_v13, %v682_v39  ;;  %v757_v49 = vadd.f32 %v5438_v24, %v756_v40 }
 0x23f   : > { %v694_v46 = vadd.f32 %v5650_v41, %v5426_v13  ;;  %v768_v32 = vadd.f32 %v5658_v43, %v5438_v24  ;;  %v685_v47 = vpop.f32.mrb[11].mxu1  ;;  %v759_v48 = vpop.f32.mrb[7].mxu0  ;;  %v1677_v41 = vshrl.u32 %v6108_v31, 16  ;;  %v829_v43 = vshrl.u32 %v6101_v10, 16 }
 0x240   : > { %v686_v50 = vadd.f32 %v5426_v13, %v685_v47  ;;  %v760_v51 = vadd.f32 %v5438_v24, %v759_v48  ;;  %1659 = vrot.lane.b32.xlu1 %v6108_v31, %s5918_s18  ;;  %v858_v13 = vunpack.c.l.s4 %v5923_v12  ;;  %v821_v47 = vshrl.u32 %v6106_v30, 16 }
 0x241   : > { %v6123_v54 = vpack.c.bf16 %v694_v46, %v691_v45  ;;  %v6125_v55 = vpack.c.bf16 %v768_v32, %v765_v38 }
 0x242   : > { %v6127_v33 = vpack.c.bf16 %v686_v50, %v683_v25  ;;  %v6129_v56 = vpack.c.bf16 %v760_v51, %v757_v49  ;;  %v859_v21 = vunpack.c.0.s8 %v858_v13 }
 0x243   : > { %7329 = vst [vmem:[#allocation2_spill] sm:$0xff] %v6125_v55  ;;  %v1693_v49 = vshrl.u32 %v6123_v54, 16 }
 0x244   : > { %1661 = vrot.lane.b32.xlu0 %v6127_v33, %s5918_s18  ;;  %v5661_v42 = vpop.f32.mrb[8].mxu0  ;;  %797 = vrot.lane.b32.xlu1 %v6106_v30, %s5918_s18  ;;  %v6169_v36 = vsub.s32 %v859_v21, %v846_v6  ;;  %v1685_v25 = vshrl.u32 %v6127_v33, 16 }
 0x245   : > { %v781_v57 = vadd.f32 %v5661_v42, %v5438_v24  ;;  %v772_v58 = vpop.f32.mrb[9].mxu0 }
 0x246   : > { %v773_v59 = vadd.f32 %v5438_v24, %v772_v58  ;;  %v5662_v60 = vpop.f32.mrb[10].mxu0 }
 0x247   : > { %v784_v44 = vadd.f32 %v5662_v60, %v5438_v24  ;;  %v775_v61 = vpop.f32.mrb[11].mxu0 }
 0x248   : > { %v776_v52 = vadd.f32 %v5438_v24, %v775_v61  ;;  %1663 = vrot.lane.b32.xlu0 %v6123_v54, %s5918_s18  ;;  %799 = vrot.lane.b32.xlu1 %v6101_v10, %s5918_s18 }
 0x249   : > { %v6139_v0 = vpack.c.bf16 %v784_v44, %v781_v57 }
 0x24a   : > { %v6141_v1 = vpack.c.bf16 %v776_v52, %v773_v59 }
 0x24b   : > { %7330 = vst [vmem:[#allocation3_spill] sm:$0xff] %v6139_v0 }
 0x24c   : > { %7331 = vst [vmem:[#allocation4_spill] sm:$0xff] %v6141_v1  ;;  %2513 = vrot.lane.b32.xlu0 %v6129_v56, %s5918_s18  ;;  %801 = vrot.lane.b32.xlu1 %v6099_v9, %s5918_s18 }
 0x2ae   : > { %v796_v7 = vpop.permute.xlu1 %795  ;;  %v1658_v8 = vpop.permute.xlu0 %1657 }
 0x2af   : > { %v805_v11 = vpack.i.b16 %v796_v7, %v6110_v34  ;;  %v1667_v15 = vpack.i.b16 %v1658_v8, %v6112_v35  ;;  %v808_v16 = vshrl.u32 %v796_v7, 16  ;;  %v1670_v18 = vshrl.u32 %v1658_v8, 16 }
 0x2b1   : > { %v841_v17 = vcombine.high %v805_v11, %v6155_v63  ;;  %v1697_v23 = vcombine.high %v1667_v15, %v6155_v63  ;;  %v809_v26 = vpack.i.b16 %v808_v16, %v807_v19  ;;  %v848_v27 = vrot.slane %v805_v11, %v6158_v14 }
 0x2b2   : > { %v1671_v28 = vpack.i.b16 %v1670_v18, %v1669_v22  ;;  %v1704_v29 = vrot.slane %v1667_v15, %v6158_v14  ;;  %v1660_v59 = vpop.permute.xlu1 %1659 }
 0x2b3   : > { %v855_v20 = vrot.slane %v841_v17, %v6158_v14  ;;  %v1711_v37 = vrot.slane %v1697_v23, %v6158_v14  ;;  %v856_v34 = vcombine.high %v848_v27, %v7324_v4  ;;  %v890_v38 = vcombine.high %v809_v26, %v6155_v63 }
 0x2b4   : > { %v1712_v39 = vcombine.high %v1704_v29, %v7324_v4  ;;  %v1746_v40 = vcombine.high %v1671_v28, %v6155_v63  ;;  %v897_v46 = vrot.slane %v809_v26, %v6158_v14  ;;  %v1753_v48 = vrot.slane %v1671_v28, %v6158_v14 }
 0x2b5   : > { %v871_v24 = vcombine.high %v855_v20, %v7324_v4  ;;  %v904_v32 = vrot.slane %v890_v38, %v6158_v14  ;;  %v1727_v51 = vcombine.high %v1711_v37, %v7324_v4  ;;  %v870_v42 = vrot.slane %v856_v34, %v6169_v36 }
 0x2b6   : > { %v878_v57 = vrot.slane %v855_v20, %v6169_v36  ;;  %v1719_v60 = vrot.slane %v1704_v29, %v6169_v36  ;;  %v1726_v44 = vrot.slane %v1712_v39, %v6169_v36  ;;  %v1760_v61 = vrot.slane %v1746_v40, %v6158_v14 }
 0x2b7   : > { %v885_v45 = vrot.slane %v871_v24, %v6169_v36  ;;  %v920_v58 = vcombine.high %v904_v32, %v7324_v4  ;;  %v905_v52 = vcombine.high %v897_v46, %v7324_v4  ;;  %v1734_v62 = vrot.slane %v1711_v37, %v6169_v36 }
 0x2b8   : > { %v863_v2 = vrot.slane %v848_v27, %v6169_v36  ;;  %v1761_v6 = vcombine.high %v1753_v48, %v7324_v4  ;;  %v1768_v7 = vrot.slane %v1753_v48, %v6169_v36  ;;  %v1675_v11 = vpack.i.b16 %v1660_v59, %v6108_v31 }
 0x2b9   : > { %v1249_v3 = vcombine.low %v878_v57, %v885_v45  ;;  %v5446_v5 = vcombine.high %v878_v57, %v885_v45  ;;  %v934_v8 = vrot.slane %v920_v58, %v6169_v36  ;;  %v1741_v12 = vrot.slane %v1727_v51, %v6169_v36  ;;  %v1662_v57 = vpop.permute.xlu0 %1661 }
 0x2ba   : > { %v1233_v13 = vcombine.low %v863_v2, %v870_v42  ;;  %v5445_v15 = vcombine.high %v863_v2, %v870_v42  ;;  %v1678_v16 = vshrl.u32 %v1660_v59, 16  ;;  %v1776_v17 = vcombine.high %v1760_v61, %v7324_v4 }
 0x2bb   : > { %v2089_v18 = vcombine.low %v1719_v60, %v1726_v44  ;;  %v919_v19 = vrot.slane %v905_v52, %v6169_v36  ;;  %v927_v20 = vrot.slane %v904_v32, %v6169_v36  ;;  %v6206_v21 = vrot.slane %v1760_v61, %v6169_v36 }
 0x2bc   : > { %v5461_v22 = vcombine.high %v1719_v60, %v1726_v44  ;;  %v1256_v23 = vrot.slane %v1249_v3, %v6158_v14  ;;  %v1264_v31 = vrot.slane %v5446_v5, %v6158_v14  ;;  %v912_v26 = vrot.slane %v897_v46, %v6169_v36 }
 0x2bd   : > { %v1298_v27 = vcombine.low %v927_v20, %v934_v8  ;;  %v5448_v28 = vcombine.high %v927_v20, %v934_v8  ;;  %v1795_v29 = vcombine.high %v1675_v11, %v6155_v63  ;;  %v1775_v24 = vrot.slane %v1761_v6, %v6169_v36 }
 0x2be   : > { %v1240_v37 = vrot.slane %v1233_v13, %v6158_v14  ;;  %v1248_v34 = vrot.slane %v5445_v15, %v6158_v14  ;;  %v1679_v38 = vpack.i.b16 %v1678_v16, %v1677_v41  ;;  %v6216_v39 = vrot.slane %v1776_v17, %v6169_v36 }
 0x2bf   : > { %v6219_v40 = vrot.slane %v2089_v18, %v6158_v14  ;;  %v1282_v45 = vcombine.low %v912_v26, %v919_v19  ;;  %v5447_v32 = vcombine.high %v912_v26, %v919_v19  ;;  %v2105_v46 = vcombine.low %v1734_v62, %v1741_v12  ;;  %v798_v18 = vpop.permute.xlu1 %797 }
 0x2c0   : > { %v5462_v48 = vcombine.high %v1734_v62, %v1741_v12  ;;  %v1273_v51 = vcombine.low %v1256_v23, %v1264_v31  ;;  %v1802_v42 = vrot.slane %v1675_v11, %v6158_v14  ;;  %v6223_v58 = vrot.slane %v5461_v22, %v6158_v14 }
 0x2c1   : > { %v1305_v59 = vrot.slane %v1298_v27, %v6158_v14  ;;  %v1313_v41 = vrot.slane %v5448_v28, %v6158_v14  ;;  %v1809_v60 = vrot.slane %v1795_v29, %v6158_v14  ;;  %v2138_v44 = vcombine.low %v1768_v7, %v1775_v24 }
 0x2c2   : > { %v5463_v61 = vcombine.high %v1768_v7, %v1775_v24  ;;  %v1265_v52 = vcombine.low %v1240_v37, %v1248_v34  ;;  %v1851_v2 = vrot.slane %v1679_v38, %v6158_v14  ;;  %v1289_v62 = vrot.slane %v1282_v45, %v6158_v14 }
 0x2c3   : > { %v1297_v3 = vrot.slane %v5447_v32, %v6158_v14  ;;  %v1844_v5 = vcombine.high %v1679_v38, %v6155_v63  ;;  %v1686_v6 = vshrl.u32 %v1662_v57, 16  ;;  %v6233_v8 = vrot.slane %v2105_v46, %v6158_v14 }
 0x2c4   : > { %v1280_v11 = vrot.slane %v1273_v51, %v6169_v36  ;;  %v1810_v12 = vcombine.high %v1802_v42, %v7324_v4  ;;  %v1683_v13 = vpack.i.b16 %v1662_v57, %v6127_v33  ;;  %v6239_v7 = vrot.slane %v5462_v48, %v6158_v14 }
 0x2c5   : > { %v1322_v16 = vcombine.low %v1305_v59, %v1313_v41  ;;  %v1825_v17 = vcombine.high %v1809_v60, %v7324_v4  ;;  %v6245_v19 = vrot.slane %v2138_v44, %v6158_v14  ;;  %v1272_v22 = vrot.slane %v1265_v52, %v6169_v36 }
 0x2c6   : > { %v1859_v23 = vcombine.high %v1851_v2, %v7324_v4  ;;  %v6252_v31 = vrot.slane %v5463_v61, %v6158_v14  ;;  %v1314_v26 = vcombine.low %v1289_v62, %v1297_v3  ;;  %v1858_v27 = vrot.slane %v1844_v5, %v6158_v14 }
 0x2c7   : > { %v1687_v28 = vpack.i.b16 %v1686_v6, %v1685_v25  ;;  %v6257_v29 = vcombine.low %v1272_v22, %v1280_v11  ;;  %v1824_v24 = vrot.slane %v1810_v12, %v6169_v36  ;;  %v1900_v37 = vrot.slane %v1683_v13, %v6158_v14 }
 0x2c8   : > { %v819_v34 = vpack.i.b16 %v798_v18, %v6106_v30  ;;  %v1329_v38 = vrot.slane %v1322_v16, %v6169_v36  ;;  %v1839_v45 = vrot.slane %v1825_v17, %v6169_v36  ;;  %v1893_v32 = vcombine.high %v1683_v13, %v6155_v63 }
 0x2c9   : > { %v822_v46 = vshrl.u32 %v798_v18, 16  ;;  %v1817_v48 = vrot.slane %v1802_v42, %v6169_v36  ;;  %v1832_v33 = vrot.slane %v1809_v60, %v6169_v36  ;;  %v1873_v25 = vrot.slane %v1859_v23, %v6169_v36 }
 0x2ca   : > { %v939_v51 = vcombine.high %v819_v34, %v6155_v63  ;;  %v1321_v57 = vrot.slane %v1314_v26, %v6169_v36  ;;  %v1866_v59 = vrot.slane %v1851_v2, %v6169_v36  ;;  %v1874_v41 = vcombine.high %v1858_v27, %v7324_v4 }
 0x2cb   : > { %v1942_v44 = vcombine.high %v1687_v28, %v6155_v63  ;;  %v2187_v61 = vcombine.low %v1817_v48, %v1824_v24  ;;  %v5465_v52 = vcombine.high %v1817_v48, %v1824_v24  ;;  %v1908_v62 = vcombine.high %v1900_v37, %v7324_v4  ;;  %v1664_v48 = vpop.permute.xlu0 %1663 }
 0x2cc   : > { %v946_v42 = vrot.slane %v819_v34, %v6158_v14  ;;  %v6275_v3 = vcombine.low %v1321_v57, %v1329_v38  ;;  %v2203_v60 = vcombine.low %v1832_v33, %v1839_v45  ;;  %v1907_v5 = vrot.slane %v1893_v32, %v6158_v14 }
 0x2cd   : > { %v823_v6 = vpack.i.b16 %v822_v46, %v821_v47  ;;  %v6281_v2 = vrot.slane %v1858_v27, %v6169_v36  ;;  %v5466_v11 = vcombine.high %v1832_v33, %v1839_v45  ;;  %v2236_v12 = vcombine.low %v1866_v59, %v1873_v25 }
 0x2ce   : > { %v953_v13 = vrot.slane %v939_v51, %v6158_v14  ;;  %v6285_v16 = vrot.slane %v1874_v41, %v6169_v36  ;;  %v5467_v17 = vcombine.high %v1866_v59, %v1873_v25  ;;  %v1949_v18 = vrot.slane %v1687_v28, %v6158_v14 }
 0x2cf   : > { %v1956_v22 = vrot.slane %v1942_v44, %v6158_v14  ;;  %v6290_v23 = vrot.slane %v2187_v61, %v6158_v14  ;;  %v6293_v30 = vrot.slane %v5465_v52, %v6158_v14  ;;  %v1922_v47 = vrot.slane %v1908_v62, %v6169_v36 }
 0x2d0   : > { %v954_v26 = vcombine.high %v946_v42, %v7324_v4  ;;  %v6298_v27 = vrot.slane %v2203_v60, %v6158_v14  ;;  %v1923_v24 = vcombine.high %v1907_v5, %v7324_v4  ;;  %v988_v34 = vcombine.high %v823_v6, %v6155_v63 }
 0x2d1   : > { %v995_v28 = vrot.slane %v823_v6, %v6158_v14  ;;  %v6304_v38 = vrot.slane %v5466_v11, %v6158_v14  ;;  %v6307_v45 = vrot.slane %v2236_v12, %v6158_v14  ;;  %v1915_v32 = vrot.slane %v1900_v37, %v6169_v36 }
 0x2d2   : > { %v969_v46 = vcombine.high %v953_v13, %v7324_v4  ;;  %v6312_v33 = vrot.slane %v5467_v17, %v6158_v14  ;;  %v1957_v25 = vcombine.high %v1949_v18, %v7324_v4  ;;  %v1972_v51 = vcombine.high %v1956_v22, %v7324_v4 }
 0x2d3   : > { %v1002_v57 = vrot.slane %v988_v34, %v6158_v14  ;;  %v2285_v44 = vcombine.low %v1915_v32, %v1922_v47  ;;  %v968_v37 = vrot.slane %v954_v26, %v6169_v36  ;;  %v1937_v61 = vrot.slane %v1923_v24, %v6169_v36 }
 0x2d4   : > { %v1003_v52 = vcombine.high %v995_v28, %v7324_v4  ;;  %v1691_v60 = vpack.i.b16 %v1664_v48, %v6123_v54  ;;  %v1930_v6 = vrot.slane %v1907_v5, %v6169_v36  ;;  %v1964_v11 = vrot.slane %v1949_v18, %v6169_v36  ;;  %v2514_v54 = vpop.permute.xlu0 %2513 }
 0x2d5   : > { %v1018_v62 = vcombine.high %v1002_v57, %v7324_v4  ;;  %v961_v12 = vrot.slane %v946_v42, %v6169_v36  ;;  %v983_v17 = vrot.slane %v969_v46, %v6169_v36  ;;  %v1971_v34 = vrot.slane %v1957_v25, %v6169_v36 }
 0x2d6   : > { %v6332_v26 = vrot.slane %v1956_v22, %v6169_v36  ;;  %v6335_v24 = vrot.slane %v1972_v51, %v6169_v36  ;;  %v5469_v53 = vcombine.high %v1915_v32, %v1922_v47  ;;  %v6338_v41 = vrot.slane %v2285_v44, %v6158_v14 }
 0x2d7   : > { %v976_v5 = vrot.slane %v953_v13, %v6169_v36  ;;  %v1331_v59 = vcombine.low %v961_v12, %v968_v37  ;;  %v1694_v18 = vshrl.u32 %v1664_v48, 16  ;;  %v2301_v20 = vcombine.low %v1930_v6, %v1937_v61 }
 0x2d8   : > { %v5470_v42 = vcombine.high %v1930_v6, %v1937_v61  ;;  %v1017_v46 = vrot.slane %v1003_v52, %v6169_v36  ;;  %v1032_v25 = vrot.slane %v1018_v62, %v6169_v36  ;;  %v5449_v15 = vcombine.high %v961_v12, %v968_v37 }
 0x2d9   : > { %v1347_v22 = vcombine.low %v976_v5, %v983_v17  ;;  %v5450_v35 = vcombine.high %v976_v5, %v983_v17  ;;  %v1998_v51 = vrot.slane %v1691_v60, %v6158_v14  ;;  %v6345_v47 = vrot.slane %v5469_v53, %v6158_v14  ;;  %v800_v5 = vpop.permute.xlu1 %799 }
 0x2da   : > { %v1010_v32 = vrot.slane %v995_v28, %v6169_v36  ;;  %v1025_v13 = vrot.slane %v1002_v57, %v6169_v36  ;;  %v1991_v48 = vcombine.high %v1691_v60, %v6155_v63  ;;  %v2334_v44 = vcombine.low %v1964_v11, %v1971_v34 }
 0x2db   : > { %v5471_v61 = vcombine.high %v1964_v11, %v1971_v34  ;;  %v1338_v52 = vrot.slane %v1331_v59, %v6158_v14  ;;  %v1695_v37 = vpack.i.b16 %v1694_v18, %v1693_v49  ;;  %v1346_v53 = vrot.slane %v5449_v15, %v6158_v14 }
 0x2dc   : > { %v1380_v62 = vcombine.low %v1010_v32, %v1017_v46  ;;  %v5451_v6 = vcombine.high %v1010_v32, %v1017_v46  ;;  %v1396_v12 = vcombine.low %v1025_v13, %v1032_v25  ;;  %v5452_v17 = vcombine.high %v1025_v13, %v1032_v25 }
 0x2dd   : > { %v1354_v28 = vrot.slane %v1347_v22, %v6158_v14  ;;  %v1362_v57 = vrot.slane %v5450_v35, %v6158_v14  ;;  %v2006_v60 = vcombine.high %v1998_v51, %v7324_v4  ;;  %v6358_v11 = vrot.slane %v2301_v20, %v6158_v14 }
 0x2de   : > { %v6361_v59 = vrot.slane %v5470_v42, %v6158_v14  ;;  %v2005_v49 = vrot.slane %v1991_v48, %v6158_v14  ;;  %v2040_v34 = vcombine.high %v1695_v37, %v6155_v63  ;;  %v827_v35 = vpack.i.b16 %v800_v5, %v6101_v10 }
 0x2df   : > { %v830_v18 = vshrl.u32 %v800_v5, 16  ;;  %v1387_v46 = vrot.slane %v1380_v62, %v6158_v14  ;;  %v1395_v20 = vrot.slane %v5451_v6, %v6158_v14  ;;  %v1403_v42 = vrot.slane %v1396_v12, %v6158_v14 }
 0x2e0   : > { %v1411_v25 = vrot.slane %v5452_v17, %v6158_v14  ;;  %v6375_v22 = vrot.slane %v2334_v44, %v6158_v14  ;;  %v1363_v32 = vcombine.low %v1338_v52, %v1346_v53  ;;  %v1371_v13 = vcombine.low %v1354_v28, %v1362_v57 }
 0x2e1   : > { %v2020_v48 = vrot.slane %v2006_v60, %v6169_v36  ;;  %v2021_v15 = vcombine.high %v2005_v49, %v7324_v4  ;;  %v831_v5 = vpack.i.b16 %v830_v18, %v829_v43  ;;  %v1037_v62 = vcombine.high %v827_v35, %v6155_v63 }
 0x2e2   : > { %v1044_v6 = vrot.slane %v827_v35, %v6158_v14  ;;  %v6384_v12 = vrot.slane %v5471_v61, %v6158_v14  ;;  %v2013_v44 = vrot.slane %v1998_v51, %v6169_v36  ;;  %v2047_v52 = vrot.slane %v1695_v37, %v6158_v14 }
 0x2e3   : > { %v2054_v17 = vrot.slane %v2040_v34, %v6158_v14  ;;  %v1412_v53 = vcombine.low %v1387_v46, %v1395_v20  ;;  %v1420_v28 = vcombine.low %v1403_v42, %v1411_v25  ;;  %v1051_v57 = vrot.slane %v1037_v62, %v6158_v14 }
 0x2e4   : > { %v1086_v10 = vcombine.high %v831_v5, %v6155_v63  ;;  %v1370_v43 = vrot.slane %v1363_v32, %v6169_v36  ;;  %v1378_v60 = vrot.slane %v1371_v13, %v6169_v36  ;;  %v1093_v35 = vrot.slane %v831_v5, %v6158_v14 }
 0x2e5   : > { %v2523_v61 = vpack.i.b16 %v2514_v54, %v6129_v56  ;;  %v2028_v51 = vrot.slane %v2005_v49, %v6169_v36  ;;  %v2035_v37 = vrot.slane %v2021_v15, %v6169_v36  ;;  %v2383_v18 = vcombine.low %v2013_v44, %v2020_v48 }
 0x2e6   : > { %v1052_v34 = vcombine.high %v1044_v6, %v7324_v4  ;;  %v2055_v46 = vcombine.high %v2047_v52, %v7324_v4  ;;  %v2070_v20 = vcombine.high %v2054_v17, %v7324_v4  ;;  %v1067_v42 = vcombine.high %v1051_v57, %v7324_v4 }
 0x2e7   : > { %v2526_v25 = vshrl.u32 %v2514_v54, 16  ;;  %v1419_v32 = vrot.slane %v1412_v53, %v6169_v36  ;;  %v1427_v13 = vrot.slane %v1420_v28, %v6169_v36  ;;  %v6404_v5 = vrot.slane %v2047_v52, %v6169_v36 }
 0x2e8   : > { %v1100_v49 = vrot.slane %v1086_v10, %v6158_v14  ;;  %v6407_v15 = vcombine.low %v1370_v43, %v1378_v60  ;;  %v6410_v62 = vrot.slane %v2054_v17, %v6169_v36  ;;  %v1101_v50 = vcombine.high %v1093_v35, %v7324_v4 }
 0x2e9   : > { %v2553_v0 = vcombine.high %v2523_v61, %v6155_v63  ;;  %v6415_v54 = vrot.slane %v2383_v18, %v6158_v14  ;;  %v5473_v53 = vcombine.high %v2013_v44, %v2020_v48  ;;  %v2399_v1 = vcombine.low %v2028_v51, %v2035_v37 }
 0x2ea   : > { %7332 = vst [vmem:[#allocation5_spill] sm:$0xff] %v6407_v15  ;;  %v1066_v28 = vrot.slane %v1052_v34, %v6169_v36  ;;  %v2069_v52 = vrot.slane %v2055_v46, %v6169_v36  ;;  %v6420_v10 = vrot.slane %v2070_v20, %v6169_v36  ;;  %v1081_v43 = vrot.slane %v1067_v42, %v6169_v36 }
 0x2eb   : > { %7333 = vst [vmem:[#allocation6_spill] sm:$0xff] %v6415_v54  ;;  %v7334_v17 = vshrl.u32 %v6129_v56, 16  ;;  %v6425_v4 = vcombine.low %v1419_v32, %v1427_v13  ;;  %v5474_v55 = vcombine.high %v2028_v51, %v2035_v37  ;;  %v1059_v18 = vrot.slane %v1044_v6, %v6169_v36  ;;  %v802_v13 = vpop.permute.xlu1 %801 }
 0x2ec   : > { %v7336_v15 = vmov 0   ;;  %v1074_v44 = vrot.slane %v1051_v57, %v6169_v36  ;;  %v1115_v34 = vrot.slane %v1101_v50, %v6169_v36  ;;  %v2560_v46 = vrot.slane %v2523_v61, %v6158_v14 }
 0x2ed   : > { %v2527_v60 = vpack.i.b16 %v2526_v25, %v7334_v17  ;;  %7335 = vst [vmem:[#allocation7_spill] sm:$0xff] %v6425_v4  ;;  %v1116_v48 = vcombine.high %v1100_v49, %v7336_v15  ;;  %v2567_v20 = vrot.slane %v2553_v0, %v6158_v14  ;;  %v6434_v42 = vrot.slane %v5473_v53, %v6158_v14 }
 0x2ee   : > { %v6437_v56 = vrot.slane %v2399_v1, %v6158_v14  ;;  %v1108_v51 = vrot.slane %v1093_v35, %v6169_v36  ;;  %v1429_v37 = vcombine.low %v1059_v18, %v1066_v28  ;;  %v5453_v6 = vcombine.high %v1059_v18, %v1066_v28 }
 0x2ef   : > { %7337 = vst [vmem:[#allocation8_spill] sm:$0xff] %v6434_v42  ;;  %v1445_v25 = vcombine.low %v1074_v44, %v1081_v43  ;;  %v5454_v32 = vcombine.high %v1074_v44, %v1081_v43  ;;  %v2602_v57 = vcombine.high %v2527_v60, %v6155_v63  ;;  %v6442_v50 = vrot.slane %v5474_v55, %v6158_v14 }
 0x2f0   : > { %7338 = vst [vmem:[#allocation9_spill] sm:$0xff] %v6437_v56  ;;  %v2432_v0 = vcombine.low %v6404_v5, %v2069_v52  ;;  %v1130_v61 = vrot.slane %v1116_v48, %v6169_v36  ;;  %v2609_v53 = vrot.slane %v2527_v60, %v6158_v14  ;;  %v1478_v1 = vcombine.low %v1108_v51, %v1115_v34 }
 0x2f1   : > { %v5455_v17 = vcombine.high %v1108_v51, %v1115_v34  ;;  %v2568_v35 = vcombine.high %v2560_v46, %v7336_v15  ;;  %v2583_v28 = vcombine.high %v2567_v20, %v7336_v15  ;;  %v1123_v43 = vrot.slane %v1100_v49, %v6169_v36 }
 0x2f2   : > { %v1436_v18 = vrot.slane %v1429_v37, %v6158_v14  ;;  %v2616_v44 = vrot.slane %v2602_v57, %v6158_v14  ;;  %v835_v55 = vpack.i.b16 %v802_v13, %v6099_v9  ;;  %v1444_v4 = vrot.slane %v5453_v6, %v6158_v14 }
 0x2f3   : > { %v1452_v48 = vrot.slane %v1445_v25, %v6158_v14  ;;  %v1460_v60 = vrot.slane %v5454_v32, %v6158_v14  ;;  %v838_v54 = vshrl.u32 %v802_v13, 16  ;;  %v5475_v34 = vcombine.high %v6404_v5, %v2069_v52 }
 0x2f4   : > { %v1494_v51 = vcombine.low %v1123_v43, %v1130_v61  ;;  %v5456_v42 = vcombine.high %v1123_v43, %v1130_v61  ;;  %v2617_v56 = vcombine.high %v2609_v53, %v7336_v15  ;;  %v1485_v49 = vrot.slane %v1478_v1, %v6158_v14 }
 0x2f5   : > { %v1493_v37 = vrot.slane %v5455_v17, %v6158_v14  ;;  %v6461_v57 = vrot.slane %v2568_v35, %v6169_v36  ;;  %v2597_v6 = vrot.slane %v2583_v28, %v6169_v36  ;;  %v6467_v32 = vrot.slane %v2560_v46, %v6169_v36 }
 0x2f6   : > { %v2632_v5 = vcombine.high %v2616_v44, %v7336_v15  ;;  %v1135_v52 = vcombine.high %v835_v55, %v6155_v63  ;;  %v1461_v13 = vcombine.low %v1436_v18, %v1444_v4  ;;  %v1469_v61 = vcombine.low %v1452_v48, %v1460_v60 }
 0x2f7   : > { %v2590_v1 = vrot.slane %v2567_v20, %v6169_v36  ;;  %v7339_v17 = vshrl.u32 %v6099_v9, 16  ;;  %v6477_v43 = vrot.slane %v1494_v51, %v6158_v14  ;;  %v6480_v46 = vrot.slane %v5456_v42, %v6158_v14 }
 0x2f8   : > { %v6483_v25 = vrot.slane %v2617_v56, %v6169_v36  ;;  %v6486_v4 = vrot.slane %v2432_v0, %v6158_v14  ;;  %v1510_v18 = vcombine.low %v1485_v49, %v1493_v37  ;;  %v2945_v9 = vcombine.low %v6467_v32, %v6461_v57 }
 0x2f9   : > { %v839_v35 = vpack.i.b16 %v838_v54, %v7339_v17  ;;  %v2961_v54 = vcombine.low %v2590_v1, %v2597_v6  ;;  %v6491_v20 = vrot.slane %v5475_v34, %v6158_v14  ;;  %v6494_v48 = vrot.slane %v2609_v53, %v6169_v36 }
 0x2fa   : > { %v2646_v42 = vrot.slane %v2632_v5, %v6169_v36  ;;  %v1149_v60 = vrot.slane %v1135_v52, %v6158_v14  ;;  %v6499_v56 = vrot.slane %v1461_v13, %v6169_v36  ;;  %v6502_v0 = vrot.slane %v1469_v61, %v6169_v36 }
 0x2fb   : > { %v5478_v51 = vcombine.high %v2590_v1, %v2597_v6  ;;  %v1184_v49 = vcombine.high %v839_v35, %v6155_v63  ;;  %v2639_v37 = vrot.slane %v2616_v44, %v6169_v36  ;;  %v2994_v5 = vcombine.low %v6494_v48, %v6483_v25 }
 0x2fc   : > { %v6513_v52 = vrot.slane %v1510_v18, %v6169_v36  ;;  %v6516_v13 = vrot.slane %v2945_v9, %v6158_v14  ;;  %v6519_v6 = vrot.slane %v2961_v54, %v6158_v14  ;;  %v1142_v61 = vrot.slane %v835_v55, %v6158_v14 }
 0x2fd   : > { %v3010_v1 = vcombine.low %v2639_v37, %v2646_v42  ;;  %v1165_v44 = vcombine.high %v1149_v60, %v7336_v15  ;;  %v2129_v17 = vcombine.low %v6233_v8, %v6239_v7  ;;  %v7340_v53 = vcombine.low %v6206_v21, %v6216_v39 }
 0x2fe   : > { %v6530_v34 = vrot.slane %v5478_v51, %v6158_v14  ;;  %v1198_v9 = vrot.slane %v1184_v49, %v6158_v14  ;;  %v2121_v54 = vcombine.low %v6219_v40, %v6223_v58  ;;  %v7341_v55 = vcombine.high %v6206_v21, %v6216_v39 }
 0x2ff   : > { %v2161_v18 = vrot.slane %v7340_v53, %v6158_v14  ;;  %v6540_v8 = vrot.slane %v2994_v5, %v6158_v14  ;;  %v5479_v7 = vcombine.high %v6494_v48, %v6483_v25  ;;  %v5480_v53 = vcombine.high %v2639_v37, %v2646_v42 }
 0x300   : > { %v2169_v28 = vrot.slane %v7341_v55, %v6158_v14  ;;  %v2170_v51 = vcombine.low %v6245_v19, %v6252_v31  ;;  %v1150_v49 = vcombine.high %v1142_v61, %v7336_v15  ;;  %v6548_v40 = vrot.slane %v1142_v61, %v6169_v36 }
 0x301   : > { %v6551_v58 = vrot.slane %v1149_v60, %v6169_v36  ;;  %v1191_v21 = vrot.slane %v839_v35, %v6158_v14  ;;  %v6555_v39 = vrot.slane %v3010_v1, %v6158_v14  ;;  %v6558_v5 = vrot.slane %v1165_v44, %v6169_v36 }
 0x302   : > { %v2136_v42 = vrot.slane %v2129_v17, %v6169_v36  ;;  %v2178_v37 = vcombine.low %v2161_v18, %v2169_v28  ;;  %v1214_v19 = vcombine.high %v1198_v9, %v7336_v15  ;;  %v2128_v31 = vrot.slane %v2121_v54, %v6169_v36 }
 0x303   : > { %v2177_v61 = vrot.slane %v2170_v51, %v6169_v36  ;;  %v2219_v60 = vcombine.low %v6290_v23, %v6293_v30  ;;  %v2227_v1 = vcombine.low %v6298_v27, %v6304_v38  ;;  %v7342_v44 = vcombine.low %v6281_v2, %v6285_v16 }
 0x304   : > { %v2185_v35 = vrot.slane %v2178_v37, %v6169_v36  ;;  %v7343_v28 = vcombine.high %v6281_v2, %v6285_v16  ;;  %v6578_v54 = vrot.slane %v5480_v53, %v6158_v14  ;;  %v6581_v23 = vrot.slane %v1150_v49, %v6169_v36 }
 0x305   : > { %v2259_v17 = vrot.slane %v7342_v44, %v6158_v14  ;;  %v1199_v30 = vcombine.high %v1191_v21, %v7336_v15  ;;  %v2268_v27 = vcombine.low %v6307_v45, %v6312_v33  ;;  %v2137_v38 = vcombine.low %v2128_v31, %v2136_v42 }
 0x306   : > { %v2267_v18 = vrot.slane %v7343_v28, %v6158_v14  ;;  %v2186_v55 = vcombine.low %v2177_v61, %v2185_v35  ;;  %v2234_v51 = vrot.slane %v2227_v1, %v6169_v36  ;;  %v6588_v44 = vrot.slane %v1191_v21, %v6169_v36 }
 0x307   : > { %v1228_v2 = vrot.slane %v1214_v19, %v6169_v36  ;;  %v1543_v16 = vcombine.low %v6551_v58, %v6558_v5  ;;  %v2226_v53 = vrot.slane %v2219_v60, %v6169_v36  ;;  %v2275_v28 = vrot.slane %v2268_v27, %v6169_v36 }
 0x308   : > { %v2276_v37 = vcombine.low %v2259_v17, %v2267_v18  ;;  %v2483_v49 = vpack.i.b16 %v2186_v55, %v2137_v38  ;;  %v2325_v33 = vcombine.low %v6358_v11, %v6361_v59  ;;  %v2317_v21 = vcombine.low %v6338_v41, %v6345_v47 }
 0x309   : > { %v6598_v42 = vcombine.low %v2226_v53, %v2234_v51  ;;  %v7344_v19 = vcombine.low %v6332_v26, %v6335_v24  ;;  %v7345_v61 = vcombine.high %v6332_v26, %v6335_v24  ;;  %v2485_v17 = vshrl.u32 %v2186_v55, 16 }
 0x30a   : > { %v2283_v45 = vrot.slane %v2276_v37, %v6169_v36  ;;  %v3374_v35 = vsel %vm3369_vm2, %v2483_v49, 0  ;;  %v2366_v11 = vcombine.low %v6375_v22, %v6384_v12  ;;  %v1221_v59 = vrot.slane %v1198_v9, %v6169_v36 }
 0x30b   : > { %v2357_v31 = vrot.slane %v7344_v19, %v6158_v14  ;;  %v2365_v60 = vrot.slane %v7345_v61, %v6158_v14  ;;  %v1527_v41 = vcombine.low %v6548_v40, %v6581_v23  ;;  %v5457_v47 = vcombine.high %v6548_v40, %v6581_v23  ;;  %5664 = vmatpush3.bf16.xpose.msra.mxu1 %v3374_v35 }
 0x30c   : > { %v2284_v1 = vcombine.low %v2275_v28, %v2283_v45  ;;  %v5458_v26 = vcombine.high %v6551_v58, %v6558_v5  ;;  %v7346_v27 = vmov 0.0   ;;  %v2484_v55 = vshrl.u32 %v2137_v38, 16 }
 0x30d   : > { %v2374_v18 = vcombine.low %v2357_v31, %v2365_v60  ;;  %5669 = vmatprep.subr.bf16.mxu1 %v7346_v27  ;;  %v2332_v22 = vrot.slane %v2325_v33, %v6169_v36  ;;  %v1213_v12 = vrot.slane %v1199_v30, %v6169_v36  ;;  %v1592_v9 = vcombine.low %v1221_v59, %v1228_v2 }
 0x30e   : > { %v2489_v24 = vpack.i.b16 %v2284_v1, %v6598_v42  ;;  %v2373_v51 = vrot.slane %v2366_v11, %v6169_v36  ;;  %v6627_v40 = vrot.slane %v1543_v16, %v6158_v14  ;;  %v2486_v58 = vpack.i.b16 %v2485_v17, %v2484_v55  ;;  %v7350_v11 = vld [vmem:[#allocation8_spill] sm:$0xff] }
 0x30f   : > { %v2381_v37 = vrot.slane %v2374_v18, %v6169_v36  ;;  %v2324_v5 = vrot.slane %v2317_v21, %v6169_v36  ;;  %v5460_v53 = vcombine.high %v1221_v59, %v1228_v2  ;;  %v7347_v30 = vcombine.low %v6410_v62, %v6420_v10  ;;  %v7349_v2 = vld [vmem:[#allocation9_spill] sm:$0xff]  ;;  %v7353_v18 = vld [vmem:[#allocation7_spill] sm:$0xff] }
 0x310   : > { %v3468_v23 = vsel %vm3369_vm2, %v2489_v24, 0  ;;  %v7348_v28 = vcombine.high %v6410_v62, %v6420_v10  ;;  %v1627_v45 = vpack.i.b16 %v6275_v3, %v6257_v29  ;;  %v2423_v21 = vcombine.low %v7349_v2, %v6442_v50  ;;  %v7351_v50 = vld [vmem:[#allocation6_spill] sm:$0xff] }
 0x311   : > { %5676 = vmatpush3.bf16.xpose.msra.mxu0 %v3468_v23  ;;  %v6631_v38 = vcombine.low %v2373_v51, %v2381_v37  ;;  %v2455_v49 = vrot.slane %v7347_v30, %v6158_v14  ;;  %v6644_v33 = vcombine.low %v2324_v5, %v2332_v22  ;;  %v2464_v19 = vcombine.low %v6486_v4, %v6491_v20  ;;  %v7352_v20 = vld [vmem:[#allocation5_spill] sm:$0xff] }
 0x312   : > { %v2463_v16 = vrot.slane %v7348_v28, %v6158_v14  ;;  %5687 = vmatprep.subr.bf16.mxu0 %v7346_v27  ;;  %v1576_v31 = vcombine.low %v6588_v44, %v1213_v12  ;;  %v5459_v61 = vcombine.high %v6588_v44, %v1213_v12  ;;  %v1599_v62 = vrot.slane %v1592_v9, %v6158_v14 }
 0x313   : > { %5666 = vmatmul.mubr.msk.bf16.vlgmr.msra.gmra.mrb[12].mxu1 %vm3369_vm2, %v1627_v45  ;;  %v3421_v60 = vsel %vm3369_vm2, %v2486_v58, 0  ;;  %v2495_v35 = vpack.i.b16 %v6631_v38, %v6644_v33  ;;  %v2491_v17 = vshrl.u32 %v2284_v1, 16  ;;  %v2415_v59 = vcombine.low %v7351_v50, %v7350_v11 }
 0x314   : > { %v2472_v10 = vcombine.low %v2455_v49, %v2463_v16  ;;  %v1607_v4 = vrot.slane %v5460_v53, %v6158_v14  ;;  %5670 = vmatpush3.bf16.xpose.msra.mxu1 %v3421_v60  ;;  %v1633_v44 = vpack.i.b16 %v7353_v18, %v7352_v20  ;;  %5671 = vmatprep.mubr.msk.bf16.mxu1 %vm5920_vm1, %v7346_v27  ;;  %v1629_v24 = vshrl.u32 %v6275_v3, 16 }
 0x315   : > { %5681 = vmatprep.subr.bf16.mxu1 %v7346_v27  ;;  %v2490_v1 = vshrl.u32 %v6598_v42, 16  ;;  %v7354_v22 = vcombine.low %v6477_v43, %v6480_v46  ;;  %v2430_v9 = vrot.slane %v2423_v21, %v6169_v36  ;;  %v2471_v51 = vrot.slane %v2464_v19, %v6169_v36 }
 0x316   : > { %v2479_v55 = vrot.slane %v2472_v10, %v6169_v36  ;;  %v1558_v37 = vrot.slane %v5458_v26, %v6158_v14  ;;  %v1583_v23 = vrot.slane %v1576_v31, %v6158_v14  ;;  %v1591_v3 = vrot.slane %v5459_v61, %v6158_v14 }
 0x317   : > { %v1525_v12 = vrot.slane %v7354_v22, %v6169_v36  ;;  %v1628_v58 = vshrl.u32 %v6257_v29, 16  ;;  %v3562_v42 = vsel %vm3369_vm2, %v2495_v35, 0  ;;  %v2492_v5 = vpack.i.b16 %v2491_v17, %v2490_v1 }
 0x318   : > { %5678 = vmatmul.mubr.msk.bf16.vlgmr.msra.gmra.mrb[12].mxu0 %vm3369_vm2, %v1633_v44  ;;  %v2422_v43 = vrot.slane %v2415_v59, %v6169_v36  ;;  %v6681_v46 = vcombine.low %v2471_v51, %v2479_v55  ;;  %v3009_v26 = vrot.slane %v5479_v7, %v6158_v14  ;;  %v1534_v53 = vrot.slane %v1527_v41, %v6158_v14 }
 0x319   : > { %v1542_v30 = vrot.slane %v5457_v47, %v6158_v14  ;;  %5688 = vmatpush3.bf16.xpose.msra.mxu0 %v3562_v42  ;;  %5689 = vmatprep.mubr.msk.bf16.mxu0 %vm5920_vm1, %v7346_v27  ;;  %v1616_v29 = vcombine.low %v1599_v62, %v1607_v4  ;;  %v1630_v49 = vpack.i.b16 %v1629_v24, %v1628_v58  ;;  %v3515_v45 = vsel %vm3369_vm2, %v2492_v5, 0 }
 0x31a   : > { %v1526_v28 = vcombine.low %v6513_v52, %v1525_v12  ;;  %5699 = vmatprep.subr.bf16.mxu0 %v7346_v27  ;;  %v2431_v16 = vcombine.low %v2422_v43, %v2430_v9  ;;  %v7355_v25 = vcombine.high %v6467_v32, %v6461_v57  ;;  %v1567_v7 = vcombine.low %v6627_v40, %v1558_v37 }
 0x31b   : > { %v1608_v41 = vcombine.low %v1583_v23, %v1591_v3  ;;  %v3034_v47 = vcombine.low %v6555_v39, %v6578_v54  ;;  %5672 = vmatmul.mubr.msk.bf16.vlgmr.msra.gmra.mrb[16].mxu1 %vm3369_vm2, %v1630_v49  ;;  %v1477_v52 = vcombine.low %v6499_v56, %v6502_v0  ;;  %v2497_v21 = vshrl.u32 %v6631_v38, 16  ;;  %v3747_v49 = vld [vmem:[%s7318_s7 + $0x8] sm:$0xff] }
 0x31c   : > { %v2960_v48 = vrot.slane %v7355_v25, %v6158_v14  ;;  %v2501_v2 = vpack.i.b16 %v6681_v46, %v2431_v16  ;;  %v1559_v19 = vcombine.low %v1534_v53, %v1542_v30  ;;  %5682 = vmatpush3.bf16.xpose.msra.mxu1 %v3515_v45  ;;  %5683 = vmatprep.mubr.msk.bf16.mxu1 %vm5920_vm1, %v7346_v27  ;;  %v1635_v54 = vshrl.u32 %v7353_v18, 16 }
 0x31d   : > { %v2985_v57 = vcombine.low %v6519_v6, %v6530_v34  ;;  %v3026_v32 = vcombine.low %v6540_v8, %v3009_v26  ;;  %v1639_v39 = vpack.i.b16 %v1526_v28, %v1477_v52  ;;  %5693 = vmatprep.subr.bf16.mxu1 %v7346_v27  ;;  %v2496_v56 = vshrl.u32 %v6644_v33, 16  ;;  %v3746_v26 = vld [vmem:[%s7318_s7] sm:$0xff] }
 0x31e   : > { %v1623_v0 = vrot.slane %v1616_v29, %v6169_v36  ;;  %v2977_v40 = vcombine.low %v6516_v13, %v2960_v48  ;;  %v1574_v38 = vrot.slane %v1567_v7, %v6169_v36  ;;  %v3041_v31 = vrot.slane %v3034_v47, %v6169_v36  ;;  %v3748_v47 = vld [vmem:[%s7318_s7 + $0x10] sm:$0xff] }
 0x31f   : > { %v1615_v61 = vrot.slane %v1608_v41, %v6169_v36  ;;  %v3656_v34 = vsel %vm3369_vm2, %v2501_v2, 0  ;;  %v1634_v6 = vshrl.u32 %v7352_v20, 16  ;;  %v2498_v8 = vpack.i.b16 %v2497_v21, %v2496_v56 }
 0x320   : > { %5690 = vmatmul.mubr.msk.bf16.vlgmr.msra.gmra.mrb[16].mxu0 %vm3369_vm2, %v1639_v39  ;;  %v2992_v33 = vrot.slane %v2985_v57, %v6169_v36  ;;  %v3033_v13 = vrot.slane %v3026_v32, %v6169_v36  ;;  %v1566_v62 = vrot.slane %v1559_v19, %v6169_v36  ;;  %v2984_v35 = vrot.slane %v2977_v40, %v6169_v36 }
 0x321   : > { %5700 = vmatpush3.bf16.xpose.msra.mxu0 %v3656_v34  ;;  %5701 = vmatprep.mubr.msk.bf16.mxu0 %vm5920_vm1, %v7346_v27  ;;  %v1636_v10 = vpack.i.b16 %v1635_v54, %v1634_v6  ;;  %v1624_v60 = vcombine.low %v1615_v61, %v1623_v0  ;;  %v3609_v11 = vsel %vm3369_vm2, %v2498_v8, 0  ;;  %v2503_v59 = vshrl.u32 %v6681_v46, 16  ;;  %v3749_v34 = vld [vmem:[%s7318_s7 + $0x18] sm:$0xff] }
 0x322   : > { %5711 = vmatprep.subr.bf16.mxu0 %v7346_v27  ;;  %v3042_v17 = vcombine.low %v3033_v13, %v3041_v31  ;;  %v1575_v50 = vcombine.low %v1566_v62, %v1574_v38  ;;  %v2993_v4 = vcombine.low %v2984_v35, %v2992_v33  ;;  %v1641_v18 = vshrl.u32 %v1526_v28, 16 }
 0x323   : > { %5684 = vmatmul.mubr.msk.bf16.vlgmr.msra.gmra.mrb[20].mxu1 %vm3369_vm2, %v1636_v10  ;;  %v2502_v44 = vshrl.u32 %v2431_v16, 16  ;;  %v1640_v55 = vshrl.u32 %v1477_v52, 16  ;;  %v1647_v9 = vshrl.u32 %v1624_v60, 16 }
 0x324   : > { %5694 = vmatpush3.bf16.xpose.msra.mxu1 %v3609_v11  ;;  %5695 = vmatprep.mubr.msk.bf16.mxu1 %vm5920_vm1, %v7346_v27  ;;  %v1645_v20 = vpack.i.b16 %v1624_v60, %v1575_v50  ;;  %v3339_v24 = vpack.i.b16 %v3042_v17, %v2993_v4  ;;  %v3342_v51 = vshrl.u32 %v3042_v17, 16  ;;  %v1646_v37 = vshrl.u32 %v1575_v50, 16 }
 0x325   : > { %5705 = vmatprep.subr.bf16.mxu1 %v7346_v27  ;;  %v2504_v1 = vpack.i.b16 %v2503_v59, %v2502_v44  ;;  %v1642_v22 = vpack.i.b16 %v1641_v18, %v1640_v55  ;;  %v3341_v23 = vshrl.u32 %v2993_v4, 16 }
 0x326   : > { %v1648_v3 = vpack.i.b16 %v1647_v9, %v1646_v37 }
 0x327   : > { %v3703_v12 = vsel %vm3369_vm2, %v2504_v1, 0  ;;  %v3343_v58 = vpack.i.b16 %v3342_v51, %v3341_v23 }
 0x328   : > { %5702 = vmatmul.mubr.msk.bf16.vlgmr.msra.gmra.mrb[20].mxu0 %vm3369_vm2, %v1645_v20 }
 0x329   : > { %5712 = vmatpush3.bf16.msra.mxu0 %v3339_v24  ;;  %5713 = vmatprep.mubr.msk.bf16.mxu0 %vm5920_vm1, %v7346_v27 }
 0x32a   : > { %5723 = vmatprep.subr.bf16.mxu0 %v7346_v27 }
 0x32b   : > { %5696 = vmatmul.mubr.msk.bf16.vlgmr.msra.gmra.mrb[24].mxu1 %vm3369_vm2, %v1642_v22 }
 0x32c   : > { %5706 = vmatpush3.bf16.xpose.msra.mxu1 %v3703_v12  ;;  %5707 = vmatprep.mubr.msk.bf16.mxu1 %vm5920_vm1, %v7346_v27 }
 0x32d   : > { %5717 = vmatprep.subr.bf16.mxu1 %v7346_v27 }
 0x333   : > { %5708 = vmatmul.mubr.msk.bf16.vlgmr.msra.gmra.mrb[28].mxu1 %vm3369_vm2, %v1648_v3 }
 0x334   : > { %5718 = vmatpush3.bf16.msra.mxu1 %v3343_v58  ;;  %5719 = vmatprep.mubr.msk.bf16.mxu1 %vm5920_vm1, %v7346_v27 }
 0x335   : > { %5729 = vmatprep.subr.bf16.mxu1 %v7346_v27 }
 0x3e6   : > { %v3410_v42 = vpop.f32.mrb[12].mxu1 }
 0x3e7   : > { %v5667_v5 = vpop.f32.mrb[13].mxu1  ;;  %v6756_v16 = vadd.f32 %v3746_v26, %v3410_v42 }
 0x3e8   : > { %v3413_v43 = vpop.f32.mrb[14].mxu1 }
 0x3e9   : > { %v5668_v46 = vpop.f32.mrb[15].mxu1  ;;  %v6765_v45 = vadd.f32 %v3747_v49, %v3413_v43  ;;  %v3766_v32 = vsel %vm3369_vm2, %v6756_v16, -inf }
 0x3eb   : > { %v3504_v53 = vpop.f32.mrb[12].mxu0  ;;  %v3769_v56 = vsel %vm3369_vm2, %v6765_v45, -inf }
 0x3ec   : > { %v6751_v30 = vadd.f32 %v3746_v26, %v3504_v53  ;;  %v5679_v29 = vpop.f32.mrb[13].mxu0 }
 0x3ed   : > { %v3507_v28 = vpop.f32.mrb[14].mxu0 }
 0x3ee   : > { %v6758_v25 = vadd.f32 %v3747_v49, %v3507_v28  ;;  %v5680_v48 = vpop.f32.mrb[15].mxu0  ;;  %v3778_v7 = vsel %vm3369_vm2, %v6751_v30, -inf  ;;  %v3457_v41 = vpop.f32.mrb[16].mxu1 }
 0x3ef   : > { %3779 = vmax.xlane.f32.xlu0 %v3778_v7  ;;  %v5673_v52 = vpop.f32.mrb[17].mxu1  ;;  %v6769_v19 = vadd.f32 %v3748_v47, %v3457_v41  ;;  %v7356_v48 = vld [vmem:[#allocation2_spill] sm:$0xff]  ;;  %v7357_v7 = vld [vmem:[#allocation4_spill] sm:$0xff] }
 0x3f0   : > { %v3781_v2 = vsel %vm3369_vm2, %v6758_v25, -inf  ;;  %v3460_v21 = vpop.f32.mrb[18].mxu1 }
 0x3f1   : > { %3782 = vmax.xlane.f32.xlu1 %v3781_v2  ;;  %v5674_v57 = vpop.f32.mrb[19].mxu1  ;;  %v3772_v61 = vsel %vm3369_vm2, %v6769_v19, -inf  ;;  %v6786_v62 = vadd.f32 %v3749_v34, %v3460_v21 }
 0x3f3   : > { %v3598_v39 = vpop.f32.mrb[16].mxu0  ;;  %3767 = vmax.xlane.f32.xlu0 %v3766_v32  ;;  %v3775_v44 = vsel %vm3369_vm2, %v6786_v62, -inf }
 0x3f4   : > { %v5691_v54 = vpop.f32.mrb[17].mxu0  ;;  %v6775_v40 = vadd.f32 %v3746_v26, %v3598_v39 }
 0x3f5   : > { %v3601_v0 = vpop.f32.mrb[18].mxu0  ;;  %3770 = vmax.xlane.f32.xlu1 %v3769_v56 }
 0x3f6   : > { %v6777_v38 = vadd.f32 %v3747_v49, %v3601_v0  ;;  %v5692_v31 = vpop.f32.mrb[19].mxu0  ;;  %v3551_v6 = vpop.f32.mrb[20].mxu1  ;;  %v3790_v35 = vsel %vm3369_vm2, %v6775_v40, -inf }
 0x3f7   : > { %3773 = vmax.xlane.f32.xlu0 %v3772_v61  ;;  %v5685_v8 = vpop.f32.mrb[21].mxu1  ;;  %v6794_v4 = vadd.f32 %v3748_v47, %v3551_v6 }
 0x3f8   : > { %v3793_v33 = vsel %vm3369_vm2, %v6777_v38, -inf  ;;  %v3554_v13 = vpop.f32.mrb[22].mxu1 }
 0x3f9   : > { %3794 = vmax.xlane.f32.xlu1 %v3793_v33  ;;  %v6788_v10 = vadd.f32 %v3749_v34, %v3554_v13  ;;  %v5686_v60 = vpop.f32.mrb[23].mxu1  ;;  %v3784_v37 = vsel %vm3369_vm2, %v6794_v4, -inf }
 0x3fb   : > { %v3692_v17 = vpop.f32.mrb[20].mxu0  ;;  %3791 = vmax.xlane.f32.xlu0 %v3790_v35  ;;  %v3787_v50 = vsel %vm3369_vm2, %v6788_v10, -inf }
 0x3fc   : > { %v5703_v11 = vpop.f32.mrb[21].mxu0  ;;  %v6802_v12 = vadd.f32 %v3746_v26, %v3692_v17 }
 0x3fd   : > { %v3695_v59 = vpop.f32.mrb[22].mxu0  ;;  %3788 = vmax.xlane.f32.xlu1 %v3787_v50 }
 0x3fe   : > { %v6796_v20 = vadd.f32 %v3747_v49, %v3695_v59  ;;  %v5704_v18 = vpop.f32.mrb[23].mxu0  ;;  %v3645_v24 = vpop.f32.mrb[24].mxu1  ;;  %v3802_v58 = vsel %vm3369_vm2, %v6802_v12, -inf }
 0x3ff   : > { %3776 = vmax.xlane.f32.xlu0 %v3775_v44  ;;  %v5697_v55 = vpop.f32.mrb[25].mxu1  ;;  %v6810_v3 = vadd.f32 %v3748_v47, %v3645_v24 }
 0x400   : > { %v3805_v1 = vsel %vm3369_vm2, %v6796_v20, -inf  ;;  %v3648_v22 = vpop.f32.mrb[26].mxu1 }
 0x401   : > { %3806 = vmax.xlane.f32.xlu1 %v3805_v1  ;;  %v6804_v9 = vadd.f32 %v3749_v34, %v3648_v22  ;;  %v5698_v51 = vpop.f32.mrb[27].mxu1  ;;  %v3796_v29 = vsel %vm3369_vm2, %v6810_v3, -inf }
 0x403   : > { %3785 = vmax.xlane.f32.xlu0 %v3784_v37  ;;  %v3799_v23 = vsel %vm3369_vm2, %v6804_v9, -inf }
 0x405   : > { %3800 = vmax.xlane.f32.xlu1 %v3799_v23 }
 0x406   : > { %v3739_v42 = vpop.f32.mrb[28].mxu1 }
 0x407   : > { %3803 = vmax.xlane.f32.xlu0 %v3802_v58  ;;  %v5709_v5 = vpop.f32.mrb[29].mxu1  ;;  %v6814_v46 = vadd.f32 %v3748_v47, %v3739_v42 }
 0x408   : > { %v3742_v43 = vpop.f32.mrb[30].mxu1 }
 0x409   : > { %v6816_v26 = vadd.f32 %v3749_v34, %v3742_v43  ;;  %v5710_v53 = vpop.f32.mrb[31].mxu1  ;;  %v3808_v28 = vsel %vm3369_vm2, %v6814_v46, -inf }
 0x40b   : > { %3797 = vmax.xlane.f32.xlu0 %v3796_v29  ;;  %v3811_v49 = vsel %vm3369_vm2, %v6816_v26, -inf }
 0x40c   : > { %3812 = vmax.xlane.f32.xlu1 %v3811_v49 }
 0x40f   : > { %3809 = vmax.xlane.f32.xlu0 %v3808_v28 }
 0x41d   : > { %2515 = vrot.lane.b32.xlu1 %v7356_v48, %s5918_s18 }
 0x425   : > { %2517 = vrot.lane.b32.xlu0 %v7357_v7, %s5918_s18 }
 0x47c   : > { %v3780_v41 = vpop.xlane.xlu0 %3779 }
 0x47d   : > { %v3818_v47 = vsub.f32 %v6751_v30, %v3780_v41 }
 0x47e   : > { %v3783_v52 = vpop.xlane.xlu1 %3782 }
 0x47f   : > { %v3838_v2 = vmul.f32 1.442695, %v3818_v47  ;;  %v3819_v21 = vsub.f32 %v6758_v25, %v3783_v52 }
 0x480   : > { %v3768_v57 = vpop.xlane.xlu0 %3767 }
 0x481   : > { %5830 = vpow2.f32 %v3838_v2  ;;  %v3814_v32 = vsub.f32 %v6756_v16, %v3768_v57  ;;  %v3840_v54 = vmul.f32 1.442695, %v3819_v21 }
 0x482   : > { %v3771_v39 = vpop.xlane.xlu1 %3770 }
 0x483   : > { %v3830_v56 = vmul.f32 1.442695, %v3814_v32  ;;  %v3815_v0 = vsub.f32 %v6765_v45, %v3771_v39 }
 0x484   : > { %v3774_v31 = vpop.xlane.xlu0 %3773 }
 0x485   : > { %5832 = vpow2.f32 %v3830_v56  ;;  %v3832_v34 = vmul.f32 1.442695, %v3815_v0  ;;  %v3816_v30 = vsub.f32 %v6769_v19, %v3774_v31 }
 0x486   : > { %v3795_v61 = vpop.xlane.xlu1 %3794  ;;  %5834 = vpow2.f32 %v3840_v54 }
 0x487   : > { %5836 = vpow2.f32 %v3832_v34  ;;  %v3834_v25 = vmul.f32 1.442695, %v3816_v30  ;;  %v3823_v24 = vsub.f32 %v6777_v38, %v3795_v61 }
 0x488   : > { %v3792_v6 = vpop.xlane.xlu0 %3791 }
 0x489   : > { %v3822_v33 = vsub.f32 %v6775_v40, %v3792_v6  ;;  %5838 = vpow2.f32 %v3834_v25  ;;  %v3848_v22 = vmul.f32 1.442695, %v3823_v24 }
 0x48a   : > { %v3789_v16 = vpop.xlane.xlu1 %3788 }
 0x48b   : > { %v6833_v8 = vpop.eup %5830  ;;  %v3846_v35 = vmul.f32 1.442695, %v3822_v33  ;;  %v3821_v17 = vsub.f32 %v6788_v10, %v3789_v16 }
 0x48c   : > { %v3777_v13 = vpop.xlane.xlu0 %3776  ;;  %v3874_v60 = vsel %vm3369_vm2, %v6833_v8, 0.0 }
 0x48d   : > { %3875 = vadd.xlane.f32.xlu0 %v3874_v60  ;;  %v3817_v19 = vsub.f32 %v6786_v62, %v3777_v13  ;;  %5840 = vpow2.f32 %v3846_v35  ;;  %v3844_v18 = vmul.f32 1.442695, %v3821_v17  ;;  %v7358_v13 = vld [vmem:[#allocation3_spill] sm:$0xff] }
 0x48e   : > { %v3807_v51 = vpop.xlane.xlu1 %3806 }
 0x48f   : > { %v6838_v45 = vpop.eup %5832  ;;  %v3836_v55 = vmul.f32 1.442695, %v3817_v19  ;;  %v3827_v35 = vsub.f32 %v6796_v20, %v3807_v51 }
 0x490   : > { %v3786_v11 = vpop.xlane.xlu0 %3785  ;;  %v3862_v50 = vsel %vm3369_vm2, %v6838_v45, 0.0  ;;  %v6844_v59 = vpop.eup %5834 }
 0x491   : > { %v3820_v40 = vsub.f32 %v6794_v4, %v3786_v11  ;;  %3863 = vadd.xlane.f32.xlu1 %v3862_v50  ;;  %v3877_v10 = vsel %vm3369_vm2, %v6844_v59, 0.0  ;;  %v6850_v62 = vpop.eup %5836  ;;  %v3856_v17 = vmul.f32 1.442695, %v3827_v35 }
 0x492   : > { %v3865_v4 = vsel %vm3369_vm2, %v6850_v62, 0.0  ;;  %v3801_v53 = vpop.xlane.xlu1 %3800 }
 0x493   : > { %v3842_v44 = vmul.f32 1.442695, %v3820_v40  ;;  %v6854_v37 = vpop.eup %5838  ;;  %v3825_v41 = vsub.f32 %v6804_v9, %v3801_v53 }
 0x494   : > { %v3804_v1 = vpop.xlane.xlu0 %3803  ;;  %v3868_v58 = vsel %vm3369_vm2, %v6854_v37, 0.0 }
 0x495   : > { %5842 = vpow2.f32 %v3842_v44  ;;  %3878 = vadd.xlane.f32.xlu1 %v3877_v10  ;;  %v3826_v38 = vsub.f32 %v6802_v12, %v3804_v1  ;;  %v3852_v21 = vmul.f32 1.442695, %v3825_v41 }
 0x496   : > { %5844 = vpow2.f32 %v3844_v18  ;;  %v2533_v18 = vshrl.u32 %v7356_v48, 16 }
 0x497   : > { %5846 = vpow2.f32 %v3836_v55  ;;  %v6859_v42 = vpop.eup %5840  ;;  %v3854_v5 = vmul.f32 1.442695, %v3826_v38 }
 0x498   : > { %v3798_v23 = vpop.xlane.xlu0 %3797  ;;  %5848 = vpow2.f32 %v3848_v22  ;;  %v3886_v12 = vsel %vm3369_vm2, %v6859_v42, 0.0  ;;  %v2541_v22 = vshrl.u32 %v7357_v7, 16 }
 0x499   : > { %3866 = vadd.xlane.f32.xlu1 %v3865_v4  ;;  %v3824_v43 = vsub.f32 %v6810_v3, %v3798_v23  ;;  %5850 = vpow2.f32 %v3854_v5  ;;  %v3813_v9 = vpop.xlane.xlu1 %3812 }
 0x49a   : > { %v3829_v54 = vsub.f32 %v6816_v26, %v3813_v9 }
 0x49b   : > { %v3850_v47 = vmul.f32 1.442695, %v3824_v43 }
 0x49c   : > { %v3810_v3 = vpop.xlane.xlu0 %3809  ;;  %v3860_v61 = vmul.f32 1.442695, %v3829_v54 }
 0x49d   : > { %3869 = vadd.xlane.f32.xlu1 %v3868_v58  ;;  %5852 = vpow2.f32 %v3850_v47  ;;  %v3828_v57 = vsub.f32 %v6814_v46, %v3810_v3  ;;  %v2516_v50 = vpop.permute.xlu1 %2515 }
 0x49e   : > { %5854 = vpow2.f32 %v3852_v21  ;;  %v2534_v40 = vshrl.u32 %v2516_v50, 16  ;;  %v2531_v44 = vpack.i.b16 %v2516_v50, %v7356_v48 }
 0x49f   : > { %v6862_v29 = vpop.eup %5842  ;;  %v3858_v56 = vmul.f32 1.442695, %v3828_v57 }
 0x4a0   : > { %v3880_v49 = vsel %vm3369_vm2, %v6862_v29, 0.0  ;;  %v6868_v28 = vpop.eup %5844  ;;  %v2535_v24 = vpack.i.b16 %v2534_v40, %v2533_v18  ;;  %v2518_v55 = vpop.permute.xlu0 %2517  ;;  %v2651_v10 = vcombine.high %v2531_v44, %v6155_v63  ;;  %v2658_v48 = vrot.slane %v2531_v44, %v6158_v14 }
 0x4a1   : > { %3881 = vadd.xlane.f32.xlu0 %v3880_v49  ;;  %3887 = vadd.xlane.f32.xlu1 %v3886_v12  ;;  %v6871_v52 = vpop.eup %5846  ;;  %v3883_v2 = vsel %vm3369_vm2, %v6868_v28, 0.0  ;;  %5856 = vpow2.f32 %v3858_v56  ;;  %v2542_v1 = vshrl.u32 %v2518_v55, 16  ;;  %v2539_v23 = vpack.i.b16 %v2518_v55, %v7357_v7 }
 0x4a2   : > { %v3871_v32 = vsel %vm3369_vm2, %v6871_v52, 0.0  ;;  %v6878_v39 = vpop.eup %5848  ;;  %5858 = vpow2.f32 %v3860_v61  ;;  %v2700_v20 = vcombine.high %v2535_v24, %v6155_v63  ;;  %v2665_v4 = vrot.slane %v2651_v10, %v6158_v14 }
 0x4a3   : > { %v3889_v0 = vsel %vm3369_vm2, %v6878_v39, 0.0  ;;  %v6883_v31 = vpop.eup %5850  ;;  %5860 = vpow2.f32 %v3856_v17  ;;  %v2543_v51 = vpack.i.b16 %v2542_v1, %v2541_v22  ;;  %v2707_v58 = vrot.slane %v2535_v24, %v6158_v14 }
 0x4a4   : > { %v3898_v46 = vsel %vm3369_vm2, %v6883_v31, 0.0  ;;  %v2714_v38 = vrot.slane %v2700_v20, %v6158_v14  ;;  %v2681_v43 = vcombine.high %v2665_v4, %v7336_v15  ;;  %v2749_v49 = vcombine.high %v2539_v23, %v6155_v63 }
 0x4a5   : > { %3884 = vadd.xlane.f32.xlu0 %v3883_v2  ;;  %3872 = vadd.xlane.f32.xlu1 %v3871_v32  ;;  %v2798_v5 = vcombine.high %v2543_v51, %v6155_v63  ;;  %v2715_v12 = vcombine.high %v2707_v58, %v7336_v15  ;;  %v2666_v41 = vcombine.high %v2658_v48, %v7336_v15 }
 0x4a6   : > { %v2730_v53 = vcombine.high %v2714_v38, %v7336_v15  ;;  %v2695_v7 = vrot.slane %v2681_v43, %v6169_v36  ;;  %v2756_v2 = vrot.slane %v2539_v23, %v6158_v14  ;;  %v2763_v21 = vrot.slane %v2749_v49, %v6158_v14 }
 0x4a7   : > { %v6887_v34 = vpop.eup %5852  ;;  %v2812_v47 = vrot.slane %v2798_v5, %v6158_v14  ;;  %v2805_v57 = vrot.slane %v2543_v51, %v6158_v14  ;;  %v2688_v32 = vrot.slane %v2665_v4, %v6169_v36  ;;  %v2729_v9 = vrot.slane %v2715_v12, %v6169_v36 }
 0x4a8   : > { %v3892_v30 = vsel %vm3369_vm2, %v6887_v34, 0.0  ;;  %v6891_v26 = vpop.eup %5854  ;;  %v2744_v3 = vrot.slane %v2730_v53, %v6169_v36  ;;  %v2737_v54 = vrot.slane %v2714_v38, %v6169_v36  ;;  %v2722_v61 = vrot.slane %v2707_v58, %v6169_v36 }
 0x4a9   : > { %3890 = vadd.xlane.f32.xlu1 %v3889_v0  ;;  %v3895_v6 = vsel %vm3369_vm2, %v6891_v26, 0.0  ;;  %v2680_v0 = vrot.slane %v2666_v41, %v6169_v36  ;;  %v2673_v35 = vrot.slane %v2658_v48, %v6169_v36  ;;  %v5482_v50 = vcombine.high %v2688_v32, %v2695_v7 }
 0x4aa   : > { %v5484_v17 = vcombine.high %v2737_v54, %v2744_v3  ;;  %v3092_v40 = vcombine.low %v2722_v61, %v2729_v9  ;;  %v5483_v18 = vcombine.high %v2722_v61, %v2729_v9  ;;  %v2771_v1 = vrot.slane %v2756_v2, %v6169_v36 }
 0x4ab   : > { %v6895_v25 = vpop.eup %5856  ;;  %v3043_v24 = vcombine.low %v2673_v35, %v2680_v0  ;;  %v5481_v55 = vcombine.high %v2673_v35, %v2680_v0  ;;  %v2835_v58 = vrot.slane %v2812_v47, %v6169_v36  ;;  %v3074_v48 = vrot.slane %v5482_v50, %v6158_v14 }
 0x4ac   : > { %v3904_v33 = vsel %vm3369_vm2, %v6895_v25, 0.0  ;;  %v6899_v16 = vpop.eup %5858  ;;  %v3123_v38 = vrot.slane %v5484_v17, %v6158_v14  ;;  %v3099_v5 = vrot.slane %v3092_v40, %v6158_v14  ;;  %v3107_v43 = vrot.slane %v5483_v18, %v6158_v14 }
 0x4ad   : > { %3899 = vadd.xlane.f32.xlu1 %v3898_v46  ;;  %v3907_v60 = vsel %vm3369_vm2, %v6899_v16, 0.0  ;;  %v6906_v19 = vpop.eup %5860  ;;  %v2828_v46 = vcombine.high %v2812_v47, %v7336_v15  ;;  %v2786_v53 = vrot.slane %v2763_v21, %v6169_v36  ;;  %v2820_v12 = vrot.slane %v2805_v57, %v6169_v36 }
 0x4ae   : > { %v3901_v11 = vsel %vm3369_vm2, %v6906_v19, 0.0 }
 0x4af   : > { %v2842_v10 = vrot.slane %v2828_v46, %v6169_v36 }
 0x4b1   : > { %3893 = vadd.xlane.f32.xlu1 %v3892_v30  ;;  %v3059_v30 = vcombine.low %v2688_v32, %v2695_v7  ;;  %v3206_v41 = vcombine.low %v2835_v58, %v2842_v10  ;;  %v5488_v7 = vcombine.high %v2835_v58, %v2842_v10 }
 0x4b3   : > { %v3066_v20 = vrot.slane %v3059_v30, %v6158_v14 }
 0x4b5   : > { %3896 = vadd.xlane.f32.xlu1 %v3895_v6  ;;  %v3108_v6 = vcombine.low %v2737_v54, %v2744_v3  ;;  %v3050_v3 = vrot.slane %v3043_v24, %v6158_v14 }
 0x4b7   : > { %v3115_v22 = vrot.slane %v3108_v6, %v6158_v14  ;;  %v3213_v6 = vrot.slane %v3206_v41, %v6158_v14 }
 0x4b9   : > { %3905 = vadd.xlane.f32.xlu1 %v3904_v33  ;;  %v2764_v33 = vcombine.high %v2756_v2, %v7336_v15  ;;  %v3058_v2 = vrot.slane %v5481_v55, %v6158_v14 }
 0x4bb   : > { %2519 = vrot.lane.b32.xlu0 %v7358_v13, %s5918_s18  ;;  %v2778_v51 = vrot.slane %v2764_v33, %v6169_v36  ;;  %v3124_v33 = vcombine.low %v3099_v5, %v3107_v43 }
 0x4bd   : > { %3908 = vadd.xlane.f32.xlu1 %v3907_v60  ;;  %v2779_v60 = vcombine.high %v2763_v21, %v7336_v15  ;;  %v3141_v0 = vcombine.low %v2771_v1, %v2778_v51  ;;  %v5485_v61 = vcombine.high %v2771_v1, %v2778_v51  ;;  %v3083_v21 = vcombine.low %v3066_v20, %v3074_v48 }
 0x4be   : > { %v3131_v20 = vrot.slane %v3124_v33, %v6169_v36 }
 0x4bf   : > { %v2793_v4 = vrot.slane %v2779_v60, %v6169_v36  ;;  %v3075_v60 = vcombine.low %v3050_v3, %v3058_v2  ;;  %v3148_v18 = vrot.slane %v3141_v0, %v6158_v14  ;;  %v3090_v10 = vrot.slane %v3083_v21, %v6169_v36 }
 0x4c1   : > { %v3157_v47 = vcombine.low %v2786_v53, %v2793_v4  ;;  %v5486_v32 = vcombine.high %v2786_v53, %v2793_v4  ;;  %v3082_v51 = vrot.slane %v3075_v60, %v6169_v36 }
 0x4c3   : > { %v3164_v35 = vrot.slane %v3157_v47, %v6158_v14  ;;  %v3172_v17 = vrot.slane %v5486_v32, %v6158_v14 }
 0x4da   : > { %3902 = vadd.xlane.f32.xlu0 %v3901_v11  ;;  %v2813_v11 = vcombine.high %v2805_v57, %v7336_v15  ;;  %v3221_v57 = vrot.slane %v5488_v7, %v6158_v14 }
 0x4dc   : > { %v2827_v23 = vrot.slane %v2813_v11, %v6169_v36 }
 0x4de   : > { %v3190_v9 = vcombine.low %v2820_v12, %v2827_v23  ;;  %v5487_v54 = vcombine.high %v2820_v12, %v2827_v23  ;;  %v3181_v23 = vcombine.low %v3164_v35, %v3172_v17  ;;  %v6974_v12 = vcombine.low %v3082_v51, %v3090_v10 }
 0x4e0   : > { %v3197_v11 = vrot.slane %v3190_v9, %v6158_v14  ;;  %v3205_v50 = vrot.slane %v5487_v54, %v6158_v14  ;;  %v3188_v47 = vrot.slane %v3181_v23, %v6169_v36  ;;  %v3349_v35 = vshrl.u32 %v6974_v12, 16 }
 0x4e2   : > { %v3222_v58 = vcombine.low %v3197_v11, %v3205_v50 }
 0x4e4   : > { %v3229_v32 = vrot.slane %v3222_v58, %v6169_v36 }
 0x51a   : > { %v3876_v46 = vpop.xlane.xlu0 %3875 }
 0x51e   : > { %v3864_v56 = vpop.xlane.xlu1 %3863 }
 0x51f   : > { %5862 = vrcp.f32 %v3864_v56  ;;  %v3132_v56 = vcombine.low %v3115_v22, %v3123_v38  ;;  %v3230_v22 = vcombine.low %v3213_v6, %v3221_v57 }
 0x521   : > { %v3139_v40 = vrot.slane %v3132_v56, %v6169_v36  ;;  %v3237_v41 = vrot.slane %v3230_v22, %v6169_v36 }
 0x522   : > { %v3879_v44 = vpop.xlane.xlu1 %3878 }
 0x523   : > { %v6970_v38 = vcombine.low %v3131_v20, %v3139_v40 }
 0x525   : > { %v3347_v2 = vpack.i.b16 %v6970_v38, %v6974_v12  ;;  %v3350_v40 = vshrl.u32 %v6970_v38, 16 }
 0x526   : > { %v3867_v49 = vpop.xlane.xlu1 %3866 }
 0x527   : > { %5864 = vrcp.f32 %v3867_v49 }
 0x528   : > { %5866 = vrcp.f32 %v3879_v44  ;;  %v3156_v44 = vrot.slane %v5485_v61, %v6158_v14 }
 0x529   : > { %5868 = vrcp.f32 %v3876_v46  ;;  %v5863_v1 = vpop.eup %5862  ;;  %v6987_v46 = vcombine.low %v3229_v32, %v3237_v41 }
 0x52a   : > { %v3870_v30 = vpop.xlane.xlu1 %3869  ;;  %v3911_v48 = vmul.f32 %v5863_v1, %v6838_v45  ;;  %v3173_v53 = vcombine.low %v3148_v18, %v3156_v44  ;;  %v2549_v45 = vshrl.u32 %v7358_v13, 16 }
 0x52b   : > { %5870 = vrcp.f32 %v3870_v30 }
 0x52c   : > { %v3180_v61 = vrot.slane %v3173_v53, %v6169_v36 }
 0x52e   : > { %v3882_v24 = vpop.xlane.xlu0 %3881  ;;  %v3888_v55 = vpop.xlane.xlu1 %3887  ;;  %v6993_v57 = vcombine.low %v3180_v61, %v3188_v47 }
 0x52f   : > { %5872 = vrcp.f32 %v3888_v55 }
 0x530   : > { %v3355_v50 = vpack.i.b16 %v6987_v46, %v6993_v57 }
 0x531   : > { %v5865_v4 = vpop.eup %5864 }
 0x532   : > { %v3913_v5 = vmul.f32 %v5865_v4, %v6850_v62  ;;  %v3885_v43 = vpop.xlane.xlu0 %3884  ;;  %v3873_v49 = vpop.xlane.xlu1 %3872 }
 0x533   : > { %5874 = vrcp.f32 %v3873_v49  ;;  %v5867_v3 = vpop.eup %5866 }
 0x534   : > { %v3942_v7 = vpack.c.bf16 %v3913_v5, %v3911_v48  ;;  %v5869_v9 = vpop.eup %5868  ;;  %v3921_v30 = vmul.f32 %v5867_v3, %v6844_v59 }
 0x535   : > { %v5871_v33 = vpop.eup %5870  ;;  %v3919_v60 = vmul.f32 %v5869_v9, %v6833_v8 }
 0x536   : > { %v2520_v62 = vpop.permute.xlu0 %2519  ;;  %5714 = vmatmul.mubr.msk.bf16.vlgmr.msra.gmra.mrb[24].mxu0 %vm3369_vm2, %v3942_v7  ;;  %v3891_v0 = vpop.xlane.xlu1 %3890  ;;  %v3915_v51 = vmul.f32 %v5871_v33, %v6854_v37 }
 0x537   : > { %v2547_v54 = vpack.i.b16 %v2520_v62, %v7358_v13  ;;  %v2550_v56 = vshrl.u32 %v2520_v62, 16  ;;  %5724 = vmatpush3.bf16.msra.mxu0 %v3347_v2  ;;  %5725 = vmatprep.mubr.msk.bf16.mxu0 %vm5920_vm1, %v7346_v27  ;;  %5876 = vrcp.f32 %v3891_v0  ;;  %v3944_v8 = vpack.c.bf16 %v3921_v30, %v3919_v60 }
 0x538   : > { %5735 = vmatprep.subr.bf16.mxu0 %v7346_v27  ;;  %5878 = vrcp.f32 %v3885_v43 }
 0x539   : > { %v2551_v21 = vpack.i.b16 %v2550_v56, %v2549_v45  ;;  %v2847_v6 = vcombine.high %v2547_v54, %v6155_v63  ;;  %v2854_v13 = vrot.slane %v2547_v54, %v6158_v14  ;;  %v5873_v17 = vpop.eup %5872  ;;  %5880 = vrcp.f32 %v3882_v24 }
 0x53a   : > { %v7004_v1 = vpop.xlane.xlu1 %3899  ;;  %v3927_v4 = vmul.f32 %v5873_v17, %v6859_v42 }
 0x53b   : > { %v2861_v11 = vrot.slane %v2847_v6, %v6158_v14  ;;  %v2862_v59 = vcombine.high %v2854_v13, %v7336_v15  ;;  %v2896_v18 = vcombine.high %v2551_v21, %v6155_v63  ;;  %v2903_v55 = vrot.slane %v2551_v21, %v6158_v14 }
 0x53c   : > { %v2869_v44 = vrot.slane %v2854_v13, %v6169_v36 }
 0x53d   : > { %v2876_v10 = vrot.slane %v2862_v59, %v6169_v36  ;;  %v2877_v20 = vcombine.high %v2861_v11, %v7336_v15  ;;  %v5875_v22 = vpop.eup %5874  ;;  %v2910_v38 = vrot.slane %v2896_v18, %v6158_v14  ;;  %v2911_v23 = vcombine.high %v2903_v55, %v7336_v15 }
 0x53e   : > { %5726 = vmatmul.mubr.msk.bf16.vlgmr.msra.gmra.mrb[28].mxu0 %vm3369_vm2, %v3944_v8  ;;  %v2884_v58 = vrot.slane %v2861_v11, %v6169_v36  ;;  %v3917_v43 = vmul.f32 %v5875_v22, %v6871_v52  ;;  %v2918_v53 = vrot.slane %v2903_v55, %v6169_v36  ;;  %v3894_v49 = vpop.xlane.xlu1 %3893  ;;  %v3351_v11 = vpack.i.b16 %v3350_v40, %v3349_v35 }
 0x53f   : > { %v2891_v24 = vrot.slane %v2877_v20, %v6169_v36  ;;  %v3239_v48 = vcombine.low %v2869_v44, %v2876_v10  ;;  %v5489_v5 = vcombine.high %v2869_v44, %v2876_v10  ;;  %5736 = vmatpush3.bf16.msra.mxu0 %v3355_v50  ;;  %v2925_v37 = vrot.slane %v2911_v23, %v6169_v36 }
 0x540   : > { %v2926_v42 = vcombine.high %v2910_v38, %v7336_v15  ;;  %5737 = vmatprep.mubr.msk.bf16.mxu0 %vm5920_vm1, %v7346_v27  ;;  %v2933_v12 = vrot.slane %v2910_v38, %v6169_v36  ;;  %5747 = vmatprep.subr.bf16.mxu0 %v7346_v27  ;;  %5882 = vrcp.f32 %v3894_v49  ;;  %v3943_v6 = vpack.c.bf16 %v3917_v43, %v3915_v51 }
 0x541   : > { %v3246_v41 = vrot.slane %v3239_v48, %v6158_v14  ;;  %v3255_v7 = vcombine.low %v2884_v58, %v2891_v24  ;;  %v5490_v3 = vcombine.high %v2884_v58, %v2891_v24  ;;  %v5877_v2 = vpop.eup %5876  ;;  %v3254_v47 = vrot.slane %v5489_v5, %v6158_v14 }
 0x542   : > { %v2940_v52 = vrot.slane %v2926_v42, %v6169_v36  ;;  %v3288_v32 = vcombine.low %v2918_v53, %v2925_v37  ;;  %v5491_v45 = vcombine.high %v2918_v53, %v2925_v37  ;;  %v3929_v54 = vmul.f32 %v5877_v2, %v6878_v39  ;;  %v3897_v21 = vpop.xlane.xlu1 %3896  ;;  %v5879_v33 = vpop.eup %5878  ;;  %5720 = vmatmul.mubr.msk.bf16.vlgmr.msra.gmra.mrb[32].mxu1 %vm3369_vm2, %v3943_v6 }
 0x543   : > { %v3262_v62 = vrot.slane %v3255_v7, %v6158_v14  ;;  %v3270_v9 = vrot.slane %v5490_v3, %v6158_v14  ;;  %5884 = vrcp.f32 %v3897_v21  ;;  %v5881_v50 = vpop.eup %5880  ;;  %v3271_v39 = vcombine.low %v3246_v41, %v3254_v47  ;;  %5730 = vmatpush3.bf16.msra.mxu1 %v3351_v11  ;;  %5731 = vmatprep.mubr.msk.bf16.mxu1 %vm5920_vm1, %v7346_v27 }
 0x544   : > { %v3295_v56 = vrot.slane %v3288_v32, %v6158_v14  ;;  %v3303_v0 = vrot.slane %v5491_v45, %v6158_v14  ;;  %v3304_v61 = vcombine.low %v2933_v12, %v2940_v52  ;;  %v5492_v30 = vcombine.high %v2933_v12, %v2940_v52  ;;  %5741 = vmatprep.subr.bf16.mxu1 %v7346_v27 }
 0x545   : > { %v3946_v13 = vpack.c.bf16 %v3929_v54, %v3927_v4  ;;  %v3279_v59 = vcombine.low %v3262_v62, %v3270_v9  ;;  %v3925_v8 = vmul.f32 %v5879_v33, %v6868_v28  ;;  %v3358_v40 = vshrl.u32 %v6987_v46, 16 }
 0x546   : > { %v3311_v60 = vrot.slane %v3304_v61, %v6158_v14  ;;  %v3319_v17 = vrot.slane %v5492_v30, %v6158_v14  ;;  %v3320_v18 = vcombine.low %v3295_v56, %v3303_v0  ;;  %v3906_v55 = vpop.xlane.xlu1 %3905  ;;  %v3923_v10 = vmul.f32 %v5881_v50, %v6862_v29 }
 0x547   : > { %5738 = vmatmul.mubr.msk.bf16.vlgmr.msra.gmra.mrb[32].mxu0 %vm3369_vm2, %v3946_v13  ;;  %v3286_v44 = vrot.slane %v3279_v59, %v6169_v36  ;;  %v3278_v20 = vrot.slane %v3271_v39, %v6169_v36  ;;  %5886 = vrcp.f32 %v3906_v55  ;;  %v3357_v28 = vshrl.u32 %v6993_v57, 16 }
 0x548   : > { %v3328_v35 = vcombine.low %v3311_v60, %v3319_v17  ;;  %5749 = vmatprep.mubr.msk.bf16.mxu0 %vm5920_vm1, %v7346_v27  ;;  %v3327_v22 = vrot.slane %v3320_v18, %v6169_v36  ;;  %v3945_v23 = vpack.c.bf16 %v3925_v8, %v3923_v10 }
 0x549   : > { %v3287_v58 = vcombine.low %v3278_v20, %v3286_v44  ;;  %v3359_v48 = vpack.i.b16 %v3358_v40, %v3357_v28 }
 0x54a   : > { %v3335_v51 = vrot.slane %v3328_v35, %v6169_v36  ;;  %v3909_v4 = vpop.xlane.xlu1 %3908  ;;  %v5883_v38 = vpop.eup %5882  ;;  %5732 = vmatmul.mubr.msk.bf16.vlgmr.msra.gmra.mrb[36].mxu1 %vm3369_vm2, %v3945_v23 }
 0x54b   : > { %5888 = vrcp.f32 %v3909_v4  ;;  %5742 = vmatpush3.bf16.msra.mxu1 %v3359_v48  ;;  %5743 = vmatprep.mubr.msk.bf16.mxu1 %vm5920_vm1, %v7346_v27  ;;  %v3931_v57 = vmul.f32 %v5883_v38, %v6887_v34  ;;  %v3365_v53 = vshrl.u32 %v3287_v58, 16 }
 0x54c   : > { %v3336_v24 = vcombine.low %v3327_v22, %v3335_v51  ;;  %5753 = vmatprep.subr.bf16.mxu1 %v7346_v27  ;;  %5890 = vrcp.f32 %v7004_v1 }
 0x54d   : > { %v5885_v5 = vpop.eup %5884 }
 0x54e   : > { %v3363_v29 = vpack.i.b16 %v3336_v24, %v3287_v58  ;;  %v3933_v46 = vmul.f32 %v5885_v5, %v6891_v26  ;;  %v3366_v43 = vshrl.u32 %v3336_v24, 16 }
 0x550   : > { %5748 = vmatpush3.bf16.msra.mxu0 %v3363_v29  ;;  %v3947_v37 = vpack.c.bf16 %v3933_v46, %v3931_v57  ;;  %v3367_v42 = vpack.i.b16 %v3366_v43, %v3365_v53 }
 0x551   : > { %v5887_v49 = vpop.eup %5886 }
 0x552   : > { %5744 = vmatmul.mubr.msk.bf16.vlgmr.msra.gmra.mrb[40].mxu1 %vm3369_vm2, %v3947_v37  ;;  %v3939_v26 = vmul.f32 %v5887_v49, %v6895_v25 }
 0x553   : > { %5754 = vmatpush3.bf16.msra.mxu1 %v3367_v42  ;;  %5755 = vmatprep.mubr.msk.bf16.mxu1 %vm5920_vm1, %v7346_v27 }
 0x555   : > { %v5889_v12 = vpop.eup %5888 }
 0x556   : > { %v3941_v41 = vmul.f32 %v5889_v12, %v6899_v16  ;;  %v5891_v3 = vpop.eup %5890 }
 0x557   : > { %v3935_v52 = vmul.f32 %v5891_v3, %v6883_v31 }
 0x558   : > { %v3949_v7 = vpack.c.bf16 %v3941_v41, %v3939_v26 }
 0x55a   : > { %5756 = vmatmul.mubr.msk.bf16.vlgmr.msra.gmra.mrb[44].mxu1 %vm3369_vm2, %v3949_v7 }
 0x567   : > { %v3903_v34 = vpop.xlane.xlu0 %3902 }
 0x568   : > { %5892 = vrcp.f32 %v3903_v34 }
 0x572   : > { %v5893_v2 = vpop.eup %5892 }
 0x573   : > { %v3937_v47 = vmul.f32 %v5893_v2, %v6906_v19 }
 0x575   : > { %v3948_v16 = vpack.c.bf16 %v3937_v47, %v3935_v52 }
 0x577   : > { %5750 = vmatmul.mubr.msk.bf16.vlgmr.msra.gmra.mrb[36].mxu0 %vm3369_vm2, %v3948_v16 }
 0x609   : > { %v3987_v32 = vpop.f32.mrb[24].mxu0 }
 0x60a   : > { %v5715_v27 = vpop.f32.mrb[25].mxu0 }
 0x60b   : > { %v3990_v45 = vpop.f32.mrb[26].mxu0 }
 0x60c   : > { %v4302_v25 = vpack.c.bf16 %v3990_v45, %v3987_v32  ;;  %v5716_v62 = vpop.f32.mrb[27].mxu0 }
 0x60e   : > { %v4314_v11 = vshrl.u32 %v4302_v25, 16 }
 0x611   : > { %v4075_v9 = vpop.f32.mrb[28].mxu0 }
 0x612   : > { %v5727_v54 = vpop.f32.mrb[29].mxu0 }
 0x613   : > { %v4078_v56 = vpop.f32.mrb[30].mxu0 }
 0x614   : > { %v4304_v1 = vpack.c.bf16 %v4078_v56, %v4075_v9  ;;  %v5728_v0 = vpop.f32.mrb[31].mxu0 }
 0x615   : > { %v4031_v61 = vpop.f32.mrb[32].mxu1 }
 0x616   : > { %v5721_v21 = vpop.f32.mrb[33].mxu1  ;;  %v4322_v20 = vshrl.u32 %v4304_v1, 16 }
 0x617   : > { %v4034_v31 = vpop.f32.mrb[34].mxu1 }
 0x618   : > { %v4303_v19 = vpack.c.bf16 %v4034_v31, %v4031_v61  ;;  %v5722_v33 = vpop.f32.mrb[35].mxu1 }
 0x61a   : > { %v4163_v30 = vpop.f32.mrb[32].mxu0  ;;  %v4312_v59 = vpack.i.b16 %v4303_v19, %v4302_v25  ;;  %v4315_v50 = vshrl.u32 %v4303_v19, 16 }
 0x61b   : > { %v5739_v6 = vpop.f32.mrb[33].mxu0 }
 0x61c   : > { %v4166_v13 = vpop.f32.mrb[34].mxu0  ;;  %v4316_v39 = vpack.i.b16 %v4315_v50, %v4314_v11  ;;  %v4342_v18 = vcombine.high %v4312_v59, %v6155_v63  ;;  %v4349_v55 = vrot.slane %v4312_v59, %v6158_v14 }
 0x61d   : > { %v7065_v60 = vpack.c.bf16 %v4166_v13, %v4163_v30  ;;  %v5740_v17 = vpop.f32.mrb[35].mxu0  ;;  %v4119_v8 = vpop.f32.mrb[36].mxu1 }
 0x61e   : > { %v4356_v44 = vrot.slane %v4342_v18, %v6158_v14  ;;  %v4357_v35 = vcombine.high %v4349_v55, %v7336_v15  ;;  %v4391_v40 = vcombine.high %v4316_v39, %v6155_v63  ;;  %v5733_v10 = vpop.f32.mrb[37].mxu1  ;;  %v4398_v22 = vrot.slane %v4316_v39, %v6158_v14 }
 0x61f   : > { %v4122_v51 = vpop.f32.mrb[38].mxu1  ;;  %v4364_v28 = vrot.slane %v4349_v55, %v6169_v36  ;;  %v4330_v45 = vshrl.u32 %v7065_v60, 16 }
 0x620   : > { %v4371_v4 = vrot.slane %v4357_v35, %v6169_v36  ;;  %v4372_v38 = vcombine.high %v4356_v44, %v7336_v15  ;;  %v4405_v23 = vrot.slane %v4391_v40, %v6158_v14  ;;  %v5734_v58 = vpop.f32.mrb[39].mxu1  ;;  %v4379_v24 = vrot.slane %v4356_v44, %v6169_v36 }
 0x621   : > { %v4406_v48 = vcombine.high %v4398_v22, %v7336_v15  ;;  %v4413_v5 = vrot.slane %v4398_v22, %v6169_v36  ;;  %v4305_v29 = vpack.c.bf16 %v4122_v51, %v4119_v8 }
 0x622   : > { %v4386_v46 = vrot.slane %v4372_v38, %v6169_v36  ;;  %v4421_v43 = vcombine.high %v4405_v23, %v7336_v15  ;;  %v7083_v57 = vrot.slane %v4405_v23, %v6169_v36  ;;  %v4734_v53 = vcombine.low %v4364_v28, %v4371_v4 }
 0x623   : > { %v4420_v37 = vrot.slane %v4406_v48, %v6169_v36  ;;  %v5509_v42 = vcombine.high %v4364_v28, %v4371_v4  ;;  %v4320_v49 = vpack.i.b16 %v4305_v29, %v4304_v1  ;;  %v4323_v12 = vshrl.u32 %v4305_v29, 16 }
 0x624   : > { %v7087_v41 = vrot.slane %v4421_v43, %v6169_v36  ;;  %v7090_v26 = vrot.slane %v4734_v53, %v6158_v14  ;;  %v4750_v7 = vcombine.low %v4379_v24, %v4386_v46  ;;  %v5510_v34 = vcombine.high %v4379_v24, %v4386_v46 }
 0x625   : > { %v7093_v3 = vrot.slane %v5509_v42, %v6158_v14  ;;  %v4783_v2 = vcombine.low %v4413_v5, %v4420_v37  ;;  %v5511_v52 = vcombine.high %v4413_v5, %v4420_v37  ;;  %v4324_v47 = vpack.i.b16 %v4323_v12, %v4322_v20  ;;  %v4207_v16 = vpop.f32.mrb[40].mxu1 }
 0x626   : > { %v7096_v32 = vrot.slane %v4750_v7, %v6158_v14  ;;  %v7099_v27 = vrot.slane %v5510_v34, %v6158_v14  ;;  %v5745_v25 = vpop.f32.mrb[41].mxu1  ;;  %v4799_v62 = vcombine.low %v7083_v57, %v7087_v41  ;;  %v5512_v9 = vcombine.high %v7083_v57, %v7087_v41 }
 0x627   : > { %v4440_v54 = vcombine.high %v4320_v49, %v6155_v63  ;;  %v4447_v56 = vrot.slane %v4320_v49, %v6158_v14  ;;  %v4210_v1 = vpop.f32.mrb[42].mxu1  ;;  %v7109_v0 = vrot.slane %v4783_v2, %v6158_v14  ;;  %v4489_v61 = vcombine.high %v4324_v47, %v6155_v63 }
 0x628   : > { %v4496_v30 = vrot.slane %v4324_v47, %v6158_v14  ;;  %v4307_v21 = vpack.c.bf16 %v4210_v1, %v4207_v16  ;;  %v5746_v6 = vpop.f32.mrb[43].mxu1  ;;  %v7114_v31 = vrot.slane %v5511_v52, %v6158_v14  ;;  %v4766_v33 = vcombine.low %v7090_v26, %v7093_v3 }
 0x629   : > { %v4454_v13 = vrot.slane %v4440_v54, %v6158_v14  ;;  %v4455_v19 = vcombine.high %v4447_v56, %v7336_v15  ;;  %v4462_v17 = vrot.slane %v4447_v56, %v6169_v36  ;;  %v4503_v11 = vrot.slane %v4489_v61, %v6158_v14 }
 0x62a   : > { %v4504_v59 = vcombine.high %v4496_v30, %v7336_v15  ;;  %v4328_v50 = vpack.i.b16 %v4307_v21, %v7065_v60  ;;  %v4511_v55 = vrot.slane %v4496_v30, %v6169_v36  ;;  %v4331_v8 = vshrl.u32 %v4307_v21, 16 }
 0x62b   : > { %v4469_v39 = vrot.slane %v4455_v19, %v6169_v36  ;;  %v4470_v18 = vcombine.high %v4454_v13, %v7336_v15  ;;  %v4477_v44 = vrot.slane %v4454_v13, %v6169_v36  ;;  %v4519_v40 = vcombine.high %v4503_v11, %v7336_v15 }
 0x62c   : > { %v4518_v35 = vrot.slane %v4504_v59, %v6169_v36  ;;  %v4538_v10 = vcombine.high %v4328_v50, %v6155_v63  ;;  %v4332_v60 = vpack.i.b16 %v4331_v8, %v4330_v45  ;;  %v4545_v58 = vrot.slane %v4328_v50, %v6158_v14 }
 0x62d   : > { %v4484_v20 = vrot.slane %v4470_v18, %v6169_v36  ;;  %v4832_v22 = vcombine.low %v4462_v17, %v4469_v39  ;;  %v5513_v51 = vcombine.high %v4462_v17, %v4469_v39  ;;  %v4295_v28 = vpop.f32.mrb[44].mxu1  ;;  %v7133_v4 = vrot.slane %v4519_v40, %v6169_v36 }
 0x62e   : > { %v4881_v38 = vcombine.low %v4511_v55, %v4518_v35  ;;  %v5515_v23 = vcombine.high %v4511_v55, %v4518_v35  ;;  %v5757_v24 = vpop.f32.mrb[45].mxu1  ;;  %v4526_v48 = vrot.slane %v4503_v11, %v6169_v36  ;;  %v4774_v43 = vcombine.low %v7096_v32, %v7099_v27  ;;  %v5812_v55 = vld [vmem:[%s7316_s5] sm:$0xff]  }
 0x62f   : > { %v4848_v5 = vcombine.low %v4477_v44, %v4484_v20  ;;  %v5514_v29 = vcombine.high %v4477_v44, %v4484_v20  ;;  %v4298_v46 = vpop.f32.mrb[46].mxu1  ;;  %v4839_v53 = vrot.slane %v4832_v22, %v6158_v14  ;;  %v4847_v37 = vrot.slane %v5513_v51, %v6158_v14  ;;  %5759 = vmatprep.subr.bf16.mxu0 %v5812_v55  ;;  %v5813_v51 = vld [vmem:[%s7316_s5 + $0x8] sm:$0xff]  }
 0x630   : > { %v7142_v42 = vrot.slane %v4881_v38, %v6158_v14  ;;  %v7145_v49 = vrot.slane %v5515_v23, %v6158_v14  ;;  %v5758_v12 = vpop.f32.mrb[47].mxu1  ;;  %v4897_v26 = vcombine.low %v4526_v48, %v7133_v4  ;;  %v5516_v7 = vcombine.high %v4526_v48, %v7133_v4  ;;  %5760 = vmatpush3.bf16.msra.mxu0 %v5812_v55 }
 0x631   : > { %v4552_v34 = vrot.slane %v4538_v10, %v6158_v14  ;;  %v4553_v3 = vcombine.high %v4545_v58, %v7336_v15  ;;  %v4855_v2 = vrot.slane %v4848_v5, %v6158_v14  ;;  %v4587_v52 = vcombine.high %v4332_v60, %v6155_v63  ;;  %5761 = vmatprep.subr.bf16.mxu0 %v5813_v51 }
 0x632   : > { %v4594_v47 = vrot.slane %v4332_v60, %v6158_v14  ;;  %v7154_v16 = vpack.c.bf16 %v4298_v46, %v4295_v28  ;;  %v4863_v32 = vrot.slane %v5514_v29, %v6158_v14  ;;  %v4560_v27 = vrot.slane %v4545_v58, %v6169_v36 }
 0x633   : > { %v4567_v45 = vrot.slane %v4553_v3, %v6169_v36  ;;  %v4568_v25 = vcombine.high %v4552_v34, %v7336_v15  ;;  %v4575_v54 = vrot.slane %v4552_v34, %v6169_v36  ;;  %v4601_v56 = vrot.slane %v4587_v52, %v6158_v14 }
 0x634   : > { %v4602_v1 = vcombine.high %v4594_v47, %v7336_v15  ;;  %v4773_v61 = vrot.slane %v4766_v33, %v6169_v36  ;;  %v4609_v21 = vrot.slane %v4594_v47, %v6169_v36  ;;  %v4781_v59 = vrot.slane %v4774_v43, %v6169_v36  ;;  %5762 = vmatpush3.bf16.msra.mxu0 %v5813_v51 }
 0x635   : > { %v4582_v30 = vrot.slane %v4568_v25, %v6169_v36  ;;  %v4930_v6 = vcombine.low %v4560_v27, %v4567_v45  ;;  %v5517_v13 = vcombine.high %v4560_v27, %v4567_v45  ;;  %v4617_v17 = vcombine.high %v4601_v56, %v7336_v15 }
 0x636   : > { %v4616_v19 = vrot.slane %v4602_v1, %v6169_v36  ;;  %v4624_v11 = vrot.slane %v4601_v56, %v6169_v36  ;;  %v4806_v33 = vrot.slane %v4799_v62, %v6158_v14  ;;  %v4814_v22 = vrot.slane %v5512_v9, %v6158_v14 }
 0x637   : > { %v4937_v50 = vrot.slane %v4930_v6, %v6158_v14  ;;  %v4946_v39 = vcombine.low %v4575_v54, %v4582_v30  ;;  %v5518_v18 = vcombine.high %v4575_v54, %v4582_v30  ;;  %v4631_v8 = vrot.slane %v4617_v17, %v6169_v36 }
 0x638   : > { %v4945_v44 = vrot.slane %v5517_v13, %v6158_v14  ;;  %v4979_v35 = vcombine.low %v4609_v21, %v4616_v19  ;;  %v5519_v40 = vcombine.high %v4609_v21, %v4616_v19  ;;  %v4815_v62 = vcombine.low %v7109_v0, %v7114_v31 }
 0x639   : > { %v4953_v10 = vrot.slane %v4946_v39, %v6158_v14  ;;  %v4961_v20 = vrot.slane %v5518_v18, %v6158_v14  ;;  %v4995_v28 = vcombine.low %v4624_v11, %v4631_v8  ;;  %v7192_v4 = vcombine.low %v4773_v61, %v4781_v59 }
 0x63a   : > { %v4986_v60 = vrot.slane %v4979_v35, %v6158_v14  ;;  %v4994_v38 = vrot.slane %v5519_v40, %v6158_v14  ;;  %v5520_v23 = vcombine.high %v4624_v11, %v4631_v8  ;;  %v4823_v58 = vcombine.low %v4806_v33, %v4814_v22 }
 0x63b   : > { %v4864_v57 = vcombine.low %v4839_v53, %v4847_v37  ;;  %v4872_v41 = vcombine.low %v4855_v2, %v4863_v32  ;;  %v4904_v9 = vrot.slane %v4897_v26, %v6158_v14  ;;  %v4912_v0 = vrot.slane %v5516_v7, %v6158_v14 }
 0x63c   : > { %v4913_v31 = vcombine.low %v7142_v42, %v7145_v49  ;;  %v4822_v24 = vrot.slane %v4815_v62, %v6169_v36  ;;  %v4830_v48 = vrot.slane %v4823_v58, %v6169_v36  ;;  %v4962_v5 = vcombine.low %v4937_v50, %v4945_v44 }
 0x63d   : > { %v4970_v29 = vcombine.low %v4953_v10, %v4961_v20  ;;  %v4871_v46 = vrot.slane %v4864_v57, %v6169_v36  ;;  %v4879_v43 = vrot.slane %v4872_v41, %v6169_v36  ;;  %v4921_v53 = vcombine.low %v4904_v9, %v4912_v0 }
 0x63e   : > { %v5002_v37 = vrot.slane %v4995_v28, %v6158_v14  ;;  %v7204_v12 = vcombine.low %v4822_v24, %v4830_v48  ;;  %v5129_v26 = vshrl.u32 %v7192_v4, 16  ;;  %v5010_v49 = vrot.slane %v5520_v23, %v6158_v14 }
 0x63f   : > { %v4977_v42 = vrot.slane %v4970_v29, %v6169_v36  ;;  %v7209_v7 = vcombine.low %v4871_v46, %v4879_v43  ;;  %v4920_v34 = vrot.slane %v4913_v31, %v6169_v36  ;;  %v4928_v3 = vrot.slane %v4921_v53, %v6169_v36 }
 0x640   : > { %v5011_v2 = vcombine.low %v4986_v60, %v4994_v38  ;;  %v5130_v52 = vshrl.u32 %v7204_v12, 16  ;;  %v4969_v47 = vrot.slane %v4962_v5, %v6169_v36  ;;  %v5019_v32 = vcombine.low %v5002_v37, %v5010_v49 }
 0x641   : > { %v5128_v27 = vpack.i.b16 %v7204_v12, %v7192_v4  ;;  %v7217_v45 = vcombine.low %v4920_v34, %v4928_v3  ;;  %v5135_v61 = vshrl.u32 %v7209_v7, 16  ;;  %v4339_v8 = vshrl.u32 %v7154_v16, 16 }
 0x642   : > { %v5131_v25 = vpack.i.b16 %v5130_v52, %v5129_v26  ;;  %v7219_v54 = vcombine.low %v4969_v47, %v4977_v42  ;;  %v5018_v56 = vrot.slane %v5011_v2, %v6169_v36  ;;  %v5026_v1 = vrot.slane %v5019_v32, %v6169_v36 }
 0x643   : > { %v5136_v30 = vshrl.u32 %v7217_v45, 16  ;;  %v5134_v21 = vpack.i.b16 %v7217_v45, %v7209_v7  ;;  %v5525_v7 = vld [vmem:[%s7317_s6] ss:$0 sm:$0xff] }
 0x644   : > { %5150 = vrot.lane.b32.xlu1 %v5131_v25, %s5924_s14  ;;  %v7228_v6 = vcombine.low %v5018_v56, %v5026_v1  ;;  %v5141_v11 = vshrl.u32 %v7219_v54, 16 }
 0x645   : > { %v5137_v19 = vpack.i.b16 %v5136_v30, %v5135_v61 }
 0x646   : > { %v5142_v59 = vshrl.u32 %v7228_v6, 16  ;;  %v5140_v39 = vpack.i.b16 %v7228_v6, %v7219_v54 }
 0x648   : > { %5152 = vrot.lane.b32.xlu1 %v5137_v19, %s5924_s14  ;;  %v5143_v55 = vpack.i.b16 %v5142_v59, %v5141_v11 }
 0x64a   : > { %v4251_v13 = vpop.f32.mrb[36].mxu0  ;;  %5154 = vrot.lane.b32.xlu0 %v5143_v55, %s5924_s14 }
 0x64b   : > { %v5751_v17 = vpop.f32.mrb[37].mxu0 }
 0x64c   : > { %v4254_v50 = vpop.f32.mrb[38].mxu0 }
 0x64d   : > { %v4308_v18 = vpack.c.bf16 %v4254_v50, %v4251_v13  ;;  %v5752_v33 = vpop.f32.mrb[39].mxu0 }
 0x64f   : > { %v4336_v44 = vpack.i.b16 %v7154_v16, %v4308_v18  ;;  %v4338_v35 = vshrl.u32 %v4308_v18, 16 }
 0x651   : > { %v4340_v40 = vpack.i.b16 %v4339_v8, %v4338_v35  ;;  %v4636_v10 = vcombine.high %v4336_v44, %v6155_v63  ;;  %v4643_v20 = vrot.slane %v4336_v44, %v6158_v14 }
 0x653   : > { %v4650_v22 = vrot.slane %v4636_v10, %v6158_v14  ;;  %v4651_v62 = vcombine.high %v4643_v20, %v7336_v15  ;;  %v4685_v51 = vcombine.high %v4340_v40, %v6155_v63  ;;  %v4692_v60 = vrot.slane %v4340_v40, %v6158_v14 }
 0x654   : > { %v4658_v28 = vrot.slane %v4643_v20, %v6169_v36 }
 0x655   : > { %v4665_v16 = vrot.slane %v4651_v62, %v6169_v36  ;;  %v4666_v38 = vcombine.high %v4650_v22, %v7336_v15  ;;  %v4699_v23 = vrot.slane %v4685_v51, %v6158_v14  ;;  %v4700_v58 = vcombine.high %v4692_v60, %v7336_v15 }
 0x656   : > { %v4673_v57 = vrot.slane %v4650_v22, %v6169_v36  ;;  %v4707_v63 = vrot.slane %v4692_v60, %v6169_v36 }
 0x657   : > { %v4680_v41 = vrot.slane %v4666_v38, %v6169_v36  ;;  %v4715_v9 = vcombine.high %v4699_v23, %v7336_v15  ;;  %v5028_v0 = vcombine.low %v4658_v28, %v4665_v16  ;;  %v4714_v31 = vrot.slane %v4700_v58, %v6169_v36 }
 0x658   : > { %v4722_v24 = vrot.slane %v4699_v23, %v6169_v36  ;;  %v5521_v48 = vcombine.high %v4658_v28, %v4665_v16 }
 0x659   : > { %v4729_v5 = vrot.slane %v4715_v9, %v6169_v36  ;;  %v5035_v29 = vrot.slane %v5028_v0, %v6158_v14  ;;  %v5044_v46 = vcombine.low %v4673_v57, %v4680_v41  ;;  %v5522_v43 = vcombine.high %v4673_v57, %v4680_v41 }
 0x65a   : > { %v5043_v53 = vrot.slane %v5521_v48, %v6158_v14  ;;  %v5077_v37 = vcombine.low %v4707_v63, %v4714_v31  ;;  %v5523_v26 = vcombine.high %v4707_v63, %v4714_v31 }
 0x65b   : > { %v5051_v15 = vrot.slane %v5044_v46, %v6158_v14  ;;  %v5059_v42 = vrot.slane %v5522_v43, %v6158_v14  ;;  %v5093_v49 = vcombine.low %v4722_v24, %v4729_v5  ;;  %v5524_v34 = vcombine.high %v4722_v24, %v4729_v5 }
 0x65c   : > { %v5084_v3 = vrot.slane %v5077_v37, %v6158_v14  ;;  %v5092_v2 = vrot.slane %v5523_v26, %v6158_v14  ;;  %v5060_v52 = vcombine.low %v5035_v29, %v5043_v53 }
 0x65d   : > { %v5068_v47 = vcombine.low %v5051_v15, %v5059_v42  ;;  %v5100_v32 = vrot.slane %v5093_v49, %v6158_v14  ;;  %v5108_v25 = vrot.slane %v5524_v34, %v6158_v14 }
 0x65e   : > { %v5109_v56 = vcombine.low %v5084_v3, %v5092_v2  ;;  %v5067_v1 = vrot.slane %v5060_v52, %v6169_v36 }
 0x65f   : > { %v5075_v61 = vrot.slane %v5068_v47, %v6169_v36  ;;  %v5117_v30 = vcombine.low %v5100_v32, %v5108_v25 }
 0x660   : > { %v5116_v19 = vrot.slane %v5109_v56, %v6169_v36 }
 0x661   : > { %v5076_v13 = vcombine.low %v5067_v1, %v5075_v61  ;;  %v5124_v17 = vrot.slane %v5117_v30, %v6169_v36 }
 0x663   : > { %v5125_v11 = vcombine.low %v5116_v19, %v5124_v17  ;;  %v5147_v59 = vshrl.u32 %v5076_v13, 16 }
 0x665   : > { %v5148_v50 = vshrl.u32 %v5125_v11, 16  ;;  %v5146_v18 = vpack.i.b16 %v5125_v11, %v5076_v13 }
 0x667   : > { %v5149_v33 = vpack.i.b16 %v5148_v50, %v5147_v59 }
 0x669   : > { %5156 = vrot.lane.b32.xlu1 %v5149_v33, %s5924_s14 }
 0x6b6   : > { %v5151_v55 = vpop.permute.xlu1 %5150 }
 0x6b7   : > { %v5160_v14 = vsel %vm3369_vm2, %v5128_v27, %v5151_v55 }
 0x6b8   : > { %5763 = vmatprep.mubr.msk.bf16.mxu0 %vm369_vm0, %v5160_v14 }
 0x6ba   : > { %v5153_v8 = vpop.permute.xlu1 %5152 }
 0x6bb   : > { %v5163_v36 = vsel %vm3369_vm2, %v5134_v21, %v5153_v8 }
 0x6bc   : > { %5764 = vmatmul.mubr.msk.bf16.vlgmr.msra.gmra.mrb[40].mxu0 %vm369_vm0, %v5163_v36  ;;  %v5155_v44 = vpop.permute.xlu0 %5154 }
 0x6bd   : > { %v5166_v35 = vsel %vm3369_vm2, %v5140_v39, %v5155_v44 }
 0x6be   : > { %5767 = vmatprep.mubr.msk.bf16.mxu0 %vm369_vm0, %v5166_v35 }
 0x6db   : > { %v5157_v4 = vpop.permute.xlu1 %5156 }
 0x6dc   : > { %v5169_v12 = vsel %vm3369_vm2, %v5146_v18, %v5157_v4 }
 0x6dd   : > { %5768 = vmatmul.mubr.msk.bf16.gmra.mrb[44].mxu0 %vm369_vm0, %v5169_v12 }
 0x78f   : > { %v5765_v27 = vpop.f32.mrb[40].mxu0 }
 0x790   : > { %v5244_v45 = vadd.f32 %v5765_v27, %v5525_v7  ;;  %v5235_v21 = vpop.f32.mrb[41].mxu0 }
 0x791   : > { %v5236_v54 = vadd.f32 %v5525_v7, %v5235_v21  ;;  %v5766_v6 = vpop.f32.mrb[42].mxu0 }
 0x792   : > { %v5546_v39 = vpack.c.bf16 %v5244_v45, %v5244_v45  ;;  %v5247_v40 = vadd.f32 %v5766_v6, %v5525_v7  ;;  %v5238_v10 = vpop.f32.mrb[43].mxu0 }
 0x793   : > { %v5544_v20 = vpack.c.bf16 %v5236_v54, %v5236_v54  ;;  %v5239_v22 = vadd.f32 %v5525_v7, %v5238_v10 }
 0x794   : > { %5301 = vst.msk [vmem:[%s348_s19 + $0x8] sm:$0xf] %vm5298_vm3, %v5546_v39  ;;  %v5547_v62 = vpack.c.bf16 %v5247_v40, %v5247_v40 }
 0x795   : > { %5299 = vst.msk [vmem:[%s348_s19] sm:$0xf] %vm5298_vm3, %v5544_v20  ;;  %v5545_v51 = vpack.c.bf16 %v5239_v22, %v5239_v22 }
 0x796   : > { %5302 = vst.msk [vmem:[%s348_s19 + $0xc] sm:$0xf] %vm5298_vm3, %v5547_v62 }
 0x797   : > { %5300 = vst.msk [vmem:[%s348_s19 + $0x4] sm:$0xf] %vm5298_vm3, %v5545_v51 }
 0x7b0   : > { %v5769_v60 = vpop.f32.mrb[44].mxu0 }
 0x7b1   : > { %v5260_v28 = vadd.f32 %v5769_v60, %v5525_v7  ;;  %v5251_v16 = vpop.f32.mrb[45].mxu0 }
 0x7b2   : > { %v5252_v38 = vadd.f32 %v5525_v7, %v5251_v16  ;;  %v5770_v23 = vpop.f32.mrb[46].mxu0 }
 0x7b3   : > { %v5550_v58 = vpack.c.bf16 %v5260_v28, %v5260_v28  ;;  %v5263_v57 = vadd.f32 %v5770_v23, %v5525_v7  ;;  %v5254_v41 = vpop.f32.mrb[47].mxu0 }
 0x7b4   : > { %v5548_v9 = vpack.c.bf16 %v5252_v38, %v5252_v38  ;;  %v5255_v0 = vadd.f32 %v5525_v7, %v5254_v41 }
 0x7b5   : > { %5305 = vst.msk [vmem:[%s348_s19 + $0x18] sm:$0xf] %vm5298_vm3, %v5550_v58  ;;  %v5551_v63 = vpack.c.bf16 %v5263_v57, %v5263_v57 }
 0x7b6   : > { %5303 = vst.msk [vmem:[%s348_s19 + $0x10] sm:$0xf] %vm5298_vm3, %v5548_v9  ;;  %v5549_v31 = vpack.c.bf16 %v5255_v0, %v5255_v0 }
 0x7b7   : > { %5306 = vst.msk [vmem:[%s348_s19 + $0x1c] sm:$0xf] %vm5298_vm3, %v5551_v63 }
 0x7b8   : > { %5304 = vst.msk [vmem:[%s348_s19 + $0x14] sm:$0xf] %vm5298_vm3, %v5549_v31 }
 0x7b9 PF: > { %s18_s29 = sadd.s32 1, %s5916_s29   ;;  %s7359_s27 = smov %s5912_s28 }
 0x7ba   : > { %p15_p5 = scmp.ge.s32.totalorder %s18_s29, 4   ;;  %s7360_s28 = smov %s7362_s30 }
 0x7bc   :  { %17 = sbr.rel (!%p15_p5) target bundleno = 2 (0x2), region = 86 }

// kernel: basic_layer_forward.9
= control target key start
LH: loop header
LB: loop body
LE: loop exit
PB: predicated region body
PF: predicated region fallthrough
CT: control target
= control target key end

     0   :  { %s6067_s30 = smov 0   ;;  %s6069_s10 = smov 0   ;;  %s7448_s0 = inlined_call_operand.vmem [shape: bf16[2,4,16,32], index: 0, kind: input, shape index: {}]   ;;  %s7449_s1 = inlined_call_operand.vmem [shape: f32[1,32], index: 1, kind: input, shape index: {}]   ;;  %s7450_s2 = inlined_call_operand.vmem [shape: f32[1,32], index: 2, kind: input, shape index: {}]   ;;  %s7451_s3 = inlined_call_operand.vmem [shape: bf16[3,32,32], index: 3, kind: input, shape index: {}]   ;;  %s7452_s4 = inlined_call_operand.vmem [shape: f32[3,1,32], index: 4, kind: input, shape index: {}]   ;;  %s7453_s5 = inlined_call_operand.vmem [shape: bf16[32,32], index: 5, kind: input, shape index: {}]   ;;  %s7454_s6 = inlined_call_operand.vmem [shape: f32[1,32], index: 6, kind: input, shape index: {}]   ;;  %s7455_s7 = inlined_call_operand.vmem [shape: f32[2,16,16], index: 7, kind: input, shape index: {}]   ;;  %s7456_s8 = inlined_call_operand.vmem [shape: f32[4,16,16], index: 8, kind: input, shape index: {}]   ;;  %s7457_s9 = inlined_call_operand.vmem [shape: bf16[2,4,16,32], index: 9, kind: output, shape index: {}]  }
   0x1   :  { %s6071_s11 = smov 0  }
   0x2 LB: > { %s31_s12 = sadd.s32 1, %s6004_s10  ;;  %p5499_p0 = scmp.ge.s32.totalorder %s6008_s11, 1  ;;  %s6008_s11 = sphi %s6071_s11, %s19_s11   ;;  %s6004_s10 = sphi %s6069_s10, %s7498_s10   ;;  %s6000_s30 = sphi %s6067_s30, %s7497_s30  }
   0x3   : > { %p33_p1 = scmp.ge.s32.totalorder %s31_s12, 2  ;;  %p321_p2 = scmp.lt.s32.totalorder %s6008_s11, 3 }
   0x5   : > { %s7500_s12 = smov (%p33_p1, %s31_s12), 0  ;;  %p322_p3 = pnand %p5499_p0, %p321_p2 }
   0x7   : > { %325 = sbr.rel (%p322_p3) target bundleno = 1979 (0x7bb), region = 56 }
   0xe   : > { %p374_p4 = scmp.lt.s32.totalorder %s6000_s30, 1  ;;  %vm421_vm0 = vcmask 261120   ;;  %v5898_v60 = vld [vmem:[%s7451_s3] sm:$0xff]   ;;  %v5899_v61 = vld [vmem:[%s7451_s3 + $0x8] sm:$0xff]   ;;  %v6150_v62 = vld [vmem:[%s7451_s3 + $0x10] sm:$0xff]   ;;  %s6010_s23 = smov 112  }
   0xf   : > { %5863 = vmatprep.subr.bf16.mxu1 %v5898_v60  ;;  %5719 = vmatprep.subr.bf16.mxu0 %v5898_v60  ;;  %v6156_v63 = vld [vmem:[%s7451_s3 + $0x20] sm:$0xff]   ;;  %vm6012_vm1 = vmmov 0   ;;  %vm3421_vm2 = vcmask 130048   ;;  %s6016_s20 = smov 16   ;;  %vm5374_vm3 = vcmask 257024  }
  0x10   : > { %s7502_s30 = smov (!%p374_p4, %s6000_s30), 1  ;;  %5865 = vmatpush3.bf16.msra.mxu1 %v5898_v60  ;;  %5720 = vmatpush3.bf16.msra.mxu0 %v5898_v60 }
  0x11   : > { %s5634_s13 = sshll.u32 %s7502_s30, 5  ;;  %5864 = vmatprep.subr.bf16.mxu1 %v5899_v61  ;;  %5721 = vmatprep.subr.bf16.mxu0 %v5899_v61 }
  0x12   : > { %s382_s16 = scalar_lea.vmem %s7448_s0, %s5634_s13  ;;  %s400_s26 = scalar_lea.vmem %s7457_s9, %s5634_s13 }
  0x13   : > { %v5661_v0 = vld [vmem:[%s382_s16 + $0x10] sm:$0xff]   ;;  %v5662_v1 = vld [vmem:[%s382_s16 + $0x18] sm:$0xff]   ;;  %v5645_v6 = vld [vmem:[%s382_s16] sm:$0xff]  }
  0x14   : > { %v5654_v2 = vunpack.c.l.bf16 %v5661_v0  ;;  %v5658_v3 = vunpack.c.l.bf16 %v5662_v1  ;;  %v5655_v4 = vunpack.c.h.bf16 %v5661_v0  ;;  %v5659_v5 = vunpack.c.h.bf16 %v5662_v1  ;;  %v5660_v13 = vld [vmem:[%s382_s16 + $0x8] sm:$0xff]   ;;  %5866 = vmatpush3.bf16.msra.mxu1 %v5899_v61  ;;  %5722 = vmatpush3.bf16.msra.mxu0 %v5899_v61 }
  0x15   : > { %v5646_v11 = vunpack.c.l.bf16 %v5645_v6  ;;  %v5647_v12 = vunpack.c.h.bf16 %v5645_v6  ;;  %v5650_v16 = vunpack.c.l.bf16 %v5660_v13  ;;  %v5651_v17 = vunpack.c.h.bf16 %v5660_v13  ;;  %5731 = vmatprep.subr.bf16.mxu1 %v6150_v62  ;;  %5743 = vmatprep.subr.bf16.mxu0 %v6156_v63 }
  0x16   : > { %v434_v7 = vsel %vm421_vm0, %v5654_v2, 0.0  ;;  %v440_v8 = vsel %vm421_vm0, %v5658_v3, 0.0  ;;  %v437_v9 = vsel %vm421_vm0, %v5655_v4, 0.0  ;;  %v443_v10 = vsel %vm421_vm0, %v5659_v5, 0.0 }
  0x17   : > { %435 = vadd.xlane.f32.xlu0 %v434_v7  ;;  %441 = vadd.xlane.f32.xlu1 %v440_v8  ;;  %v422_v14 = vsel %vm421_vm0, %v5646_v11, 0.0  ;;  %v425_v15 = vsel %vm421_vm0, %v5647_v12, 0.0  ;;  %v428_v18 = vsel %vm421_vm0, %v5650_v16, 0.0  ;;  %v431_v19 = vsel %vm421_vm0, %v5651_v17, 0.0 }
  0x1b   : > { %438 = vadd.xlane.f32.xlu0 %v437_v9  ;;  %444 = vadd.xlane.f32.xlu1 %v443_v10 }
  0x1f   : > { %423 = vadd.xlane.f32.xlu0 %v422_v14  ;;  %426 = vadd.xlane.f32.xlu1 %v425_v15 }
  0x23   : > { %429 = vadd.xlane.f32.xlu0 %v428_v18  ;;  %432 = vadd.xlane.f32.xlu1 %v431_v19 }
  0xa4   : > { %v436_v20 = vpop.xlane.xlu0 %435  ;;  %v442_v21 = vpop.xlane.xlu1 %441 }
  0xa5   : > { %v451_v22 = vmul.f32 0.03125, %v436_v20  ;;  %v453_v23 = vmul.f32 0.03125, %v442_v21 }
  0xa7   : > { %v6101_v24 = vsub.f32 %v5654_v2, %v451_v22  ;;  %v6103_v25 = vsub.f32 %v5658_v3, %v453_v23 }
  0xa8   : > { %v439_v26 = vpop.xlane.xlu0 %438  ;;  %v445_v27 = vpop.xlane.xlu1 %444 }
  0xa9   : > { %v452_v28 = vmul.f32 0.03125, %v439_v26  ;;  %v454_v29 = vmul.f32 0.03125, %v445_v27  ;;  %v467_v30 = vmul.f32 %v6101_v24, %v6101_v24  ;;  %v469_v31 = vmul.f32 %v6103_v25, %v6103_v25  ;;  %v5504_v27 = vld [vmem:[%s7449_s1] ss:$0 sm:$0xff] }
  0xab   : > { %v6109_v32 = vsub.f32 %v5655_v4, %v452_v28  ;;  %v6111_v33 = vsub.f32 %v5659_v5, %v454_v29  ;;  %v483_v34 = vsel %vm421_vm0, %v467_v30, 0.0  ;;  %v489_v37 = vsel %vm421_vm0, %v469_v31, 0.0 }
  0xac   : > { %484 = vadd.xlane.f32.xlu0 %v483_v34  ;;  %v424_v35 = vpop.xlane.xlu0 %423  ;;  %v427_v36 = vpop.xlane.xlu1 %426 }
  0xad   : > { %v447_v38 = vmul.f32 0.03125, %v424_v35  ;;  %v468_v39 = vmul.f32 %v6109_v32, %v6109_v32  ;;  %v448_v40 = vmul.f32 0.03125, %v427_v36  ;;  %v470_v41 = vmul.f32 %v6111_v33, %v6111_v33 }
  0xaf   : > { %v6119_v42 = vsub.f32 %v5646_v11, %v447_v38  ;;  %v486_v43 = vsel %vm421_vm0, %v468_v39, 0.0  ;;  %v6122_v44 = vsub.f32 %v5647_v12, %v448_v40  ;;  %v492_v46 = vsel %vm421_vm0, %v470_v41, 0.0 }
  0xb0   : > { %487 = vadd.xlane.f32.xlu1 %v486_v43  ;;  %490 = vadd.xlane.f32.xlu0 %v489_v37  ;;  %v430_v45 = vpop.xlane.xlu0 %429  ;;  %v433_v47 = vpop.xlane.xlu1 %432 }
  0xb1   : > { %v449_v48 = vmul.f32 0.03125, %v430_v45  ;;  %v450_v49 = vmul.f32 0.03125, %v433_v47  ;;  %v463_v50 = vmul.f32 %v6119_v42, %v6119_v42  ;;  %v464_v51 = vmul.f32 %v6122_v44, %v6122_v44 }
  0xb3   : > { %v6129_v52 = vsub.f32 %v5650_v16, %v449_v48  ;;  %v6131_v53 = vsub.f32 %v5651_v17, %v450_v49  ;;  %v471_v54 = vsel %vm421_vm0, %v463_v50, 0.0  ;;  %v474_v55 = vsel %vm421_vm0, %v464_v51, 0.0 }
  0xb4   : > { %493 = vadd.xlane.f32.xlu1 %v492_v46  ;;  %472 = vadd.xlane.f32.xlu0 %v471_v54 }
  0xb5   : > { %v465_v56 = vmul.f32 %v6129_v52, %v6129_v52  ;;  %v466_v57 = vmul.f32 %v6131_v53, %v6131_v53 }
  0xb7   : > { %v477_v58 = vsel %vm421_vm0, %v465_v56, 0.0  ;;  %v480_v59 = vsel %vm421_vm0, %v466_v57, 0.0  ;;  %v5901_v56 = vld [vmem:[%s7451_s3 + $0x18] sm:$0xff]  }
  0xb8   : > { %475 = vadd.xlane.f32.xlu1 %v474_v55  ;;  %478 = vadd.xlane.f32.xlu0 %v477_v58 }
  0xbc   : > { %481 = vadd.xlane.f32.xlu1 %v480_v59 }
 0x139   : > { %v485_v0 = vpop.xlane.xlu0 %484 }
 0x13a   : > { %v499_v1 = vmul.f32 0.03125, %v485_v0 }
 0x13c   : > { %v507_v2 = vadd.f32 1e-05, %v499_v1 }
 0x13d   : > { %v488_v3 = vpop.xlane.xlu1 %487  ;;  %v491_v4 = vpop.xlane.xlu0 %490 }
 0x13e   : > { %5906 = vrsqrt.f32 %v507_v2  ;;  %v500_v5 = vmul.f32 0.03125, %v488_v3  ;;  %v501_v6 = vmul.f32 0.03125, %v491_v4 }
 0x140   : > { %v508_v7 = vadd.f32 1e-05, %v500_v5  ;;  %v509_v8 = vadd.f32 1e-05, %v501_v6 }
 0x141   : > { %v494_v9 = vpop.xlane.xlu1 %493  ;;  %v473_v10 = vpop.xlane.xlu0 %472 }
 0x142   : > { %5908 = vrsqrt.f32 %v508_v7  ;;  %v502_v11 = vmul.f32 0.03125, %v494_v9  ;;  %v495_v12 = vmul.f32 0.03125, %v473_v10 }
 0x143   : > { %5910 = vrsqrt.f32 %v509_v8 }
 0x144   : > { %v510_v13 = vadd.f32 1e-05, %v502_v11  ;;  %v503_v14 = vadd.f32 1e-05, %v495_v12 }
 0x145   : > { %v476_v15 = vpop.xlane.xlu1 %475  ;;  %v479_v16 = vpop.xlane.xlu0 %478 }
 0x146   : > { %5912 = vrsqrt.f32 %v510_v13  ;;  %v496_v17 = vmul.f32 0.03125, %v476_v15  ;;  %v497_v18 = vmul.f32 0.03125, %v479_v16  ;;  %v5518_v13 = vld [vmem:[%s7452_s4 + $0x1] ss:$0 sm:$0xff] }
 0x147   : > { %5914 = vrsqrt.f32 %v503_v14 }
 0x148   : > { %v5907_v19 = vpop.eup %5906  ;;  %v504_v20 = vadd.f32 1e-05, %v496_v17  ;;  %v505_v21 = vadd.f32 1e-05, %v497_v18 }
 0x149   : > { %v482_v22 = vpop.xlane.xlu1 %481  ;;  %v523_v23 = vmul.f32 %v5907_v19, %v6101_v24  ;;  %v5505_v24 = vld [vmem:[%s7450_s2] ss:$0 sm:$0xff] }
 0x14a   : > { %5916 = vrsqrt.f32 %v504_v20  ;;  %v498_v26 = vmul.f32 0.03125, %v482_v22 }
 0x14b   : > { %5918 = vrsqrt.f32 %v505_v21  ;;  %v537_v34 = vmul.f32 %v5504_v27, %v523_v23 }
 0x14c   : > { %v5909_v28 = vpop.eup %5908  ;;  %v506_v29 = vadd.f32 1e-05, %v498_v26 }
 0x14d   : > { %v5911_v30 = vpop.eup %5910  ;;  %v524_v31 = vmul.f32 %v5909_v28, %v6109_v32  ;;  %v551_v40 = vadd.f32 %v5505_v24, %v537_v34 }
 0x14e   : > { %v525_v35 = vmul.f32 %v5911_v30, %v6103_v25  ;;  %5920 = vrsqrt.f32 %v506_v29 }
 0x14f   : > { %v538_v36 = vmul.f32 %v5504_v27, %v524_v31 }
 0x150   : > { %v5913_v37 = vpop.eup %5912  ;;  %v539_v43 = vmul.f32 %v5504_v27, %v525_v35 }
 0x151   : > { %v5915_v38 = vpop.eup %5914  ;;  %v526_v39 = vmul.f32 %v5913_v37, %v6111_v33  ;;  %v552_v41 = vadd.f32 %v5505_v24, %v538_v36 }
 0x152   : > { %v519_v45 = vmul.f32 %v5915_v38, %v6119_v42  ;;  %v553_v25 = vadd.f32 %v5505_v24, %v539_v43 }
 0x153   : > { %v557_v46 = vpack.c.bf16 %v552_v41, %v551_v40  ;;  %v540_v32 = vmul.f32 %v5504_v27, %v526_v39 }
 0x154   : > { %v5917_v47 = vpop.eup %5916  ;;  %v533_v51 = vmul.f32 %v5504_v27, %v519_v45 }
 0x155   : > { %v5919_v48 = vpop.eup %5918  ;;  %5727 = vmatprep.mubr.msk.bf16.mxu1 %vm421_vm0, %v557_v46  ;;  %v554_v49 = vadd.f32 %v5505_v24, %v540_v32  ;;  %v520_v50 = vmul.f32 %v5917_v47, %v6122_v44 }
 0x156   : > { %v521_v54 = vmul.f32 %v5919_v48, %v6129_v52  ;;  %v547_v58 = vadd.f32 %v5505_v24, %v533_v51 }
 0x157   : > { %v558_v55 = vpack.c.bf16 %v554_v49, %v553_v25  ;;  %v534_v33 = vmul.f32 %v5504_v27, %v520_v50 }
 0x158   : > { %v5921_v42 = vpop.eup %5920  ;;  %v535_v60 = vmul.f32 %v5504_v27, %v521_v54 }
 0x159   : > { %v522_v57 = vmul.f32 %v5921_v42, %v6131_v53  ;;  %5728 = vmatmul.mubr.msk.bf16.vlgmr.msra.gmra.mrb[0].mxu1 %vm421_vm0, %v558_v55  ;;  %v548_v59 = vadd.f32 %v5505_v24, %v534_v33  ;;  %v5903_v53 = vld [vmem:[%s7451_s3 + $0x28] sm:$0xff]  }
 0x15a   : > { %5732 = vmatpush3.bf16.msra.mxu1 %v6150_v62  ;;  %v549_v52 = vadd.f32 %v5505_v24, %v535_v60  ;;  %v5506_v62 = vld [vmem:[%s7452_s4] ss:$0 sm:$0xff] }
 0x15b   : > { %v555_v44 = vpack.c.bf16 %v548_v59, %v547_v58  ;;  %5733 = vmatprep.subr.bf16.mxu1 %v5901_v56  ;;  %v536_v61 = vmul.f32 %v5504_v27, %v522_v57 }
 0x15d   : > { %5723 = vmatprep.mubr.msk.bf16.mxu0 %vm421_vm0, %v555_v44  ;;  %5735 = vmatprep.mubr.msk.bf16.mxu1 %vm421_vm0, %v555_v44  ;;  %v550_v0 = vadd.f32 %v5505_v24, %v536_v61  ;;  %v5530_v24 = vld [vmem:[%s7452_s4 + $0x2] ss:$0 sm:$0xff] }
 0x15e   : > { %5734 = vmatpush3.bf16.msra.mxu1 %v5901_v56 }
 0x15f   : > { %v556_v1 = vpack.c.bf16 %v550_v0, %v549_v52 }
 0x161   : > { %5724 = vmatmul.mubr.msk.bf16.vlgmr.msra.gmra.mrb[0].mxu0 %vm421_vm0, %v556_v1  ;;  %5736 = vmatmul.mubr.msk.bf16.vlgmr.msra.gmra.mrb[4].mxu1 %vm421_vm0, %v556_v1 }
 0x162   : > { %5739 = vmatprep.mubr.msk.bf16.mxu1 %vm421_vm0, %v557_v46  ;;  %5744 = vmatpush3.bf16.msra.mxu0 %v6156_v63 }
 0x163   : > { %5747 = vmatprep.mubr.msk.bf16.mxu0 %vm421_vm0, %v555_v44  ;;  %5745 = vmatprep.subr.bf16.mxu0 %v5903_v53 }
 0x166   : > { %5746 = vmatpush3.bf16.msra.mxu0 %v5903_v53  ;;  %v7458_v53 = vmov 0.0  }
 0x167   : > { %5755 = vmatprep.subr.bf16.mxu1 %v7458_v53  ;;  %5767 = vmatprep.subr.bf16.mxu0 %v7458_v53 }
 0x169   : > { %5740 = vmatmul.mubr.msk.bf16.gmra.mrb[8].mxu1 %vm421_vm0, %v558_v55  ;;  %5748 = vmatmul.mubr.msk.bf16.vlgmr.msra.gmra.mrb[4].mxu0 %vm421_vm0, %v556_v1 }
 0x16a   : > { %5751 = vmatprep.mubr.msk.bf16.mxu0 %vm421_vm0, %v557_v46  ;;  %5757 = vmatprep.mubr.msk.bf16.mxu1 %vm6012_vm1, %v7458_v53 }
 0x171   : > { %5752 = vmatmul.mubr.msk.bf16.gmra.mrb[8].mxu0 %vm421_vm0, %v558_v55 }
 0x172   : > { %5769 = vmatprep.mubr.msk.bf16.mxu0 %vm6012_vm1, %v7458_v53 }
 0x22c   : > { %v5729_v2 = vpop.f32.mrb[0].mxu1 }
 0x22d   : > { %v644_v3 = vpop.f32.mrb[1].mxu1  ;;  %v653_v63 = vadd.f32 %v5729_v2, %v5506_v62 }
 0x22e   : > { %v5730_v4 = vpop.f32.mrb[2].mxu1  ;;  %v645_v7 = vadd.f32 %v5506_v62, %v644_v3  ;;  %v897_v3 = vlaneseq }
 0x22f   : > { %v656_v5 = vadd.f32 %v5730_v4, %v5506_v62  ;;  %v647_v6 = vpop.f32.mrb[3].mxu1  ;;  %v7462_v4 = vmov 0  }
 0x230   : > { %v648_v8 = vadd.f32 %v5506_v62, %v647_v6  ;;  %v898_v6 = vshrl.u32 %v897_v3, 7 }
 0x231   : > { %v6196_v9 = vpack.c.bf16 %v656_v5, %v653_v63  ;;  %v6252_v63 = vpack.i.b16 %v7462_v4, %v7462_v4 }
 0x232   : > { %v6198_v10 = vpack.c.bf16 %v648_v8, %v645_v7 }
 0x234   : > { %v5725_v11 = vpop.f32.mrb[0].mxu0  ;;  %v5737_v12 = vpop.f32.mrb[4].mxu1 }
 0x235   : > { %v628_v14 = vpop.f32.mrb[1].mxu0  ;;  %v718_v15 = vpop.f32.mrb[5].mxu1  ;;  %v637_v18 = vadd.f32 %v5725_v11, %v5506_v62  ;;  %v727_v19 = vadd.f32 %v5737_v12, %v5518_v13  ;;  %v6015_v12 = vmov 1934713408  }
 0x236   : > { %v5726_v16 = vpop.f32.mrb[2].mxu0  ;;  %v5738_v17 = vpop.f32.mrb[6].mxu1  ;;  %v629_v26 = vadd.f32 %v5506_v62, %v628_v14  ;;  %v719_v27 = vadd.f32 %v5518_v13, %v718_v15 }
 0x237   : > { %v640_v20 = vadd.f32 %v5726_v16, %v5506_v62  ;;  %v730_v21 = vadd.f32 %v5738_v17, %v5518_v13  ;;  %v631_v22 = vpop.f32.mrb[3].mxu0  ;;  %v721_v23 = vpop.f32.mrb[7].mxu1 }
 0x238   : > { %v632_v28 = vadd.f32 %v5506_v62, %v631_v22  ;;  %v722_v29 = vadd.f32 %v5518_v13, %v721_v23  ;;  %v6013_v62 = vmov 1983009808  }
 0x239   : > { %v6203_v30 = vpack.c.bf16 %v640_v20, %v637_v18  ;;  %v6205_v31 = vpack.c.bf16 %v730_v21, %v727_v19  ;;  %v895_v2 = vunpack.c.l.s4 %v6013_v62 }
 0x23a   : > { %v6207_v34 = vpack.c.bf16 %v632_v28, %v629_v26  ;;  %v6209_v35 = vpack.c.bf16 %v722_v29, %v719_v27 }
 0x23b   : > { %v896_v5 = vunpack.c.0.s8 %v895_v2 }
 0x23c   : > { %v5741_v36 = vpop.f32.mrb[8].mxu1  ;;  %1709 = vrot.lane.b32.xlu0 %v6209_v35, %s6010_s23  ;;  %v5749_v37 = vpop.f32.mrb[4].mxu0  ;;  %847 = vrot.lane.b32.xlu1 %v6207_v34, %s6010_s23  ;;  %v859_v19 = vshrl.u32 %v6207_v34, 16  ;;  %v1721_v22 = vshrl.u32 %v6209_v35, 16 }
 0x23d   : > { %v817_v38 = vadd.f32 %v5749_v37, %v5530_v24  ;;  %v734_v39 = vpop.f32.mrb[9].mxu1  ;;  %v808_v40 = vpop.f32.mrb[5].mxu0  ;;  %v743_v45 = vadd.f32 %v5741_v36, %v5518_v13  ;;  %v6255_v14 = vsub.s32 %v896_v5, %v898_v6 }
 0x23e   : > { %v5742_v41 = vpop.f32.mrb[10].mxu1  ;;  %v5750_v43 = vpop.f32.mrb[6].mxu0  ;;  %v735_v25 = vadd.f32 %v5518_v13, %v734_v39  ;;  %v809_v49 = vadd.f32 %v5530_v24, %v808_v40 }
 0x23f   : > { %v746_v46 = vadd.f32 %v5742_v41, %v5518_v13  ;;  %v820_v32 = vadd.f32 %v5750_v43, %v5530_v24  ;;  %v737_v47 = vpop.f32.mrb[11].mxu1  ;;  %v811_v48 = vpop.f32.mrb[7].mxu0  ;;  %v1729_v41 = vshrl.u32 %v6205_v31, 16  ;;  %v881_v43 = vshrl.u32 %v6198_v10, 16 }
 0x240   : > { %v738_v50 = vadd.f32 %v5518_v13, %v737_v47  ;;  %v812_v51 = vadd.f32 %v5530_v24, %v811_v48  ;;  %1711 = vrot.lane.b32.xlu1 %v6205_v31, %s6010_s23  ;;  %v910_v13 = vunpack.c.l.s4 %v6015_v12  ;;  %v873_v47 = vshrl.u32 %v6203_v30, 16 }
 0x241   : > { %v6220_v54 = vpack.c.bf16 %v746_v46, %v743_v45  ;;  %v6222_v55 = vpack.c.bf16 %v820_v32, %v817_v38 }
 0x242   : > { %v6224_v33 = vpack.c.bf16 %v738_v50, %v735_v25  ;;  %v6226_v56 = vpack.c.bf16 %v812_v51, %v809_v49  ;;  %v911_v21 = vunpack.c.0.s8 %v910_v13 }
 0x243   : > { %7467 = vst [vmem:[#allocation2_spill] sm:$0xff] %v6222_v55  ;;  %v1745_v49 = vshrl.u32 %v6220_v54, 16 }
 0x244   : > { %1713 = vrot.lane.b32.xlu0 %v6224_v33, %s6010_s23  ;;  %v5753_v42 = vpop.f32.mrb[8].mxu0  ;;  %849 = vrot.lane.b32.xlu1 %v6203_v30, %s6010_s23  ;;  %v6266_v36 = vsub.s32 %v911_v21, %v898_v6  ;;  %v1737_v25 = vshrl.u32 %v6224_v33, 16 }
 0x245   : > { %v833_v57 = vadd.f32 %v5753_v42, %v5530_v24  ;;  %v824_v58 = vpop.f32.mrb[9].mxu0 }
 0x246   : > { %v825_v59 = vadd.f32 %v5530_v24, %v824_v58  ;;  %v5754_v60 = vpop.f32.mrb[10].mxu0 }
 0x247   : > { %v836_v44 = vadd.f32 %v5754_v60, %v5530_v24  ;;  %v827_v61 = vpop.f32.mrb[11].mxu0 }
 0x248   : > { %v828_v52 = vadd.f32 %v5530_v24, %v827_v61  ;;  %1715 = vrot.lane.b32.xlu0 %v6220_v54, %s6010_s23  ;;  %851 = vrot.lane.b32.xlu1 %v6198_v10, %s6010_s23 }
 0x249   : > { %v6236_v0 = vpack.c.bf16 %v836_v44, %v833_v57 }
 0x24a   : > { %v6238_v1 = vpack.c.bf16 %v828_v52, %v825_v59 }
 0x24b   : > { %7468 = vst [vmem:[#allocation3_spill] sm:$0xff] %v6236_v0 }
 0x24c   : > { %7469 = vst [vmem:[#allocation4_spill] sm:$0xff] %v6238_v1  ;;  %2565 = vrot.lane.b32.xlu0 %v6226_v56, %s6010_s23  ;;  %853 = vrot.lane.b32.xlu1 %v6196_v9, %s6010_s23 }
 0x2ae   : > { %v848_v7 = vpop.permute.xlu1 %847  ;;  %v1710_v8 = vpop.permute.xlu0 %1709 }
 0x2af   : > { %v857_v11 = vpack.i.b16 %v848_v7, %v6207_v34  ;;  %v1719_v15 = vpack.i.b16 %v1710_v8, %v6209_v35  ;;  %v860_v16 = vshrl.u32 %v848_v7, 16  ;;  %v1722_v18 = vshrl.u32 %v1710_v8, 16 }
 0x2b1   : > { %v893_v17 = vcombine.high %v857_v11, %v6252_v63  ;;  %v1749_v23 = vcombine.high %v1719_v15, %v6252_v63  ;;  %v861_v26 = vpack.i.b16 %v860_v16, %v859_v19  ;;  %v900_v27 = vrot.slane %v857_v11, %v6255_v14 }
 0x2b2   : > { %v1723_v28 = vpack.i.b16 %v1722_v18, %v1721_v22  ;;  %v1756_v29 = vrot.slane %v1719_v15, %v6255_v14  ;;  %v1712_v59 = vpop.permute.xlu1 %1711 }
 0x2b3   : > { %v907_v20 = vrot.slane %v893_v17, %v6255_v14  ;;  %v1763_v37 = vrot.slane %v1749_v23, %v6255_v14  ;;  %v908_v34 = vcombine.high %v900_v27, %v7462_v4  ;;  %v942_v38 = vcombine.high %v861_v26, %v6252_v63 }
 0x2b4   : > { %v1764_v39 = vcombine.high %v1756_v29, %v7462_v4  ;;  %v1798_v40 = vcombine.high %v1723_v28, %v6252_v63  ;;  %v949_v46 = vrot.slane %v861_v26, %v6255_v14  ;;  %v1805_v48 = vrot.slane %v1723_v28, %v6255_v14 }
 0x2b5   : > { %v923_v24 = vcombine.high %v907_v20, %v7462_v4  ;;  %v956_v32 = vrot.slane %v942_v38, %v6255_v14  ;;  %v1779_v51 = vcombine.high %v1763_v37, %v7462_v4  ;;  %v922_v42 = vrot.slane %v908_v34, %v6266_v36 }
 0x2b6   : > { %v930_v57 = vrot.slane %v907_v20, %v6266_v36  ;;  %v1771_v60 = vrot.slane %v1756_v29, %v6266_v36  ;;  %v1778_v44 = vrot.slane %v1764_v39, %v6266_v36  ;;  %v1812_v61 = vrot.slane %v1798_v40, %v6255_v14 }
 0x2b7   : > { %v937_v45 = vrot.slane %v923_v24, %v6266_v36  ;;  %v972_v58 = vcombine.high %v956_v32, %v7462_v4  ;;  %v957_v52 = vcombine.high %v949_v46, %v7462_v4  ;;  %v1786_v62 = vrot.slane %v1763_v37, %v6266_v36 }
 0x2b8   : > { %v915_v2 = vrot.slane %v900_v27, %v6266_v36  ;;  %v1813_v6 = vcombine.high %v1805_v48, %v7462_v4  ;;  %v1820_v7 = vrot.slane %v1805_v48, %v6266_v36  ;;  %v1727_v11 = vpack.i.b16 %v1712_v59, %v6205_v31 }
 0x2b9   : > { %v1301_v3 = vcombine.low %v930_v57, %v937_v45  ;;  %v5538_v5 = vcombine.high %v930_v57, %v937_v45  ;;  %v986_v8 = vrot.slane %v972_v58, %v6266_v36  ;;  %v1793_v12 = vrot.slane %v1779_v51, %v6266_v36  ;;  %v1714_v57 = vpop.permute.xlu0 %1713 }
 0x2ba   : > { %v1285_v13 = vcombine.low %v915_v2, %v922_v42  ;;  %v5537_v15 = vcombine.high %v915_v2, %v922_v42  ;;  %v1730_v16 = vshrl.u32 %v1712_v59, 16  ;;  %v1828_v17 = vcombine.high %v1812_v61, %v7462_v4 }
 0x2bb   : > { %v2141_v18 = vcombine.low %v1771_v60, %v1778_v44  ;;  %v971_v19 = vrot.slane %v957_v52, %v6266_v36  ;;  %v979_v20 = vrot.slane %v956_v32, %v6266_v36  ;;  %v6303_v21 = vrot.slane %v1812_v61, %v6266_v36 }
 0x2bc   : > { %v5553_v22 = vcombine.high %v1771_v60, %v1778_v44  ;;  %v1308_v23 = vrot.slane %v1301_v3, %v6255_v14  ;;  %v1316_v31 = vrot.slane %v5538_v5, %v6255_v14  ;;  %v964_v26 = vrot.slane %v949_v46, %v6266_v36 }
 0x2bd   : > { %v1350_v27 = vcombine.low %v979_v20, %v986_v8  ;;  %v5540_v28 = vcombine.high %v979_v20, %v986_v8  ;;  %v1847_v29 = vcombine.high %v1727_v11, %v6252_v63  ;;  %v1827_v24 = vrot.slane %v1813_v6, %v6266_v36 }
 0x2be   : > { %v1292_v37 = vrot.slane %v1285_v13, %v6255_v14  ;;  %v1300_v34 = vrot.slane %v5537_v15, %v6255_v14  ;;  %v1731_v38 = vpack.i.b16 %v1730_v16, %v1729_v41  ;;  %v6313_v39 = vrot.slane %v1828_v17, %v6266_v36 }
 0x2bf   : > { %v6316_v40 = vrot.slane %v2141_v18, %v6255_v14  ;;  %v1334_v45 = vcombine.low %v964_v26, %v971_v19  ;;  %v5539_v32 = vcombine.high %v964_v26, %v971_v19  ;;  %v2157_v46 = vcombine.low %v1786_v62, %v1793_v12  ;;  %v850_v18 = vpop.permute.xlu1 %849 }
 0x2c0   : > { %v5554_v48 = vcombine.high %v1786_v62, %v1793_v12  ;;  %v1325_v51 = vcombine.low %v1308_v23, %v1316_v31  ;;  %v1854_v42 = vrot.slane %v1727_v11, %v6255_v14  ;;  %v6320_v58 = vrot.slane %v5553_v22, %v6255_v14 }
 0x2c1   : > { %v1357_v59 = vrot.slane %v1350_v27, %v6255_v14  ;;  %v1365_v41 = vrot.slane %v5540_v28, %v6255_v14  ;;  %v1861_v60 = vrot.slane %v1847_v29, %v6255_v14  ;;  %v2190_v44 = vcombine.low %v1820_v7, %v1827_v24 }
 0x2c2   : > { %v5555_v61 = vcombine.high %v1820_v7, %v1827_v24  ;;  %v1317_v52 = vcombine.low %v1292_v37, %v1300_v34  ;;  %v1903_v2 = vrot.slane %v1731_v38, %v6255_v14  ;;  %v1341_v62 = vrot.slane %v1334_v45, %v6255_v14 }
 0x2c3   : > { %v1349_v3 = vrot.slane %v5539_v32, %v6255_v14  ;;  %v1896_v5 = vcombine.high %v1731_v38, %v6252_v63  ;;  %v1738_v6 = vshrl.u32 %v1714_v57, 16  ;;  %v6330_v8 = vrot.slane %v2157_v46, %v6255_v14 }
 0x2c4   : > { %v1332_v11 = vrot.slane %v1325_v51, %v6266_v36  ;;  %v1862_v12 = vcombine.high %v1854_v42, %v7462_v4  ;;  %v1735_v13 = vpack.i.b16 %v1714_v57, %v6224_v33  ;;  %v6336_v7 = vrot.slane %v5554_v48, %v6255_v14 }
 0x2c5   : > { %v1374_v16 = vcombine.low %v1357_v59, %v1365_v41  ;;  %v1877_v17 = vcombine.high %v1861_v60, %v7462_v4  ;;  %v6342_v19 = vrot.slane %v2190_v44, %v6255_v14  ;;  %v1324_v22 = vrot.slane %v1317_v52, %v6266_v36 }
 0x2c6   : > { %v1911_v23 = vcombine.high %v1903_v2, %v7462_v4  ;;  %v6349_v31 = vrot.slane %v5555_v61, %v6255_v14  ;;  %v1366_v26 = vcombine.low %v1341_v62, %v1349_v3  ;;  %v1910_v27 = vrot.slane %v1896_v5, %v6255_v14 }
 0x2c7   : > { %v1739_v28 = vpack.i.b16 %v1738_v6, %v1737_v25  ;;  %v6354_v29 = vcombine.low %v1324_v22, %v1332_v11  ;;  %v1876_v24 = vrot.slane %v1862_v12, %v6266_v36  ;;  %v1952_v37 = vrot.slane %v1735_v13, %v6255_v14 }
 0x2c8   : > { %v871_v34 = vpack.i.b16 %v850_v18, %v6203_v30  ;;  %v1381_v38 = vrot.slane %v1374_v16, %v6266_v36  ;;  %v1891_v45 = vrot.slane %v1877_v17, %v6266_v36  ;;  %v1945_v32 = vcombine.high %v1735_v13, %v6252_v63 }
 0x2c9   : > { %v874_v46 = vshrl.u32 %v850_v18, 16  ;;  %v1869_v48 = vrot.slane %v1854_v42, %v6266_v36  ;;  %v1884_v33 = vrot.slane %v1861_v60, %v6266_v36  ;;  %v1925_v25 = vrot.slane %v1911_v23, %v6266_v36 }
 0x2ca   : > { %v991_v51 = vcombine.high %v871_v34, %v6252_v63  ;;  %v1373_v57 = vrot.slane %v1366_v26, %v6266_v36  ;;  %v1918_v59 = vrot.slane %v1903_v2, %v6266_v36  ;;  %v1926_v41 = vcombine.high %v1910_v27, %v7462_v4 }
 0x2cb   : > { %v1994_v44 = vcombine.high %v1739_v28, %v6252_v63  ;;  %v2239_v61 = vcombine.low %v1869_v48, %v1876_v24  ;;  %v5557_v52 = vcombine.high %v1869_v48, %v1876_v24  ;;  %v1960_v62 = vcombine.high %v1952_v37, %v7462_v4  ;;  %v1716_v48 = vpop.permute.xlu0 %1715 }
 0x2cc   : > { %v998_v42 = vrot.slane %v871_v34, %v6255_v14  ;;  %v6372_v3 = vcombine.low %v1373_v57, %v1381_v38  ;;  %v2255_v60 = vcombine.low %v1884_v33, %v1891_v45  ;;  %v1959_v5 = vrot.slane %v1945_v32, %v6255_v14 }
 0x2cd   : > { %v875_v6 = vpack.i.b16 %v874_v46, %v873_v47  ;;  %v6378_v2 = vrot.slane %v1910_v27, %v6266_v36  ;;  %v5558_v11 = vcombine.high %v1884_v33, %v1891_v45  ;;  %v2288_v12 = vcombine.low %v1918_v59, %v1925_v25 }
 0x2ce   : > { %v1005_v13 = vrot.slane %v991_v51, %v6255_v14  ;;  %v6382_v16 = vrot.slane %v1926_v41, %v6266_v36  ;;  %v5559_v17 = vcombine.high %v1918_v59, %v1925_v25  ;;  %v2001_v18 = vrot.slane %v1739_v28, %v6255_v14 }
 0x2cf   : > { %v2008_v22 = vrot.slane %v1994_v44, %v6255_v14  ;;  %v6387_v23 = vrot.slane %v2239_v61, %v6255_v14  ;;  %v6390_v30 = vrot.slane %v5557_v52, %v6255_v14  ;;  %v1974_v47 = vrot.slane %v1960_v62, %v6266_v36 }
 0x2d0   : > { %v1006_v26 = vcombine.high %v998_v42, %v7462_v4  ;;  %v6395_v27 = vrot.slane %v2255_v60, %v6255_v14  ;;  %v1975_v24 = vcombine.high %v1959_v5, %v7462_v4  ;;  %v1040_v34 = vcombine.high %v875_v6, %v6252_v63 }
 0x2d1   : > { %v1047_v28 = vrot.slane %v875_v6, %v6255_v14  ;;  %v6401_v38 = vrot.slane %v5558_v11, %v6255_v14  ;;  %v6404_v45 = vrot.slane %v2288_v12, %v6255_v14  ;;  %v1967_v32 = vrot.slane %v1952_v37, %v6266_v36 }
 0x2d2   : > { %v1021_v46 = vcombine.high %v1005_v13, %v7462_v4  ;;  %v6409_v33 = vrot.slane %v5559_v17, %v6255_v14  ;;  %v2009_v25 = vcombine.high %v2001_v18, %v7462_v4  ;;  %v2024_v51 = vcombine.high %v2008_v22, %v7462_v4 }
 0x2d3   : > { %v1054_v57 = vrot.slane %v1040_v34, %v6255_v14  ;;  %v2337_v44 = vcombine.low %v1967_v32, %v1974_v47  ;;  %v1020_v37 = vrot.slane %v1006_v26, %v6266_v36  ;;  %v1989_v61 = vrot.slane %v1975_v24, %v6266_v36 }
 0x2d4   : > { %v1055_v52 = vcombine.high %v1047_v28, %v7462_v4  ;;  %v1743_v60 = vpack.i.b16 %v1716_v48, %v6220_v54  ;;  %v1982_v6 = vrot.slane %v1959_v5, %v6266_v36  ;;  %v2016_v11 = vrot.slane %v2001_v18, %v6266_v36  ;;  %v2566_v54 = vpop.permute.xlu0 %2565 }
 0x2d5   : > { %v1070_v62 = vcombine.high %v1054_v57, %v7462_v4  ;;  %v1013_v12 = vrot.slane %v998_v42, %v6266_v36  ;;  %v1035_v17 = vrot.slane %v1021_v46, %v6266_v36  ;;  %v2023_v34 = vrot.slane %v2009_v25, %v6266_v36 }
 0x2d6   : > { %v6429_v26 = vrot.slane %v2008_v22, %v6266_v36  ;;  %v6432_v24 = vrot.slane %v2024_v51, %v6266_v36  ;;  %v5561_v53 = vcombine.high %v1967_v32, %v1974_v47  ;;  %v6435_v41 = vrot.slane %v2337_v44, %v6255_v14 }
 0x2d7   : > { %v1028_v5 = vrot.slane %v1005_v13, %v6266_v36  ;;  %v1383_v59 = vcombine.low %v1013_v12, %v1020_v37  ;;  %v1746_v18 = vshrl.u32 %v1716_v48, 16  ;;  %v2353_v20 = vcombine.low %v1982_v6, %v1989_v61 }
 0x2d8   : > { %v5562_v42 = vcombine.high %v1982_v6, %v1989_v61  ;;  %v1069_v46 = vrot.slane %v1055_v52, %v6266_v36  ;;  %v1084_v25 = vrot.slane %v1070_v62, %v6266_v36  ;;  %v5541_v15 = vcombine.high %v1013_v12, %v1020_v37 }
 0x2d9   : > { %v1399_v22 = vcombine.low %v1028_v5, %v1035_v17  ;;  %v5542_v35 = vcombine.high %v1028_v5, %v1035_v17  ;;  %v2050_v51 = vrot.slane %v1743_v60, %v6255_v14  ;;  %v6442_v47 = vrot.slane %v5561_v53, %v6255_v14  ;;  %v852_v5 = vpop.permute.xlu1 %851 }
 0x2da   : > { %v1062_v32 = vrot.slane %v1047_v28, %v6266_v36  ;;  %v1077_v13 = vrot.slane %v1054_v57, %v6266_v36  ;;  %v2043_v48 = vcombine.high %v1743_v60, %v6252_v63  ;;  %v2386_v44 = vcombine.low %v2016_v11, %v2023_v34 }
 0x2db   : > { %v5563_v61 = vcombine.high %v2016_v11, %v2023_v34  ;;  %v1390_v52 = vrot.slane %v1383_v59, %v6255_v14  ;;  %v1747_v37 = vpack.i.b16 %v1746_v18, %v1745_v49  ;;  %v1398_v53 = vrot.slane %v5541_v15, %v6255_v14 }
 0x2dc   : > { %v1432_v62 = vcombine.low %v1062_v32, %v1069_v46  ;;  %v5543_v6 = vcombine.high %v1062_v32, %v1069_v46  ;;  %v1448_v12 = vcombine.low %v1077_v13, %v1084_v25  ;;  %v5544_v17 = vcombine.high %v1077_v13, %v1084_v25 }
 0x2dd   : > { %v1406_v28 = vrot.slane %v1399_v22, %v6255_v14  ;;  %v1414_v57 = vrot.slane %v5542_v35, %v6255_v14  ;;  %v2058_v60 = vcombine.high %v2050_v51, %v7462_v4  ;;  %v6455_v11 = vrot.slane %v2353_v20, %v6255_v14 }
 0x2de   : > { %v6458_v59 = vrot.slane %v5562_v42, %v6255_v14  ;;  %v2057_v49 = vrot.slane %v2043_v48, %v6255_v14  ;;  %v2092_v34 = vcombine.high %v1747_v37, %v6252_v63  ;;  %v879_v35 = vpack.i.b16 %v852_v5, %v6198_v10 }
 0x2df   : > { %v882_v18 = vshrl.u32 %v852_v5, 16  ;;  %v1439_v46 = vrot.slane %v1432_v62, %v6255_v14  ;;  %v1447_v20 = vrot.slane %v5543_v6, %v6255_v14  ;;  %v1455_v42 = vrot.slane %v1448_v12, %v6255_v14 }
 0x2e0   : > { %v1463_v25 = vrot.slane %v5544_v17, %v6255_v14  ;;  %v6472_v22 = vrot.slane %v2386_v44, %v6255_v14  ;;  %v1415_v32 = vcombine.low %v1390_v52, %v1398_v53  ;;  %v1423_v13 = vcombine.low %v1406_v28, %v1414_v57 }
 0x2e1   : > { %v2072_v48 = vrot.slane %v2058_v60, %v6266_v36  ;;  %v2073_v15 = vcombine.high %v2057_v49, %v7462_v4  ;;  %v883_v5 = vpack.i.b16 %v882_v18, %v881_v43  ;;  %v1089_v62 = vcombine.high %v879_v35, %v6252_v63 }
 0x2e2   : > { %v1096_v6 = vrot.slane %v879_v35, %v6255_v14  ;;  %v6481_v12 = vrot.slane %v5563_v61, %v6255_v14  ;;  %v2065_v44 = vrot.slane %v2050_v51, %v6266_v36  ;;  %v2099_v52 = vrot.slane %v1747_v37, %v6255_v14 }
 0x2e3   : > { %v2106_v17 = vrot.slane %v2092_v34, %v6255_v14  ;;  %v1464_v53 = vcombine.low %v1439_v46, %v1447_v20  ;;  %v1472_v28 = vcombine.low %v1455_v42, %v1463_v25  ;;  %v1103_v57 = vrot.slane %v1089_v62, %v6255_v14 }
 0x2e4   : > { %v1138_v10 = vcombine.high %v883_v5, %v6252_v63  ;;  %v1422_v43 = vrot.slane %v1415_v32, %v6266_v36  ;;  %v1430_v60 = vrot.slane %v1423_v13, %v6266_v36  ;;  %v1145_v35 = vrot.slane %v883_v5, %v6255_v14 }
 0x2e5   : > { %v2575_v61 = vpack.i.b16 %v2566_v54, %v6226_v56  ;;  %v2080_v51 = vrot.slane %v2057_v49, %v6266_v36  ;;  %v2087_v37 = vrot.slane %v2073_v15, %v6266_v36  ;;  %v2435_v18 = vcombine.low %v2065_v44, %v2072_v48 }
 0x2e6   : > { %v1104_v34 = vcombine.high %v1096_v6, %v7462_v4  ;;  %v2107_v46 = vcombine.high %v2099_v52, %v7462_v4  ;;  %v2122_v20 = vcombine.high %v2106_v17, %v7462_v4  ;;  %v1119_v42 = vcombine.high %v1103_v57, %v7462_v4 }
 0x2e7   : > { %v2578_v25 = vshrl.u32 %v2566_v54, 16  ;;  %v1471_v32 = vrot.slane %v1464_v53, %v6266_v36  ;;  %v1479_v13 = vrot.slane %v1472_v28, %v6266_v36  ;;  %v6501_v5 = vrot.slane %v2099_v52, %v6266_v36 }
 0x2e8   : > { %v1152_v49 = vrot.slane %v1138_v10, %v6255_v14  ;;  %v6504_v15 = vcombine.low %v1422_v43, %v1430_v60  ;;  %v6507_v62 = vrot.slane %v2106_v17, %v6266_v36  ;;  %v1153_v50 = vcombine.high %v1145_v35, %v7462_v4 }
 0x2e9   : > { %v2605_v0 = vcombine.high %v2575_v61, %v6252_v63  ;;  %v6512_v54 = vrot.slane %v2435_v18, %v6255_v14  ;;  %v5565_v53 = vcombine.high %v2065_v44, %v2072_v48  ;;  %v2451_v1 = vcombine.low %v2080_v51, %v2087_v37 }
 0x2ea   : > { %7470 = vst [vmem:[#allocation5_spill] sm:$0xff] %v6504_v15  ;;  %v1118_v28 = vrot.slane %v1104_v34, %v6266_v36  ;;  %v2121_v52 = vrot.slane %v2107_v46, %v6266_v36  ;;  %v6517_v10 = vrot.slane %v2122_v20, %v6266_v36  ;;  %v1133_v43 = vrot.slane %v1119_v42, %v6266_v36 }
 0x2eb   : > { %7471 = vst [vmem:[#allocation6_spill] sm:$0xff] %v6512_v54  ;;  %v7472_v17 = vshrl.u32 %v6226_v56, 16  ;;  %v6522_v4 = vcombine.low %v1471_v32, %v1479_v13  ;;  %v5566_v55 = vcombine.high %v2080_v51, %v2087_v37  ;;  %v1111_v18 = vrot.slane %v1096_v6, %v6266_v36  ;;  %v854_v13 = vpop.permute.xlu1 %853 }
 0x2ec   : > { %v7474_v15 = vmov 0   ;;  %v1126_v44 = vrot.slane %v1103_v57, %v6266_v36  ;;  %v1167_v34 = vrot.slane %v1153_v50, %v6266_v36  ;;  %v2612_v46 = vrot.slane %v2575_v61, %v6255_v14 }
 0x2ed   : > { %v2579_v60 = vpack.i.b16 %v2578_v25, %v7472_v17  ;;  %7473 = vst [vmem:[#allocation7_spill] sm:$0xff] %v6522_v4  ;;  %v1168_v48 = vcombine.high %v1152_v49, %v7474_v15  ;;  %v2619_v20 = vrot.slane %v2605_v0, %v6255_v14  ;;  %v6531_v42 = vrot.slane %v5565_v53, %v6255_v14 }
 0x2ee   : > { %v6534_v56 = vrot.slane %v2451_v1, %v6255_v14  ;;  %v1160_v51 = vrot.slane %v1145_v35, %v6266_v36  ;;  %v1481_v37 = vcombine.low %v1111_v18, %v1118_v28  ;;  %v5545_v6 = vcombine.high %v1111_v18, %v1118_v28 }
 0x2ef   : > { %7475 = vst [vmem:[#allocation8_spill] sm:$0xff] %v6531_v42  ;;  %v1497_v25 = vcombine.low %v1126_v44, %v1133_v43  ;;  %v5546_v32 = vcombine.high %v1126_v44, %v1133_v43  ;;  %v2654_v57 = vcombine.high %v2579_v60, %v6252_v63  ;;  %v6539_v50 = vrot.slane %v5566_v55, %v6255_v14 }
 0x2f0   : > { %7476 = vst [vmem:[#allocation9_spill] sm:$0xff] %v6534_v56  ;;  %v2484_v0 = vcombine.low %v6501_v5, %v2121_v52  ;;  %v1182_v61 = vrot.slane %v1168_v48, %v6266_v36  ;;  %v2661_v53 = vrot.slane %v2579_v60, %v6255_v14  ;;  %v1530_v1 = vcombine.low %v1160_v51, %v1167_v34 }
 0x2f1   : > { %v5547_v17 = vcombine.high %v1160_v51, %v1167_v34  ;;  %v2620_v35 = vcombine.high %v2612_v46, %v7474_v15  ;;  %v2635_v28 = vcombine.high %v2619_v20, %v7474_v15  ;;  %v1175_v43 = vrot.slane %v1152_v49, %v6266_v36 }
 0x2f2   : > { %v1488_v18 = vrot.slane %v1481_v37, %v6255_v14  ;;  %v2668_v44 = vrot.slane %v2654_v57, %v6255_v14  ;;  %v887_v55 = vpack.i.b16 %v854_v13, %v6196_v9  ;;  %v1496_v4 = vrot.slane %v5545_v6, %v6255_v14 }
 0x2f3   : > { %v1504_v48 = vrot.slane %v1497_v25, %v6255_v14  ;;  %v1512_v60 = vrot.slane %v5546_v32, %v6255_v14  ;;  %v890_v54 = vshrl.u32 %v854_v13, 16  ;;  %v5567_v34 = vcombine.high %v6501_v5, %v2121_v52 }
 0x2f4   : > { %v1546_v51 = vcombine.low %v1175_v43, %v1182_v61  ;;  %v5548_v42 = vcombine.high %v1175_v43, %v1182_v61  ;;  %v2669_v56 = vcombine.high %v2661_v53, %v7474_v15  ;;  %v1537_v49 = vrot.slane %v1530_v1, %v6255_v14 }
 0x2f5   : > { %v1545_v37 = vrot.slane %v5547_v17, %v6255_v14  ;;  %v6558_v57 = vrot.slane %v2620_v35, %v6266_v36  ;;  %v2649_v6 = vrot.slane %v2635_v28, %v6266_v36  ;;  %v6564_v32 = vrot.slane %v2612_v46, %v6266_v36 }
 0x2f6   : > { %v2684_v5 = vcombine.high %v2668_v44, %v7474_v15  ;;  %v1187_v52 = vcombine.high %v887_v55, %v6252_v63  ;;  %v1513_v13 = vcombine.low %v1488_v18, %v1496_v4  ;;  %v1521_v61 = vcombine.low %v1504_v48, %v1512_v60 }
 0x2f7   : > { %v2642_v1 = vrot.slane %v2619_v20, %v6266_v36  ;;  %v7477_v17 = vshrl.u32 %v6196_v9, 16  ;;  %v6574_v43 = vrot.slane %v1546_v51, %v6255_v14  ;;  %v6577_v46 = vrot.slane %v5548_v42, %v6255_v14 }
 0x2f8   : > { %v6580_v25 = vrot.slane %v2669_v56, %v6266_v36  ;;  %v6583_v4 = vrot.slane %v2484_v0, %v6255_v14  ;;  %v1562_v18 = vcombine.low %v1537_v49, %v1545_v37  ;;  %v2997_v9 = vcombine.low %v6564_v32, %v6558_v57 }
 0x2f9   : > { %v891_v35 = vpack.i.b16 %v890_v54, %v7477_v17  ;;  %v3013_v54 = vcombine.low %v2642_v1, %v2649_v6  ;;  %v6588_v20 = vrot.slane %v5567_v34, %v6255_v14  ;;  %v6591_v48 = vrot.slane %v2661_v53, %v6266_v36 }
 0x2fa   : > { %v2698_v42 = vrot.slane %v2684_v5, %v6266_v36  ;;  %v1201_v60 = vrot.slane %v1187_v52, %v6255_v14  ;;  %v6596_v56 = vrot.slane %v1513_v13, %v6266_v36  ;;  %v6599_v0 = vrot.slane %v1521_v61, %v6266_v36 }
 0x2fb   : > { %v5570_v51 = vcombine.high %v2642_v1, %v2649_v6  ;;  %v1236_v49 = vcombine.high %v891_v35, %v6252_v63  ;;  %v2691_v37 = vrot.slane %v2668_v44, %v6266_v36  ;;  %v3046_v5 = vcombine.low %v6591_v48, %v6580_v25 }
 0x2fc   : > { %v6610_v52 = vrot.slane %v1562_v18, %v6266_v36  ;;  %v6613_v13 = vrot.slane %v2997_v9, %v6255_v14  ;;  %v6616_v6 = vrot.slane %v3013_v54, %v6255_v14  ;;  %v1194_v61 = vrot.slane %v887_v55, %v6255_v14 }
 0x2fd   : > { %v3062_v1 = vcombine.low %v2691_v37, %v2698_v42  ;;  %v1217_v44 = vcombine.high %v1201_v60, %v7474_v15  ;;  %v2181_v17 = vcombine.low %v6330_v8, %v6336_v7  ;;  %v7478_v53 = vcombine.low %v6303_v21, %v6313_v39 }
 0x2fe   : > { %v6627_v34 = vrot.slane %v5570_v51, %v6255_v14  ;;  %v1250_v9 = vrot.slane %v1236_v49, %v6255_v14  ;;  %v2173_v54 = vcombine.low %v6316_v40, %v6320_v58  ;;  %v7479_v55 = vcombine.high %v6303_v21, %v6313_v39 }
 0x2ff   : > { %v2213_v18 = vrot.slane %v7478_v53, %v6255_v14  ;;  %v6637_v8 = vrot.slane %v3046_v5, %v6255_v14  ;;  %v5571_v7 = vcombine.high %v6591_v48, %v6580_v25  ;;  %v5572_v53 = vcombine.high %v2691_v37, %v2698_v42 }
 0x300   : > { %v2221_v28 = vrot.slane %v7479_v55, %v6255_v14  ;;  %v2222_v51 = vcombine.low %v6342_v19, %v6349_v31  ;;  %v1202_v49 = vcombine.high %v1194_v61, %v7474_v15  ;;  %v6645_v40 = vrot.slane %v1194_v61, %v6266_v36 }
 0x301   : > { %v6648_v58 = vrot.slane %v1201_v60, %v6266_v36  ;;  %v1243_v21 = vrot.slane %v891_v35, %v6255_v14  ;;  %v6652_v39 = vrot.slane %v3062_v1, %v6255_v14  ;;  %v6655_v5 = vrot.slane %v1217_v44, %v6266_v36 }
 0x302   : > { %v2188_v42 = vrot.slane %v2181_v17, %v6266_v36  ;;  %v2230_v37 = vcombine.low %v2213_v18, %v2221_v28  ;;  %v1266_v19 = vcombine.high %v1250_v9, %v7474_v15  ;;  %v2180_v31 = vrot.slane %v2173_v54, %v6266_v36 }
 0x303   : > { %v2229_v61 = vrot.slane %v2222_v51, %v6266_v36  ;;  %v2271_v60 = vcombine.low %v6387_v23, %v6390_v30  ;;  %v2279_v1 = vcombine.low %v6395_v27, %v6401_v38  ;;  %v7480_v44 = vcombine.low %v6378_v2, %v6382_v16 }
 0x304   : > { %v2237_v35 = vrot.slane %v2230_v37, %v6266_v36  ;;  %v7481_v28 = vcombine.high %v6378_v2, %v6382_v16  ;;  %v6675_v54 = vrot.slane %v5572_v53, %v6255_v14  ;;  %v6678_v23 = vrot.slane %v1202_v49, %v6266_v36 }
 0x305   : > { %v2311_v17 = vrot.slane %v7480_v44, %v6255_v14  ;;  %v1251_v30 = vcombine.high %v1243_v21, %v7474_v15  ;;  %v2320_v27 = vcombine.low %v6404_v45, %v6409_v33  ;;  %v2189_v38 = vcombine.low %v2180_v31, %v2188_v42 }
 0x306   : > { %v2319_v18 = vrot.slane %v7481_v28, %v6255_v14  ;;  %v2238_v55 = vcombine.low %v2229_v61, %v2237_v35  ;;  %v2286_v51 = vrot.slane %v2279_v1, %v6266_v36  ;;  %v6685_v44 = vrot.slane %v1243_v21, %v6266_v36 }
 0x307   : > { %v1280_v2 = vrot.slane %v1266_v19, %v6266_v36  ;;  %v1595_v16 = vcombine.low %v6648_v58, %v6655_v5  ;;  %v2278_v53 = vrot.slane %v2271_v60, %v6266_v36  ;;  %v2327_v28 = vrot.slane %v2320_v27, %v6266_v36 }
 0x308   : > { %v2328_v37 = vcombine.low %v2311_v17, %v2319_v18  ;;  %v2535_v49 = vpack.i.b16 %v2238_v55, %v2189_v38  ;;  %v2377_v33 = vcombine.low %v6455_v11, %v6458_v59  ;;  %v2369_v21 = vcombine.low %v6435_v41, %v6442_v47 }
 0x309   : > { %v6695_v42 = vcombine.low %v2278_v53, %v2286_v51  ;;  %v7482_v19 = vcombine.low %v6429_v26, %v6432_v24  ;;  %v7483_v61 = vcombine.high %v6429_v26, %v6432_v24  ;;  %v2537_v17 = vshrl.u32 %v2238_v55, 16 }
 0x30a   : > { %v2335_v45 = vrot.slane %v2328_v37, %v6266_v36  ;;  %v3426_v35 = vsel %vm3421_vm2, %v2535_v49, 0  ;;  %v2418_v11 = vcombine.low %v6472_v22, %v6481_v12  ;;  %v1273_v59 = vrot.slane %v1250_v9, %v6266_v36 }
 0x30b   : > { %v2409_v31 = vrot.slane %v7482_v19, %v6255_v14  ;;  %v2417_v60 = vrot.slane %v7483_v61, %v6255_v14  ;;  %v1579_v41 = vcombine.low %v6645_v40, %v6678_v23  ;;  %v5549_v47 = vcombine.high %v6645_v40, %v6678_v23  ;;  %5756 = vmatpush3.bf16.xpose.msra.mxu1 %v3426_v35 }
 0x30c   : > { %v2336_v1 = vcombine.low %v2327_v28, %v2335_v45  ;;  %v5550_v26 = vcombine.high %v6648_v58, %v6655_v5  ;;  %v7484_v27 = vmov 0.0   ;;  %v2536_v55 = vshrl.u32 %v2189_v38, 16 }
 0x30d   : > { %v2426_v18 = vcombine.low %v2409_v31, %v2417_v60  ;;  %5761 = vmatprep.subr.bf16.mxu1 %v7484_v27  ;;  %v2384_v22 = vrot.slane %v2377_v33, %v6266_v36  ;;  %v1265_v12 = vrot.slane %v1251_v30, %v6266_v36  ;;  %v1644_v9 = vcombine.low %v1273_v59, %v1280_v2 }
 0x30e   : > { %v2541_v24 = vpack.i.b16 %v2336_v1, %v6695_v42  ;;  %v2425_v51 = vrot.slane %v2418_v11, %v6266_v36  ;;  %v6724_v40 = vrot.slane %v1595_v16, %v6255_v14  ;;  %v2538_v58 = vpack.i.b16 %v2537_v17, %v2536_v55  ;;  %v7488_v11 = vld [vmem:[#allocation8_spill] sm:$0xff] }
 0x30f   : > { %v2433_v37 = vrot.slane %v2426_v18, %v6266_v36  ;;  %v2376_v5 = vrot.slane %v2369_v21, %v6266_v36  ;;  %v5552_v53 = vcombine.high %v1273_v59, %v1280_v2  ;;  %v7485_v30 = vcombine.low %v6507_v62, %v6517_v10  ;;  %v7487_v2 = vld [vmem:[#allocation9_spill] sm:$0xff]  ;;  %v7491_v18 = vld [vmem:[#allocation7_spill] sm:$0xff] }
 0x310   : > { %v3520_v23 = vsel %vm3421_vm2, %v2541_v24, 0  ;;  %v7486_v28 = vcombine.high %v6507_v62, %v6517_v10  ;;  %v1679_v45 = vpack.i.b16 %v6372_v3, %v6354_v29  ;;  %v2475_v21 = vcombine.low %v7487_v2, %v6539_v50  ;;  %v7489_v50 = vld [vmem:[#allocation6_spill] sm:$0xff] }
 0x311   : > { %5768 = vmatpush3.bf16.xpose.msra.mxu0 %v3520_v23  ;;  %v6728_v38 = vcombine.low %v2425_v51, %v2433_v37  ;;  %v2507_v49 = vrot.slane %v7485_v30, %v6255_v14  ;;  %v6741_v33 = vcombine.low %v2376_v5, %v2384_v22  ;;  %v2516_v19 = vcombine.low %v6583_v4, %v6588_v20  ;;  %v7490_v20 = vld [vmem:[#allocation5_spill] sm:$0xff] }
 0x312   : > { %v2515_v16 = vrot.slane %v7486_v28, %v6255_v14  ;;  %5779 = vmatprep.subr.bf16.mxu0 %v7484_v27  ;;  %v1628_v31 = vcombine.low %v6685_v44, %v1265_v12  ;;  %v5551_v61 = vcombine.high %v6685_v44, %v1265_v12  ;;  %v1651_v62 = vrot.slane %v1644_v9, %v6255_v14 }
 0x313   : > { %5758 = vmatmul.mubr.msk.bf16.vlgmr.msra.gmra.mrb[12].mxu1 %vm3421_vm2, %v1679_v45  ;;  %v3473_v60 = vsel %vm3421_vm2, %v2538_v58, 0  ;;  %v2547_v35 = vpack.i.b16 %v6728_v38, %v6741_v33  ;;  %v2543_v17 = vshrl.u32 %v2336_v1, 16  ;;  %v2467_v59 = vcombine.low %v7489_v50, %v7488_v11 }
 0x314   : > { %v2524_v10 = vcombine.low %v2507_v49, %v2515_v16  ;;  %v1659_v4 = vrot.slane %v5552_v53, %v6255_v14  ;;  %5762 = vmatpush3.bf16.xpose.msra.mxu1 %v3473_v60  ;;  %v1685_v44 = vpack.i.b16 %v7491_v18, %v7490_v20  ;;  %5763 = vmatprep.mubr.msk.bf16.mxu1 %vm6012_vm1, %v7484_v27  ;;  %v1681_v24 = vshrl.u32 %v6372_v3, 16 }
 0x315   : > { %5773 = vmatprep.subr.bf16.mxu1 %v7484_v27  ;;  %v2542_v1 = vshrl.u32 %v6695_v42, 16  ;;  %v7492_v22 = vcombine.low %v6574_v43, %v6577_v46  ;;  %v2482_v9 = vrot.slane %v2475_v21, %v6266_v36  ;;  %v2523_v51 = vrot.slane %v2516_v19, %v6266_v36 }
 0x316   : > { %v2531_v55 = vrot.slane %v2524_v10, %v6266_v36  ;;  %v1610_v37 = vrot.slane %v5550_v26, %v6255_v14  ;;  %v1635_v23 = vrot.slane %v1628_v31, %v6255_v14  ;;  %v1643_v3 = vrot.slane %v5551_v61, %v6255_v14 }
 0x317   : > { %v1577_v12 = vrot.slane %v7492_v22, %v6266_v36  ;;  %v1680_v58 = vshrl.u32 %v6354_v29, 16  ;;  %v3614_v42 = vsel %vm3421_vm2, %v2547_v35, 0  ;;  %v2544_v5 = vpack.i.b16 %v2543_v17, %v2542_v1 }
 0x318   : > { %5770 = vmatmul.mubr.msk.bf16.vlgmr.msra.gmra.mrb[12].mxu0 %vm3421_vm2, %v1685_v44  ;;  %v2474_v43 = vrot.slane %v2467_v59, %v6266_v36  ;;  %v6778_v46 = vcombine.low %v2523_v51, %v2531_v55  ;;  %v3061_v26 = vrot.slane %v5571_v7, %v6255_v14  ;;  %v1586_v53 = vrot.slane %v1579_v41, %v6255_v14 }
 0x319   : > { %v1594_v30 = vrot.slane %v5549_v47, %v6255_v14  ;;  %5780 = vmatpush3.bf16.xpose.msra.mxu0 %v3614_v42  ;;  %5781 = vmatprep.mubr.msk.bf16.mxu0 %vm6012_vm1, %v7484_v27  ;;  %v1668_v29 = vcombine.low %v1651_v62, %v1659_v4  ;;  %v1682_v49 = vpack.i.b16 %v1681_v24, %v1680_v58  ;;  %v3567_v45 = vsel %vm3421_vm2, %v2544_v5, 0 }
 0x31a   : > { %v1578_v28 = vcombine.low %v6610_v52, %v1577_v12  ;;  %5791 = vmatprep.subr.bf16.mxu0 %v7484_v27  ;;  %v2483_v16 = vcombine.low %v2474_v43, %v2482_v9  ;;  %v7493_v25 = vcombine.high %v6564_v32, %v6558_v57  ;;  %v1619_v7 = vcombine.low %v6724_v40, %v1610_v37  ;;  %v6848_v43 = vld [vmem:[%s7455_s7] sm:$0xff] }
 0x31b   : > { %v1660_v41 = vcombine.low %v1635_v23, %v1643_v3  ;;  %v3086_v47 = vcombine.low %v6652_v39, %v6675_v54  ;;  %5764 = vmatmul.mubr.msk.bf16.vlgmr.msra.gmra.mrb[16].mxu1 %vm3421_vm2, %v1682_v49  ;;  %v1529_v52 = vcombine.low %v6596_v56, %v6599_v0  ;;  %v2549_v21 = vshrl.u32 %v6728_v38, 16 }
 0x31c   : > { %v3012_v48 = vrot.slane %v7493_v25, %v6255_v14  ;;  %v2553_v2 = vpack.i.b16 %v6778_v46, %v2483_v16  ;;  %v1611_v19 = vcombine.low %v1586_v53, %v1594_v30  ;;  %5774 = vmatpush3.bf16.xpose.msra.mxu1 %v3567_v45  ;;  %5775 = vmatprep.mubr.msk.bf16.mxu1 %vm6012_vm1, %v7484_v27  ;;  %v1687_v54 = vshrl.u32 %v7491_v18, 16  ;;  %v3799_v53 = vld [vmem:[%s7455_s7 + $0x8] sm:$0xff] }
 0x31d   : > { %v3037_v57 = vcombine.low %v6616_v6, %v6627_v34  ;;  %v3078_v32 = vcombine.low %v6637_v8, %v3061_v26  ;;  %v1691_v39 = vpack.i.b16 %v1578_v28, %v1529_v52  ;;  %5785 = vmatprep.subr.bf16.mxu1 %v7484_v27  ;;  %v2548_v56 = vshrl.u32 %v6741_v33, 16 }
 0x31e   : > { %v1675_v0 = vrot.slane %v1668_v29, %v6266_v36  ;;  %v3029_v40 = vcombine.low %v6613_v13, %v3012_v48  ;;  %v1626_v38 = vrot.slane %v1619_v7, %v6266_v36  ;;  %v3093_v31 = vrot.slane %v3086_v47, %v6266_v36  ;;  %v6856_v29 = vld [vmem:[%s7456_s8 + $0x10] sm:$0xff]  ;;  %v3821_v7 = vld [vmem:[%s7456_s8 + $0x18] sm:$0xff] }
 0x31f   : > { %v1667_v61 = vrot.slane %v1660_v41, %v6266_v36  ;;  %v3708_v34 = vsel %vm3421_vm2, %v2553_v2, 0  ;;  %v1686_v6 = vshrl.u32 %v7490_v20, 16  ;;  %v2550_v8 = vpack.i.b16 %v2549_v21, %v2548_v56  ;;  %v6863_v48 = vld [vmem:[%s7455_s7 + $0x10] sm:$0xff]  ;;  %v3818_v41 = vld [vmem:[%s7456_s8] sm:$0xff] }
 0x320   : > { %5782 = vmatmul.mubr.msk.bf16.vlgmr.msra.gmra.mrb[16].mxu0 %vm3421_vm2, %v1691_v39  ;;  %v3044_v33 = vrot.slane %v3037_v57, %v6266_v36  ;;  %v3085_v13 = vrot.slane %v3078_v32, %v6266_v36  ;;  %v1618_v62 = vrot.slane %v1611_v19, %v6266_v36  ;;  %v3036_v35 = vrot.slane %v3029_v40, %v6266_v36  ;;  %v3819_v19 = vld [vmem:[%s7456_s8 + $0x8] sm:$0xff] }
 0x321   : > { %5792 = vmatpush3.bf16.xpose.msra.mxu0 %v3708_v34  ;;  %5793 = vmatprep.mubr.msk.bf16.mxu0 %vm6012_vm1, %v7484_v27  ;;  %v1688_v10 = vpack.i.b16 %v1687_v54, %v1686_v6  ;;  %v1676_v60 = vcombine.low %v1667_v61, %v1675_v0  ;;  %v3661_v11 = vsel %vm3421_vm2, %v2550_v8, 0  ;;  %v2555_v59 = vshrl.u32 %v6778_v46, 16 }
 0x322   : > { %5803 = vmatprep.subr.bf16.mxu0 %v7484_v27  ;;  %v3094_v17 = vcombine.low %v3085_v13, %v3093_v31  ;;  %v1627_v50 = vcombine.low %v1618_v62, %v1626_v38  ;;  %v3045_v4 = vcombine.low %v3036_v35, %v3044_v33  ;;  %v1693_v18 = vshrl.u32 %v1578_v28, 16  ;;  %v3801_v13 = vld [vmem:[%s7455_s7 + $0x18] sm:$0xff] }
 0x323   : > { %5776 = vmatmul.mubr.msk.bf16.vlgmr.msra.gmra.mrb[20].mxu1 %vm3421_vm2, %v1688_v10  ;;  %v2554_v44 = vshrl.u32 %v2483_v16, 16  ;;  %v1692_v55 = vshrl.u32 %v1529_v52, 16  ;;  %v1699_v9 = vshrl.u32 %v1676_v60, 16  ;;  %v3823_v10 = vld [vmem:[%s7456_s8 + $0x28] sm:$0xff] }
 0x324   : > { %5786 = vmatpush3.bf16.xpose.msra.mxu1 %v3661_v11  ;;  %5787 = vmatprep.mubr.msk.bf16.mxu1 %vm6012_vm1, %v7484_v27  ;;  %v1697_v20 = vpack.i.b16 %v1676_v60, %v1627_v50  ;;  %v3391_v24 = vpack.i.b16 %v3094_v17, %v3045_v4  ;;  %v3394_v51 = vshrl.u32 %v3094_v17, 16  ;;  %v1698_v37 = vshrl.u32 %v1627_v50, 16  ;;  %v3822_v60 = vld [vmem:[%s7456_s8 + $0x20] sm:$0xff] }
 0x325   : > { %5797 = vmatprep.subr.bf16.mxu1 %v7484_v27  ;;  %v2556_v1 = vpack.i.b16 %v2555_v59, %v2554_v44  ;;  %v1694_v22 = vpack.i.b16 %v1693_v18, %v1692_v55  ;;  %v3393_v23 = vshrl.u32 %v3045_v4, 16 }
 0x326   : > { %v1700_v3 = vpack.i.b16 %v1699_v9, %v1698_v37 }
 0x327   : > { %v3755_v12 = vsel %vm3421_vm2, %v2556_v1, 0  ;;  %v3395_v58 = vpack.i.b16 %v3394_v51, %v3393_v23 }
 0x328   : > { %5794 = vmatmul.mubr.msk.bf16.vlgmr.msra.gmra.mrb[20].mxu0 %vm3421_vm2, %v1697_v20 }
 0x329   : > { %5804 = vmatpush3.bf16.msra.mxu0 %v3391_v24  ;;  %5805 = vmatprep.mubr.msk.bf16.mxu0 %vm6012_vm1, %v7484_v27 }
 0x32a   : > { %5815 = vmatprep.subr.bf16.mxu0 %v7484_v27 }
 0x32b   : > { %5788 = vmatmul.mubr.msk.bf16.vlgmr.msra.gmra.mrb[24].mxu1 %vm3421_vm2, %v1694_v22 }
 0x32c   : > { %5798 = vmatpush3.bf16.xpose.msra.mxu1 %v3755_v12  ;;  %5799 = vmatprep.mubr.msk.bf16.mxu1 %vm6012_vm1, %v7484_v27 }
 0x32d   : > { %5809 = vmatprep.subr.bf16.mxu1 %v7484_v27 }
 0x333   : > { %5800 = vmatmul.mubr.msk.bf16.vlgmr.msra.gmra.mrb[28].mxu1 %vm3421_vm2, %v1700_v3 }
 0x334   : > { %5810 = vmatpush3.bf16.msra.mxu1 %v3395_v58  ;;  %5811 = vmatprep.mubr.msk.bf16.mxu1 %vm6012_vm1, %v7484_v27 }
 0x335   : > { %5821 = vmatprep.subr.bf16.mxu1 %v7484_v27 }
 0x3e6   : > { %v3462_v42 = vpop.f32.mrb[12].mxu1 }
 0x3e7   : > { %v5759_v5 = vpop.f32.mrb[13].mxu1  ;;  %v3802_v49 = vadd.f32 %v6848_v43, %v3462_v42  ;;  %v3825_v42 = vld [vmem:[%s7456_s8 + $0x38] sm:$0xff] }
 0x3e8   : > { %v3465_v46 = vpop.f32.mrb[14].mxu1 }
 0x3e9   : > { %v5760_v26 = vpop.f32.mrb[15].mxu1  ;;  %v3803_v47 = vadd.f32 %v3799_v53, %v3465_v46  ;;  %v6882_v56 = vadd.f32 %v3818_v41, %v3802_v49 }
 0x3eb   : > { %v3556_v30 = vpop.f32.mrb[12].mxu0  ;;  %v6886_v31 = vadd.f32 %v3819_v19, %v3803_v47  ;;  %v3842_v8 = vsel %vm3421_vm2, %v6882_v56, -inf }
 0x3ec   : > { %v3806_v28 = vadd.f32 %v6848_v43, %v3556_v30  ;;  %v5771_v16 = vpop.f32.mrb[13].mxu0 }
 0x3ed   : > { %v3559_v25 = vpop.f32.mrb[14].mxu0  ;;  %v3845_v11 = vsel %vm3421_vm2, %v6886_v31, -inf }
 0x3ee   : > { %v3807_v45 = vadd.f32 %v3799_v53, %v3559_v25  ;;  %v5772_v52 = vpop.f32.mrb[15].mxu0  ;;  %v6872_v2 = vadd.f32 %v6856_v29, %v3806_v28  ;;  %v3509_v21 = vpop.f32.mrb[16].mxu1 }
 0x3ef   : > { %v3804_v57 = vadd.f32 %v6863_v48, %v3509_v21  ;;  %v5765_v32 = vpop.f32.mrb[17].mxu1 }
 0x3f0   : > { %v3854_v39 = vsel %vm3421_vm2, %v6872_v2, -inf  ;;  %v6880_v54 = vadd.f32 %v3821_v7, %v3807_v45  ;;  %v3512_v0 = vpop.f32.mrb[18].mxu1 }
 0x3f1   : > { %3855 = vmax.xlane.f32.xlu0 %v3854_v39  ;;  %v5766_v40 = vpop.f32.mrb[19].mxu1  ;;  %v6891_v33 = vadd.f32 %v3818_v41, %v3804_v57  ;;  %v3805_v59 = vadd.f32 %v3801_v13, %v3512_v0 }
 0x3f2   : > { %v3857_v38 = vsel %vm3421_vm2, %v6880_v54, -inf }
 0x3f3   : > { %3858 = vmax.xlane.f32.xlu1 %v3857_v38  ;;  %v3650_v61 = vpop.f32.mrb[16].mxu0  ;;  %v3848_v20 = vsel %vm3421_vm2, %v6891_v33, -inf  ;;  %v6917_v3 = vadd.f32 %v3819_v19, %v3805_v59 }
 0x3f4   : > { %v3810_v34 = vadd.f32 %v6848_v43, %v3650_v61  ;;  %v5783_v6 = vpop.f32.mrb[17].mxu0 }
 0x3f5   : > { %v3653_v62 = vpop.f32.mrb[18].mxu0  ;;  %3843 = vmax.xlane.f32.xlu0 %v3842_v8  ;;  %v3851_v16 = vsel %vm3421_vm2, %v6917_v3, -inf }
 0x3f6   : > { %v3811_v35 = vadd.f32 %v3799_v53, %v3653_v62  ;;  %v5784_v17 = vpop.f32.mrb[19].mxu0  ;;  %v3603_v50 = vpop.f32.mrb[20].mxu1  ;;  %v6908_v44 = vadd.f32 %v3822_v60, %v3810_v34 }
 0x3f7   : > { %3846 = vmax.xlane.f32.xlu1 %v3845_v11  ;;  %v5777_v4 = vpop.f32.mrb[21].mxu1  ;;  %v3808_v9 = vadd.f32 %v6863_v48, %v3603_v50 }
 0x3f8   : > { %v6906_v18 = vadd.f32 %v3823_v10, %v3811_v35  ;;  %v3606_v24 = vpop.f32.mrb[22].mxu1  ;;  %v3866_v37 = vsel %vm3421_vm2, %v6908_v44, -inf  ;;  %v7494_v35 = vld [vmem:[#allocation2_spill] sm:$0xff] }
 0x3f9   : > { %3849 = vmax.xlane.f32.xlu0 %v3848_v20  ;;  %v3809_v55 = vadd.f32 %v3801_v13, %v3606_v24  ;;  %v5778_v1 = vpop.f32.mrb[23].mxu1 }
 0x3fa   : > { %v3869_v22 = vsel %vm3421_vm2, %v6906_v18, -inf }
 0x3fb   : > { %v3744_v12 = vpop.f32.mrb[20].mxu0  ;;  %3870 = vmax.xlane.f32.xlu1 %v3869_v22  ;;  %v6915_v23 = vadd.f32 %v3821_v7, %v3809_v55  ;;  %v6930_v7 = vadd.f32 %v6856_v29, %v3808_v9 }
 0x3fc   : > { %v5795_v51 = vpop.f32.mrb[21].mxu0  ;;  %v3814_v49 = vadd.f32 %v6848_v43, %v3744_v12 }
 0x3fd   : > { %v3747_v58 = vpop.f32.mrb[22].mxu0  ;;  %3867 = vmax.xlane.f32.xlu0 %v3866_v37  ;;  %v3863_v26 = vsel %vm3421_vm2, %v6915_v23, -inf  ;;  %v3860_v21 = vsel %vm3421_vm2, %v6930_v7, -inf }
 0x3fe   : > { %v3815_v5 = vadd.f32 %v3799_v53, %v3747_v58  ;;  %v5796_v46 = vpop.f32.mrb[23].mxu0  ;;  %v3697_v30 = vpop.f32.mrb[24].mxu1  ;;  %v3824_v53 = vld [vmem:[%s7456_s8 + $0x30] sm:$0xff] }
 0x3ff   : > { %3864 = vmax.xlane.f32.xlu1 %v3863_v26  ;;  %v5789_v28 = vpop.f32.mrb[25].mxu1  ;;  %v3812_v52 = vadd.f32 %v6863_v48, %v3697_v30  ;;  %v6942_v29 = vadd.f32 %v3824_v53, %v3814_v49 }
 0x400   : > { %v6927_v25 = vadd.f32 %v3825_v42, %v3815_v5  ;;  %v3700_v41 = vpop.f32.mrb[26].mxu1 }
 0x401   : > { %3852 = vmax.xlane.f32.xlu0 %v3851_v16  ;;  %v3813_v47 = vadd.f32 %v3801_v13, %v3700_v41  ;;  %v5790_v45 = vpop.f32.mrb[27].mxu1  ;;  %v3878_v40 = vsel %vm3421_vm2, %v6942_v29, -inf  ;;  %v6949_v38 = vadd.f32 %v3822_v60, %v3812_v52 }
 0x402   : > { %v3881_v43 = vsel %vm3421_vm2, %v6927_v25, -inf }
 0x403   : > { %3882 = vmax.xlane.f32.xlu1 %v3881_v43  ;;  %v6940_v19 = vadd.f32 %v3823_v10, %v3813_v47  ;;  %v3872_v8 = vsel %vm3421_vm2, %v6949_v38, -inf }
 0x405   : > { %3861 = vmax.xlane.f32.xlu0 %v3860_v21  ;;  %v3875_v57 = vsel %vm3421_vm2, %v6940_v19, -inf }
 0x406   : > { %v3791_v32 = vpop.f32.mrb[28].mxu1 }
 0x407   : > { %3876 = vmax.xlane.f32.xlu1 %v3875_v57  ;;  %v3816_v39 = vadd.f32 %v6863_v48, %v3791_v32  ;;  %v5801_v0 = vpop.f32.mrb[29].mxu1 }
 0x408   : > { %v3794_v61 = vpop.f32.mrb[30].mxu1 }
 0x409   : > { %3879 = vmax.xlane.f32.xlu0 %v3878_v40  ;;  %v3817_v34 = vadd.f32 %v3801_v13, %v3794_v61  ;;  %v5802_v6 = vpop.f32.mrb[31].mxu1  ;;  %v6955_v10 = vadd.f32 %v3824_v53, %v3816_v39  ;;  %v7495_v13 = vld [vmem:[#allocation4_spill] sm:$0xff] }
 0x40b   : > { %v6953_v62 = vadd.f32 %v3825_v42, %v3817_v34  ;;  %v3884_v60 = vsel %vm3421_vm2, %v6955_v10, -inf }
 0x40d   : > { %3873 = vmax.xlane.f32.xlu0 %v3872_v8  ;;  %v3887_v48 = vsel %vm3421_vm2, %v6953_v62, -inf }
 0x40e   : > { %3888 = vmax.xlane.f32.xlu1 %v3887_v48 }
 0x411   : > { %3885 = vmax.xlane.f32.xlu0 %v3884_v60 }
 0x41f   : > { %2567 = vrot.lane.b32.xlu1 %v7494_v35, %s6010_s23 }
 0x427   : > { %2569 = vrot.lane.b32.xlu0 %v7495_v13, %s6010_s23 }
 0x47e   : > { %v3856_v17 = vpop.xlane.xlu0 %3855 }
 0x47f   : > { %v3894_v11 = vsub.f32 %v6872_v2, %v3856_v17 }
 0x480   : > { %v3859_v50 = vpop.xlane.xlu1 %3858 }
 0x481   : > { %v3914_v59 = vmul.f32 1.442695, %v3894_v11  ;;  %v3895_v4 = vsub.f32 %v6880_v54, %v3859_v50 }
 0x482   : > { %v3844_v20 = vpop.xlane.xlu0 %3843 }
 0x483   : > { %5922 = vpow2.f32 %v3914_v59  ;;  %v3890_v24 = vsub.f32 %v6882_v56, %v3844_v20  ;;  %v3916_v1 = vmul.f32 1.442695, %v3895_v4 }
 0x484   : > { %v3847_v55 = vpop.xlane.xlu1 %3846 }
 0x485   : > { %v3906_v22 = vmul.f32 1.442695, %v3890_v24  ;;  %v3891_v12 = vsub.f32 %v6886_v31, %v3847_v55 }
 0x486   : > { %v3850_v9 = vpop.xlane.xlu0 %3849 }
 0x487   : > { %5924 = vpow2.f32 %v3906_v22  ;;  %v3908_v37 = vmul.f32 1.442695, %v3891_v12  ;;  %v3892_v2 = vsub.f32 %v6891_v33, %v3850_v9 }
 0x488   : > { %v3871_v51 = vpop.xlane.xlu1 %3870  ;;  %5926 = vpow2.f32 %v3916_v1 }
 0x489   : > { %5928 = vpow2.f32 %v3908_v37  ;;  %v3910_v54 = vmul.f32 1.442695, %v3892_v2  ;;  %v3899_v45 = vsub.f32 %v6906_v18, %v3871_v51 }
 0x48a   : > { %v3868_v58 = vpop.xlane.xlu0 %3867 }
 0x48b   : > { %v3898_v5 = vsub.f32 %v6908_v44, %v3868_v58  ;;  %5930 = vpow2.f32 %v3910_v54  ;;  %v3924_v21 = vmul.f32 1.442695, %v3899_v45 }
 0x48c   : > { %v3865_v56 = vpop.xlane.xlu1 %3864 }
 0x48d   : > { %v6970_v42 = vpop.eup %5922  ;;  %v3922_v30 = vmul.f32 1.442695, %v3898_v5  ;;  %v3897_v49 = vsub.f32 %v6915_v23, %v3865_v56 }
 0x48e   : > { %v3853_v46 = vpop.xlane.xlu0 %3852  ;;  %v3950_v26 = vsel %vm3421_vm2, %v6970_v42, 0.0 }
 0x48f   : > { %3951 = vadd.xlane.f32.xlu0 %v3950_v26  ;;  %v3893_v33 = vsub.f32 %v6917_v3, %v3853_v46  ;;  %5932 = vpow2.f32 %v3922_v30  ;;  %v3920_v53 = vmul.f32 1.442695, %v3897_v49  ;;  %v7496_v46 = vld [vmem:[#allocation3_spill] sm:$0xff] }
 0x490   : > { %v3883_v57 = vpop.xlane.xlu1 %3882 }
 0x491   : > { %v6975_v31 = vpop.eup %5924  ;;  %v3912_v43 = vmul.f32 1.442695, %v3893_v33  ;;  %v3903_v30 = vsub.f32 %v6927_v25, %v3883_v57 }
 0x492   : > { %v3862_v28 = vpop.xlane.xlu0 %3861  ;;  %v3938_v16 = vsel %vm3421_vm2, %v6975_v31, 0.0  ;;  %v6981_v41 = vpop.eup %5926 }
 0x493   : > { %v3896_v44 = vsub.f32 %v6930_v7, %v3862_v28  ;;  %3939 = vadd.xlane.f32.xlu1 %v3938_v16  ;;  %v3953_v23 = vsel %vm3421_vm2, %v6981_v41, 0.0  ;;  %v6987_v3 = vpop.eup %5928  ;;  %v3932_v49 = vmul.f32 1.442695, %v3903_v30 }
 0x494   : > { %v3941_v7 = vsel %vm3421_vm2, %v6987_v3, 0.0  ;;  %v3877_v6 = vpop.xlane.xlu1 %3876 }
 0x495   : > { %v3918_v47 = vmul.f32 1.442695, %v3896_v44  ;;  %v6991_v32 = vpop.eup %5930  ;;  %v3901_v17 = vsub.f32 %v6940_v19, %v3877_v6 }
 0x496   : > { %v3880_v52 = vpop.xlane.xlu0 %3879  ;;  %v3944_v0 = vsel %vm3421_vm2, %v6991_v32, 0.0 }
 0x497   : > { %5934 = vpow2.f32 %v3918_v47  ;;  %3954 = vadd.xlane.f32.xlu1 %v3953_v23  ;;  %v3902_v18 = vsub.f32 %v6942_v29, %v3880_v52  ;;  %v3928_v4 = vmul.f32 1.442695, %v3901_v17 }
 0x498   : > { %5936 = vpow2.f32 %v3920_v53  ;;  %v2585_v53 = vshrl.u32 %v7494_v35, 16 }
 0x499   : > { %5938 = vpow2.f32 %v3912_v43  ;;  %v6996_v40 = vpop.eup %5932  ;;  %v3930_v61 = vmul.f32 1.442695, %v3902_v18 }
 0x49a   : > { %v3874_v39 = vpop.xlane.xlu0 %3873  ;;  %5940 = vpow2.f32 %v3924_v21  ;;  %v3962_v29 = vsel %vm3421_vm2, %v6996_v40, 0.0  ;;  %v2593_v21 = vshrl.u32 %v7495_v13, 16 }
 0x49b   : > { %3942 = vadd.xlane.f32.xlu1 %v3941_v7  ;;  %v3900_v34 = vsub.f32 %v6949_v38, %v3874_v39  ;;  %5942 = vpow2.f32 %v3930_v61  ;;  %v3889_v19 = vpop.xlane.xlu1 %3888 }
 0x49c   : > { %v3905_v1 = vsub.f32 %v6953_v62, %v3889_v19 }
 0x49d   : > { %v3926_v11 = vmul.f32 1.442695, %v3900_v34 }
 0x49e   : > { %v3886_v38 = vpop.xlane.xlu0 %3885  ;;  %v3936_v51 = vmul.f32 1.442695, %v3905_v1 }
 0x49f   : > { %3945 = vadd.xlane.f32.xlu1 %v3944_v0  ;;  %5944 = vpow2.f32 %v3926_v11  ;;  %v3904_v20 = vsub.f32 %v6955_v10, %v3886_v38  ;;  %v2568_v16 = vpop.permute.xlu1 %2567 }
 0x4a0   : > { %5946 = vpow2.f32 %v3928_v4  ;;  %v2586_v44 = vshrl.u32 %v2568_v16, 16  ;;  %v2583_v47 = vpack.i.b16 %v2568_v16, %v7494_v35 }
 0x4a1   : > { %v6999_v8 = vpop.eup %5934  ;;  %v3934_v22 = vmul.f32 1.442695, %v3904_v20 }
 0x4a2   : > { %v3956_v48 = vsel %vm3421_vm2, %v6999_v8, 0.0  ;;  %v7005_v60 = vpop.eup %5936  ;;  %v2587_v45 = vpack.i.b16 %v2586_v44, %v2585_v53  ;;  %v2570_v43 = vpop.permute.xlu0 %2569  ;;  %v2703_v23 = vcombine.high %v2583_v47, %v6252_v63  ;;  %v2710_v35 = vrot.slane %v2583_v47, %v6255_v14 }
 0x4a3   : > { %3957 = vadd.xlane.f32.xlu0 %v3956_v48  ;;  %3963 = vadd.xlane.f32.xlu1 %v3962_v29  ;;  %v7008_v50 = vpop.eup %5938  ;;  %v3959_v59 = vsel %vm3421_vm2, %v7005_v60, 0.0  ;;  %5948 = vpow2.f32 %v3934_v22  ;;  %v2594_v52 = vshrl.u32 %v2570_v43, 16  ;;  %v2591_v39 = vpack.i.b16 %v2570_v43, %v7495_v13 }
 0x4a4   : > { %v3947_v24 = vsel %vm3421_vm2, %v7008_v50, 0.0  ;;  %v7015_v55 = vpop.eup %5940  ;;  %5950 = vpow2.f32 %v3936_v51  ;;  %v2752_v25 = vcombine.high %v2587_v45, %v6252_v63  ;;  %v2717_v7 = vrot.slane %v2703_v23, %v6255_v14 }
 0x4a5   : > { %v3965_v12 = vsel %vm3421_vm2, %v7015_v55, 0.0  ;;  %v7020_v9 = vpop.eup %5942  ;;  %5952 = vpow2.f32 %v3932_v49  ;;  %v2595_v57 = vpack.i.b16 %v2594_v52, %v2593_v21  ;;  %v2759_v0 = vrot.slane %v2587_v45, %v6255_v14 }
 0x4a6   : > { %v3974_v10 = vsel %vm3421_vm2, %v7020_v9, 0.0  ;;  %v2766_v18 = vrot.slane %v2752_v25, %v6255_v14  ;;  %v2733_v34 = vcombine.high %v2717_v7, %v7474_v15  ;;  %v2801_v48 = vcombine.high %v2591_v39, %v6252_v63 }
 0x4a7   : > { %3960 = vadd.xlane.f32.xlu0 %v3959_v59  ;;  %3948 = vadd.xlane.f32.xlu1 %v3947_v24  ;;  %v2850_v61 = vcombine.high %v2595_v57, %v6252_v63  ;;  %v2767_v29 = vcombine.high %v2759_v0, %v7474_v15  ;;  %v2718_v17 = vcombine.high %v2710_v35, %v7474_v15 }
 0x4a8   : > { %v2782_v6 = vcombine.high %v2766_v18, %v7474_v15  ;;  %v2747_v13 = vrot.slane %v2733_v34, %v6266_v36  ;;  %v2808_v59 = vrot.slane %v2591_v39, %v6255_v14  ;;  %v2815_v4 = vrot.slane %v2801_v48, %v6255_v14 }
 0x4a9   : > { %v7024_v37 = vpop.eup %5944  ;;  %v2864_v11 = vrot.slane %v2850_v61, %v6255_v14  ;;  %v2857_v20 = vrot.slane %v2595_v57, %v6255_v14  ;;  %v2740_v24 = vrot.slane %v2717_v7, %v6266_v36  ;;  %v2781_v19 = vrot.slane %v2767_v29, %v6266_v36 }
 0x4aa   : > { %v3968_v2 = vsel %vm3421_vm2, %v7024_v37, 0.0  ;;  %v7028_v62 = vpop.eup %5946  ;;  %v2796_v38 = vrot.slane %v2782_v6, %v6266_v36  ;;  %v2789_v1 = vrot.slane %v2766_v18, %v6266_v36  ;;  %v2774_v51 = vrot.slane %v2759_v0, %v6266_v36 }
 0x4ab   : > { %3966 = vadd.xlane.f32.xlu1 %v3965_v12  ;;  %v3971_v58 = vsel %vm3421_vm2, %v7028_v62, 0.0  ;;  %v2732_v12 = vrot.slane %v2718_v17, %v6266_v36  ;;  %v2725_v30 = vrot.slane %v2710_v35, %v6266_v36  ;;  %v5574_v16 = vcombine.high %v2740_v24, %v2747_v13 }
 0x4ac   : > { %v5576_v49 = vcombine.high %v2789_v1, %v2796_v38  ;;  %v3144_v44 = vcombine.low %v2774_v51, %v2781_v19  ;;  %v5575_v53 = vcombine.high %v2774_v51, %v2781_v19  ;;  %v2823_v52 = vrot.slane %v2808_v59, %v6266_v36 }
 0x4ad   : > { %v7032_v54 = vpop.eup %5948  ;;  %v3095_v45 = vcombine.low %v2725_v30, %v2732_v12  ;;  %v5573_v43 = vcombine.high %v2725_v30, %v2732_v12  ;;  %v2887_v0 = vrot.slane %v2864_v11, %v6266_v36  ;;  %v3126_v35 = vrot.slane %v5574_v16, %v6255_v14 }
 0x4ae   : > { %v3980_v5 = vsel %vm3421_vm2, %v7032_v54, 0.0  ;;  %v7036_v56 = vpop.eup %5950  ;;  %v3175_v18 = vrot.slane %v5576_v49, %v6255_v14  ;;  %v3151_v61 = vrot.slane %v3144_v44, %v6255_v14  ;;  %v3159_v34 = vrot.slane %v5575_v53, %v6255_v14 }
 0x4af   : > { %3975 = vadd.xlane.f32.xlu1 %v3974_v10  ;;  %v3983_v26 = vsel %vm3421_vm2, %v7036_v56, 0.0  ;;  %v7043_v33 = vpop.eup %5952  ;;  %v2880_v10 = vcombine.high %v2864_v11, %v7474_v15  ;;  %v2838_v6 = vrot.slane %v2815_v4, %v6266_v36  ;;  %v2872_v29 = vrot.slane %v2857_v20, %v6266_v36 }
 0x4b0   : > { %v3977_v28 = vsel %vm3421_vm2, %v7043_v33, 0.0 }
 0x4b1   : > { %v2894_v23 = vrot.slane %v2880_v10, %v6266_v36 }
 0x4b3   : > { %3969 = vadd.xlane.f32.xlu1 %v3968_v2  ;;  %v3111_v2 = vcombine.low %v2740_v24, %v2747_v13  ;;  %v3258_v17 = vcombine.low %v2887_v0, %v2894_v23  ;;  %v5580_v13 = vcombine.high %v2887_v0, %v2894_v23 }
 0x4b5   : > { %v3118_v25 = vrot.slane %v3111_v2, %v6255_v14 }
 0x4b7   : > { %3972 = vadd.xlane.f32.xlu1 %v3971_v58  ;;  %v3160_v58 = vcombine.low %v2789_v1, %v2796_v38  ;;  %v3102_v38 = vrot.slane %v3095_v45, %v6255_v14 }
 0x4b9   : > { %v3167_v21 = vrot.slane %v3160_v58, %v6255_v14  ;;  %v3265_v58 = vrot.slane %v3258_v17, %v6255_v14 }
 0x4bb   : > { %3981 = vadd.xlane.f32.xlu1 %v3980_v5  ;;  %v2816_v5 = vcombine.high %v2808_v59, %v7474_v15  ;;  %v3110_v59 = vrot.slane %v5573_v43, %v6255_v14 }
 0x4bd   : > { %2571 = vrot.lane.b32.xlu0 %v7496_v46, %s6010_s23  ;;  %v2830_v57 = vrot.slane %v2816_v5, %v6266_v36  ;;  %v3176_v5 = vcombine.low %v3151_v61, %v3159_v34 }
 0x4bf   : > { %3984 = vadd.xlane.f32.xlu1 %v3983_v26  ;;  %v2831_v26 = vcombine.high %v2815_v4, %v7474_v15  ;;  %v3193_v12 = vcombine.low %v2823_v52, %v2830_v57  ;;  %v5577_v51 = vcombine.high %v2823_v52, %v2830_v57  ;;  %v3135_v4 = vcombine.low %v3118_v25, %v3126_v35 }
 0x4c0   : > { %v3183_v25 = vrot.slane %v3176_v5, %v6266_v36 }
 0x4c1   : > { %v2845_v7 = vrot.slane %v2831_v26, %v6266_v36  ;;  %v3127_v26 = vcombine.low %v3102_v38, %v3110_v59  ;;  %v3200_v53 = vrot.slane %v3193_v12, %v6255_v14  ;;  %v3142_v23 = vrot.slane %v3135_v4, %v6266_v36 }
 0x4c3   : > { %v3209_v11 = vcombine.low %v2838_v6, %v2845_v7  ;;  %v5578_v24 = vcombine.high %v2838_v6, %v2845_v7  ;;  %v3134_v57 = vrot.slane %v3127_v26, %v6266_v36 }
 0x4c5   : > { %v3216_v30 = vrot.slane %v3209_v11, %v6255_v14  ;;  %v3224_v49 = vrot.slane %v5578_v24, %v6255_v14 }
 0x4dc   : > { %3978 = vadd.xlane.f32.xlu0 %v3977_v28  ;;  %v2865_v28 = vcombine.high %v2857_v20, %v7474_v15  ;;  %v3273_v20 = vrot.slane %v5580_v13, %v6255_v14 }
 0x4de   : > { %v2879_v39 = vrot.slane %v2865_v28, %v6266_v36 }
 0x4e0   : > { %v3242_v19 = vcombine.low %v2872_v29, %v2879_v39  ;;  %v5579_v1 = vcombine.high %v2872_v29, %v2879_v39  ;;  %v3233_v39 = vcombine.low %v3216_v30, %v3224_v49  ;;  %v7111_v29 = vcombine.low %v3134_v57, %v3142_v23 }
 0x4e2   : > { %v3249_v28 = vrot.slane %v3242_v19, %v6255_v14  ;;  %v3257_v16 = vrot.slane %v5579_v1, %v6255_v14  ;;  %v3240_v11 = vrot.slane %v3233_v39, %v6266_v36  ;;  %v3401_v30 = vshrl.u32 %v7111_v29, 16 }
 0x4e4   : > { %v3274_v0 = vcombine.low %v3249_v28, %v3257_v16 }
 0x4e6   : > { %v3281_v24 = vrot.slane %v3274_v0, %v6266_v36 }
 0x51c   : > { %v3952_v10 = vpop.xlane.xlu0 %3951 }
 0x520   : > { %v3940_v22 = vpop.xlane.xlu1 %3939 }
 0x521   : > { %5954 = vrcp.f32 %v3940_v22  ;;  %v3184_v22 = vcombine.low %v3167_v21, %v3175_v18  ;;  %v3282_v21 = vcombine.low %v3265_v58, %v3273_v20 }
 0x523   : > { %v3191_v44 = vrot.slane %v3184_v22, %v6266_v36  ;;  %v3289_v17 = vrot.slane %v3282_v21, %v6266_v36 }
 0x524   : > { %v3955_v47 = vpop.xlane.xlu1 %3954 }
 0x525   : > { %v7107_v18 = vcombine.low %v3183_v25, %v3191_v44 }
 0x527   : > { %v3399_v59 = vpack.i.b16 %v7107_v18, %v7111_v29  ;;  %v3402_v44 = vshrl.u32 %v7107_v18, 16 }
 0x528   : > { %v3943_v48 = vpop.xlane.xlu1 %3942 }
 0x529   : > { %5956 = vrcp.f32 %v3943_v48 }
 0x52a   : > { %5958 = vrcp.f32 %v3955_v47  ;;  %v3208_v47 = vrot.slane %v5577_v51, %v6255_v14 }
 0x52b   : > { %5960 = vrcp.f32 %v3952_v10  ;;  %v5955_v52 = vpop.eup %5954  ;;  %v7124_v10 = vcombine.low %v3281_v24, %v3289_v17 }
 0x52c   : > { %v3946_v2 = vpop.xlane.xlu1 %3945  ;;  %v3987_v35 = vmul.f32 %v5955_v52, %v6975_v31  ;;  %v3225_v6 = vcombine.low %v3200_v53, %v3208_v47  ;;  %v2601_v31 = vshrl.u32 %v7496_v46, 16 }
 0x52d   : > { %5962 = vrcp.f32 %v3946_v2 }
 0x52e   : > { %v3232_v51 = vrot.slane %v3225_v6, %v6266_v36 }
 0x530   : > { %v3958_v45 = vpop.xlane.xlu0 %3957  ;;  %v3964_v43 = vpop.xlane.xlu1 %3963  ;;  %v7130_v20 = vcombine.low %v3232_v51, %v3240_v11 }
 0x531   : > { %5964 = vrcp.f32 %v3964_v43 }
 0x532   : > { %v3407_v16 = vpack.i.b16 %v7124_v10, %v7130_v20 }
 0x533   : > { %v5957_v7 = vpop.eup %5956 }
 0x534   : > { %v3989_v61 = vmul.f32 %v5957_v7, %v6987_v3  ;;  %v3961_v34 = vpop.xlane.xlu0 %3960  ;;  %v3949_v48 = vpop.xlane.xlu1 %3948 }
 0x535   : > { %5966 = vrcp.f32 %v3949_v48  ;;  %v5959_v38 = vpop.eup %5958 }
 0x536   : > { %v4018_v13 = vpack.c.bf16 %v3989_v61, %v3987_v35  ;;  %v5961_v19 = vpop.eup %5960  ;;  %v3997_v2 = vmul.f32 %v5959_v38, %v6981_v41 }
 0x537   : > { %v5963_v5 = vpop.eup %5962  ;;  %v3995_v26 = vmul.f32 %v5961_v19, %v6970_v42 }
 0x538   : > { %v2572_v3 = vpop.permute.xlu0 %2571  ;;  %5806 = vmatmul.mubr.msk.bf16.vlgmr.msra.gmra.mrb[24].mxu0 %vm3421_vm2, %v4018_v13  ;;  %v3967_v12 = vpop.xlane.xlu1 %3966  ;;  %v3991_v57 = vmul.f32 %v5963_v5, %v6991_v32 }
 0x539   : > { %v2599_v1 = vpack.i.b16 %v2572_v3, %v7496_v46  ;;  %v2602_v22 = vshrl.u32 %v2572_v3, 16  ;;  %5816 = vmatpush3.bf16.msra.mxu0 %v3399_v59  ;;  %5817 = vmatprep.mubr.msk.bf16.mxu0 %vm6012_vm1, %v7484_v27  ;;  %5968 = vrcp.f32 %v3967_v12  ;;  %v4020_v42 = vpack.c.bf16 %v3997_v2, %v3995_v26 }
 0x53a   : > { %5827 = vmatprep.subr.bf16.mxu0 %v7484_v27  ;;  %5970 = vrcp.f32 %v3961_v34 }
 0x53b   : > { %v2603_v4 = vpack.i.b16 %v2602_v22, %v2601_v31  ;;  %v2899_v58 = vcombine.high %v2599_v1, %v6252_v63  ;;  %v2906_v46 = vrot.slane %v2599_v1, %v6255_v14  ;;  %v5965_v49 = vpop.eup %5964  ;;  %5972 = vrcp.f32 %v3958_v45 }
 0x53c   : > { %v7141_v52 = vpop.xlane.xlu1 %3975  ;;  %v4003_v7 = vmul.f32 %v5965_v49, %v6996_v40 }
 0x53d   : > { %v2913_v28 = vrot.slane %v2899_v58, %v6255_v14  ;;  %v2914_v41 = vcombine.high %v2906_v46, %v7474_v15  ;;  %v2948_v53 = vcombine.high %v2603_v4, %v6252_v63  ;;  %v2955_v43 = vrot.slane %v2603_v4, %v6255_v14 }
 0x53e   : > { %v2921_v47 = vrot.slane %v2906_v46, %v6266_v36 }
 0x53f   : > { %v2928_v23 = vrot.slane %v2914_v41, %v6266_v36  ;;  %v2929_v25 = vcombine.high %v2913_v28, %v7474_v15  ;;  %v5967_v21 = vpop.eup %5966  ;;  %v2962_v18 = vrot.slane %v2948_v53, %v6255_v14  ;;  %v2963_v39 = vcombine.high %v2955_v43, %v7474_v15 }
 0x540   : > { %5818 = vmatmul.mubr.msk.bf16.vlgmr.msra.gmra.mrb[28].mxu0 %vm3421_vm2, %v4020_v42  ;;  %v2936_v0 = vrot.slane %v2913_v28, %v6266_v36  ;;  %v3993_v34 = vmul.f32 %v5967_v21, %v7008_v50  ;;  %v2970_v6 = vrot.slane %v2955_v43, %v6266_v36  ;;  %v3970_v48 = vpop.xlane.xlu1 %3969  ;;  %v3403_v28 = vpack.i.b16 %v3402_v44, %v3401_v30 }
 0x541   : > { %v2943_v45 = vrot.slane %v2929_v25, %v6266_v36  ;;  %v3291_v35 = vcombine.low %v2921_v47, %v2928_v23  ;;  %v5581_v61 = vcombine.high %v2921_v47, %v2928_v23  ;;  %5828 = vmatpush3.bf16.msra.mxu0 %v3407_v16  ;;  %v2977_v32 = vrot.slane %v2963_v39, %v6266_v36 }
 0x542   : > { %v2978_v40 = vcombine.high %v2962_v18, %v7474_v15  ;;  %5829 = vmatprep.mubr.msk.bf16.mxu0 %vm6012_vm1, %v7484_v27  ;;  %v2985_v29 = vrot.slane %v2962_v18, %v6266_v36  ;;  %5839 = vmatprep.subr.bf16.mxu0 %v7484_v27  ;;  %5974 = vrcp.f32 %v3970_v48  ;;  %v4019_v58 = vpack.c.bf16 %v3993_v34, %v3991_v57 }
 0x543   : > { %v3298_v17 = vrot.slane %v3291_v35, %v6255_v14  ;;  %v3307_v13 = vcombine.low %v2936_v0, %v2943_v45  ;;  %v5582_v38 = vcombine.high %v2936_v0, %v2943_v45  ;;  %v5969_v59 = vpop.eup %5968  ;;  %v3306_v11 = vrot.slane %v5581_v61, %v6255_v14 }
 0x544   : > { %v2992_v50 = vrot.slane %v2978_v40, %v6266_v36  ;;  %v3340_v24 = vcombine.low %v2970_v6, %v2977_v32  ;;  %v5583_v31 = vcombine.high %v2970_v6, %v2977_v32  ;;  %v4005_v1 = vmul.f32 %v5969_v59, %v7015_v55  ;;  %v3973_v4 = vpop.xlane.xlu1 %3972  ;;  %v5971_v5 = vpop.eup %5970  ;;  %5812 = vmatmul.mubr.msk.bf16.vlgmr.msra.gmra.mrb[32].mxu1 %vm3421_vm2, %v4019_v58 }
 0x545   : > { %v3314_v3 = vrot.slane %v3307_v13, %v6255_v14  ;;  %v3322_v19 = vrot.slane %v5582_v38, %v6255_v14  ;;  %5976 = vrcp.f32 %v3973_v4  ;;  %v5973_v16 = vpop.eup %5972  ;;  %v3323_v55 = vcombine.low %v3298_v17, %v3306_v11  ;;  %5822 = vmatpush3.bf16.msra.mxu1 %v3403_v28  ;;  %5823 = vmatprep.mubr.msk.bf16.mxu1 %vm6012_vm1, %v7484_v27 }
 0x546   : > { %v3347_v22 = vrot.slane %v3340_v24, %v6255_v14  ;;  %v3355_v12 = vrot.slane %v5583_v31, %v6255_v14  ;;  %v3356_v51 = vcombine.low %v2985_v29, %v2992_v50  ;;  %v5584_v2 = vcombine.high %v2985_v29, %v2992_v50  ;;  %5833 = vmatprep.subr.bf16.mxu1 %v7484_v27 }
 0x547   : > { %v4022_v46 = vpack.c.bf16 %v4005_v1, %v4003_v7  ;;  %v3331_v41 = vcombine.low %v3314_v3, %v3322_v19  ;;  %v4001_v42 = vmul.f32 %v5971_v5, %v7005_v60  ;;  %v3410_v44 = vshrl.u32 %v7124_v10, 16 }
 0x548   : > { %v3363_v26 = vrot.slane %v3356_v51, %v6255_v14  ;;  %v3371_v49 = vrot.slane %v5584_v2, %v6255_v14  ;;  %v3372_v53 = vcombine.low %v3347_v22, %v3355_v12  ;;  %v3982_v43 = vpop.xlane.xlu1 %3981  ;;  %v3999_v23 = vmul.f32 %v5973_v16, %v6999_v8 }
 0x549   : > { %5830 = vmatmul.mubr.msk.bf16.vlgmr.msra.gmra.mrb[32].mxu0 %vm3421_vm2, %v4022_v46  ;;  %v3338_v47 = vrot.slane %v3331_v41, %v6266_v36  ;;  %v3330_v25 = vrot.slane %v3323_v55, %v6266_v36  ;;  %5978 = vrcp.f32 %v3982_v43  ;;  %v3409_v60 = vshrl.u32 %v7130_v20, 16 }
 0x54a   : > { %v3380_v30 = vcombine.low %v3363_v26, %v3371_v49  ;;  %5841 = vmatprep.mubr.msk.bf16.mxu0 %vm6012_vm1, %v7484_v27  ;;  %v3379_v21 = vrot.slane %v3372_v53, %v6266_v36  ;;  %v4021_v39 = vpack.c.bf16 %v4001_v42, %v3999_v23 }
 0x54b   : > { %v3339_v0 = vcombine.low %v3330_v25, %v3338_v47  ;;  %v3411_v35 = vpack.i.b16 %v3410_v44, %v3409_v60 }
 0x54c   : > { %v3387_v57 = vrot.slane %v3380_v30, %v6266_v36  ;;  %v3985_v7 = vpop.xlane.xlu1 %3984  ;;  %v5975_v18 = vpop.eup %5974  ;;  %5824 = vmatmul.mubr.msk.bf16.vlgmr.msra.gmra.mrb[36].mxu1 %vm3421_vm2, %v4021_v39 }
 0x54d   : > { %5980 = vrcp.f32 %v3985_v7  ;;  %5834 = vmatpush3.bf16.msra.mxu1 %v3411_v35  ;;  %5835 = vmatprep.mubr.msk.bf16.mxu1 %vm6012_vm1, %v7484_v27  ;;  %v4007_v20 = vmul.f32 %v5975_v18, %v7024_v37  ;;  %v3417_v6 = vshrl.u32 %v3339_v0, 16 }
 0x54e   : > { %v3388_v45 = vcombine.low %v3379_v21, %v3387_v57  ;;  %5845 = vmatprep.subr.bf16.mxu1 %v7484_v27  ;;  %5982 = vrcp.f32 %v7141_v52 }
 0x54f   : > { %v5977_v61 = vpop.eup %5976 }
 0x550   : > { %v3415_v8 = vpack.i.b16 %v3388_v45, %v3339_v0  ;;  %v4009_v10 = vmul.f32 %v5977_v61, %v7028_v62  ;;  %v3418_v34 = vshrl.u32 %v3388_v45, 16 }
 0x552   : > { %5840 = vmatpush3.bf16.msra.mxu0 %v3415_v8  ;;  %v4023_v32 = vpack.c.bf16 %v4009_v10, %v4007_v20  ;;  %v3419_v40 = vpack.i.b16 %v3418_v34, %v3417_v6 }
 0x553   : > { %v5979_v48 = vpop.eup %5978 }
 0x554   : > { %5836 = vmatmul.mubr.msk.bf16.vlgmr.msra.gmra.mrb[40].mxu1 %vm3421_vm2, %v4023_v32  ;;  %v4015_v62 = vmul.f32 %v5979_v48, %v7032_v54 }
 0x555   : > { %5846 = vmatpush3.bf16.msra.mxu1 %v3419_v40  ;;  %5847 = vmatprep.mubr.msk.bf16.mxu1 %vm6012_vm1, %v7484_v27 }
 0x557   : > { %v5981_v29 = vpop.eup %5980 }
 0x558   : > { %v4017_v17 = vmul.f32 %v5981_v29, %v7036_v56  ;;  %v5983_v38 = vpop.eup %5982 }
 0x559   : > { %v4011_v50 = vmul.f32 %v5983_v38, %v7020_v9 }
 0x55a   : > { %v4025_v13 = vpack.c.bf16 %v4017_v17, %v4015_v62 }
 0x55c   : > { %5848 = vmatmul.mubr.msk.bf16.vlgmr.msra.gmra.mrb[44].mxu1 %vm3421_vm2, %v4025_v13 }
 0x569   : > { %v3979_v37 = vpop.xlane.xlu0 %3978 }
 0x56a   : > { %5984 = vrcp.f32 %v3979_v37 }
 0x574   : > { %v5985_v59 = vpop.eup %5984 }
 0x575   : > { %v4013_v11 = vmul.f32 %v5985_v59, %v7043_v33 }
 0x577   : > { %v4024_v56 = vpack.c.bf16 %v4013_v11, %v4011_v50 }
 0x579   : > { %5842 = vmatmul.mubr.msk.bf16.vlgmr.msra.gmra.mrb[36].mxu0 %vm3421_vm2, %v4024_v56 }
 0x60b   : > { %v4063_v24 = vpop.f32.mrb[24].mxu0 }
 0x60c   : > { %v5807_v27 = vpop.f32.mrb[25].mxu0 }
 0x60d   : > { %v4066_v31 = vpop.f32.mrb[26].mxu0 }
 0x60e   : > { %v4378_v54 = vpack.c.bf16 %v4066_v31, %v4063_v24  ;;  %v5808_v3 = vpop.f32.mrb[27].mxu0 }
 0x610   : > { %v4390_v28 = vshrl.u32 %v4378_v54, 16 }
 0x613   : > { %v4151_v19 = vpop.f32.mrb[28].mxu0 }
 0x614   : > { %v5819_v1 = vpop.f32.mrb[29].mxu0 }
 0x615   : > { %v4154_v22 = vpop.f32.mrb[30].mxu0 }
 0x616   : > { %v4380_v52 = vpack.c.bf16 %v4154_v22, %v4151_v19  ;;  %v5820_v12 = vpop.f32.mrb[31].mxu0 }
 0x617   : > { %v4107_v51 = vpop.f32.mrb[32].mxu1 }
 0x618   : > { %v5813_v4 = vpop.f32.mrb[33].mxu1  ;;  %v4398_v25 = vshrl.u32 %v4380_v52, 16 }
 0x619   : > { %v4110_v9 = vpop.f32.mrb[34].mxu1 }
 0x61a   : > { %v4379_v33 = vpack.c.bf16 %v4110_v9, %v4107_v51  ;;  %v5814_v5 = vpop.f32.mrb[35].mxu1 }
 0x61c   : > { %v4239_v2 = vpop.f32.mrb[32].mxu0  ;;  %v4388_v41 = vpack.i.b16 %v4379_v33, %v4378_v54  ;;  %v4391_v16 = vshrl.u32 %v4379_v33, 16 }
 0x61d   : > { %v5831_v58 = vpop.f32.mrb[33].mxu0 }
 0x61e   : > { %v4242_v46 = vpop.f32.mrb[34].mxu0  ;;  %v4392_v55 = vpack.i.b16 %v4391_v16, %v4390_v28  ;;  %v4418_v53 = vcombine.high %v4388_v41, %v6252_v63  ;;  %v4425_v43 = vrot.slane %v4388_v41, %v6255_v14 }
 0x61f   : > { %v7202_v26 = vpack.c.bf16 %v4242_v46, %v4239_v2  ;;  %v5832_v49 = vpop.f32.mrb[35].mxu0  ;;  %v4195_v42 = vpop.f32.mrb[36].mxu1 }
 0x620   : > { %v4432_v47 = vrot.slane %v4418_v53, %v6255_v14  ;;  %v4433_v30 = vcombine.high %v4425_v43, %v7474_v15  ;;  %v4467_v44 = vcombine.high %v4392_v55, %v6252_v63  ;;  %v5825_v23 = vpop.f32.mrb[37].mxu1  ;;  %v4474_v21 = vrot.slane %v4392_v55, %v6255_v14 }
 0x621   : > { %v4198_v57 = vpop.f32.mrb[38].mxu1  ;;  %v4440_v60 = vrot.slane %v4425_v43, %v6266_v36  ;;  %v4406_v31 = vshrl.u32 %v7202_v26, 16 }
 0x622   : > { %v4447_v7 = vrot.slane %v4433_v30, %v6266_v36  ;;  %v4448_v18 = vcombine.high %v4432_v47, %v7474_v15  ;;  %v4481_v39 = vrot.slane %v4467_v44, %v6255_v14  ;;  %v5826_v0 = vpop.f32.mrb[39].mxu1  ;;  %v4455_v45 = vrot.slane %v4432_v47, %v6266_v36 }
 0x623   : > { %v4482_v35 = vcombine.high %v4474_v21, %v7474_v15  ;;  %v4489_v61 = vrot.slane %v4474_v21, %v6266_v36  ;;  %v4381_v8 = vpack.c.bf16 %v4198_v57, %v4195_v42 }
 0x624   : > { %v4462_v10 = vrot.slane %v4448_v18, %v6266_v36  ;;  %v4497_v34 = vcombine.high %v4481_v39, %v7474_v15  ;;  %v7220_v20 = vrot.slane %v4481_v39, %v6266_v36  ;;  %v4810_v6 = vcombine.low %v4440_v60, %v4447_v7 }
 0x625   : > { %v4496_v32 = vrot.slane %v4482_v35, %v6266_v36  ;;  %v5601_v40 = vcombine.high %v4440_v60, %v4447_v7  ;;  %v4396_v48 = vpack.i.b16 %v4381_v8, %v4380_v52  ;;  %v4399_v29 = vshrl.u32 %v4381_v8, 16 }
 0x626   : > { %v7224_v17 = vrot.slane %v4497_v34, %v6266_v36  ;;  %v7227_v62 = vrot.slane %v4810_v6, %v6255_v14  ;;  %v4826_v13 = vcombine.low %v4455_v45, %v4462_v10  ;;  %v5602_v37 = vcombine.high %v4455_v45, %v4462_v10 }
 0x627   : > { %v7230_v38 = vrot.slane %v5601_v40, %v6255_v14  ;;  %v4859_v59 = vcombine.low %v4489_v61, %v4496_v32  ;;  %v5603_v50 = vcombine.high %v4489_v61, %v4496_v32  ;;  %v4400_v11 = vpack.i.b16 %v4399_v29, %v4398_v25  ;;  %v4283_v56 = vpop.f32.mrb[40].mxu1 }
 0x628   : > { %v7233_v24 = vrot.slane %v4826_v13, %v6255_v14  ;;  %v7236_v27 = vrot.slane %v5602_v37, %v6255_v14  ;;  %v5837_v54 = vpop.f32.mrb[41].mxu1  ;;  %v4875_v3 = vcombine.low %v7220_v20, %v7224_v17  ;;  %v5604_v19 = vcombine.high %v7220_v20, %v7224_v17 }
 0x629   : > { %v4516_v1 = vcombine.high %v4396_v48, %v6252_v63  ;;  %v4523_v22 = vrot.slane %v4396_v48, %v6255_v14  ;;  %v4286_v52 = vpop.f32.mrb[42].mxu1  ;;  %v7246_v12 = vrot.slane %v4859_v59, %v6255_v14  ;;  %v4565_v51 = vcombine.high %v4400_v11, %v6252_v63 }
 0x62a   : > { %v4572_v2 = vrot.slane %v4400_v11, %v6255_v14  ;;  %v4383_v4 = vpack.c.bf16 %v4286_v52, %v4283_v56  ;;  %v5838_v58 = vpop.f32.mrb[43].mxu1  ;;  %v7251_v9 = vrot.slane %v5603_v50, %v6255_v14  ;;  %v4842_v5 = vcombine.low %v7227_v62, %v7230_v38 }
 0x62b   : > { %v4530_v46 = vrot.slane %v4516_v1, %v6255_v14  ;;  %v4531_v33 = vcombine.high %v4523_v22, %v7474_v15  ;;  %v4538_v49 = vrot.slane %v4523_v22, %v6266_v36  ;;  %v4579_v28 = vrot.slane %v4565_v51, %v6255_v14 }
 0x62c   : > { %v4580_v41 = vcombine.high %v4572_v2, %v7474_v15  ;;  %v4404_v16 = vpack.i.b16 %v4383_v4, %v7202_v26  ;;  %v4587_v43 = vrot.slane %v4572_v2, %v6266_v36  ;;  %v4407_v42 = vshrl.u32 %v4383_v4, 16 }
 0x62d   : > { %v4545_v55 = vrot.slane %v4531_v33, %v6266_v36  ;;  %v4546_v53 = vcombine.high %v4530_v46, %v7474_v15  ;;  %v4553_v47 = vrot.slane %v4530_v46, %v6266_v36  ;;  %v4595_v44 = vcombine.high %v4579_v28, %v7474_v15 }
 0x62e   : > { %v4594_v30 = vrot.slane %v4580_v41, %v6266_v36  ;;  %v4614_v23 = vcombine.high %v4404_v16, %v6252_v63  ;;  %v4408_v26 = vpack.i.b16 %v4407_v42, %v4406_v31  ;;  %v4621_v0 = vrot.slane %v4404_v16, %v6255_v14 }
 0x62f   : > { %v4560_v25 = vrot.slane %v4546_v53, %v6266_v36  ;;  %v4908_v21 = vcombine.low %v4538_v49, %v4545_v55  ;;  %v5605_v57 = vcombine.high %v4538_v49, %v4545_v55  ;;  %v4371_v60 = vpop.f32.mrb[44].mxu1  ;;  %v7270_v7 = vrot.slane %v4595_v44, %v6266_v36 }
 0x630   : > { %v4957_v18 = vcombine.low %v4587_v43, %v4594_v30  ;;  %v5607_v39 = vcombine.high %v4587_v43, %v4594_v30  ;;  %v5849_v45 = vpop.f32.mrb[45].mxu1  ;;  %v4602_v35 = vrot.slane %v4579_v28, %v6266_v36  ;;  %v4850_v34 = vcombine.low %v7233_v24, %v7236_v27  ;;  %v5904_v43 = vld [vmem:[%s7453_s5] sm:$0xff]  }
 0x631   : > { %v4924_v61 = vcombine.low %v4553_v47, %v4560_v25  ;;  %v5606_v8 = vcombine.high %v4553_v47, %v4560_v25  ;;  %v4374_v10 = vpop.f32.mrb[46].mxu1  ;;  %v4915_v6 = vrot.slane %v4908_v21, %v6255_v14  ;;  %v4923_v32 = vrot.slane %v5605_v57, %v6255_v14  ;;  %5851 = vmatprep.subr.bf16.mxu0 %v5904_v43  ;;  %v5905_v57 = vld [vmem:[%s7453_s5 + $0x8] sm:$0xff]  }
 0x632   : > { %v7279_v40 = vrot.slane %v4957_v18, %v6255_v14  ;;  %v7282_v48 = vrot.slane %v5607_v39, %v6255_v14  ;;  %v5850_v29 = vpop.f32.mrb[47].mxu1  ;;  %v4973_v62 = vcombine.low %v4602_v35, %v7270_v7  ;;  %v5608_v13 = vcombine.high %v4602_v35, %v7270_v7  ;;  %5852 = vmatpush3.bf16.msra.mxu0 %v5904_v43 }
 0x633   : > { %v4628_v37 = vrot.slane %v4614_v23, %v6255_v14  ;;  %v4629_v38 = vcombine.high %v4621_v0, %v7474_v15  ;;  %v4931_v59 = vrot.slane %v4924_v61, %v6255_v14  ;;  %v4663_v50 = vcombine.high %v4408_v26, %v6252_v63  ;;  %5853 = vmatprep.subr.bf16.mxu0 %v5905_v57 }
 0x634   : > { %v4670_v11 = vrot.slane %v4408_v26, %v6255_v14  ;;  %v7291_v56 = vpack.c.bf16 %v4374_v10, %v4371_v60  ;;  %v4939_v24 = vrot.slane %v5606_v8, %v6255_v14  ;;  %v4636_v27 = vrot.slane %v4621_v0, %v6266_v36 }
 0x635   : > { %v4643_v31 = vrot.slane %v4629_v38, %v6266_v36  ;;  %v4644_v54 = vcombine.high %v4628_v37, %v7474_v15  ;;  %v4651_v1 = vrot.slane %v4628_v37, %v6266_v36  ;;  %v4677_v22 = vrot.slane %v4663_v50, %v6255_v14 }
 0x636   : > { %v4678_v52 = vcombine.high %v4670_v11, %v7474_v15  ;;  %v4849_v51 = vrot.slane %v4842_v5, %v6266_v36  ;;  %v4685_v4 = vrot.slane %v4670_v11, %v6266_v36  ;;  %v4857_v41 = vrot.slane %v4850_v34, %v6266_v36  ;;  %5854 = vmatpush3.bf16.msra.mxu0 %v5905_v57 }
 0x637   : > { %v4658_v2 = vrot.slane %v4644_v54, %v6266_v36  ;;  %v5006_v58 = vcombine.low %v4636_v27, %v4643_v31  ;;  %v5609_v46 = vcombine.high %v4636_v27, %v4643_v31  ;;  %v4693_v49 = vcombine.high %v4677_v22, %v7474_v15 }
 0x638   : > { %v4692_v33 = vrot.slane %v4678_v52, %v6266_v36  ;;  %v4700_v28 = vrot.slane %v4677_v22, %v6266_v36  ;;  %v4882_v5 = vrot.slane %v4875_v3, %v6255_v14  ;;  %v4890_v21 = vrot.slane %v5604_v19, %v6255_v14 }
 0x639   : > { %v5013_v16 = vrot.slane %v5006_v58, %v6255_v14  ;;  %v5022_v55 = vcombine.low %v4651_v1, %v4658_v2  ;;  %v5610_v53 = vcombine.high %v4651_v1, %v4658_v2  ;;  %v4707_v42 = vrot.slane %v4693_v49, %v6266_v36 }
 0x63a   : > { %v5021_v47 = vrot.slane %v5609_v46, %v6255_v14  ;;  %v5055_v30 = vcombine.low %v4685_v4, %v4692_v33  ;;  %v5611_v44 = vcombine.high %v4685_v4, %v4692_v33  ;;  %v4891_v3 = vcombine.low %v7246_v12, %v7251_v9 }
 0x63b   : > { %v5029_v23 = vrot.slane %v5022_v55, %v6255_v14  ;;  %v5037_v25 = vrot.slane %v5610_v53, %v6255_v14  ;;  %v5071_v60 = vcombine.low %v4700_v28, %v4707_v42  ;;  %v7329_v7 = vcombine.low %v4849_v51, %v4857_v41 }
 0x63c   : > { %v5062_v26 = vrot.slane %v5055_v30, %v6255_v14  ;;  %v5070_v18 = vrot.slane %v5611_v44, %v6255_v14  ;;  %v5612_v39 = vcombine.high %v4700_v28, %v4707_v42  ;;  %v4899_v0 = vcombine.low %v4882_v5, %v4890_v21 }
 0x63d   : > { %v4940_v20 = vcombine.low %v4915_v6, %v4923_v32  ;;  %v4948_v17 = vcombine.low %v4931_v59, %v4939_v24  ;;  %v4980_v19 = vrot.slane %v4973_v62, %v6255_v14  ;;  %v4988_v12 = vrot.slane %v5608_v13, %v6255_v14 }
 0x63e   : > { %v4989_v9 = vcombine.low %v7279_v40, %v7282_v48  ;;  %v4898_v45 = vrot.slane %v4891_v3, %v6266_v36  ;;  %v4906_v35 = vrot.slane %v4899_v0, %v6266_v36  ;;  %v5038_v61 = vcombine.low %v5013_v16, %v5021_v47 }
 0x63f   : > { %v5046_v8 = vcombine.low %v5029_v23, %v5037_v25  ;;  %v4947_v10 = vrot.slane %v4940_v20, %v6266_v36  ;;  %v4955_v34 = vrot.slane %v4948_v17, %v6266_v36  ;;  %v4997_v6 = vcombine.low %v4980_v19, %v4988_v12 }
 0x640   : > { %v5078_v32 = vrot.slane %v5071_v60, %v6255_v14  ;;  %v7341_v29 = vcombine.low %v4898_v45, %v4906_v35  ;;  %v5205_v62 = vshrl.u32 %v7329_v7, 16  ;;  %v5086_v48 = vrot.slane %v5612_v39, %v6255_v14 }
 0x641   : > { %v5053_v40 = vrot.slane %v5046_v8, %v6266_v36  ;;  %v7346_v13 = vcombine.low %v4947_v10, %v4955_v34  ;;  %v4996_v37 = vrot.slane %v4989_v9, %v6266_v36  ;;  %v5004_v38 = vrot.slane %v4997_v6, %v6266_v36 }
 0x642   : > { %v5087_v59 = vcombine.low %v5062_v26, %v5070_v18  ;;  %v5206_v50 = vshrl.u32 %v7341_v29, 16  ;;  %v5045_v11 = vrot.slane %v5038_v61, %v6266_v36  ;;  %v5095_v24 = vcombine.low %v5078_v32, %v5086_v48 }
 0x643   : > { %v5204_v27 = vpack.i.b16 %v7341_v29, %v7329_v7  ;;  %v7354_v31 = vcombine.low %v4996_v37, %v5004_v38  ;;  %v5211_v51 = vshrl.u32 %v7346_v13, 16  ;;  %v4415_v42 = vshrl.u32 %v7291_v56, 16 }
 0x644   : > { %v5207_v54 = vpack.i.b16 %v5206_v50, %v5205_v62  ;;  %v7356_v1 = vcombine.low %v5045_v11, %v5053_v40  ;;  %v5094_v22 = vrot.slane %v5087_v59, %v6266_v36  ;;  %v5102_v52 = vrot.slane %v5095_v24, %v6266_v36 }
 0x645   : > { %v5212_v2 = vshrl.u32 %v7354_v31, 16  ;;  %v5210_v4 = vpack.i.b16 %v7354_v31, %v7346_v13  ;;  %v5617_v13 = vld [vmem:[%s7454_s6] ss:$0 sm:$0xff] }
 0x646   : > { %5226 = vrot.lane.b32.xlu1 %v5207_v54, %s6016_s20  ;;  %v7365_v58 = vcombine.low %v5094_v22, %v5102_v52  ;;  %v5217_v28 = vshrl.u32 %v7356_v1, 16 }
 0x647   : > { %v5213_v33 = vpack.i.b16 %v5212_v2, %v5211_v51 }
 0x648   : > { %v5218_v41 = vshrl.u32 %v7365_v58, 16  ;;  %v5216_v55 = vpack.i.b16 %v7365_v58, %v7356_v1 }
 0x64a   : > { %5228 = vrot.lane.b32.xlu1 %v5213_v33, %s6016_s20  ;;  %v5219_v43 = vpack.i.b16 %v5218_v41, %v5217_v28 }
 0x64c   : > { %v4327_v46 = vpop.f32.mrb[36].mxu0  ;;  %5230 = vrot.lane.b32.xlu0 %v5219_v43, %s6016_s20 }
 0x64d   : > { %v5843_v49 = vpop.f32.mrb[37].mxu0 }
 0x64e   : > { %v4330_v16 = vpop.f32.mrb[38].mxu0 }
 0x64f   : > { %v4384_v53 = vpack.c.bf16 %v4330_v16, %v4327_v46  ;;  %v5844_v5 = vpop.f32.mrb[39].mxu0 }
 0x651   : > { %v4412_v47 = vpack.i.b16 %v7291_v56, %v4384_v53  ;;  %v4414_v30 = vshrl.u32 %v4384_v53, 16 }
 0x653   : > { %v4416_v44 = vpack.i.b16 %v4415_v42, %v4414_v30  ;;  %v4712_v23 = vcombine.high %v4412_v47, %v6252_v63  ;;  %v4719_v25 = vrot.slane %v4412_v47, %v6255_v14 }
 0x655   : > { %v4726_v21 = vrot.slane %v4712_v23, %v6255_v14  ;;  %v4727_v3 = vcombine.high %v4719_v25, %v7474_v15  ;;  %v4761_v57 = vcombine.high %v4416_v44, %v6252_v63  ;;  %v4768_v26 = vrot.slane %v4416_v44, %v6255_v14 }
 0x656   : > { %v4734_v60 = vrot.slane %v4719_v25, %v6266_v36 }
 0x657   : > { %v4741_v56 = vrot.slane %v4727_v3, %v6266_v36  ;;  %v4742_v18 = vcombine.high %v4726_v21, %v7474_v15  ;;  %v4775_v39 = vrot.slane %v4761_v57, %v6255_v14  ;;  %v4776_v0 = vcombine.high %v4768_v26, %v7474_v15 }
 0x658   : > { %v4749_v20 = vrot.slane %v4726_v21, %v6266_v36  ;;  %v4783_v63 = vrot.slane %v4768_v26, %v6266_v36 }
 0x659   : > { %v4756_v17 = vrot.slane %v4742_v18, %v6266_v36  ;;  %v4791_v19 = vcombine.high %v4775_v39, %v7474_v15  ;;  %v5104_v12 = vcombine.low %v4734_v60, %v4741_v56  ;;  %v4790_v9 = vrot.slane %v4776_v0, %v6266_v36 }
 0x65a   : > { %v4798_v45 = vrot.slane %v4775_v39, %v6266_v36  ;;  %v5613_v35 = vcombine.high %v4734_v60, %v4741_v56 }
 0x65b   : > { %v4805_v61 = vrot.slane %v4791_v19, %v6266_v36  ;;  %v5111_v8 = vrot.slane %v5104_v12, %v6255_v14  ;;  %v5120_v10 = vcombine.low %v4749_v20, %v4756_v17  ;;  %v5614_v34 = vcombine.high %v4749_v20, %v4756_v17 }
 0x65c   : > { %v5119_v6 = vrot.slane %v5613_v35, %v6255_v14  ;;  %v5153_v32 = vcombine.low %v4783_v63, %v4790_v9  ;;  %v5615_v62 = vcombine.high %v4783_v63, %v4790_v9 }
 0x65d   : > { %v5127_v15 = vrot.slane %v5120_v10, %v6255_v14  ;;  %v5135_v40 = vrot.slane %v5614_v34, %v6255_v14  ;;  %v5169_v48 = vcombine.low %v4798_v45, %v4805_v61  ;;  %v5616_v37 = vcombine.high %v4798_v45, %v4805_v61 }
 0x65e   : > { %v5160_v38 = vrot.slane %v5153_v32, %v6255_v14  ;;  %v5168_v59 = vrot.slane %v5615_v62, %v6255_v14  ;;  %v5136_v50 = vcombine.low %v5111_v8, %v5119_v6 }
 0x65f   : > { %v5144_v11 = vcombine.low %v5127_v15, %v5135_v40  ;;  %v5176_v24 = vrot.slane %v5169_v48, %v6255_v14  ;;  %v5184_v54 = vrot.slane %v5616_v37, %v6255_v14 }
 0x660   : > { %v5185_v22 = vcombine.low %v5160_v38, %v5168_v59  ;;  %v5143_v52 = vrot.slane %v5136_v50, %v6266_v36 }
 0x661   : > { %v5151_v51 = vrot.slane %v5144_v11, %v6266_v36  ;;  %v5193_v2 = vcombine.low %v5176_v24, %v5184_v54 }
 0x662   : > { %v5192_v33 = vrot.slane %v5185_v22, %v6266_v36 }
 0x663   : > { %v5152_v46 = vcombine.low %v5143_v52, %v5151_v51  ;;  %v5200_v49 = vrot.slane %v5193_v2, %v6266_v36 }
 0x665   : > { %v5201_v28 = vcombine.low %v5192_v33, %v5200_v49  ;;  %v5223_v41 = vshrl.u32 %v5152_v46, 16 }
 0x667   : > { %v5224_v16 = vshrl.u32 %v5201_v28, 16  ;;  %v5222_v53 = vpack.i.b16 %v5201_v28, %v5152_v46 }
 0x669   : > { %v5225_v5 = vpack.i.b16 %v5224_v16, %v5223_v41 }
 0x66b   : > { %5232 = vrot.lane.b32.xlu1 %v5225_v5, %s6016_s20 }
 0x6b8   : > { %v5227_v43 = vpop.permute.xlu1 %5226 }
 0x6b9   : > { %v5236_v14 = vsel %vm3421_vm2, %v5204_v27, %v5227_v43 }
 0x6ba   : > { %5855 = vmatprep.mubr.msk.bf16.mxu0 %vm421_vm0, %v5236_v14 }
 0x6bc   : > { %v5229_v42 = vpop.permute.xlu1 %5228 }
 0x6bd   : > { %v5239_v36 = vsel %vm3421_vm2, %v5210_v4, %v5229_v42 }
 0x6be   : > { %5856 = vmatmul.mubr.msk.bf16.vlgmr.msra.gmra.mrb[40].mxu0 %vm421_vm0, %v5239_v36  ;;  %v5231_v47 = vpop.permute.xlu0 %5230 }
 0x6bf   : > { %v5242_v30 = vsel %vm3421_vm2, %v5216_v55, %v5231_v47 }
 0x6c0   : > { %5859 = vmatprep.mubr.msk.bf16.mxu0 %vm421_vm0, %v5242_v30 }
 0x6dd   : > { %v5233_v7 = vpop.permute.xlu1 %5232 }
 0x6de   : > { %v5245_v29 = vsel %vm3421_vm2, %v5222_v53, %v5233_v7 }
 0x6df   : > { %5860 = vmatmul.mubr.msk.bf16.gmra.mrb[44].mxu0 %vm421_vm0, %v5245_v29 }
 0x791   : > { %v5857_v27 = vpop.f32.mrb[40].mxu0 }
 0x792   : > { %v5320_v31 = vadd.f32 %v5857_v27, %v5617_v13  ;;  %v5311_v4 = vpop.f32.mrb[41].mxu0 }
 0x793   : > { %v5312_v1 = vadd.f32 %v5617_v13, %v5311_v4  ;;  %v5858_v58 = vpop.f32.mrb[42].mxu0 }
 0x794   : > { %v5638_v55 = vpack.c.bf16 %v5320_v31, %v5320_v31  ;;  %v5323_v44 = vadd.f32 %v5858_v58, %v5617_v13  ;;  %v5314_v23 = vpop.f32.mrb[43].mxu0 }
 0x795   : > { %v5636_v25 = vpack.c.bf16 %v5312_v1, %v5312_v1  ;;  %v5315_v21 = vadd.f32 %v5617_v13, %v5314_v23 }
 0x796   : > { %5377 = vst.msk [vmem:[%s400_s26 + $0x8] sm:$0xf] %vm5374_vm3, %v5638_v55  ;;  %v5639_v3 = vpack.c.bf16 %v5323_v44, %v5323_v44 }
 0x797   : > { %5375 = vst.msk [vmem:[%s400_s26] sm:$0xf] %vm5374_vm3, %v5636_v25  ;;  %v5637_v57 = vpack.c.bf16 %v5315_v21, %v5315_v21 }
 0x798   : > { %5378 = vst.msk [vmem:[%s400_s26 + $0xc] sm:$0xf] %vm5374_vm3, %v5639_v3 }
 0x799   : > { %5376 = vst.msk [vmem:[%s400_s26 + $0x4] sm:$0xf] %vm5374_vm3, %v5637_v57 }
 0x7b2   : > { %v5861_v26 = vpop.f32.mrb[44].mxu0 }
 0x7b3   : > { %v5336_v60 = vadd.f32 %v5861_v26, %v5617_v13  ;;  %v5327_v56 = vpop.f32.mrb[45].mxu0 }
 0x7b4   : > { %v5328_v18 = vadd.f32 %v5617_v13, %v5327_v56  ;;  %v5862_v39 = vpop.f32.mrb[46].mxu0 }
 0x7b5   : > { %v5642_v0 = vpack.c.bf16 %v5336_v60, %v5336_v60  ;;  %v5339_v20 = vadd.f32 %v5862_v39, %v5617_v13  ;;  %v5330_v17 = vpop.f32.mrb[47].mxu0 }
 0x7b6   : > { %v5640_v19 = vpack.c.bf16 %v5328_v18, %v5328_v18  ;;  %v5331_v12 = vadd.f32 %v5617_v13, %v5330_v17 }
 0x7b7   : > { %5381 = vst.msk [vmem:[%s400_s26 + $0x18] sm:$0xf] %vm5374_vm3, %v5642_v0  ;;  %v5643_v63 = vpack.c.bf16 %v5339_v20, %v5339_v20 }
 0x7b8   : > { %5379 = vst.msk [vmem:[%s400_s26 + $0x10] sm:$0xf] %vm5374_vm3, %v5640_v19  ;;  %v5641_v9 = vpack.c.bf16 %v5331_v12, %v5331_v12 }
 0x7b9   : > { %5382 = vst.msk [vmem:[%s400_s26 + $0x1c] sm:$0xf] %vm5374_vm3, %v5643_v63 }
 0x7ba   : > { %5380 = vst.msk [vmem:[%s400_s26 + $0x14] sm:$0xf] %vm5374_vm3, %v5641_v9 }
 0x7bb PF: > { %s19_s11 = sadd.s32 1, %s6008_s11   ;;  %s7497_s30 = smov %s6004_s10 }
 0x7bc   : > { %p16_p5 = scmp.ge.s32.totalorder %s19_s11, 4   ;;  %s7498_s10 = smov %s7500_s12 }
 0x7be   :  { %18 = sbr.rel (!%p16_p5) target bundleno = 2 (0x2), region = 93 }

</bundles_post_ra>
